<compile_context>
chip_gen: v7x
topology: tpu7x:2x2x1
jax: 0.10.0
libtpu: 0.0.40
codegen_flags: <defaults>
</compile_context>

<pallas_src>
import functools

import jax
import jax.numpy as jnp
from jax.experimental import pallas as pl
from jax.experimental.pallas import tpu as pltpu


# ----------------------------------------------------------------------------
# Kernel 1: conv1 + all four LightConv branches, whole image per batch element.
# ----------------------------------------------------------------------------
def _branches_kernel(x_ref, wc1_ref, bc1_ref,
                     we1_ref, wdw1_ref, bdw1_ref,
                     we2_ref, wdw2_ref, bdw2_ref,
                     we3_ref, wdw3_ref, bdw3_ref,
                     we4_ref, wdw4_ref, bdw4_ref,
                     fins_ref, pooled_ref, pad_ref,
                     *, H, W, C, cdt):
    Ct = pad_ref.shape[-1]                    # 4*C
    Cin = x_ref.shape[-1]

    # Zero only the halo ring (the interior is fully rewritten every depth).
    # Not gated on program_id == 0: with a "parallel" batch axis each
    # TensorCore gets its own scratch instance and its first step need not be
    # global step 0, so per-step halo zeroing is the safe (and still cheap)
    # variant of the "zero once" optimization.
    pad_ref[0:1, :, :] = jnp.zeros((1, W + 2, Ct), jnp.float32)
    pad_ref[H + 1:H + 2, :, :] = jnp.zeros((1, W + 2, Ct), jnp.float32)
    pad_ref[:, 0:1, :] = jnp.zeros((H + 2, 1, Ct), jnp.float32)
    pad_ref[:, W + 1:W + 2, :] = jnp.zeros((H + 2, 1, Ct), jnp.float32)

    # conv1: 1x1 + folded BN + ReLU (x1 never touches HBM)
    x = x_ref[0].reshape(H * W, Cin).astype(cdt)
    h = jnp.dot(x, wc1_ref[...], preferred_element_type=jnp.float32)
    h = jnp.maximum(h + bc1_ref[...], 0.0)                    # (H*W, C) f32

    we_refs = (we1_ref, we2_ref, we3_ref, we4_ref)
    wdw_refs = (wdw1_ref, wdw2_ref, wdw3_ref, wdw4_ref)
    bdw_refs = (bdw1_ref, bdw2_ref, bdw3_ref, bdw4_ref)

    cur = h.astype(cdt)                       # input to this depth's 1x1 convs
    inv_hw = 1.0 / (H * W)
    for d in range(4):                        # static unroll over depth
        k = 4 - d                             # branches still active here
        width = k * C

        # 1x1 convs of the active branches -> pad-scratch interior.
        if d == 0:
            # all four entry 1x1s share x1: one wide (H*W,C)@(C,4C) matmul
            y1 = jnp.dot(cur, we1_ref[...], preferred_element_type=jnp.float32)
            pad_ref[1:H + 1, 1:W + 1, :width] = y1.reshape(H, W, width)
        else:
            # per-branch (H*W,C)@(C,C) matmuls (no zero-block FLOPs)
            for i in range(k):
                yi = jnp.dot(cur[:, i * C:(i + 1) * C], we_refs[d][i],
                             preferred_element_type=jnp.float32)
                pad_ref[1:H + 1, 1:W + 1, i * C:(i + 1) * C] = yi.reshape(H, W, C)

        # depthwise 3x3 (padding=1) + folded BN + ReLU; taps streamed straight
        # from the halo scratch, weights/bias hoisted out of the tap loop.
        w = wdw_refs[d][...]                                   # (9, width)
        b = bdw_refs[d][...]                                   # (1, width)
        acc = jnp.zeros((H, W, width), jnp.float32)
        for t in range(9):
            dy, dx = divmod(t, 3)
            acc = acc + pad_ref[dy:dy + H, dx:dx + W, :width] * w[t, :]
        y = jnp.maximum(acc + b, 0.0)                          # (H, W, width)

        # first C channels = the branch that finishes at this depth
        fin = y[:, :, :C]
        fins_ref[0, :, :, d * C:(d + 1) * C] = fin.astype(fins_ref.dtype)
        pooled_ref[0, d:d + 1, :] = (
            jnp.sum(jnp.sum(fin, axis=0), axis=0) * inv_hw).reshape(1, C)
        if k > 1:
            cur = y[:, :, C:].reshape(H * W, width - C).astype(cdt)


def fused_branches(x, prep):
    N, H, W, Cin = x.shape
    C = prep["C"]
    cdt = prep["cdt"]
    d1, d2, d3, d4 = prep["depths"]

    def wspec(a):
        if a.ndim == 2:
            return pl.BlockSpec(a.shape, lambda n: (0, 0))
        return pl.BlockSpec(a.shape, lambda n: (0, 0, 0))

    weights = [prep["wc1"], prep["bc1"], *d1, *d2, *d3, *d4]
    in_specs = ([pl.BlockSpec((1, H, W, Cin), lambda n: (n, 0, 0, 0))]
                + [wspec(w) for w in weights])

    kernel = functools.partial(_branches_kernel, H=H, W=W, C=C, cdt=cdt)
    # TODO(synk): for v7x (64 MiB VMEM) at large H*W, add an H-tile grid axis
    # with halo rows via overlapping in_specs and mark both axes "parallel".
    fins, pooled = pl.pallas_call(
        kernel,
        out_shape=(jax.ShapeDtypeStruct((N, H, W, 4 * C), cdt),
                   jax.ShapeDtypeStruct((N, 4, C), jnp.float32)),
        grid=(N,),
        in_specs=in_specs,
        out_specs=(pl.BlockSpec((1, H, W, 4 * C), lambda n: (n, 0, 0, 0)),
                   pl.BlockSpec((1, 4, C), lambda n: (n, 0, 0))),
        scratch_shapes=[pltpu.VMEM((H + 2, W + 2, 4 * C), jnp.float32)],
        compiler_params=pltpu.CompilerParams(
            dimension_semantics=("parallel",),
            vmem_limit_bytes=64 * 1024 * 1024),
    )(x, *weights)
    return fins, pooled


# ----------------------------------------------------------------------------
# Kernel 2: tail — in-kernel ChannelGate MLP, gated sum folded into a single
# K=4C conv3 matmul, fused downsample / residual, bias + ReLU.
# ----------------------------------------------------------------------------
def _tail_kernel(*refs, H, W, C, cdt, has_downsample):
    if has_downsample:
        (fins_ref, pooled_ref, x_ref, w1t_ref, b1_ref, w2t_ref, b2_ref,
         w3_ref, bias_ref, wds_ref, o_ref) = refs
    else:
        (fins_ref, pooled_ref, x_ref, w1t_ref, b1_ref, w2t_ref, b2_ref,
         w3_ref, bias_ref, o_ref) = refs
        wds_ref = None

    Cout = o_ref.shape[-1]
    Cin = x_ref.shape[-1]

    # ChannelGate MLP, computed transposed so each gate ends up as a (C, 1)
    # column it can sublane-broadcast against the conv3 weight rows.
    pt = pooled_ref[0]                                          # (C, 4) f32
    hg = jnp.maximum(
        jnp.dot(w1t_ref[...], pt, preferred_element_type=jnp.float32)
        + b1_ref[...], 0.0)                                     # (red, 4)
    gt = jax.nn.sigmoid(
        jnp.dot(w2t_ref[...], hg, preferred_element_type=jnp.float32)
        + b2_ref[...])                                          # (C, 4)

    # (sum_i g_i*x_i) @ W3  ==  [x_a|x_b|x_c|x_d] @ vstack_i(diag(g_i) @ W3):
    # gating moves onto the tiny weight matrix, MXU K fill becomes 4*C.
    w3 = w3_ref[...]                                            # (C, Cout) f32
    w3g = jnp.concatenate([gt[:, i:i + 1] * w3 for i in range(4)],
                          axis=0).astype(cdt)                   # (4C, Cout)
    fins = fins_ref[0].reshape(H * W, 4 * C)                    # cdt
    acc = jnp.dot(fins, w3g, preferred_element_type=jnp.float32)

    xin = x_ref[0].reshape(H * W, Cin)
    if has_downsample:
        acc = acc + jnp.dot(xin.astype(cdt), wds_ref[...],
                            preferred_element_type=jnp.float32)
    else:
        acc = acc + xin.astype(jnp.float32)                     # identity residual
    acc = acc + bias_ref[...]                                   # b3 (+ bds)
    o_ref[0] = jnp.maximum(acc, 0.0).reshape(H, W, Cout).astype(o_ref.dtype)


def fused_tail(fins, pooled_t, x, prep, out_dtype=jnp.float32):
    N, H, W, _ = fins.shape
    C = prep["C"]
    Cout = prep["Cout"]
    cdt = prep["cdt"]
    Cin = x.shape[-1]
    has_ds = "wds" in prep

    def wspec(a):
        return pl.BlockSpec(a.shape, lambda n: (0, 0))

    in_specs = [pl.BlockSpec((1, H, W, 4 * C), lambda n: (n, 0, 0, 0)),
                pl.BlockSpec((1, C, 4), lambda n: (n, 0, 0)),
                pl.BlockSpec((1, H, W, Cin), lambda n: (n, 0, 0, 0)),
                wspec(prep["w1t"]), wspec(prep["b1c"]),
                wspec(prep["w2t"]), wspec(prep["b2c"]),
                wspec(prep["w3"]), wspec(prep["bias_out"])]
    args = [fins, pooled_t, x, prep["w1t"], prep["b1c"], prep["w2t"],
            prep["b2c"], prep["w3"], prep["bias_out"]]
    if has_ds:
        in_specs.append(wspec(prep["wds"]))
        args.append(prep["wds"])

    kernel = functools.partial(_tail_kernel, H=H, W=W, C=C, cdt=cdt,
                               has_downsample=has_ds)
    return pl.pallas_call(
        kernel,
        out_shape=jax.ShapeDtypeStruct((N, H, W, Cout), out_dtype),
        grid=(N,),
        in_specs=in_specs,
        out_specs=pl.BlockSpec((1, H, W, Cout), lambda n: (n, 0, 0, 0)),
        compiler_params=pltpu.CompilerParams(
            dimension_semantics=("parallel",),
            vmem_limit_bytes=64 * 1024 * 1024),
    )(*args)


# ----------------------------------------------------------------------------
# Host-side parameter preparation: fold BN into convs, build per-depth fused
# weights (concat at depth 1, per-branch stacks at depths 2-4).
# ----------------------------------------------------------------------------
def prepare_params(p, compute_dtype):
    C = p["conv1"]["w"].shape[1]
    cdt = compute_dtype
    prep = {"C": C, "cdt": cdt}
    prep["wc1"] = (p["conv1"]["w"] * p["conv1"]["scale"][None, :]).astype(cdt)
    prep["bc1"] = p["conv1"]["bias"].reshape(1, C).astype(jnp.float32)

    branches = [p["conv2a"], p["conv2b"], p["conv2c"], p["conv2d"]]
    depths = []
    for depth in range(4):
        # branches still active at this depth, finishing-first order
        active = [br[depth] for br in branches if len(br) > depth]
        if depth == 0:
            we = jnp.concatenate([lp["w1"] for lp in active], axis=1).astype(cdt)
        else:
            we = jnp.stack([lp["w1"] for lp in active], axis=0).astype(cdt)
        wdw = jnp.concatenate(
            [lp["wd"].reshape(9, C) * lp["scale"][None, :] for lp in active],
            axis=1).astype(jnp.float32)
        bdw = jnp.concatenate(
            [lp["bias"] for lp in active]).reshape(1, -1).astype(jnp.float32)
        depths.append((we, wdw, bdw))
    prep["depths"] = depths

    g = p["gate"]
    red = g["w1"].shape[1]
    prep["w1t"] = g["w1"].T.astype(jnp.float32)              # (red, C)
    prep["b1c"] = g["b1"].reshape(red, 1).astype(jnp.float32)
    prep["w2t"] = g["w2"].T.astype(jnp.float32)              # (C, red)
    prep["b2c"] = g["b2"].reshape(C, 1).astype(jnp.float32)

    Cout = p["conv3"]["w"].shape[1]
    prep["Cout"] = Cout
    prep["w3"] = (p["conv3"]["w"] * p["conv3"]["scale"][None, :]).astype(jnp.float32)
    bias = p["conv3"]["bias"]
    if "downsample" in p:
        prep["wds"] = (p["downsample"]["w"]
                       * p["downsample"]["scale"][None, :]).astype(cdt)
        bias = bias + p["downsample"]["bias"]
    prep["bias_out"] = bias.reshape(1, Cout).astype(jnp.float32)
    return prep


# ----------------------------------------------------------------------------
# OSBlock forward
# ----------------------------------------------------------------------------
def os_block_forward_nhwc(x_nhwc, params, compute_dtype=jnp.bfloat16):
    """NHWC entry point (no boundary transposes).  compute_dtype controls MXU
    operand / inter-kernel activation dtype (f32 accumulation is kept)."""
    prep = prepare_params(params, compute_dtype)
    x = x_nhwc.astype(compute_dtype)
    fins, pooled = fused_branches(x, prep)
    pooled_t = jnp.transpose(pooled, (0, 2, 1))     # tiny (N, C, 4) tensor
    return fused_tail(fins, pooled_t, x, prep, jnp.float32)


def os_block_forward(x_nchw, params, compute_dtype=jnp.bfloat16):
    """NCHW (PyTorch) boundary; the single layout transpose is done in the
    compute dtype to halve its HBM traffic.  Prefer os_block_forward_nhwc."""
    x = jnp.transpose(x_nchw.astype(compute_dtype), (0, 2, 3, 1))
    out = os_block_forward_nhwc(x, params, compute_dtype)
    return jnp.transpose(out, (0, 3, 1, 2))


# ----------------------------------------------------------------------------
# Deterministic synthetic params (BN folded to eval-mode scale/bias)
# ----------------------------------------------------------------------------
def init_params(key, in_channels, out_channels):
    mid = out_channels // 4
    red = max(mid // 16, 1)                          # ChannelGate reduction=16
    keys = iter(jax.random.split(key, 128))

    def rnd(shape, s=0.1):
        return s * jax.random.normal(next(keys), shape, jnp.float32)

    def bn(c):
        gamma = 1.0 + rnd((c,))
        beta = rnd((c,))
        mean = rnd((c,))
        var = jnp.abs(jax.random.normal(next(keys), (c,), jnp.float32)) + 0.5
        scale = gamma / jnp.sqrt(var + 1e-5)
        return scale, beta - mean * scale

    def light():
        s, b = bn(mid)
        return dict(w1=rnd((mid, mid)), wd=rnd((3, 3, mid)), scale=s, bias=b)

    params = {}
    s1, b1 = bn(mid)
    params["conv1"] = dict(w=rnd((in_channels, mid)), scale=s1, bias=b1)
    params["conv2a"] = [light()]
    params["conv2b"] = [light() for _ in range(2)]
    params["conv2c"] = [light() for _ in range(3)]
    params["conv2d"] = [light() for _ in range(4)]
    params["gate"] = dict(w1=rnd((mid, red)), b1=rnd((red,)),
                          w2=rnd((red, mid)), b2=rnd((mid,)))
    s3, b3 = bn(out_channels)
    params["conv3"] = dict(w=rnd((mid, out_channels)), scale=s3, bias=b3)
    if in_channels != out_channels:
        sd, bd = bn(out_channels)
        params["downsample"] = dict(w=rnd((in_channels, out_channels)),
                                    scale=sd, bias=bd)
    return params


# ----------------------------------------------------------------------------
# Pure-JAX reference (unfused math) for the correctness check
# ----------------------------------------------------------------------------
def ref_forward(x_nchw, p):
    x = jnp.transpose(x_nchw, (0, 2, 3, 1)).astype(jnp.float32)

    def a1x1(xin, w, s, b, relu):
        y = jnp.einsum("nhwc,cd->nhwd", xin, w) * s + b
        return jnp.maximum(y, 0.0) if relu else y

    def dw(xin, wd, s, b):
        N, H, W, C = xin.shape
        xp = jnp.pad(xin, ((0, 0), (1, 1), (1, 1), (0, 0)))
        acc = jnp.zeros_like(xin)
        for dy in range(3):
            for dx in range(3):
                acc = acc + xp[:, dy:dy + H, dx:dx + W, :] * wd[dy, dx, :]
        return jnp.maximum(acc * s + b, 0.0)

    def light(xin, lp):
        return dw(a1x1(xin, lp["w1"], 1.0, 0.0, False),
                  lp["wd"], lp["scale"], lp["bias"])

    def branch(xin, lps):
        for lp in lps:
            xin = light(xin, lp)
        return xin

    def gate(xin):
        pooled = jnp.mean(xin, axis=(1, 2))
        h = jnp.maximum(pooled @ p["gate"]["w1"] + p["gate"]["b1"], 0.0)
        g = jax.nn.sigmoid(h @ p["gate"]["w2"] + p["gate"]["b2"])
        return g[:, None, None, :]

    x1 = a1x1(x, p["conv1"]["w"], p["conv1"]["scale"], p["conv1"]["bias"], True)
    xa, xb = branch(x1, p["conv2a"]), branch(x1, p["conv2b"])
    xc, xd = branch(x1, p["conv2c"]), branch(x1, p["conv2d"])
    x2 = xa * gate(xa) + xb * gate(xb) + xc * gate(xc) + xd * gate(xd)
    x3 = a1x1(x2, p["conv3"]["w"], p["conv3"]["scale"], p["conv3"]["bias"], False)
    res = x
    if "downsample" in p:
        res = a1x1(x, p["downsample"]["w"], p["downsample"]["scale"],
                   p["downsample"]["bias"], False)
    out = jnp.maximum(x3 + res, 0.0)
    return jnp.transpose(out, (0, 3, 1, 2))


if __name__ == "__main__":
    key = jax.random.PRNGKey(0)
    kx, kp = jax.random.split(key)

    in_channels, out_channels = 32, 64        # mid = 16, gate reduction -> 1
    N, H, W = 2, 16, 16
    x = jax.random.normal(kx, (N, in_channels, H, W), jnp.float32)
    params = init_params(kp, in_channels, out_channels)

    ref = jax.block_until_ready(ref_forward(x, params))

    # exact-precision path (compute_dtype=f32): must match the reference tightly
    out_f32 = jax.block_until_ready(os_block_forward(x, params, jnp.float32))
    err_f32 = float(jnp.max(jnp.abs(out_f32 - ref)))

    # default bf16-operand path (f32 accumulation): looser, relative tolerance
    out_bf16 = jax.block_until_ready(os_block_forward(x, params))
    rel_bf16 = (float(jnp.max(jnp.abs(out_bf16 - ref)))
                / (float(jnp.max(jnp.abs(ref))) + 1e-6))

    assert out_f32.shape == (N, out_channels, H, W), out_f32.shape
    assert out_bf16.shape == (N, out_channels, H, W), out_bf16.shape
    if err_f32 < 1e-3 and rel_bf16 < 3e-2:
        print("KERNEL_OK")
    else:
        print(f"MISMATCH err_f32={err_f32} rel_err_bf16={rel_bf16}")
</pallas_src>

<mosaic_0001>
module attributes {stable_mosaic.version = 11 : i64} {
  func.func @_branches_kernel(%arg0: i32, %arg1: memref<1x16x16x32xf32, #tpu.memory_space<vmem>>, %arg2: memref<32x16xf32, #tpu.memory_space<vmem>>, %arg3: memref<1x16xf32, #tpu.memory_space<vmem>>, %arg4: memref<16x64xf32, #tpu.memory_space<vmem>>, %arg5: memref<9x64xf32, #tpu.memory_space<vmem>>, %arg6: memref<1x64xf32, #tpu.memory_space<vmem>>, %arg7: memref<3x16x16xf32, #tpu.memory_space<vmem>>, %arg8: memref<9x48xf32, #tpu.memory_space<vmem>>, %arg9: memref<1x48xf32, #tpu.memory_space<vmem>>, %arg10: memref<2x16x16xf32, #tpu.memory_space<vmem>>, %arg11: memref<9x32xf32, #tpu.memory_space<vmem>>, %arg12: memref<1x32xf32, #tpu.memory_space<vmem>>, %arg13: memref<1x16x16xf32, #tpu.memory_space<vmem>>, %arg14: memref<9x16xf32, #tpu.memory_space<vmem>>, %arg15: memref<1x16xf32, #tpu.memory_space<vmem>>, %arg16: memref<1x16x16x64xf32, #tpu.memory_space<vmem>>, %arg17: memref<1x4x16xf32, #tpu.memory_space<vmem>>, %arg18: memref<18x18x64xf32, #tpu.memory_space<vmem>>) attributes {dimension_semantics = [#tpu.dimension_semantics<parallel>], iteration_bounds = array<i64: 2>, scalar_prefetch = 0 : i64, scratch_operands = 1 : i64, tpu.core_type = #tpu.core_type<tc>, window_params = [{transform_indices = @transform_0, window_bounds = array<i64: 1, 16, 16, 32>}, {pipeline_mode = #tpu.pipeline_mode<synchronous>, transform_indices = @transform_1, window_bounds = array<i64: 32, 16>}, {pipeline_mode = #tpu.pipeline_mode<synchronous>, transform_indices = @transform_2, window_bounds = array<i64: 1, 16>}, {pipeline_mode = #tpu.pipeline_mode<synchronous>, transform_indices = @transform_3, window_bounds = array<i64: 16, 64>}, {pipeline_mode = #tpu.pipeline_mode<synchronous>, transform_indices = @transform_4, window_bounds = array<i64: 9, 64>}, {pipeline_mode = #tpu.pipeline_mode<synchronous>, transform_indices = @transform_5, window_bounds = array<i64: 1, 64>}, {pipeline_mode = #tpu.pipeline_mode<synchronous>, transform_indices = @transform_6, window_bounds = array<i64: 3, 16, 16>}, {pipeline_mode = #tpu.pipeline_mode<synchronous>, transform_indices = @transform_7, window_bounds = array<i64: 9, 48>}, {pipeline_mode = #tpu.pipeline_mode<synchronous>, transform_indices = @transform_8, window_bounds = array<i64: 1, 48>}, {pipeline_mode = #tpu.pipeline_mode<synchronous>, transform_indices = @transform_9, window_bounds = array<i64: 2, 16, 16>}, {pipeline_mode = #tpu.pipeline_mode<synchronous>, transform_indices = @transform_10, window_bounds = array<i64: 9, 32>}, {pipeline_mode = #tpu.pipeline_mode<synchronous>, transform_indices = @transform_11, window_bounds = array<i64: 1, 32>}, {pipeline_mode = #tpu.pipeline_mode<synchronous>, transform_indices = @transform_12, window_bounds = array<i64: 1, 16, 16>}, {pipeline_mode = #tpu.pipeline_mode<synchronous>, transform_indices = @transform_13, window_bounds = array<i64: 9, 16>}, {pipeline_mode = #tpu.pipeline_mode<synchronous>, transform_indices = @transform_14, window_bounds = array<i64: 1, 16>}, {transform_indices = @transform_15, window_bounds = array<i64: 1, 16, 16, 64>}, {transform_indices = @transform_16, window_bounds = array<i64: 1, 4, 16>}]} {
    %cst = arith.constant 0.000000e+00 : f32
    %0 = vector.broadcast %cst : f32 to vector<1x18x64xf32>
    %c0 = arith.constant 0 : index
    %c0_0 = arith.constant 0 : index
    %c0_1 = arith.constant 0 : index
    %1 = vector.load %arg18[%c0, %c0_0, %c0_1] : memref<18x18x64xf32, #tpu.memory_space<vmem>>, vector<1x18x64xf32>
    tpu.vector_store %arg18[%c0, %c0_0, %c0_1], %0 {strides = array<i32>} : memref<18x18x64xf32, #tpu.memory_space<vmem>>, vector<1x18x64xf32>,
    %cst_2 = arith.constant 0.000000e+00 : f32
    %2 = vector.broadcast %cst_2 : f32 to vector<1x18x64xf32>
    %c17 = arith.constant 17 : index
    %c0_3 = arith.constant 0 : index
    %c0_4 = arith.constant 0 : index
    %3 = vector.load %arg18[%c17, %c0_3, %c0_4] : memref<18x18x64xf32, #tpu.memory_space<vmem>>, vector<1x18x64xf32>
    tpu.vector_store %arg18[%c17, %c0_3, %c0_4], %2 {strides = array<i32>} : memref<18x18x64xf32, #tpu.memory_space<vmem>>, vector<1x18x64xf32>,
    %cst_5 = arith.constant 0.000000e+00 : f32
    %4 = vector.broadcast %cst_5 : f32 to vector<18x1x64xf32>
    %c0_6 = arith.constant 0 : index
    %c0_7 = arith.constant 0 : index
    %c0_8 = arith.constant 0 : index
    %5 = vector.load %arg18[%c0_6, %c0_7, %c0_8] : memref<18x18x64xf32, #tpu.memory_space<vmem>>, vector<18x1x64xf32>
    tpu.vector_store %arg18[%c0_6, %c0_7, %c0_8], %4 {strides = array<i32>} : memref<18x18x64xf32, #tpu.memory_space<vmem>>, vector<18x1x64xf32>,
    %cst_9 = arith.constant 0.000000e+00 : f32
    %6 = vector.broadcast %cst_9 : f32 to vector<18x1x64xf32>
    %c0_10 = arith.constant 0 : index
    %c17_11 = arith.constant 17 : index
    %c0_12 = arith.constant 0 : index
    %7 = vector.load %arg18[%c0_10, %c17_11, %c0_12] : memref<18x18x64xf32, #tpu.memory_space<vmem>>, vector<18x1x64xf32>
    tpu.vector_store %arg18[%c0_10, %c17_11, %c0_12], %6 {strides = array<i32>} : memref<18x18x64xf32, #tpu.memory_space<vmem>>, vector<18x1x64xf32>,
    %c0_13 = arith.constant 0 : index
    %c0_14 = arith.constant 0 : index
    %c0_15 = arith.constant 0 : index
    %c0_16 = arith.constant 0 : index
    %8 = vector.load %arg1[%c0_13, %c0_14, %c0_15, %c0_16] : memref<1x16x16x32xf32, #tpu.memory_space<vmem>>, vector<1x16x16x32xf32>
    %9 = vector.shape_cast %8 : vector<1x16x16x32xf32> to vector<16x16x32xf32>
    %10 = vector.shape_cast %9 : vector<16x16x32xf32> to vector<256x32xf32>
    %c0_17 = arith.constant 0 : index
    %c0_18 = arith.constant 0 : index
    %11 = vector.load %arg2[%c0_17, %c0_18] : memref<32x16xf32, #tpu.memory_space<vmem>>, vector<32x16xf32>
    %cst_19 = arith.constant dense<0.000000e+00> : vector<256x16xf32>
    %12 = tpu.matmul %10, %11, %cst_19 {dimension_numbers = #tpu.dot_dimension_numbers<[1], [0], [0], [1], [0, 0, 1, 1], [], []>} : vector<256x32xf32>, vector<32x16xf32>, vector<256x16xf32> -> vector<256x16xf32>
    %c0_20 = arith.constant 0 : index
    %c0_21 = arith.constant 0 : index
    %13 = vector.load %arg3[%c0_20, %c0_21] : memref<1x16xf32, #tpu.memory_space<vmem>>, vector<1x16xf32>
    %14 = vector.broadcast %13 : vector<1x16xf32> to vector<256x16xf32>
    %15 = arith.addf %12, %14 : vector<256x16xf32>
    %cst_22 = arith.constant 0.000000e+00 : f32
    %16 = vector.broadcast %cst_22 : f32 to vector<256x16xf32>
    %17 = arith.maximumf %15, %16 : vector<256x16xf32>
    %c0_23 = arith.constant 0 : index
    %c0_24 = arith.constant 0 : index
    %18 = vector.load %arg4[%c0_23, %c0_24] : memref<16x64xf32, #tpu.memory_space<vmem>>, vector<16x64xf32>
    %cst_25 = arith.constant dense<0.000000e+00> : vector<256x64xf32>
    %19 = tpu.matmul %17, %18, %cst_25 {dimension_numbers = #tpu.dot_dimension_numbers<[1], [0], [0], [1], [0, 0, 1, 1], [], []>} : vector<256x16xf32>, vector<16x64xf32>, vector<256x64xf32> -> vector<256x64xf32>
    %20 = vector.shape_cast %19 : vector<256x64xf32> to vector<16x16x64xf32>
    %c1 = arith.constant 1 : index
    %c1_26 = arith.constant 1 : index
    %c0_27 = arith.constant 0 : index
    %21 = vector.load %arg18[%c1, %c1_26, %c0_27] : memref<18x18x64xf32, #tpu.memory_space<vmem>>, vector<16x16x64xf32>
    tpu.vector_store %arg18[%c1, %c1_26, %c0_27], %20 {strides = array<i32>} : memref<18x18x64xf32, #tpu.memory_space<vmem>>, vector<16x16x64xf32>,
    %c0_28 = arith.constant 0 : index
    %c0_29 = arith.constant 0 : index
    %22 = vector.load %arg5[%c0_28, %c0_29] : memref<9x64xf32, #tpu.memory_space<vmem>>, vector<9x64xf32>
    %c0_30 = arith.constant 0 : index
    %c0_31 = arith.constant 0 : index
    %23 = vector.load %arg6[%c0_30, %c0_31] : memref<1x64xf32, #tpu.memory_space<vmem>>, vector<1x64xf32>
    %cst_32 = arith.constant 0.000000e+00 : f32
    %24 = vector.broadcast %cst_32 : f32 to vector<16x16x64xf32>
    %c0_33 = arith.constant 0 : index
    %c0_34 = arith.constant 0 : index
    %c0_35 = arith.constant 0 : index
    %25 = vector.load %arg18[%c0_33, %c0_34, %c0_35] : memref<18x18x64xf32, #tpu.memory_space<vmem>>, vector<16x16x64xf32>
    %26 = vector.extract_strided_slice %22 {offsets = [0, 0], sizes = [1, 64], strides = [1, 1]} : vector<9x64xf32> to vector<1x64xf32>
    %27 = vector.shape_cast %26 : vector<1x64xf32> to vector<64xf32>
    %28 = vector.shape_cast %27 : vector<64xf32> to vector<1x1x64xf32>
    %29 = vector.broadcast %28 : vector<1x1x64xf32> to vector<16x16x64xf32>
    %30 = arith.mulf %25, %29 : vector<16x16x64xf32>
    %31 = arith.addf %24, %30 : vector<16x16x64xf32>
    %c0_36 = arith.constant 0 : index
    %c1_37 = arith.constant 1 : index
    %c0_38 = arith.constant 0 : index
    %32 = vector.load %arg18[%c0_36, %c1_37, %c0_38] : memref<18x18x64xf32, #tpu.memory_space<vmem>>, vector<16x16x64xf32>
    %33 = vector.extract_strided_slice %22 {offsets = [1, 0], sizes = [1, 64], strides = [1, 1]} : vector<9x64xf32> to vector<1x64xf32>
    %34 = vector.shape_cast %33 : vector<1x64xf32> to vector<64xf32>
    %35 = vector.shape_cast %34 : vector<64xf32> to vector<1x1x64xf32>
    %36 = vector.broadcast %35 : vector<1x1x64xf32> to vector<16x16x64xf32>
    %37 = arith.mulf %32, %36 : vector<16x16x64xf32>
    %38 = arith.addf %31, %37 : vector<16x16x64xf32>
    %c0_39 = arith.constant 0 : index
    %c2 = arith.constant 2 : index
    %c0_40 = arith.constant 0 : index
    %39 = vector.load %arg18[%c0_39, %c2, %c0_40] : memref<18x18x64xf32, #tpu.memory_space<vmem>>, vector<16x16x64xf32>
    %40 = vector.extract_strided_slice %22 {offsets = [2, 0], sizes = [1, 64], strides = [1, 1]} : vector<9x64xf32> to vector<1x64xf32>
    %41 = vector.shape_cast %40 : vector<1x64xf32> to vector<64xf32>
    %42 = vector.shape_cast %41 : vector<64xf32> to vector<1x1x64xf32>
    %43 = vector.broadcast %42 : vector<1x1x64xf32> to vector<16x16x64xf32>
    %44 = arith.mulf %39, %43 : vector<16x16x64xf32>
    %45 = arith.addf %38, %44 : vector<16x16x64xf32>
    %c1_41 = arith.constant 1 : index
    %c0_42 = arith.constant 0 : index
    %c0_43 = arith.constant 0 : index
    %46 = vector.load %arg18[%c1_41, %c0_42, %c0_43] : memref<18x18x64xf32, #tpu.memory_space<vmem>>, vector<16x16x64xf32>
    %47 = vector.extract_strided_slice %22 {offsets = [3, 0], sizes = [1, 64], strides = [1, 1]} : vector<9x64xf32> to vector<1x64xf32>
    %48 = vector.shape_cast %47 : vector<1x64xf32> to vector<64xf32>
    %49 = vector.shape_cast %48 : vector<64xf32> to vector<1x1x64xf32>
    %50 = vector.broadcast %49 : vector<1x1x64xf32> to vector<16x16x64xf32>
    %51 = arith.mulf %46, %50 : vector<16x16x64xf32>
    %52 = arith.addf %45, %51 : vector<16x16x64xf32>
    %c1_44 = arith.constant 1 : index
    %c1_45 = arith.constant 1 : index
    %c0_46 = arith.constant 0 : index
    %53 = vector.load %arg18[%c1_44, %c1_45, %c0_46] : memref<18x18x64xf32, #tpu.memory_space<vmem>>, vector<16x16x64xf32>
    %54 = vector.extract_strided_slice %22 {offsets = [4, 0], sizes = [1, 64], strides = [1, 1]} : vector<9x64xf32> to vector<1x64xf32>
    %55 = vector.shape_cast %54 : vector<1x64xf32> to vector<64xf32>
    %56 = vector.shape_cast %55 : vector<64xf32> to vector<1x1x64xf32>
    %57 = vector.broadcast %56 : vector<1x1x64xf32> to vector<16x16x64xf32>
    %58 = arith.mulf %53, %57 : vector<16x16x64xf32>
    %59 = arith.addf %52, %58 : vector<16x16x64xf32>
    %c1_47 = arith.constant 1 : index
    %c2_48 = arith.constant 2 : index
    %c0_49 = arith.constant 0 : index
    %60 = vector.load %arg18[%c1_47, %c2_48, %c0_49] : memref<18x18x64xf32, #tpu.memory_space<vmem>>, vector<16x16x64xf32>
    %61 = vector.extract_strided_slice %22 {offsets = [5, 0], sizes = [1, 64], strides = [1, 1]} : vector<9x64xf32> to vector<1x64xf32>
    %62 = vector.shape_cast %61 : vector<1x64xf32> to vector<64xf32>
    %63 = vector.shape_cast %62 : vector<64xf32> to vector<1x1x64xf32>
    %64 = vector.broadcast %63 : vector<1x1x64xf32> to vector<16x16x64xf32>
    %65 = arith.mulf %60, %64 : vector<16x16x64xf32>
    %66 = arith.addf %59, %65 : vector<16x16x64xf32>
    %c2_50 = arith.constant 2 : index
    %c0_51 = arith.constant 0 : index
    %c0_52 = arith.constant 0 : index
    %67 = vector.load %arg18[%c2_50, %c0_51, %c0_52] : memref<18x18x64xf32, #tpu.memory_space<vmem>>, vector<16x16x64xf32>
    %68 = vector.extract_strided_slice %22 {offsets = [6, 0], sizes = [1, 64], strides = [1, 1]} : vector<9x64xf32> to vector<1x64xf32>
    %69 = vector.shape_cast %68 : vector<1x64xf32> to vector<64xf32>
    %70 = vector.shape_cast %69 : vector<64xf32> to vector<1x1x64xf32>
    %71 = vector.broadcast %70 : vector<1x1x64xf32> to vector<16x16x64xf32>
    %72 = arith.mulf %67, %71 : vector<16x16x64xf32>
    %73 = arith.addf %66, %72 : vector<16x16x64xf32>
    %c2_53 = arith.constant 2 : index
    %c1_54 = arith.constant 1 : index
    %c0_55 = arith.constant 0 : index
    %74 = vector.load %arg18[%c2_53, %c1_54, %c0_55] : memref<18x18x64xf32, #tpu.memory_space<vmem>>, vector<16x16x64xf32>
    %75 = vector.extract_strided_slice %22 {offsets = [7, 0], sizes = [1, 64], strides = [1, 1]} : vector<9x64xf32> to vector<1x64xf32>
    %76 = vector.shape_cast %75 : vector<1x64xf32> to vector<64xf32>
    %77 = vector.shape_cast %76 : vector<64xf32> to vector<1x1x64xf32>
    %78 = vector.broadcast %77 : vector<1x1x64xf32> to vector<16x16x64xf32>
    %79 = arith.mulf %74, %78 : vector<16x16x64xf32>
    %80 = arith.addf %73, %79 : vector<16x16x64xf32>
    %c2_56 = arith.constant 2 : index
    %c2_57 = arith.constant 2 : index
    %c0_58 = arith.constant 0 : index
    %81 = vector.load %arg18[%c2_56, %c2_57, %c0_58] : memref<18x18x64xf32, #tpu.memory_space<vmem>>, vector<16x16x64xf32>
    %82 = vector.extract_strided_slice %22 {offsets = [8, 0], sizes = [1, 64], strides = [1, 1]} : vector<9x64xf32> to vector<1x64xf32>
    %83 = vector.shape_cast %82 : vector<1x64xf32> to vector<64xf32>
    %84 = vector.shape_cast %83 : vector<64xf32> to vector<1x1x64xf32>
    %85 = vector.broadcast %84 : vector<1x1x64xf32> to vector<16x16x64xf32>
    %86 = arith.mulf %81, %85 : vector<16x16x64xf32>
    %87 = arith.addf %80, %86 : vector<16x16x64xf32>
    %88 = vector.shape_cast %23 : vector<1x64xf32> to vector<1x1x64xf32>
    %89 = vector.broadcast %88 : vector<1x1x64xf32> to vector<16x16x64xf32>
    %90 = arith.addf %87, %89 : vector<16x16x64xf32>
    %cst_59 = arith.constant 0.000000e+00 : f32
    %91 = vector.broadcast %cst_59 : f32 to vector<16x16x64xf32>
    %92 = arith.maximumf %90, %91 : vector<16x16x64xf32>
    %93 = vector.extract_strided_slice %92 {offsets = [0, 0, 0], sizes = [16, 16, 16], strides = [1, 1, 1]} : vector<16x16x64xf32> to vector<16x16x16xf32>
    %c0_60 = arith.constant 0 : index
    %c0_61 = arith.constant 0 : index
    %c0_62 = arith.constant 0 : index
    %c0_63 = arith.constant 0 : index
    %94 = vector.load %arg16[%c0_60, %c0_61, %c0_62, %c0_63] : memref<1x16x16x64xf32, #tpu.memory_space<vmem>>, vector<1x16x16x16xf32>
    %95 = vector.shape_cast %94 : vector<1x16x16x16xf32> to vector<16x16x16xf32>
    %96 = vector.shape_cast %93 : vector<16x16x16xf32> to vector<1x16x16x16xf32>
    tpu.vector_store %arg16[%c0_60, %c0_61, %c0_62, %c0_63], %96 {strides = array<i32>} : memref<1x16x16x64xf32, #tpu.memory_space<vmem>>, vector<1x16x16x16xf32>,
    %cst_64 = arith.constant dense<0.000000e+00> : vector<16x16xf32>
    %97 = vector.multi_reduction <add>, %93, %cst_64 [0] : vector<16x16x16xf32> to vector<16x16xf32>
    %cst_65 = arith.constant dense<0.000000e+00> : vector<16xf32>
    %98 = vector.multi_reduction <add>, %97, %cst_65 [0] : vector<16x16xf32> to vector<16xf32>
    %cst_66 = arith.constant 3.906250e-03 : f32
    %99 = vector.broadcast %cst_66 : f32 to vector<16xf32>
    %100 = arith.mulf %98, %99 : vector<16xf32>
    %101 = vector.shape_cast %100 : vector<16xf32> to vector<1x16xf32>
    %c0_67 = arith.constant 0 : index
    %c0_68 = arith.constant 0 : index
    %c0_69 = arith.constant 0 : index
    %102 = vector.load %arg17[%c0_67, %c0_68, %c0_69] : memref<1x4x16xf32, #tpu.memory_space<vmem>>, vector<1x1x16xf32>
    %103 = vector.shape_cast %102 : vector<1x1x16xf32> to vector<1x16xf32>
    %104 = vector.shape_cast %101 : vector<1x16xf32> to vector<1x1x16xf32>
    tpu.vector_store %arg17[%c0_67, %c0_68, %c0_69], %104 {strides = array<i32>} : memref<1x4x16xf32, #tpu.memory_space<vmem>>, vector<1x1x16xf32>,
    %105 = vector.extract_strided_slice %92 {offsets = [0, 0, 16], sizes = [16, 16, 48], strides = [1, 1, 1]} : vector<16x16x64xf32> to vector<16x16x48xf32>
    %106 = vector.shape_cast %105 : vector<16x16x48xf32> to vector<256x48xf32>
    %107 = vector.extract_strided_slice %106 {offsets = [0, 0], sizes = [256, 16], strides = [1, 1]} : vector<256x48xf32> to vector<256x16xf32>
    %c0_70 = arith.constant 0 : index
    %c0_71 = arith.constant 0 : index
    %c0_72 = arith.constant 0 : index
    %108 = vector.load %arg7[%c0_70, %c0_71, %c0_72] : memref<3x16x16xf32, #tpu.memory_space<vmem>>, vector<1x16x16xf32>
    %109 = vector.shape_cast %108 : vector<1x16x16xf32> to vector<16x16xf32>
    %cst_73 = arith.constant dense<0.000000e+00> : vector<256x16xf32>
    %110 = tpu.matmul %107, %109, %cst_73 {dimension_numbers = #tpu.dot_dimension_numbers<[1], [0], [0], [1], [0, 0, 1, 1], [], []>} : vector<256x16xf32>, vector<16x16xf32>, vector<256x16xf32> -> vector<256x16xf32>
    %111 = vector.shape_cast %110 : vector<256x16xf32> to vector<16x16x16xf32>
    %c1_74 = arith.constant 1 : index
    %c1_75 = arith.constant 1 : index
    %c0_76 = arith.constant 0 : index
    %112 = vector.load %arg18[%c1_74, %c1_75, %c0_76] : memref<18x18x64xf32, #tpu.memory_space<vmem>>, vector<16x16x16xf32>
    tpu.vector_store %arg18[%c1_74, %c1_75, %c0_76], %111 {strides = array<i32>} : memref<18x18x64xf32, #tpu.memory_space<vmem>>, vector<16x16x16xf32>,
    %113 = vector.extract_strided_slice %106 {offsets = [0, 16], sizes = [256, 16], strides = [1, 1]} : vector<256x48xf32> to vector<256x16xf32>
    %c1_77 = arith.constant 1 : index
    %c0_78 = arith.constant 0 : index
    %c0_79 = arith.constant 0 : index
    %114 = vector.load %arg7[%c1_77, %c0_78, %c0_79] : memref<3x16x16xf32, #tpu.memory_space<vmem>>, vector<1x16x16xf32>
    %115 = vector.shape_cast %114 : vector<1x16x16xf32> to vector<16x16xf32>
    %cst_80 = arith.constant dense<0.000000e+00> : vector<256x16xf32>
    %116 = tpu.matmul %113, %115, %cst_80 {dimension_numbers = #tpu.dot_dimension_numbers<[1], [0], [0], [1], [0, 0, 1, 1], [], []>} : vector<256x16xf32>, vector<16x16xf32>, vector<256x16xf32> -> vector<256x16xf32>
    %117 = vector.shape_cast %116 : vector<256x16xf32> to vector<16x16x16xf32>
    %c1_81 = arith.constant 1 : index
    %c1_82 = arith.constant 1 : index
    %c16 = arith.constant 16 : index
    %118 = vector.load %arg18[%c1_81, %c1_82, %c16] : memref<18x18x64xf32, #tpu.memory_space<vmem>>, vector<16x16x16xf32>
    tpu.vector_store %arg18[%c1_81, %c1_82, %c16], %117 {strides = array<i32>} : memref<18x18x64xf32, #tpu.memory_space<vmem>>, vector<16x16x16xf32>,
    %119 = vector.extract_strided_slice %106 {offsets = [0, 32], sizes = [256, 16], strides = [1, 1]} : vector<256x48xf32> to vector<256x16xf32>
    %c2_83 = arith.constant 2 : index
    %c0_84 = arith.constant 0 : index
    %c0_85 = arith.constant 0 : index
    %120 = vector.load %arg7[%c2_83, %c0_84, %c0_85] : memref<3x16x16xf32, #tpu.memory_space<vmem>>, vector<1x16x16xf32>
    %121 = vector.shape_cast %120 : vector<1x16x16xf32> to vector<16x16xf32>
    %cst_86 = arith.constant dense<0.000000e+00> : vector<256x16xf32>
    %122 = tpu.matmul %119, %121, %cst_86 {dimension_numbers = #tpu.dot_dimension_numbers<[1], [0], [0], [1], [0, 0, 1, 1], [], []>} : vector<256x16xf32>, vector<16x16xf32>, vector<256x16xf32> -> vector<256x16xf32>
    %123 = vector.shape_cast %122 : vector<256x16xf32> to vector<16x16x16xf32>
    %c1_87 = arith.constant 1 : index
    %c1_88 = arith.constant 1 : index
    %c32 = arith.constant 32 : index
    %124 = vector.load %arg18[%c1_87, %c1_88, %c32] : memref<18x18x64xf32, #tpu.memory_space<vmem>>, vector<16x16x16xf32>
    tpu.vector_store %arg18[%c1_87, %c1_88, %c32], %123 {strides = array<i32>} : memref<18x18x64xf32, #tpu.memory_space<vmem>>, vector<16x16x16xf32>,
    %c0_89 = arith.constant 0 : index
    %c0_90 = arith.constant 0 : index
    %125 = vector.load %arg8[%c0_89, %c0_90] : memref<9x48xf32, #tpu.memory_space<vmem>>, vector<9x48xf32>
    %c0_91 = arith.constant 0 : index
    %c0_92 = arith.constant 0 : index
    %126 = vector.load %arg9[%c0_91, %c0_92] : memref<1x48xf32, #tpu.memory_space<vmem>>, vector<1x48xf32>
    %cst_93 = arith.constant 0.000000e+00 : f32
    %127 = vector.broadcast %cst_93 : f32 to vector<16x16x48xf32>
    %c0_94 = arith.constant 0 : index
    %c0_95 = arith.constant 0 : index
    %c0_96 = arith.constant 0 : index
    %128 = vector.load %arg18[%c0_94, %c0_95, %c0_96] : memref<18x18x64xf32, #tpu.memory_space<vmem>>, vector<16x16x48xf32>
    %129 = vector.extract_strided_slice %125 {offsets = [0, 0], sizes = [1, 48], strides = [1, 1]} : vector<9x48xf32> to vector<1x48xf32>
    %130 = vector.shape_cast %129 : vector<1x48xf32> to vector<48xf32>
    %131 = vector.shape_cast %130 : vector<48xf32> to vector<1x1x48xf32>
    %132 = vector.broadcast %131 : vector<1x1x48xf32> to vector<16x16x48xf32>
    %133 = arith.mulf %128, %132 : vector<16x16x48xf32>
    %134 = arith.addf %127, %133 : vector<16x16x48xf32>
    %c0_97 = arith.constant 0 : index
    %c1_98 = arith.constant 1 : index
    %c0_99 = arith.constant 0 : index
    %135 = vector.load %arg18[%c0_97, %c1_98, %c0_99] : memref<18x18x64xf32, #tpu.memory_space<vmem>>, vector<16x16x48xf32>
    %136 = vector.extract_strided_slice %125 {offsets = [1, 0], sizes = [1, 48], strides = [1, 1]} : vector<9x48xf32> to vector<1x48xf32>
    %137 = vector.shape_cast %136 : vector<1x48xf32> to vector<48xf32>
    %138 = vector.shape_cast %137 : vector<48xf32> to vector<1x1x48xf32>
    %139 = vector.broadcast %138 : vector<1x1x48xf32> to vector<16x16x48xf32>
    %140 = arith.mulf %135, %139 : vector<16x16x48xf32>
    %141 = arith.addf %134, %140 : vector<16x16x48xf32>
    %c0_100 = arith.constant 0 : index
    %c2_101 = arith.constant 2 : index
    %c0_102 = arith.constant 0 : index
    %142 = vector.load %arg18[%c0_100, %c2_101, %c0_102] : memref<18x18x64xf32, #tpu.memory_space<vmem>>, vector<16x16x48xf32>
    %143 = vector.extract_strided_slice %125 {offsets = [2, 0], sizes = [1, 48], strides = [1, 1]} : vector<9x48xf32> to vector<1x48xf32>
    %144 = vector.shape_cast %143 : vector<1x48xf32> to vector<48xf32>
    %145 = vector.shape_cast %144 : vector<48xf32> to vector<1x1x48xf32>
    %146 = vector.broadcast %145 : vector<1x1x48xf32> to vector<16x16x48xf32>
    %147 = arith.mulf %142, %146 : vector<16x16x48xf32>
    %148 = arith.addf %141, %147 : vector<16x16x48xf32>
    %c1_103 = arith.constant 1 : index
    %c0_104 = arith.constant 0 : index
    %c0_105 = arith.constant 0 : index
    %149 = vector.load %arg18[%c1_103, %c0_104, %c0_105] : memref<18x18x64xf32, #tpu.memory_space<vmem>>, vector<16x16x48xf32>
    %150 = vector.extract_strided_slice %125 {offsets = [3, 0], sizes = [1, 48], strides = [1, 1]} : vector<9x48xf32> to vector<1x48xf32>
    %151 = vector.shape_cast %150 : vector<1x48xf32> to vector<48xf32>
    %152 = vector.shape_cast %151 : vector<48xf32> to vector<1x1x48xf32>
    %153 = vector.broadcast %152 : vector<1x1x48xf32> to vector<16x16x48xf32>
    %154 = arith.mulf %149, %153 : vector<16x16x48xf32>
    %155 = arith.addf %148, %154 : vector<16x16x48xf32>
    %c1_106 = arith.constant 1 : index
    %c1_107 = arith.constant 1 : index
    %c0_108 = arith.constant 0 : index
    %156 = vector.load %arg18[%c1_106, %c1_107, %c0_108] : memref<18x18x64xf32, #tpu.memory_space<vmem>>, vector<16x16x48xf32>
    %157 = vector.extract_strided_slice %125 {offsets = [4, 0], sizes = [1, 48], strides = [1, 1]} : vector<9x48xf32> to vector<1x48xf32>
    %158 = vector.shape_cast %157 : vector<1x48xf32> to vector<48xf32>
    %159 = vector.shape_cast %158 : vector<48xf32> to vector<1x1x48xf32>
    %160 = vector.broadcast %159 : vector<1x1x48xf32> to vector<16x16x48xf32>
    %161 = arith.mulf %156, %160 : vector<16x16x48xf32>
    %162 = arith.addf %155, %161 : vector<16x16x48xf32>
    %c1_109 = arith.constant 1 : index
    %c2_110 = arith.constant 2 : index
    %c0_111 = arith.constant 0 : index
    %163 = vector.load %arg18[%c1_109, %c2_110, %c0_111] : memref<18x18x64xf32, #tpu.memory_space<vmem>>, vector<16x16x48xf32>
    %164 = vector.extract_strided_slice %125 {offsets = [5, 0], sizes = [1, 48], strides = [1, 1]} : vector<9x48xf32> to vector<1x48xf32>
    %165 = vector.shape_cast %164 : vector<1x48xf32> to vector<48xf32>
    %166 = vector.shape_cast %165 : vector<48xf32> to vector<1x1x48xf32>
    %167 = vector.broadcast %166 : vector<1x1x48xf32> to vector<16x16x48xf32>
    %168 = arith.mulf %163, %167 : vector<16x16x48xf32>
    %169 = arith.addf %162, %168 : vector<16x16x48xf32>
    %c2_112 = arith.constant 2 : index
    %c0_113 = arith.constant 0 : index
    %c0_114 = arith.constant 0 : index
    %170 = vector.load %arg18[%c2_112, %c0_113, %c0_114] : memref<18x18x64xf32, #tpu.memory_space<vmem>>, vector<16x16x48xf32>
    %171 = vector.extract_strided_slice %125 {offsets = [6, 0], sizes = [1, 48], strides = [1, 1]} : vector<9x48xf32> to vector<1x48xf32>
    %172 = vector.shape_cast %171 : vector<1x48xf32> to vector<48xf32>
    %173 = vector.shape_cast %172 : vector<48xf32> to vector<1x1x48xf32>
    %174 = vector.broadcast %173 : vector<1x1x48xf32> to vector<16x16x48xf32>
    %175 = arith.mulf %170, %174 : vector<16x16x48xf32>
    %176 = arith.addf %169, %175 : vector<16x16x48xf32>
    %c2_115 = arith.constant 2 : index
    %c1_116 = arith.constant 1 : index
    %c0_117 = arith.constant 0 : index
    %177 = vector.load %arg18[%c2_115, %c1_116, %c0_117] : memref<18x18x64xf32, #tpu.memory_space<vmem>>, vector<16x16x48xf32>
    %178 = vector.extract_strided_slice %125 {offsets = [7, 0], sizes = [1, 48], strides = [1, 1]} : vector<9x48xf32> to vector<1x48xf32>
    %179 = vector.shape_cast %178 : vector<1x48xf32> to vector<48xf32>
    %180 = vector.shape_cast %179 : vector<48xf32> to vector<1x1x48xf32>
    %181 = vector.broadcast %180 : vector<1x1x48xf32> to vector<16x16x48xf32>
    %182 = arith.mulf %177, %181 : vector<16x16x48xf32>
    %183 = arith.addf %176, %182 : vector<16x16x48xf32>
    %c2_118 = arith.constant 2 : index
    %c2_119 = arith.constant 2 : index
    %c0_120 = arith.constant 0 : index
    %184 = vector.load %arg18[%c2_118, %c2_119, %c0_120] : memref<18x18x64xf32, #tpu.memory_space<vmem>>, vector<16x16x48xf32>
    %185 = vector.extract_strided_slice %125 {offsets = [8, 0], sizes = [1, 48], strides = [1, 1]} : vector<9x48xf32> to vector<1x48xf32>
    %186 = vector.shape_cast %185 : vector<1x48xf32> to vector<48xf32>
    %187 = vector.shape_cast %186 : vector<48xf32> to vector<1x1x48xf32>
    %188 = vector.broadcast %187 : vector<1x1x48xf32> to vector<16x16x48xf32>
    %189 = arith.mulf %184, %188 : vector<16x16x48xf32>
    %190 = arith.addf %183, %189 : vector<16x16x48xf32>
    %191 = vector.shape_cast %126 : vector<1x48xf32> to vector<1x1x48xf32>
    %192 = vector.broadcast %191 : vector<1x1x48xf32> to vector<16x16x48xf32>
    %193 = arith.addf %190, %192 : vector<16x16x48xf32>
    %cst_121 = arith.constant 0.000000e+00 : f32
    %194 = vector.broadcast %cst_121 : f32 to vector<16x16x48xf32>
    %195 = arith.maximumf %193, %194 : vector<16x16x48xf32>
    %196 = vector.extract_strided_slice %195 {offsets = [0, 0, 0], sizes = [16, 16, 16], strides = [1, 1, 1]} : vector<16x16x48xf32> to vector<16x16x16xf32>
    %c0_122 = arith.constant 0 : index
    %c0_123 = arith.constant 0 : index
    %c0_124 = arith.constant 0 : index
    %c16_125 = arith.constant 16 : index
    %197 = vector.load %arg16[%c0_122, %c0_123, %c0_124, %c16_125] : memref<1x16x16x64xf32, #tpu.memory_space<vmem>>, vector<1x16x16x16xf32>
    %198 = vector.shape_cast %197 : vector<1x16x16x16xf32> to vector<16x16x16xf32>
    %199 = vector.shape_cast %196 : vector<16x16x16xf32> to vector<1x16x16x16xf32>
    tpu.vector_store %arg16[%c0_122, %c0_123, %c0_124, %c16_125], %199 {strides = array<i32>} : memref<1x16x16x64xf32, #tpu.memory_space<vmem>>, vector<1x16x16x16xf32>,
    %cst_126 = arith.constant dense<0.000000e+00> : vector<16x16xf32>
    %200 = vector.multi_reduction <add>, %196, %cst_126 [0] : vector<16x16x16xf32> to vector<16x16xf32>
    %cst_127 = arith.constant dense<0.000000e+00> : vector<16xf32>
    %201 = vector.multi_reduction <add>, %200, %cst_127 [0] : vector<16x16xf32> to vector<16xf32>
    %cst_128 = arith.constant 3.906250e-03 : f32
    %202 = vector.broadcast %cst_128 : f32 to vector<16xf32>
    %203 = arith.mulf %201, %202 : vector<16xf32>
    %204 = vector.shape_cast %203 : vector<16xf32> to vector<1x16xf32>
    %c0_129 = arith.constant 0 : index
    %c1_130 = arith.constant 1 : index
    %c0_131 = arith.constant 0 : index
    %205 = vector.load %arg17[%c0_129, %c1_130, %c0_131] : memref<1x4x16xf32, #tpu.memory_space<vmem>>, vector<1x1x16xf32>
    %206 = vector.shape_cast %205 : vector<1x1x16xf32> to vector<1x16xf32>
    %207 = vector.shape_cast %204 : vector<1x16xf32> to vector<1x1x16xf32>
    tpu.vector_store %arg17[%c0_129, %c1_130, %c0_131], %207 {strides = array<i32>} : memref<1x4x16xf32, #tpu.memory_space<vmem>>, vector<1x1x16xf32>,
    %208 = vector.extract_strided_slice %195 {offsets = [0, 0, 16], sizes = [16, 16, 32], strides = [1, 1, 1]} : vector<16x16x48xf32> to vector<16x16x32xf32>
    %209 = vector.shape_cast %208 : vector<16x16x32xf32> to vector<256x32xf32>
    %210 = vector.extract_strided_slice %209 {offsets = [0, 0], sizes = [256, 16], strides = [1, 1]} : vector<256x32xf32> to vector<256x16xf32>
    %c0_132 = arith.constant 0 : index
    %c0_133 = arith.constant 0 : index
    %c0_134 = arith.constant 0 : index
    %211 = vector.load %arg10[%c0_132, %c0_133, %c0_134] : memref<2x16x16xf32, #tpu.memory_space<vmem>>, vector<1x16x16xf32>
    %212 = vector.shape_cast %211 : vector<1x16x16xf32> to vector<16x16xf32>
    %cst_135 = arith.constant dense<0.000000e+00> : vector<256x16xf32>
    %213 = tpu.matmul %210, %212, %cst_135 {dimension_numbers = #tpu.dot_dimension_numbers<[1], [0], [0], [1], [0, 0, 1, 1], [], []>} : vector<256x16xf32>, vector<16x16xf32>, vector<256x16xf32> -> vector<256x16xf32>
    %214 = vector.shape_cast %213 : vector<256x16xf32> to vector<16x16x16xf32>
    %c1_136 = arith.constant 1 : index
    %c1_137 = arith.constant 1 : index
    %c0_138 = arith.constant 0 : index
    %215 = vector.load %arg18[%c1_136, %c1_137, %c0_138] : memref<18x18x64xf32, #tpu.memory_space<vmem>>, vector<16x16x16xf32>
    tpu.vector_store %arg18[%c1_136, %c1_137, %c0_138], %214 {strides = array<i32>} : memref<18x18x64xf32, #tpu.memory_space<vmem>>, vector<16x16x16xf32>,
    %216 = vector.extract_strided_slice %209 {offsets = [0, 16], sizes = [256, 16], strides = [1, 1]} : vector<256x32xf32> to vector<256x16xf32>
    %c1_139 = arith.constant 1 : index
    %c0_140 = arith.constant 0 : index
    %c0_141 = arith.constant 0 : index
    %217 = vector.load %arg10[%c1_139, %c0_140, %c0_141] : memref<2x16x16xf32, #tpu.memory_space<vmem>>, vector<1x16x16xf32>
    %218 = vector.shape_cast %217 : vector<1x16x16xf32> to vector<16x16xf32>
    %cst_142 = arith.constant dense<0.000000e+00> : vector<256x16xf32>
    %219 = tpu.matmul %216, %218, %cst_142 {dimension_numbers = #tpu.dot_dimension_numbers<[1], [0], [0], [1], [0, 0, 1, 1], [], []>} : vector<256x16xf32>, vector<16x16xf32>, vector<256x16xf32> -> vector<256x16xf32>
    %220 = vector.shape_cast %219 : vector<256x16xf32> to vector<16x16x16xf32>
    %c1_143 = arith.constant 1 : index
    %c1_144 = arith.constant 1 : index
    %c16_145 = arith.constant 16 : index
    %221 = vector.load %arg18[%c1_143, %c1_144, %c16_145] : memref<18x18x64xf32, #tpu.memory_space<vmem>>, vector<16x16x16xf32>
    tpu.vector_store %arg18[%c1_143, %c1_144, %c16_145], %220 {strides = array<i32>} : memref<18x18x64xf32, #tpu.memory_space<vmem>>, vector<16x16x16xf32>,
    %c0_146 = arith.constant 0 : index
    %c0_147 = arith.constant 0 : index
    %222 = vector.load %arg11[%c0_146, %c0_147] : memref<9x32xf32, #tpu.memory_space<vmem>>, vector<9x32xf32>
    %c0_148 = arith.constant 0 : index
    %c0_149 = arith.constant 0 : index
    %223 = vector.load %arg12[%c0_148, %c0_149] : memref<1x32xf32, #tpu.memory_space<vmem>>, vector<1x32xf32>
    %cst_150 = arith.constant 0.000000e+00 : f32
    %224 = vector.broadcast %cst_150 : f32 to vector<16x16x32xf32>
    %c0_151 = arith.constant 0 : index
    %c0_152 = arith.constant 0 : index
    %c0_153 = arith.constant 0 : index
    %225 = vector.load %arg18[%c0_151, %c0_152, %c0_153] : memref<18x18x64xf32, #tpu.memory_space<vmem>>, vector<16x16x32xf32>
    %226 = vector.extract_strided_slice %222 {offsets = [0, 0], sizes = [1, 32], strides = [1, 1]} : vector<9x32xf32> to vector<1x32xf32>
    %227 = vector.shape_cast %226 : vector<1x32xf32> to vector<32xf32>
    %228 = vector.shape_cast %227 : vector<32xf32> to vector<1x1x32xf32>
    %229 = vector.broadcast %228 : vector<1x1x32xf32> to vector<16x16x32xf32>
    %230 = arith.mulf %225, %229 : vector<16x16x32xf32>
    %231 = arith.addf %224, %230 : vector<16x16x32xf32>
    %c0_154 = arith.constant 0 : index
    %c1_155 = arith.constant 1 : index
    %c0_156 = arith.constant 0 : index
    %232 = vector.load %arg18[%c0_154, %c1_155, %c0_156] : memref<18x18x64xf32, #tpu.memory_space<vmem>>, vector<16x16x32xf32>
    %233 = vector.extract_strided_slice %222 {offsets = [1, 0], sizes = [1, 32], strides = [1, 1]} : vector<9x32xf32> to vector<1x32xf32>
    %234 = vector.shape_cast %233 : vector<1x32xf32> to vector<32xf32>
    %235 = vector.shape_cast %234 : vector<32xf32> to vector<1x1x32xf32>
    %236 = vector.broadcast %235 : vector<1x1x32xf32> to vector<16x16x32xf32>
    %237 = arith.mulf %232, %236 : vector<16x16x32xf32>
    %238 = arith.addf %231, %237 : vector<16x16x32xf32>
    %c0_157 = arith.constant 0 : index
    %c2_158 = arith.constant 2 : index
    %c0_159 = arith.constant 0 : index
    %239 = vector.load %arg18[%c0_157, %c2_158, %c0_159] : memref<18x18x64xf32, #tpu.memory_space<vmem>>, vector<16x16x32xf32>
    %240 = vector.extract_strided_slice %222 {offsets = [2, 0], sizes = [1, 32], strides = [1, 1]} : vector<9x32xf32> to vector<1x32xf32>
    %241 = vector.shape_cast %240 : vector<1x32xf32> to vector<32xf32>
    %242 = vector.shape_cast %241 : vector<32xf32> to vector<1x1x32xf32>
    %243 = vector.broadcast %242 : vector<1x1x32xf32> to vector<16x16x32xf32>
    %244 = arith.mulf %239, %243 : vector<16x16x32xf32>
    %245 = arith.addf %238, %244 : vector<16x16x32xf32>
    %c1_160 = arith.constant 1 : index
    %c0_161 = arith.constant 0 : index
    %c0_162 = arith.constant 0 : index
    %246 = vector.load %arg18[%c1_160, %c0_161, %c0_162] : memref<18x18x64xf32, #tpu.memory_space<vmem>>, vector<16x16x32xf32>
    %247 = vector.extract_strided_slice %222 {offsets = [3, 0], sizes = [1, 32], strides = [1, 1]} : vector<9x32xf32> to vector<1x32xf32>
    %248 = vector.shape_cast %247 : vector<1x32xf32> to vector<32xf32>
    %249 = vector.shape_cast %248 : vector<32xf32> to vector<1x1x32xf32>
    %250 = vector.broadcast %249 : vector<1x1x32xf32> to vector<16x16x32xf32>
    %251 = arith.mulf %246, %250 : vector<16x16x32xf32>
    %252 = arith.addf %245, %251 : vector<16x16x32xf32>
    %c1_163 = arith.constant 1 : index
    %c1_164 = arith.constant 1 : index
    %c0_165 = arith.constant 0 : index
    %253 = vector.load %arg18[%c1_163, %c1_164, %c0_165] : memref<18x18x64xf32, #tpu.memory_space<vmem>>, vector<16x16x32xf32>
    %254 = vector.extract_strided_slice %222 {offsets = [4, 0], sizes = [1, 32], strides = [1, 1]} : vector<9x32xf32> to vector<1x32xf32>
    %255 = vector.shape_cast %254 : vector<1x32xf32> to vector<32xf32>
    %256 = vector.shape_cast %255 : vector<32xf32> to vector<1x1x32xf32>
    %257 = vector.broadcast %256 : vector<1x1x32xf32> to vector<16x16x32xf32>
    %258 = arith.mulf %253, %257 : vector<16x16x32xf32>
    %259 = arith.addf %252, %258 : vector<16x16x32xf32>
    %c1_166 = arith.constant 1 : index
    %c2_167 = arith.constant 2 : index
    %c0_168 = arith.constant 0 : index
    %260 = vector.load %arg18[%c1_166, %c2_167, %c0_168] : memref<18x18x64xf32, #tpu.memory_space<vmem>>, vector<16x16x32xf32>
    %261 = vector.extract_strided_slice %222 {offsets = [5, 0], sizes = [1, 32], strides = [1, 1]} : vector<9x32xf32> to vector<1x32xf32>
    %262 = vector.shape_cast %261 : vector<1x32xf32> to vector<32xf32>
    %263 = vector.shape_cast %262 : vector<32xf32> to vector<1x1x32xf32>
    %264 = vector.broadcast %263 : vector<1x1x32xf32> to vector<16x16x32xf32>
    %265 = arith.mulf %260, %264 : vector<16x16x32xf32>
    %266 = arith.addf %259, %265 : vector<16x16x32xf32>
    %c2_169 = arith.constant 2 : index
    %c0_170 = arith.constant 0 : index
    %c0_171 = arith.constant 0 : index
    %267 = vector.load %arg18[%c2_169, %c0_170, %c0_171] : memref<18x18x64xf32, #tpu.memory_space<vmem>>, vector<16x16x32xf32>
    %268 = vector.extract_strided_slice %222 {offsets = [6, 0], sizes = [1, 32], strides = [1, 1]} : vector<9x32xf32> to vector<1x32xf32>
    %269 = vector.shape_cast %268 : vector<1x32xf32> to vector<32xf32>
    %270 = vector.shape_cast %269 : vector<32xf32> to vector<1x1x32xf32>
    %271 = vector.broadcast %270 : vector<1x1x32xf32> to vector<16x16x32xf32>
    %272 = arith.mulf %267, %271 : vector<16x16x32xf32>
    %273 = arith.addf %266, %272 : vector<16x16x32xf32>
    %c2_172 = arith.constant 2 : index
    %c1_173 = arith.constant 1 : index
    %c0_174 = arith.constant 0 : index
    %274 = vector.load %arg18[%c2_172, %c1_173, %c0_174] : memref<18x18x64xf32, #tpu.memory_space<vmem>>, vector<16x16x32xf32>
    %275 = vector.extract_strided_slice %222 {offsets = [7, 0], sizes = [1, 32], strides = [1, 1]} : vector<9x32xf32> to vector<1x32xf32>
    %276 = vector.shape_cast %275 : vector<1x32xf32> to vector<32xf32>
    %277 = vector.shape_cast %276 : vector<32xf32> to vector<1x1x32xf32>
    %278 = vector.broadcast %277 : vector<1x1x32xf32> to vector<16x16x32xf32>
    %279 = arith.mulf %274, %278 : vector<16x16x32xf32>
    %280 = arith.addf %273, %279 : vector<16x16x32xf32>
    %c2_175 = arith.constant 2 : index
    %c2_176 = arith.constant 2 : index
    %c0_177 = arith.constant 0 : index
    %281 = vector.load %arg18[%c2_175, %c2_176, %c0_177] : memref<18x18x64xf32, #tpu.memory_space<vmem>>, vector<16x16x32xf32>
    %282 = vector.extract_strided_slice %222 {offsets = [8, 0], sizes = [1, 32], strides = [1, 1]} : vector<9x32xf32> to vector<1x32xf32>
    %283 = vector.shape_cast %282 : vector<1x32xf32> to vector<32xf32>
    %284 = vector.shape_cast %283 : vector<32xf32> to vector<1x1x32xf32>
    %285 = vector.broadcast %284 : vector<1x1x32xf32> to vector<16x16x32xf32>
    %286 = arith.mulf %281, %285 : vector<16x16x32xf32>
    %287 = arith.addf %280, %286 : vector<16x16x32xf32>
    %288 = vector.shape_cast %223 : vector<1x32xf32> to vector<1x1x32xf32>
    %289 = vector.broadcast %288 : vector<1x1x32xf32> to vector<16x16x32xf32>
    %290 = arith.addf %287, %289 : vector<16x16x32xf32>
    %cst_178 = arith.constant 0.000000e+00 : f32
    %291 = vector.broadcast %cst_178 : f32 to vector<16x16x32xf32>
    %292 = arith.maximumf %290, %291 : vector<16x16x32xf32>
    %293 = vector.extract_strided_slice %292 {offsets = [0, 0, 0], sizes = [16, 16, 16], strides = [1, 1, 1]} : vector<16x16x32xf32> to vector<16x16x16xf32>
    %c0_179 = arith.constant 0 : index
    %c0_180 = arith.constant 0 : index
    %c0_181 = arith.constant 0 : index
    %c32_182 = arith.constant 32 : index
    %294 = vector.load %arg16[%c0_179, %c0_180, %c0_181, %c32_182] : memref<1x16x16x64xf32, #tpu.memory_space<vmem>>, vector<1x16x16x16xf32>
    %295 = vector.shape_cast %294 : vector<1x16x16x16xf32> to vector<16x16x16xf32>
    %296 = vector.shape_cast %293 : vector<16x16x16xf32> to vector<1x16x16x16xf32>
    tpu.vector_store %arg16[%c0_179, %c0_180, %c0_181, %c32_182], %296 {strides = array<i32>} : memref<1x16x16x64xf32, #tpu.memory_space<vmem>>, vector<1x16x16x16xf32>,
    %cst_183 = arith.constant dense<0.000000e+00> : vector<16x16xf32>
    %297 = vector.multi_reduction <add>, %293, %cst_183 [0] : vector<16x16x16xf32> to vector<16x16xf32>
    %cst_184 = arith.constant dense<0.000000e+00> : vector<16xf32>
    %298 = vector.multi_reduction <add>, %297, %cst_184 [0] : vector<16x16xf32> to vector<16xf32>
    %cst_185 = arith.constant 3.906250e-03 : f32
    %299 = vector.broadcast %cst_185 : f32 to vector<16xf32>
    %300 = arith.mulf %298, %299 : vector<16xf32>
    %301 = vector.shape_cast %300 : vector<16xf32> to vector<1x16xf32>
    %c0_186 = arith.constant 0 : index
    %c2_187 = arith.constant 2 : index
    %c0_188 = arith.constant 0 : index
    %302 = vector.load %arg17[%c0_186, %c2_187, %c0_188] : memref<1x4x16xf32, #tpu.memory_space<vmem>>, vector<1x1x16xf32>
    %303 = vector.shape_cast %302 : vector<1x1x16xf32> to vector<1x16xf32>
    %304 = vector.shape_cast %301 : vector<1x16xf32> to vector<1x1x16xf32>
    tpu.vector_store %arg17[%c0_186, %c2_187, %c0_188], %304 {strides = array<i32>} : memref<1x4x16xf32, #tpu.memory_space<vmem>>, vector<1x1x16xf32>,
    %305 = vector.extract_strided_slice %292 {offsets = [0, 0, 16], sizes = [16, 16, 16], strides = [1, 1, 1]} : vector<16x16x32xf32> to vector<16x16x16xf32>
    %306 = vector.shape_cast %305 : vector<16x16x16xf32> to vector<256x16xf32>
    %c0_189 = arith.constant 0 : index
    %c0_190 = arith.constant 0 : index
    %c0_191 = arith.constant 0 : index
    %307 = vector.load %arg13[%c0_189, %c0_190, %c0_191] : memref<1x16x16xf32, #tpu.memory_space<vmem>>, vector<1x16x16xf32>
    %308 = vector.shape_cast %307 : vector<1x16x16xf32> to vector<16x16xf32>
    %cst_192 = arith.constant dense<0.000000e+00> : vector<256x16xf32>
    %309 = tpu.matmul %306, %308, %cst_192 {dimension_numbers = #tpu.dot_dimension_numbers<[1], [0], [0], [1], [0, 0, 1, 1], [], []>} : vector<256x16xf32>, vector<16x16xf32>, vector<256x16xf32> -> vector<256x16xf32>
    %310 = vector.shape_cast %309 : vector<256x16xf32> to vector<16x16x16xf32>
    %c1_193 = arith.constant 1 : index
    %c1_194 = arith.constant 1 : index
    %c0_195 = arith.constant 0 : index
    %311 = vector.load %arg18[%c1_193, %c1_194, %c0_195] : memref<18x18x64xf32, #tpu.memory_space<vmem>>, vector<16x16x16xf32>
    tpu.vector_store %arg18[%c1_193, %c1_194, %c0_195], %310 {strides = array<i32>} : memref<18x18x64xf32, #tpu.memory_space<vmem>>, vector<16x16x16xf32>,
    %c0_196 = arith.constant 0 : index
    %c0_197 = arith.constant 0 : index
    %312 = vector.load %arg14[%c0_196, %c0_197] : memref<9x16xf32, #tpu.memory_space<vmem>>, vector<9x16xf32>
    %c0_198 = arith.constant 0 : index
    %c0_199 = arith.constant 0 : index
    %313 = vector.load %arg15[%c0_198, %c0_199] : memref<1x16xf32, #tpu.memory_space<vmem>>, vector<1x16xf32>
    %cst_200 = arith.constant 0.000000e+00 : f32
    %314 = vector.broadcast %cst_200 : f32 to vector<16x16x16xf32>
    %c0_201 = arith.constant 0 : index
    %c0_202 = arith.constant 0 : index
    %c0_203 = arith.constant 0 : index
    %315 = vector.load %arg18[%c0_201, %c0_202, %c0_203] : memref<18x18x64xf32, #tpu.memory_space<vmem>>, vector<16x16x16xf32>
    %316 = vector.extract_strided_slice %312 {offsets = [0, 0], sizes = [1, 16], strides = [1, 1]} : vector<9x16xf32> to vector<1x16xf32>
    %317 = vector.shape_cast %316 : vector<1x16xf32> to vector<16xf32>
    %318 = vector.shape_cast %317 : vector<16xf32> to vector<1x1x16xf32>
    %319 = vector.broadcast %318 : vector<1x1x16xf32> to vector<16x16x16xf32>
    %320 = arith.mulf %315, %319 : vector<16x16x16xf32>
    %321 = arith.addf %314, %320 : vector<16x16x16xf32>
    %c0_204 = arith.constant 0 : index
    %c1_205 = arith.constant 1 : index
    %c0_206 = arith.constant 0 : index
    %322 = vector.load %arg18[%c0_204, %c1_205, %c0_206] : memref<18x18x64xf32, #tpu.memory_space<vmem>>, vector<16x16x16xf32>
    %323 = vector.extract_strided_slice %312 {offsets = [1, 0], sizes = [1, 16], strides = [1, 1]} : vector<9x16xf32> to vector<1x16xf32>
    %324 = vector.shape_cast %323 : vector<1x16xf32> to vector<16xf32>
    %325 = vector.shape_cast %324 : vector<16xf32> to vector<1x1x16xf32>
    %326 = vector.broadcast %325 : vector<1x1x16xf32> to vector<16x16x16xf32>
    %327 = arith.mulf %322, %326 : vector<16x16x16xf32>
    %328 = arith.addf %321, %327 : vector<16x16x16xf32>
    %c0_207 = arith.constant 0 : index
    %c2_208 = arith.constant 2 : index
    %c0_209 = arith.constant 0 : index
    %329 = vector.load %arg18[%c0_207, %c2_208, %c0_209] : memref<18x18x64xf32, #tpu.memory_space<vmem>>, vector<16x16x16xf32>
    %330 = vector.extract_strided_slice %312 {offsets = [2, 0], sizes = [1, 16], strides = [1, 1]} : vector<9x16xf32> to vector<1x16xf32>
    %331 = vector.shape_cast %330 : vector<1x16xf32> to vector<16xf32>
    %332 = vector.shape_cast %331 : vector<16xf32> to vector<1x1x16xf32>
    %333 = vector.broadcast %332 : vector<1x1x16xf32> to vector<16x16x16xf32>
    %334 = arith.mulf %329, %333 : vector<16x16x16xf32>
    %335 = arith.addf %328, %334 : vector<16x16x16xf32>
    %c1_210 = arith.constant 1 : index
    %c0_211 = arith.constant 0 : index
    %c0_212 = arith.constant 0 : index
    %336 = vector.load %arg18[%c1_210, %c0_211, %c0_212] : memref<18x18x64xf32, #tpu.memory_space<vmem>>, vector<16x16x16xf32>
    %337 = vector.extract_strided_slice %312 {offsets = [3, 0], sizes = [1, 16], strides = [1, 1]} : vector<9x16xf32> to vector<1x16xf32>
    %338 = vector.shape_cast %337 : vector<1x16xf32> to vector<16xf32>
    %339 = vector.shape_cast %338 : vector<16xf32> to vector<1x1x16xf32>
    %340 = vector.broadcast %339 : vector<1x1x16xf32> to vector<16x16x16xf32>
    %341 = arith.mulf %336, %340 : vector<16x16x16xf32>
    %342 = arith.addf %335, %341 : vector<16x16x16xf32>
    %c1_213 = arith.constant 1 : index
    %c1_214 = arith.constant 1 : index
    %c0_215 = arith.constant 0 : index
    %343 = vector.load %arg18[%c1_213, %c1_214, %c0_215] : memref<18x18x64xf32, #tpu.memory_space<vmem>>, vector<16x16x16xf32>
    %344 = vector.extract_strided_slice %312 {offsets = [4, 0], sizes = [1, 16], strides = [1, 1]} : vector<9x16xf32> to vector<1x16xf32>
    %345 = vector.shape_cast %344 : vector<1x16xf32> to vector<16xf32>
    %346 = vector.shape_cast %345 : vector<16xf32> to vector<1x1x16xf32>
    %347 = vector.broadcast %346 : vector<1x1x16xf32> to vector<16x16x16xf32>
    %348 = arith.mulf %343, %347 : vector<16x16x16xf32>
    %349 = arith.addf %342, %348 : vector<16x16x16xf32>
    %c1_216 = arith.constant 1 : index
    %c2_217 = arith.constant 2 : index
    %c0_218 = arith.constant 0 : index
    %350 = vector.load %arg18[%c1_216, %c2_217, %c0_218] : memref<18x18x64xf32, #tpu.memory_space<vmem>>, vector<16x16x16xf32>
    %351 = vector.extract_strided_slice %312 {offsets = [5, 0], sizes = [1, 16], strides = [1, 1]} : vector<9x16xf32> to vector<1x16xf32>
    %352 = vector.shape_cast %351 : vector<1x16xf32> to vector<16xf32>
    %353 = vector.shape_cast %352 : vector<16xf32> to vector<1x1x16xf32>
    %354 = vector.broadcast %353 : vector<1x1x16xf32> to vector<16x16x16xf32>
    %355 = arith.mulf %350, %354 : vector<16x16x16xf32>
    %356 = arith.addf %349, %355 : vector<16x16x16xf32>
    %c2_219 = arith.constant 2 : index
    %c0_220 = arith.constant 0 : index
    %c0_221 = arith.constant 0 : index
    %357 = vector.load %arg18[%c2_219, %c0_220, %c0_221] : memref<18x18x64xf32, #tpu.memory_space<vmem>>, vector<16x16x16xf32>
    %358 = vector.extract_strided_slice %312 {offsets = [6, 0], sizes = [1, 16], strides = [1, 1]} : vector<9x16xf32> to vector<1x16xf32>
    %359 = vector.shape_cast %358 : vector<1x16xf32> to vector<16xf32>
    %360 = vector.shape_cast %359 : vector<16xf32> to vector<1x1x16xf32>
    %361 = vector.broadcast %360 : vector<1x1x16xf32> to vector<16x16x16xf32>
    %362 = arith.mulf %357, %361 : vector<16x16x16xf32>
    %363 = arith.addf %356, %362 : vector<16x16x16xf32>
    %c2_222 = arith.constant 2 : index
    %c1_223 = arith.constant 1 : index
    %c0_224 = arith.constant 0 : index
    %364 = vector.load %arg18[%c2_222, %c1_223, %c0_224] : memref<18x18x64xf32, #tpu.memory_space<vmem>>, vector<16x16x16xf32>
    %365 = vector.extract_strided_slice %312 {offsets = [7, 0], sizes = [1, 16], strides = [1, 1]} : vector<9x16xf32> to vector<1x16xf32>
    %366 = vector.shape_cast %365 : vector<1x16xf32> to vector<16xf32>
    %367 = vector.shape_cast %366 : vector<16xf32> to vector<1x1x16xf32>
    %368 = vector.broadcast %367 : vector<1x1x16xf32> to vector<16x16x16xf32>
    %369 = arith.mulf %364, %368 : vector<16x16x16xf32>
    %370 = arith.addf %363, %369 : vector<16x16x16xf32>
    %c2_225 = arith.constant 2 : index
    %c2_226 = arith.constant 2 : index
    %c0_227 = arith.constant 0 : index
    %371 = vector.load %arg18[%c2_225, %c2_226, %c0_227] : memref<18x18x64xf32, #tpu.memory_space<vmem>>, vector<16x16x16xf32>
    %372 = vector.extract_strided_slice %312 {offsets = [8, 0], sizes = [1, 16], strides = [1, 1]} : vector<9x16xf32> to vector<1x16xf32>
    %373 = vector.shape_cast %372 : vector<1x16xf32> to vector<16xf32>
    %374 = vector.shape_cast %373 : vector<16xf32> to vector<1x1x16xf32>
    %375 = vector.broadcast %374 : vector<1x1x16xf32> to vector<16x16x16xf32>
    %376 = arith.mulf %371, %375 : vector<16x16x16xf32>
    %377 = arith.addf %370, %376 : vector<16x16x16xf32>
    %378 = vector.shape_cast %313 : vector<1x16xf32> to vector<1x1x16xf32>
    %379 = vector.broadcast %378 : vector<1x1x16xf32> to vector<16x16x16xf32>
    %380 = arith.addf %377, %379 : vector<16x16x16xf32>
    %cst_228 = arith.constant 0.000000e+00 : f32
    %381 = vector.broadcast %cst_228 : f32 to vector<16x16x16xf32>
    %382 = arith.maximumf %380, %381 : vector<16x16x16xf32>
    %c0_229 = arith.constant 0 : index
    %c0_230 = arith.constant 0 : index
    %c0_231 = arith.constant 0 : index
    %c48 = arith.constant 48 : index
    %383 = vector.load %arg16[%c0_229, %c0_230, %c0_231, %c48] : memref<1x16x16x64xf32, #tpu.memory_space<vmem>>, vector<1x16x16x16xf32>
    %384 = vector.shape_cast %383 : vector<1x16x16x16xf32> to vector<16x16x16xf32>
    %385 = vector.shape_cast %382 : vector<16x16x16xf32> to vector<1x16x16x16xf32>
    tpu.vector_store %arg16[%c0_229, %c0_230, %c0_231, %c48], %385 {strides = array<i32>} : memref<1x16x16x64xf32, #tpu.memory_space<vmem>>, vector<1x16x16x16xf32>,
    %cst_232 = arith.constant dense<0.000000e+00> : vector<16x16xf32>
    %386 = vector.multi_reduction <add>, %382, %cst_232 [0] : vector<16x16x16xf32> to vector<16x16xf32>
    %cst_233 = arith.constant dense<0.000000e+00> : vector<16xf32>
    %387 = vector.multi_reduction <add>, %386, %cst_233 [0] : vector<16x16xf32> to vector<16xf32>
    %cst_234 = arith.constant 3.906250e-03 : f32
    %388 = vector.broadcast %cst_234 : f32 to vector<16xf32>
    %389 = arith.mulf %387, %388 : vector<16xf32>
    %390 = vector.shape_cast %389 : vector<16xf32> to vector<1x16xf32>
    %c0_235 = arith.constant 0 : index
    %c3 = arith.constant 3 : index
    %c0_236 = arith.constant 0 : index
    %391 = vector.load %arg17[%c0_235, %c3, %c0_236] : memref<1x4x16xf32, #tpu.memory_space<vmem>>, vector<1x1x16xf32>
    %392 = vector.shape_cast %391 : vector<1x1x16xf32> to vector<1x16xf32>
    %393 = vector.shape_cast %390 : vector<1x16xf32> to vector<1x1x16xf32>
    tpu.vector_store %arg17[%c0_235, %c3, %c0_236], %393 {strides = array<i32>} : memref<1x4x16xf32, #tpu.memory_space<vmem>>, vector<1x1x16xf32>,
    return
  }
  func.func @transform_0(%arg0: i32) -> (i32, i32, i32, i32) {
    %c0_i32 = arith.constant 0 : i32
    %c0_i32_0 = arith.constant 0 : i32
    %c0_i32_1 = arith.constant 0 : i32
    %c0_i32_2 = arith.constant 0 : i32
    return %arg0, %c0_i32, %c0_i32_0, %c0_i32_1 : i32, i32, i32, i32
  }
  func.func @transform_1(%arg0: i32) -> (i32, i32) {
    %c0_i32 = arith.constant 0 : i32
    %c0_i32_0 = arith.constant 0 : i32
    %c0_i32_1 = arith.constant 0 : i32
    return %c0_i32, %c0_i32_0 : i32, i32
  }
  func.func @transform_2(%arg0: i32) -> (i32, i32) {
    %c0_i32 = arith.constant 0 : i32
    %c0_i32_0 = arith.constant 0 : i32
    %c0_i32_1 = arith.constant 0 : i32
    return %c0_i32, %c0_i32_0 : i32, i32
  }
  func.func @transform_3(%arg0: i32) -> (i32, i32) {
    %c0_i32 = arith.constant 0 : i32
    %c0_i32_0 = arith.constant 0 : i32
    %c0_i32_1 = arith.constant 0 : i32
    return %c0_i32, %c0_i32_0 : i32, i32
  }
  func.func @transform_4(%arg0: i32) -> (i32, i32) {
    %c0_i32 = arith.constant 0 : i32
    %c0_i32_0 = arith.constant 0 : i32
    %c0_i32_1 = arith.constant 0 : i32
    return %c0_i32, %c0_i32_0 : i32, i32
  }
  func.func @transform_5(%arg0: i32) -> (i32, i32) {
    %c0_i32 = arith.constant 0 : i32
    %c0_i32_0 = arith.constant 0 : i32
    %c0_i32_1 = arith.constant 0 : i32
    return %c0_i32, %c0_i32_0 : i32, i32
  }
  func.func @transform_6(%arg0: i32) -> (i32, i32, i32) {
    %c0_i32 = arith.constant 0 : i32
    %c0_i32_0 = arith.constant 0 : i32
    %c0_i32_1 = arith.constant 0 : i32
    %c0_i32_2 = arith.constant 0 : i32
    return %c0_i32, %c0_i32_0, %c0_i32_1 : i32, i32, i32
  }
  func.func @transform_7(%arg0: i32) -> (i32, i32) {
    %c0_i32 = arith.constant 0 : i32
    %c0_i32_0 = arith.constant 0 : i32
    %c0_i32_1 = arith.constant 0 : i32
    return %c0_i32, %c0_i32_0 : i32, i32
  }
  func.func @transform_8(%arg0: i32) -> (i32, i32) {
    %c0_i32 = arith.constant 0 : i32
    %c0_i32_0 = arith.constant 0 : i32
    %c0_i32_1 = arith.constant 0 : i32
    return %c0_i32, %c0_i32_0 : i32, i32
  }
  func.func @transform_9(%arg0: i32) -> (i32, i32, i32) {
    %c0_i32 = arith.constant 0 : i32
    %c0_i32_0 = arith.constant 0 : i32
    %c0_i32_1 = arith.constant 0 : i32
    %c0_i32_2 = arith.constant 0 : i32
    return %c0_i32, %c0_i32_0, %c0_i32_1 : i32, i32, i32
  }
  func.func @transform_10(%arg0: i32) -> (i32, i32) {
    %c0_i32 = arith.constant 0 : i32
    %c0_i32_0 = arith.constant 0 : i32
    %c0_i32_1 = arith.constant 0 : i32
    return %c0_i32, %c0_i32_0 : i32, i32
  }
  func.func @transform_11(%arg0: i32) -> (i32, i32) {
    %c0_i32 = arith.constant 0 : i32
    %c0_i32_0 = arith.constant 0 : i32
    %c0_i32_1 = arith.constant 0 : i32
    return %c0_i32, %c0_i32_0 : i32, i32
  }
  func.func @transform_12(%arg0: i32) -> (i32, i32, i32) {
    %c0_i32 = arith.constant 0 : i32
    %c0_i32_0 = arith.constant 0 : i32
    %c0_i32_1 = arith.constant 0 : i32
    %c0_i32_2 = arith.constant 0 : i32
    return %c0_i32, %c0_i32_0, %c0_i32_1 : i32, i32, i32
  }
  func.func @transform_13(%arg0: i32) -> (i32, i32) {
    %c0_i32 = arith.constant 0 : i32
    %c0_i32_0 = arith.constant 0 : i32
    %c0_i32_1 = arith.constant 0 : i32
    return %c0_i32, %c0_i32_0 : i32, i32
  }
  func.func @transform_14(%arg0: i32) -> (i32, i32) {
    %c0_i32 = arith.constant 0 : i32
    %c0_i32_0 = arith.constant 0 : i32
    %c0_i32_1 = arith.constant 0 : i32
    return %c0_i32, %c0_i32_0 : i32, i32
  }
  func.func @transform_15(%arg0: i32) -> (i32, i32, i32, i32) {
    %c0_i32 = arith.constant 0 : i32
    %c0_i32_0 = arith.constant 0 : i32
    %c0_i32_1 = arith.constant 0 : i32
    %c0_i32_2 = arith.constant 0 : i32
    return %arg0, %c0_i32, %c0_i32_0, %c0_i32_1 : i32, i32, i32, i32
  }
  func.func @transform_16(%arg0: i32) -> (i32, i32, i32) {
    %c0_i32 = arith.constant 0 : i32
    %c0_i32_0 = arith.constant 0 : i32
    %c0_i32_1 = arith.constant 0 : i32
    return %arg0, %c0_i32, %c0_i32_0 : i32, i32, i32
  }
}

</mosaic_0001>

<bundles_post_ra>
// kernel: tpu_custom_call.1
= control target key start
LH: loop header
LB: loop body
LE: loop exit
PB: predicated region body
PF: predicated region fallthrough
CT: control target
= control target key end

     0   :  { %s16461_s0 = inlined_call_operand.hbm [shape: f32[2,16,16,32], index: 0, kind: input, shape index: {}]   ;;  %s16462_s1 = inlined_call_operand.hbm [shape: f32[32,16], index: 1, kind: input, shape index: {}]   ;;  %s16463_s2 = inlined_call_operand.hbm [shape: f32[1,16], index: 2, kind: input, shape index: {}]   ;;  %s16464_s3 = inlined_call_operand.hbm [shape: f32[16,64], index: 3, kind: input, shape index: {}]   ;;  %s16465_s4 = inlined_call_operand.hbm [shape: f32[9,64], index: 4, kind: input, shape index: {}]   ;;  %s16466_s5 = inlined_call_operand.hbm [shape: f32[1,64], index: 5, kind: input, shape index: {}]   ;;  %s16467_s6 = inlined_call_operand.hbm [shape: f32[3,16,16], index: 6, kind: input, shape index: {}]   ;;  %s16468_s7 = inlined_call_operand.hbm [shape: f32[9,48], index: 7, kind: input, shape index: {}]   ;;  %s16469_s8 = inlined_call_operand.hbm [shape: f32[1,48], index: 8, kind: input, shape index: {}]   ;;  %s16470_s9 = inlined_call_operand.hbm [shape: f32[2,16,16], index: 9, kind: input, shape index: {}]   ;;  %s16471_s10 = inlined_call_operand.hbm [shape: f32[9,32], index: 10, kind: input, shape index: {}]   ;;  %s16472_s11 = inlined_call_operand.hbm [shape: f32[1,32], index: 11, kind: input, shape index: {}]   ;;  %s16473_s12 = inlined_call_operand.hbm [shape: f32[1,16,16], index: 12, kind: input, shape index: {}]   ;;  %s16474_s13 = inlined_call_operand.hbm [shape: f32[9,16], index: 13, kind: input, shape index: {}]   ;;  %s16475_s14 = inlined_call_operand.hbm [shape: f32[1,16], index: 14, kind: input, shape index: {}]   ;;  %s16476_s15 = inlined_call_operand.hbm [shape: f32[2,16,16,64], index: 15, kind: output, shape index: {0}]   ;;  %s16477_s16 = inlined_call_operand.hbm [shape: f32[2,4,16], index: 16, kind: output, shape index: {1}]  }
   0x1   :  { %16559 = sst [smem:[#allocation90_spill]] %s16461_s0 }
   0x2   :  { %16560 = sst [smem:[#allocation91_spill]] %s16462_s1 }
   0x3   :  { %16561 = sst [smem:[#allocation92_spill]] %s16463_s2 }
   0x4   :  { %16562 = sst [smem:[#allocation93_spill]] %s16464_s3 }
   0x5   :  { %16563 = sst [smem:[#allocation94_spill]] %s16465_s4 }
   0x6   :  { %16564 = sst [smem:[#allocation95_spill]] %s16466_s5 }
   0x7   :  { %16565 = sst [smem:[#allocation96_spill]] %s16476_s15 }
   0x8   :  { %16566 = sst [smem:[#allocation97_spill]] %s16477_s16 }
   0x9   :  { %22 = vsyncpa [#allocation4], 0 }
   0xa   :  { %24 = vsyncpa [#allocation4 + $0x1], 0 }
   0xb   :  { %25 = vsyncpa [#allocation7], 0 }
   0xc   :  { %26 = vsyncpa [#allocation10], 0 }
   0xd   :  { %27 = vsyncpa [#allocation13], 0 }
   0xe   :  { %28 = vsyncpa [#allocation16], 0 }
   0xf   :  { %29 = vsyncpa [#allocation19], 0 }
  0x10   :  { %30 = vsyncpa [#allocation22], 0 }
  0x11   :  { %31 = vsyncpa [#allocation25], 0 }
  0x12   :  { %32 = vsyncpa [#allocation5], 0 }
  0x13   :  { %34 = vsyncpa [#allocation5 + $0x1], 0 }
  0x14   :  { %35 = vsyncpa [#allocation29], 0 }
  0x15   :  { %37 = vsyncpa [#allocation29 + $0x1], 0  ;;  %s11172_s21 = smov 0   ;;  %s11174_s22 = smov 0  }
  0x16   :  { %s11176_s23 = smov 0   ;;  %s11178_s24 = smov 0  }
  0x17 LB: > { %16567 = sst [smem:[#allocation40_spill]] %s11045_s21  ;;  %s11059_s25 = smov [#allocation6]   ;;  %s11057_s24 = sphi %s11178_s24, %s16734_s24   ;;  %s11053_s23 = sphi %s11176_s23, %s16733_s23   ;;  %s11049_s22 = sphi %s11174_s22, %s16732_s22   ;;  %s11045_s21 = sphi %s11172_s21, %s16731_s21  }
  0x18   : > { %16568 = sst [smem:[#allocation41_spill]] %s11049_s22  ;;  %s432_s26 = sshll.u32 %s11059_s25, 4  ;;  %s11198_s26 = int_to_ptr.vmem [resolvable:$true] %s432_s26 }
  0x19   : > { %16569 = sst [smem:[#allocation42_spill]] %s11053_s23  ;;  %s11193_s27 = sadd.s32 4294967295, %s11057_s24  }
  0x1a   : > { %16570 = sst [smem:[#allocation43_spill]] %s11193_s27  ;;  %p9257_p0 = scmp.ge.s32.totalorder %s11057_s24, 1 }
  0x1b   : > { %p16489_p1 = scmp.eq.s32.totalorder %s11193_s27, 0  ;;  %p420_p2 = scmp.lt.s32.totalorder %s11057_s24, 3 }
  0x1c   : > { %s11060_s29 = smov [#allocation9]   ;;  %s11061_s17 = smov [#allocation12]  }
  0x1d   : > { %p11200_p3 = pnand %p9257_p0, %p420_p2  ;;  %s456_s30 = sshll.u32 %s11060_s29, 4  ;;  %s11213_s30 = int_to_ptr.vmem [resolvable:$true] %s456_s30 }
  0x1e   : > { %s483_s18 = sshll.u32 %s11061_s17, 4  ;;  %s16574_s1 = sld [smem:[#allocation91_spill]]  ;;  %s11215_s18 = int_to_ptr.vmem [resolvable:$true] %s483_s18 }
  0x1f   : > { %s16571_s28 = scalar_select %p11200_p3, 1, 0 }
  0x20   : > { %p10360_p5 = pneg %p11200_p3 }
  0x21   : > { %16572 = sst [smem:[#allocation44_spill]] %s16571_s28 }
  0x22   : > { %p11209_p6 = pnand %p10360_p5, %p16489_p1 }
  0x24   : > { %s10509_s25 = scalar_lea.hbm %s16574_s1, 512  ;;  %p11225_p8 = pneg %p11209_p6 }
  0x25   : > { %p10510_p7 = scmp.ne.s32.totalorder %s16574_s1, %s10509_s25  ;;  %p10516_p11 = scmp.lt.u32.totalorder %s10509_s25, %s16574_s1 }
  0x27   : > { %p10512_p9 = pnand %p11225_p8, %p10510_p7 }
  0x29   : > { %p10513_p10 = pneg %p10512_p9 }
  0x2b   : > { %p10518_p12 = pnand %p10516_p11, %p10513_p10 }
  0x2d   : > { %10521 = shalt.err (!%p10518_p12)
}
  0x2e   : > { %s10522_s15 = scalar_lea.vmem %s11198_s26, 512  ;;  %p10530_p5 = scmp.lt.s32.totalorder %s11198_s26, %s11198_s26 }
  0x2f   : > { %p10523_p13 = scmp.ne.s32.totalorder %s11198_s26, %s10522_s15  ;;  %p10531_p4 = scmp.lt.s32.totalorder %s10522_s15, %s10522_s15 }
  0x31   : > { %p10525_p0 = pnand %p10523_p13, %p11225_p8  ;;  %p10532_p7 = por %p10531_p4, %p10530_p5 }
  0x33   : > { %p10526_p2 = pneg %p10525_p0 }
  0x35   : > { %p10533_p9 = pnand %p10532_p7, %p10526_p2 }
  0x37   : > { %10536 = shalt.err (!%p10533_p9)
}
  0x38   : > { %s16487_s16 = smov 128   ;;  %s16491_s28 = smov 8  }
  0x39   : > { %10363 = dma.hbm_to_vmem [thread:$0]  (!%p11209_p6), %s16574_s1, 512, %s11198_s26, [#allocation7], %s16487_s16, %s16487_s16, %s16491_s28  }
  0x3a   : > { %s16576_s3 = sld [smem:[#allocation93_spill]] }
  0x40   : > { %s10537_s15 = scalar_lea.hbm %s16576_s3, 256 }
  0x41   : > { %p10538_p4 = scmp.ne.s32.totalorder %s16576_s3, %s10537_s15  ;;  %p10544_p12 = scmp.lt.u32.totalorder %s10537_s15, %s16576_s3 }
  0x43   : > { %p10540_p10 = pnand %p10538_p4, %p11225_p8 }
  0x45   : > { %p10541_p11 = pneg %p10540_p10 }
  0x47   : > { %p10546_p13 = pnand %p10544_p12, %p10541_p11 }
  0x49   : > { %10549 = shalt.err (!%p10546_p13)
}
  0x4a   : > { %s10550_s26 = scalar_lea.vmem %s11213_s30, 256  ;;  %p10558_p7 = scmp.lt.s32.totalorder %s11213_s30, %s11213_s30 }
  0x4b   : > { %p10551_p0 = scmp.ne.s32.totalorder %s11213_s30, %s10550_s26  ;;  %p10559_p9 = scmp.lt.s32.totalorder %s10550_s26, %s10550_s26 }
  0x4d   : > { %p10553_p2 = pnand %p10551_p0, %p11225_p8  ;;  %p10560_p4 = por %p10559_p9, %p10558_p7 }
  0x4f   : > { %p10554_p5 = pneg %p10553_p2 }
  0x51   : > { %p10561_p10 = pnand %p10560_p4, %p10554_p5 }
  0x53   : > { %10564 = shalt.err (!%p10561_p10)
}
  0x54   : > { %10369 = dma.hbm_to_vmem [thread:$0]  (!%p11209_p6), %s16576_s3, 256, %s11213_s30, [#allocation10], %s16487_s16, %s16487_s16, %s16491_s28  }
  0x55   : > { %s16577_s5 = sld [smem:[#allocation95_spill]] }
  0x5b   : > { %s10565_s19 = scalar_lea.hbm %s16577_s5, 16 }
  0x5c   : > { %p10566_p11 = scmp.ne.s32.totalorder %s16577_s5, %s10565_s19  ;;  %p10572_p0 = scmp.lt.u32.totalorder %s10565_s19, %s16577_s5 }
  0x5e   : > { %p10568_p12 = pnand %p10566_p11, %p11225_p8 }
  0x60   : > { %p10569_p13 = pneg %p10568_p12 }
  0x62   : > { %p10574_p2 = pnand %p10572_p0, %p10569_p13 }
  0x64   : > { %10577 = shalt.err (!%p10574_p2)
}
  0x65   : > { %s10578_s30 = scalar_lea.vmem %s11215_s18, 16  ;;  %s10585_s26 = scalar_lea.vmem %s11215_s18, 32 }
  0x66   : > { %p10579_p5 = scmp.ne.s32.totalorder %s11215_s18, %s10578_s30  ;;  %p10586_p4 = scmp.lt.s32.totalorder %s11215_s18, %s11215_s18 }
  0x67   : > { %p10587_p10 = scmp.lt.s32.totalorder %s10585_s26, %s10578_s30 }
  0x68   : > { %p10581_p7 = pnand %p10579_p5, %p11225_p8 }
  0x69   : > { %p10588_p11 = por %p10587_p10, %p10586_p4 }
  0x6a   : > { %p10582_p9 = pneg %p10581_p7 }
  0x6c   : > { %p10589_p12 = pnand %p10588_p11, %p10582_p9 }
  0x6e   : > { %10592 = shalt.err (!%p10589_p12)
}
  0x6f   : > { %10375 = dma.hbm_to_vmem [thread:$0]  (!%p11209_p6), %s16577_s5, 16, %s11215_s18, [#allocation13]  }
  0x70   : > { %s11064_s23 = smov [#allocation15]   ;;  %s11065_s19 = smov [#allocation18]  }
  0x71   : > { %s506_s27 = sshll.u32 %s11064_s23, 4  ;;  %s530_s20 = sshll.u32 %s11065_s19, 4  ;;  %s507_s27 = int_to_ptr.vmem [resolvable:$true] %s506_s27  ;;  %s531_s20 = int_to_ptr.vmem [resolvable:$true] %s530_s20 }
  0x72   : > { %s10593_s15 = scalar_lea.hbm %s16468_s7, 256 }
  0x73   : > { %p10594_p13 = scmp.ne.s32.totalorder %s16468_s7, %s10593_s15  ;;  %p10600_p5 = scmp.lt.u32.totalorder %s10593_s15, %s16468_s7 }
  0x75   : > { %p10596_p0 = pnand %p10594_p13, %p11225_p8 }
  0x77   : > { %p10597_p2 = pneg %p10596_p0 }
  0x79   : > { %p10602_p7 = pnand %p10600_p5, %p10597_p2 }
  0x7b   : > { %10605 = shalt.err (!%p10602_p7)
}
  0x7c   : > { %s10606_s18 = scalar_lea.vmem %s507_s27, 256  ;;  %p10614_p11 = scmp.lt.s32.totalorder %s507_s27, %s507_s27 }
  0x7d   : > { %p10607_p9 = scmp.ne.s32.totalorder %s507_s27, %s10606_s18  ;;  %p10615_p12 = scmp.lt.s32.totalorder %s10606_s18, %s10606_s18 }
  0x7f   : > { %p10609_p4 = pnand %p10607_p9, %p11225_p8  ;;  %p10616_p1 = por %p10615_p12, %p10614_p11 }
  0x81   : > { %p10610_p10 = pneg %p10609_p4 }
  0x83   : > { %p10617_p3 = pnand %p10616_p1, %p10610_p10 }
  0x85   : > { %10620 = shalt.err (!%p10617_p3)
}
  0x86   : > { %s16578_s22 = smov 128   ;;  %s10621_s17 = scalar_lea.hbm %s16470_s9, 512 }
  0x87   : > { %10381 = dma.hbm_to_vmem [thread:$0]  (!%p11209_p6), %s16468_s7, 256, %s507_s27, [#allocation16], %s16578_s22, %s16578_s22, %s16491_s28  }
  0x88   : > { %p10622_p1 = scmp.ne.s32.totalorder %s16470_s9, %s10621_s17  ;;  %p10628_p0 = scmp.lt.u32.totalorder %s10621_s17, %s16470_s9 }
  0x8a   : > { %p10624_p3 = pnand %p10622_p1, %p11225_p8 }
  0x8c   : > { %p10625_p13 = pneg %p10624_p3 }
  0x8e   : > { %p10630_p2 = pnand %p10628_p0, %p10625_p13 }
  0x90   : > { %10633 = shalt.err (!%p10630_p2)
}
  0x91   : > { %s10634_s18 = scalar_lea.vmem %s531_s20, 512  ;;  %p10642_p4 = scmp.lt.s32.totalorder %s531_s20, %s531_s20 }
  0x92   : > { %p10635_p5 = scmp.ne.s32.totalorder %s531_s20, %s10634_s18  ;;  %p10643_p10 = scmp.lt.s32.totalorder %s10634_s18, %s10634_s18 }
  0x94   : > { %p10637_p7 = pnand %p10635_p5, %p11225_p8  ;;  %p10644_p11 = por %p10643_p10, %p10642_p4 }
  0x96   : > { %p10638_p9 = pneg %p10637_p7 }
  0x98   : > { %p10645_p12 = pnand %p10644_p11, %p10638_p9 }
  0x9a   : > { %10648 = shalt.err (!%p10645_p12)
}
  0x9b   : > { %10387 = dma.hbm_to_vmem [thread:$0]  (!%p11209_p6), %s16470_s9, 512, %s531_s20, [#allocation19], %s16578_s22, %s16578_s22, %s16491_s28  }
  0x9c   : > { %s11066_s23 = smov [#allocation21]   ;;  %s11067_s25 = smov [#allocation24]  }
  0x9d   : > { %s557_s19 = sshll.u32 %s11066_s23, 4  ;;  %s580_s17 = sshll.u32 %s11067_s25, 4  ;;  %s558_s19 = int_to_ptr.vmem [resolvable:$true] %s557_s19  ;;  %s581_s17 = int_to_ptr.vmem [resolvable:$true] %s580_s17 }
  0x9e   : > { %s10649_s26 = scalar_lea.hbm %s16472_s11, 16 }
  0x9f   : > { %p10650_p1 = scmp.ne.s32.totalorder %s16472_s11, %s10649_s26  ;;  %p10656_p0 = scmp.lt.u32.totalorder %s10649_s26, %s16472_s11 }
  0xa1   : > { %p10652_p3 = pnand %p10650_p1, %p11225_p8 }
  0xa3   : > { %p10653_p13 = pneg %p10652_p3 }
  0xa5   : > { %p10658_p2 = pnand %p10656_p0, %p10653_p13 }
  0xa7   : > { %10661 = shalt.err (!%p10658_p2)
}
  0xa8   : > { %s10662_s20 = scalar_lea.vmem %s558_s19, 16  ;;  %s10669_s16 = scalar_lea.vmem %s558_s19, 32 }
  0xa9   : > { %p10663_p5 = scmp.ne.s32.totalorder %s558_s19, %s10662_s20  ;;  %p10670_p4 = scmp.lt.s32.totalorder %s558_s19, %s558_s19 }
  0xaa   : > { %p10671_p10 = scmp.lt.s32.totalorder %s10669_s16, %s10662_s20 }
  0xab   : > { %p10665_p7 = pnand %p10663_p5, %p11225_p8 }
  0xac   : > { %p10672_p11 = por %p10671_p10, %p10670_p4 }
  0xad   : > { %p10666_p9 = pneg %p10665_p7 }
  0xaf   : > { %p10673_p12 = pnand %p10672_p11, %p10666_p9 }
  0xb1   : > { %10676 = shalt.err (!%p10673_p12)
}
  0xb2   : > { %10393 = dma.hbm_to_vmem [thread:$0]  (!%p11209_p6), %s16472_s11, 16, %s558_s19, [#allocation22]  }
  0xb3   : > { %s10677_s30 = scalar_lea.hbm %s16474_s13, 256 }
  0xb4   : > { %p10678_p1 = scmp.ne.s32.totalorder %s16474_s13, %s10677_s30  ;;  %p10684_p0 = scmp.lt.u32.totalorder %s10677_s30, %s16474_s13 }
  0xb6   : > { %p10680_p3 = pnand %p10678_p1, %p11225_p8 }
  0xb8   : > { %p10681_p13 = pneg %p10680_p3 }
  0xba   : > { %p10686_p2 = pnand %p10684_p0, %p10681_p13 }
  0xbc   : > { %10689 = shalt.err (!%p10686_p2)
}
  0xbd   : > { %s10690_s20 = scalar_lea.vmem %s581_s17, 256  ;;  %p10698_p4 = scmp.lt.s32.totalorder %s581_s17, %s581_s17 }
  0xbe   : > { %p10691_p5 = scmp.ne.s32.totalorder %s581_s17, %s10690_s20  ;;  %p10699_p10 = scmp.lt.s32.totalorder %s10690_s20, %s10690_s20 }
  0xc0   : > { %p10693_p7 = pnand %p10691_p5, %p11225_p8  ;;  %p10700_p11 = por %p10699_p10, %p10698_p4 }
  0xc2   : > { %p10694_p9 = pneg %p10693_p7 }
  0xc4   : > { %p10701_p12 = pnand %p10700_p11, %p10694_p9 }
  0xc6   : > { %10704 = shalt.err (!%p10701_p12)
}
  0xc7   : > { %10399 = dma.hbm_to_vmem [thread:$0]  (!%p11209_p6), %s16474_s13, 256, %s581_s17, [#allocation25], %s16578_s22, %s16578_s22, %s16491_s28  }
  0xc8   : > { %s11068_s23 = smov [#allocation8]   ;;  %s11069_s1 = smov [#allocation11]  }
  0xc9   : > { %s446_s25 = sshll.u32 %s11068_s23, 4  ;;  %s469_s15 = sshll.u32 %s11069_s1, 4  ;;  %s447_s25 = int_to_ptr.vmem [resolvable:$true] %s446_s25  ;;  %s470_s15 = int_to_ptr.vmem [resolvable:$true] %s469_s15 }
  0xca   : > { %s16579_s2 = sld [smem:[#allocation92_spill]] }
  0xd0   : > { %s10705_s21 = scalar_lea.hbm %s16579_s2, 16 }
  0xd1   : > { %p10706_p1 = scmp.ne.s32.totalorder %s16579_s2, %s10705_s21  ;;  %p10712_p0 = scmp.lt.u32.totalorder %s10705_s21, %s16579_s2 }
  0xd3   : > { %p10708_p3 = pnand %p10706_p1, %p11225_p8 }
  0xd5   : > { %p10709_p13 = pneg %p10708_p3 }
  0xd7   : > { %p10714_p2 = pnand %p10712_p0, %p10709_p13 }
  0xd9   : > { %10717 = shalt.err (!%p10714_p2)
}
  0xda   : > { %s10718_s17 = scalar_lea.vmem %s447_s25, 16  ;;  %s10725_s16 = scalar_lea.vmem %s447_s25, 32 }
  0xdb   : > { %p10719_p5 = scmp.ne.s32.totalorder %s447_s25, %s10718_s17  ;;  %p10726_p4 = scmp.lt.s32.totalorder %s447_s25, %s447_s25 }
  0xdc   : > { %p10727_p10 = scmp.lt.s32.totalorder %s10725_s16, %s10718_s17 }
  0xdd   : > { %p10721_p7 = pnand %p10719_p5, %p11225_p8 }
  0xde   : > { %p10728_p11 = por %p10727_p10, %p10726_p4 }
  0xdf   : > { %p10722_p9 = pneg %p10721_p7 }
  0xe1   : > { %p10729_p12 = pnand %p10728_p11, %p10722_p9 }
  0xe3   : > { %10732 = shalt.err (!%p10729_p12)
}
  0xe4   : > { %10366 = dma.hbm_to_vmem [thread:$0]  (!%p11209_p6), %s16579_s2, 16, %s447_s25, [#allocation7]  }
  0xe5   : > { %s16580_s4 = sld [smem:[#allocation94_spill]] }
  0xeb   : > { %s10733_s21 = scalar_lea.hbm %s16580_s4, 256 }
  0xec   : > { %p10734_p1 = scmp.ne.s32.totalorder %s16580_s4, %s10733_s21  ;;  %p10740_p0 = scmp.lt.u32.totalorder %s10733_s21, %s16580_s4 }
  0xee   : > { %p10736_p3 = pnand %p10734_p1, %p11225_p8 }
  0xf0   : > { %p10737_p13 = pneg %p10736_p3 }
  0xf2   : > { %p10742_p2 = pnand %p10740_p0, %p10737_p13 }
  0xf4   : > { %10745 = shalt.err (!%p10742_p2)
}
  0xf5   : > { %s10746_s17 = scalar_lea.vmem %s470_s15, 256  ;;  %p10754_p4 = scmp.lt.s32.totalorder %s470_s15, %s470_s15 }
  0xf6   : > { %p10747_p5 = scmp.ne.s32.totalorder %s470_s15, %s10746_s17  ;;  %p10755_p10 = scmp.lt.s32.totalorder %s10746_s17, %s10746_s17 }
  0xf8   : > { %p10749_p7 = pnand %p10747_p5, %p11225_p8  ;;  %p10756_p11 = por %p10755_p10, %p10754_p4 }
  0xfa   : > { %p10750_p9 = pneg %p10749_p7 }
  0xfc   : > { %p10757_p12 = pnand %p10756_p11, %p10750_p9 }
  0xfe   : > { %10760 = shalt.err (!%p10757_p12)
}
  0xff   : > { %10372 = dma.hbm_to_vmem [thread:$0]  (!%p11209_p6), %s16580_s4, 256, %s470_s15, [#allocation10], %s16578_s22, %s16578_s22, %s16491_s28  }
 0x100   : > { %s11070_s23 = smov [#allocation14]   ;;  %s11071_s30 = smov [#allocation17]  }
 0x101   : > { %s493_s1 = sshll.u32 %s11070_s23, 4  ;;  %s520_s26 = sshll.u32 %s11071_s30, 4  ;;  %s494_s1 = int_to_ptr.vmem [resolvable:$true] %s493_s1  ;;  %s521_s26 = int_to_ptr.vmem [resolvable:$true] %s520_s26 }
 0x102   : > { %s10761_s27 = scalar_lea.hbm %s16467_s6, 768 }
 0x103   : > { %p10762_p1 = scmp.ne.s32.totalorder %s16467_s6, %s10761_s27  ;;  %p10768_p0 = scmp.lt.u32.totalorder %s10761_s27, %s16467_s6 }
 0x105   : > { %p10764_p3 = pnand %p10762_p1, %p11225_p8 }
 0x107   : > { %p10765_p13 = pneg %p10764_p3 }
 0x109   : > { %p10770_p2 = pnand %p10768_p0, %p10765_p13 }
 0x10b   : > { %10773 = shalt.err (!%p10770_p2)
}
 0x10c   : > { %s10774_s15 = scalar_lea.vmem %s494_s1, 768  ;;  %p10782_p4 = scmp.lt.s32.totalorder %s494_s1, %s494_s1 }
 0x10d   : > { %p10775_p5 = scmp.ne.s32.totalorder %s494_s1, %s10774_s15  ;;  %p10783_p10 = scmp.lt.s32.totalorder %s10774_s15, %s10774_s15 }
 0x10f   : > { %p10777_p7 = pnand %p10775_p5, %p11225_p8  ;;  %p10784_p11 = por %p10783_p10, %p10782_p4 }
 0x111   : > { %p10778_p9 = pneg %p10777_p7 }
 0x113   : > { %p10785_p12 = pnand %p10784_p11, %p10778_p9 }
 0x115   : > { %10788 = shalt.err (!%p10785_p12)
}
 0x116   : > { %10378 = dma.hbm_to_vmem [thread:$0]  (!%p11209_p6), %s16467_s6, 768, %s494_s1, [#allocation13], %s16578_s22, %s16578_s22, %s16491_s28  }
 0x117   : > { %s10789_s18 = scalar_lea.hbm %s16469_s8, 16 }
 0x118   : > { %p10790_p1 = scmp.ne.s32.totalorder %s16469_s8, %s10789_s18  ;;  %p10796_p0 = scmp.lt.u32.totalorder %s10789_s18, %s16469_s8 }
 0x11a   : > { %p10792_p3 = pnand %p10790_p1, %p11225_p8 }
 0x11c   : > { %p10793_p13 = pneg %p10792_p3 }
 0x11e   : > { %p10798_p2 = pnand %p10796_p0, %p10793_p13 }
 0x120   : > { %10801 = shalt.err (!%p10798_p2)
}
 0x121   : > { %s10802_s25 = scalar_lea.vmem %s521_s26, 16  ;;  %s10809_s1 = scalar_lea.vmem %s521_s26, 32 }
 0x122   : > { %p10803_p5 = scmp.ne.s32.totalorder %s521_s26, %s10802_s25  ;;  %p10810_p4 = scmp.lt.s32.totalorder %s521_s26, %s521_s26 }
 0x123   : > { %p10811_p10 = scmp.lt.s32.totalorder %s10809_s1, %s10802_s25 }
 0x124   : > { %p10805_p7 = pnand %p10803_p5, %p11225_p8 }
 0x125   : > { %p10812_p11 = por %p10811_p10, %p10810_p4 }
 0x126   : > { %p10806_p9 = pneg %p10805_p7 }
 0x128   : > { %p10813_p12 = pnand %p10812_p11, %p10806_p9 }
 0x12a   : > { %10816 = shalt.err (!%p10813_p12)
}
 0x12b   : > { %10384 = dma.hbm_to_vmem [thread:$0]  (!%p11209_p6), %s16469_s8, 16, %s521_s26, [#allocation16]  }
 0x12c   : > { %s11072_s23 = smov [#allocation20]   ;;  %s11073_s21 = smov [#allocation23]  }
 0x12d   : > { %s543_s30 = sshll.u32 %s11072_s23, 4  ;;  %s567_s18 = sshll.u32 %s11073_s21, 4  ;;  %s544_s30 = int_to_ptr.vmem [resolvable:$true] %s543_s30  ;;  %s568_s18 = int_to_ptr.vmem [resolvable:$true] %s567_s18 }
 0x12e   : > { %s10817_s19 = scalar_lea.hbm %s16471_s10, 256 }
 0x12f   : > { %p10818_p1 = scmp.ne.s32.totalorder %s16471_s10, %s10817_s19  ;;  %p10824_p0 = scmp.lt.u32.totalorder %s10817_s19, %s16471_s10 }
 0x131   : > { %p10820_p3 = pnand %p10818_p1, %p11225_p8 }
 0x133   : > { %p10821_p13 = pneg %p10820_p3 }
 0x135   : > { %p10826_p2 = pnand %p10824_p0, %p10821_p13 }
 0x137   : > { %10829 = shalt.err (!%p10826_p2)
}
 0x138   : > { %s10830_s26 = scalar_lea.vmem %s544_s30, 256  ;;  %p10838_p4 = scmp.lt.s32.totalorder %s544_s30, %s544_s30 }
 0x139   : > { %p10831_p5 = scmp.ne.s32.totalorder %s544_s30, %s10830_s26  ;;  %p10839_p10 = scmp.lt.s32.totalorder %s10830_s26, %s10830_s26 }
 0x13b   : > { %p10833_p7 = pnand %p10831_p5, %p11225_p8  ;;  %p10840_p11 = por %p10839_p10, %p10838_p4 }
 0x13d   : > { %p10834_p9 = pneg %p10833_p7 }
 0x13f   : > { %p10841_p12 = pnand %p10840_p11, %p10834_p9 }
 0x141   : > { %10844 = shalt.err (!%p10841_p12)
}
 0x142   : > { %10390 = dma.hbm_to_vmem [thread:$0]  (!%p11209_p6), %s16471_s10, 256, %s544_s30, [#allocation19], %s16578_s22, %s16578_s22, %s16491_s28  }
 0x143   : > { %s10845_s20 = scalar_lea.hbm %s16473_s12, 256 }
 0x144   : > { %p10846_p1 = scmp.ne.s32.totalorder %s16473_s12, %s10845_s20  ;;  %p10852_p0 = scmp.lt.u32.totalorder %s10845_s20, %s16473_s12 }
 0x146   : > { %p10848_p3 = pnand %p10846_p1, %p11225_p8 }
 0x148   : > { %p10849_p13 = pneg %p10848_p3 }
 0x14a   : > { %p10854_p2 = pnand %p10852_p0, %p10849_p13 }
 0x14c   : > { %10857 = shalt.err (!%p10854_p2)
}
 0x14d   : > { %s10858_s15 = scalar_lea.vmem %s568_s18, 256  ;;  %p10866_p4 = scmp.lt.s32.totalorder %s568_s18, %s568_s18 }
 0x14e   : > { %p10859_p5 = scmp.ne.s32.totalorder %s568_s18, %s10858_s15  ;;  %p10867_p10 = scmp.lt.s32.totalorder %s10858_s15, %s10858_s15 }
 0x150   : > { %p10861_p7 = pnand %p10859_p5, %p11225_p8  ;;  %p10868_p11 = por %p10867_p10, %p10866_p4 }
 0x152   : > { %p10862_p9 = pneg %p10861_p7 }
 0x154   : > { %p10869_p12 = pnand %p10868_p11, %p10862_p9 }
 0x156   : > { %10872 = shalt.err (!%p10869_p12)
}
 0x157   : > { %10396 = dma.hbm_to_vmem [thread:$0]  (!%p11209_p6), %s16473_s12, 256, %s568_s18, [#allocation22], %s16578_s22, %s16578_s22, %s16491_s28  }
 0x158   : > { %s11074_s16 = smov [#allocation26]   ;;  %s10873_s20 = scalar_lea.hbm %s16475_s14, 16 }
 0x159   : > { %s594_s23 = sshll.u32 %s11074_s16, 4  ;;  %p10874_p1 = scmp.ne.s32.totalorder %s16475_s14, %s10873_s20  ;;  %s595_s23 = int_to_ptr.vmem [resolvable:$true] %s594_s23 }
 0x15a   : > { %p10880_p0 = scmp.lt.u32.totalorder %s10873_s20, %s16475_s14 }
 0x15b   : > { %p10876_p3 = pnand %p10874_p1, %p11225_p8 }
 0x15d   : > { %p10877_p13 = pneg %p10876_p3 }
 0x15f   : > { %p10882_p2 = pnand %p10880_p0, %p10877_p13 }
 0x161   : > { %10885 = shalt.err (!%p10882_p2)
}
 0x162   : > { %s10886_s18 = scalar_lea.vmem %s595_s23, 16  ;;  %s10893_s15 = scalar_lea.vmem %s595_s23, 32 }
 0x163   : > { %p10887_p5 = scmp.ne.s32.totalorder %s595_s23, %s10886_s18  ;;  %p10894_p4 = scmp.lt.s32.totalorder %s595_s23, %s595_s23 }
 0x164   : > { %p10895_p10 = scmp.lt.s32.totalorder %s10893_s15, %s10886_s18 }
 0x165   : > { %p10889_p7 = pnand %p10887_p5, %p11225_p8 }
 0x166   : > { %p10896_p11 = por %p10895_p10, %p10894_p4 }
 0x167   : > { %p10890_p9 = pneg %p10889_p7 }
 0x169   : > { %p10897_p12 = pnand %p10896_p11, %p10890_p9 }
 0x16b   : > { %10900 = shalt.err (!%p10897_p12)
}
 0x16c   : > { %s16581_s16 = sld [smem:[#allocation42_spill]]  ;;  %s16582_s21 = sld [smem:[#allocation41_spill]] }
 0x16d   : > { %s16583_s29 = sld [smem:[#allocation40_spill]]  ;;  %s16584_s27 = sld [smem:[#allocation43_spill]] }
 0x16e   : > { %10402 = dma.hbm_to_vmem [thread:$0]  (!%p11209_p6), %s16475_s14, 16, %s595_s23, [#allocation25]  }
 0x16f   : > { %s9256_s20 = sadd.s32 4294967294, %s11057_s24   ;;  %s11520_s0 = sadd.s32 1, %s11057_s24  }
 0x170   : > { %s47_s19 = ssub.s32 %s11057_s24, %s11520_s0  ;;  %p58_p3 = scmp.eq.s32.totalorder %s11057_s24, 0 }
 0x171   : > { %p48_p8 = scmp.eq.s32.totalorder %s47_s19, 0  ;;  %p387_p7 = scmp.eq.s32.totalorder %s9256_s20, 1 }
 0x172   : > { %s50_s17 = sadd.s32 1, %s16581_s16  ;;  %p57_p1 = scmp.ne.s32.totalorder %s16581_s16, %s16582_s21 }
 0x173   : > { %p63_p13 = scmp.ne.s32.totalorder %s16582_s21, %s16583_s29  ;;  %p16586_p2 = scmp.eq.s32.totalorder %s16584_s27, 0 }
 0x174   : > { %s11531_s25 = scalar_select %p48_p8, %s16581_s16, %s50_s17  }
 0x175   : > { %p11533_p0 = por %p58_p3, %p57_p1  ;;  %p11539_p6 = por %p16586_p2, %p63_p13 }
 0x176   : > { %p381_p5 = scmp.eq.s32.totalorder %s16584_s27, 1  ;;  %p10428_p9 = scmp.lt.s32.totalorder %s11057_s24, 2 }
 0x177   : > { %s605_s18 = sand.u32 1, %s16581_s16   ;;  %p11550_p10 = por %p387_p7, %p63_p13 }
 0x178   : > { %p11546_p4 = por %p381_p5, %p57_p1  ;;  %s9273_s26 = sshll.u32 %s605_s18, 8 }
 0x179   : > { %s16589_s30 = scalar_select %p11550_p10, 1, 0 }
 0x17a   : > { %s16588_s15 = scalar_select %p11546_p4, 1, 0 }
 0x17b   : > { %s9566_s21 = sshll.u32 %s11057_s24, 12  ;;  %s16590_s17 = sld [smem:[#allocation90_spill]] }
 0x17c   : > { %s609_s16 = scalar_lea.vmem [#allocation3], %s9273_s26  ;;  %p11564_p11 = pnand %p10428_p9, %p11533_p0 }
 0x17d   : > { %s616_s27 = sshll.u32 %s609_s16, 4  ;;  %s11568_s2 = scalar_lea.sflag [#allocation4], %s605_s18  ;;  %s11560_s27 = int_to_ptr.vmem [resolvable:$true] %s616_s27 }
 0x17e   : > { %p10903_p8 = pneg %p11564_p11 }
 0x181   : > { %s11558_s28 = scalar_lea.hbm %s16590_s17, %s9566_s21  ;;  %s10906_s1 = scalar_lea.hbm %s16590_s17, 8192 }
 0x182   : > { %s10901_s29 = scalar_lea.hbm %s11558_s28, 4096  ;;  %p10907_p13 = scmp.lt.u32.totalorder %s11558_s28, %s16590_s17 }
 0x183   : > { %p10902_p12 = scmp.ne.s32.totalorder %s11558_s28, %s10901_s29  ;;  %p10908_p0 = scmp.lt.u32.totalorder %s10906_s1, %s10901_s29 }
 0x184   : > { %p10910_p5 = scmp.lt.u32.totalorder %s10901_s29, %s11558_s28 }
 0x185   : > { %p10904_p1 = pnand %p10903_p8, %p10902_p12  ;;  %p10909_p2 = por %p10908_p0, %p10907_p13 }
 0x187   : > { %p10905_p3 = pneg %p10904_p1  ;;  %p10911_p7 = por %p10910_p5, %p10909_p2 }
 0x189   : > { %p10912_p9 = pnand %p10911_p7, %p10905_p3 }
 0x18b   : > { %10915 = shalt.err (!%p10912_p9)
}
 0x18c   : > { %s10916_s18 = scalar_lea.vmem %s11560_s27, 4096  ;;  %s11075_s26 = smov [#allocation3]  }
 0x18d   : > { %p10917_p12 = scmp.ne.s32.totalorder %s11560_s27, %s10916_s18  ;;  %s10921_s21 = sshll.u32 %s11075_s26, 4  ;;  %s10922_s21 = int_to_ptr.vmem [resolvable:$false] %s10921_s21 }
 0x18e   : > { %s10923_s19 = scalar_lea.vmem %s10922_s21, 8192  ;;  %p10924_p4 = scmp.lt.s32.totalorder %s11560_s27, %s10922_s21 }
 0x18f   : > { %p10919_p1 = pnand %p10917_p12, %p10903_p8  ;;  %p10925_p13 = scmp.lt.s32.totalorder %s10923_s19, %s10916_s18 }
 0x191   : > { %p10920_p10 = pneg %p10919_p1  ;;  %p10926_p0 = por %p10925_p13, %p10924_p4 }
 0x193   : > { %p10927_p2 = pnand %p10926_p0, %p10920_p10 }
 0x195   : > { %10930 = shalt.err (!%p10927_p2)
}
 0x196   : > { %s16592_s29 = smov 8   ;;  %s16593_s1 = sld [smem:[#allocation44_spill]] }
 0x197   : > { %10406 = dma.hbm_to_vmem [thread:$0]  (!%p11564_p11), %s11558_s28, 4096, %s11560_s27, %s11568_s2, %s16578_s22, %s16578_s22, %s16592_s29  }
 0x19c   : > { %p16594_p8 = scmp.ne.s32.totalorder %s16593_s1, 0 }
 0x19e   : > { %628 = sbr.rel (%p16594_p8) target bundleno = 2767 (0xacf), region = 80 }
 0x1a5   : > { %s16595_s16 = sld [smem:[#allocation41_spill]] }
 0x1ab   : > { %s11602_s26 = sand.u32 1, %s16595_s16  }
 0x1ac   : > { %s9277_s18 = sshll.u32 %s11602_s26, 8  ;;  %s631_s21 = scalar_lea.sflag [#allocation4], %s11602_s26 }
 0x1ad   : > { %s11608_s20 = scalar_lea.vmem [#allocation3], %s9277_s18 }
 0x1ae   : > { %11004 = dma.done.wait (%p11539_p6), %s631_s21, 4096  }
 0x1af   : > { %11006 = vsyncadd (%p11539_p6), %s631_s21, 4294963200  ;;  %s16596_s2 = sld [smem:[#allocation43_spill]] }
 0x1b5   : > { %p16597_p4 = scmp.eq.s32.totalorder %s16596_s2, 0 }
 0x1b7   : > { %11008 = dma.done.wait (%p16597_p4), [#allocation7], 528   ;;  %p16598_p10 = pmov %p16597_p4 }
 0x1b8   : > { %p16599_p11 = pmov %p16597_p4 }
 0x1b9   : > { %11010 = vsyncadd (%p16598_p10), [#allocation7], 4294966768 }
 0x1ba   : > { %11012 = dma.done.wait (%p16599_p11), [#allocation10], 512   ;;  %p16600_p3 = pmov %p16597_p4 }
 0x1bc   : > { %11014 = vsyncadd (%p16600_p3), [#allocation10], 4294966784  ;;  %p16601_p5 = pmov %p16600_p3 }
 0x1bd   : > { %p16602_p7 = pmov %p16600_p3 }
 0x1be   : > { %11016 = dma.done.wait (%p16601_p5), [#allocation13], 784  }
 0x1bf   : > { %11018 = vsyncadd (%p16602_p7), [#allocation13], 4294966512  ;;  %p16603_p6 = pmov %p16600_p3 }
 0x1c0   : > { %p16604_p9 = pmov %p16600_p3 }
 0x1c1   : > { %11020 = dma.done.wait (%p16603_p6), [#allocation16], 272  }
 0x1c2   : > { %11022 = vsyncadd (%p16604_p9), [#allocation16], 4294967024  ;;  %p16605_p12 = pmov %p16600_p3 }
 0x1c3   : > { %p16606_p1 = pmov %p16600_p3 }
 0x1c4   : > { %11024 = dma.done.wait (%p16605_p12), [#allocation19], 768  }
 0x1c5   : > { %11026 = vsyncadd (%p16606_p1), [#allocation19], 4294966528  ;;  %p16607_p13 = pmov %p16606_p1 }
 0x1c6   : > { %p16608_p0 = pmov %p16606_p1 }
 0x1c7   : > { %11028 = dma.done.wait (%p16607_p13), [#allocation22], 272  }
 0x1c8   : > { %11030 = vsyncadd (%p16608_p0), [#allocation22], 4294967024  ;;  %p16609_p2 = pmov %p16608_p0 }
 0x1c9   : > { %p16610_p8 = pmov %p16608_p0 }
 0x1ca   : > { %11032 = dma.done.wait (%p16609_p2), [#allocation25], 272  }
 0x1cb   : > { %11034 = vsyncadd (%p16610_p8), [#allocation25], 4294967024  ;;  %vm833_vm0 = vcmask 261120   ;;  %v822_v0 = vld [vmem:[#allocation6] sm:$0xff]  ;;  %v823_v1 = vld [vmem:[#allocation6 + $0x8] sm:$0xff]  ;;  %vm744_vm1 = vcmask 523264  }
 0x1cc   : > { %v824_v2 = vld [vmem:[#allocation6 + $0x10] sm:$0xff]  ;;  %v10262_v3 = vpack.c.bf16 %v823_v1, %v822_v0  ;;  %v825_v4 = vld [vmem:[#allocation6 + $0x18] sm:$0xff]  ;;  %v790_v5 = vld [vmem:[%s11608_s20] sm:$0xff]  ;;  %vm753_vm2 = vcmask 516096   ;;  %v11076_v41 = vmov 0.0   ;;  %vm1189_vm3 = vcmask 130048  }
 0x1cd   : > { %v10266_v6 = vpack.c.bf16 %v825_v4, %v824_v2  ;;  %9850 = vmatprep.mubr.msk.f32.mxu0 %vm833_vm0, %v790_v5  ;;  %v791_v7 = vld [vmem:[%s11608_s20 + $0x8] sm:$0xff]  ;;  %v792_v8 = vld [vmem:[%s11608_s20 + $0x10] sm:$0xff]  ;;  %v793_v9 = vld [vmem:[%s11608_s20 + $0x18] sm:$0xff]  ;;  %773 = vst.msk [vmem:[#allocation2 + $0x29] sm:$0x1] %vm753_vm2, %v11076_v41  ;;  %vm747_vm4 = vcmask 517120  }
 0x1ce   : > { %10263 = vmatprep.subr.bf16.mxu0 %v10262_v3  ;;  %v794_v10 = vld [vmem:[%s11608_s20 + $0x20] sm:$0xff]  ;;  %v795_v11 = vld [vmem:[%s11608_s20 + $0x28] sm:$0xff]  ;;  %v796_v12 = vld [vmem:[%s11608_s20 + $0x30] sm:$0xff]  ;;  %745 = vst.msk [vmem:[#allocation2] sm:$0xff] %vm744_vm1, %v11076_v41  ;;  %s11077_s28 = smov 96   ;;  %s11078_s22 = smov 112  }
 0x1cf   : > { %10265 = vmatpush3.bf16.msra.mxu0 %v10262_v3  ;;  %v797_v13 = vld [vmem:[%s11608_s20 + $0x38] sm:$0xff]  ;;  %v798_v14 = vld [vmem:[%s11608_s20 + $0x40] sm:$0xff]  ;;  %v799_v15 = vld [vmem:[%s11608_s20 + $0x48] sm:$0xff]  ;;  %746 = vst.msk [vmem:[#allocation2 + $0x8] sm:$0xff] %vm744_vm1, %v11076_v41  ;;  %s11079_s23 = smov 80   ;;  %s12289_s27 = scalar_lea.vmem [#allocation27], %s9277_s18 }
 0x1d0   : > { %10267 = vmatprep.subr.bf16.mxu0 %v10266_v6  ;;  %v800_v16 = vld [vmem:[%s11608_s20 + $0x50] sm:$0xff]  ;;  %v801_v17 = vld [vmem:[%s11608_s20 + $0x58] sm:$0xff]  ;;  %v802_v18 = vld [vmem:[%s11608_s20 + $0x60] sm:$0xff]  ;;  %750 = vst.msk [vmem:[#allocation2 + $0x198] sm:$0xff] %vm744_vm1, %v11076_v41  ;;  %s9293_s19 = sshll.u32 %s11602_s26, 2  ;;  %vm2622_vm5 = vcmask 122880  }
 0x1d1   : > { %v803_v19 = vld [vmem:[%s11608_s20 + $0x68] sm:$0xff]  ;;  %v804_v20 = vld [vmem:[%s11608_s20 + $0x70] sm:$0xff]  ;;  %v805_v21 = vld [vmem:[%s11608_s20 + $0x78] sm:$0xff]  ;;  %751 = vst.msk [vmem:[#allocation2 + $0x1a0] sm:$0xff] %vm744_vm1, %v11076_v41  ;;  %s13077_s29 = scalar_lea.vmem [#allocation28], %s9293_s19  ;;  %s11080_s1 = smov 16  }
 0x1d2   : > { %v806_v22 = vld [vmem:[%s11608_s20 + $0x80] sm:$0xff]  ;;  %v807_v23 = vld [vmem:[%s11608_s20 + $0x88] sm:$0xff]  ;;  %v808_v24 = vld [vmem:[%s11608_s20 + $0x90] sm:$0xff]  ;;  %755 = vst.msk [vmem:[#allocation2 + $0x18] sm:$0x1] %vm753_vm2, %v11076_v41  ;;  %vm3527_vm6 = vcmask 261248  }
 0x1d3   : > { %10269 = vmatpush3.bf16.msra.mxu0 %v10266_v6  ;;  %v809_v25 = vld [vmem:[%s11608_s20 + $0x98] sm:$0xff]  ;;  %v810_v26 = vld [vmem:[%s11608_s20 + $0xa0] sm:$0xff]  ;;  %v811_v27 = vld [vmem:[%s11608_s20 + $0xa8] sm:$0xff]  ;;  %756 = vst.msk [vmem:[#allocation2 + $0x30] sm:$0x1] %vm753_vm2, %v11076_v41  ;;  %s11081_s16 = smov 32  }
 0x1d4   : > { %v812_v28 = vld [vmem:[%s11608_s20 + $0xb0] sm:$0xff]  ;;  %v813_v29 = vld [vmem:[%s11608_s20 + $0xb8] sm:$0xff]  ;;  %v814_v30 = vld [vmem:[%s11608_s20 + $0xc0] sm:$0xff]  ;;  %757 = vst.msk [vmem:[#allocation2 + $0x48] sm:$0x1] %vm753_vm2, %v11076_v41  ;;  %vm4044_vm7 = vcmask 392448  }
 0x1d5   : > { %v815_v31 = vld [vmem:[%s11608_s20 + $0xc8] sm:$0xff]  ;;  %v816_v32 = vld [vmem:[%s11608_s20 + $0xd0] sm:$0xff]  ;;  %v817_v33 = vld [vmem:[%s11608_s20 + $0xd8] sm:$0xff]  ;;  %758 = vst.msk [vmem:[#allocation2 + $0x60] sm:$0x1] %vm753_vm2, %v11076_v41  ;;  %s11082_s18 = smov 48  }
 0x1d6   : > { %9851 = vmatmul.mubr.msk.f32.vlgmr.msra.gmra.mrb[0].mxu0 %vm833_vm0, %v791_v7  ;;  %v818_v34 = vld [vmem:[%s11608_s20 + $0xe0] sm:$0xff]  ;;  %v819_v35 = vld [vmem:[%s11608_s20 + $0xe8] sm:$0xff]  ;;  %v820_v36 = vld [vmem:[%s11608_s20 + $0xf0] sm:$0xff]  ;;  %759 = vst.msk [vmem:[#allocation2 + $0x78] sm:$0x1] %vm753_vm2, %v11076_v41  ;;  %vm8880_vm8 = vcmask 523648  }
 0x1d7   : > { %9853 = vmatprep.mubr.msk.f32.mxu0 %vm833_vm0, %v792_v8  ;;  %v821_v37 = vld [vmem:[%s11608_s20 + $0xf8] sm:$0xff]  ;;  %v1187_v38 = vld [vmem:[#allocation9] sm:$0xff]  ;;  %v1188_v39 = vld [vmem:[#allocation9 + $0x8] sm:$0xff]  ;;  %760 = vst.msk [vmem:[#allocation2 + $0x90] sm:$0x1] %vm753_vm2, %v11076_v41  ;;  %s9563_s21 = sshll.u32 %s16596_s2, 6 }
 0x1d8   : > { %v10270_v40 = vpack.c.bf16 %v1188_v39, %v1187_v38  ;;  %761 = vst.msk [vmem:[#allocation2 + $0xa8] sm:$0x1] %vm753_vm2, %v11076_v41  ;;  %762 = vst.msk [vmem:[#allocation2 + $0xc0] sm:$0x1] %vm753_vm2, %v11076_v41  ;;  %v11782_v42 = vld [vmem:[#allocation8] ss:$0 sm:$0xff] }
 0x1d9   : > { %763 = vst.msk [vmem:[#allocation2 + $0xd8] sm:$0x1] %vm753_vm2, %v11076_v41  ;;  %764 = vst.msk [vmem:[#allocation2 + $0xf0] sm:$0x1] %vm753_vm2, %v11076_v41  ;;  %s9021_s20 = sshll.u32 %s13077_s29, 4  ;;  %p16726_p10 = scmp.ne.s32.totalorder %s16588_s15, 0  ;;  %s16348_s20 = int_to_ptr.vmem [resolvable:$true] %s9021_s20 }
 0x1da   : > { %9854 = vmatmul.mubr.msk.f32.gmra.mrb[2].mxu0 %vm833_vm0, %v793_v9  ;;  %10271 = vmatprep.subr.bf16.mxu1 %v10270_v40  ;;  %765 = vst.msk [vmem:[#allocation2 + $0x108] sm:$0x1] %vm753_vm2, %v11076_v41  ;;  %766 = vst.msk [vmem:[#allocation2 + $0x120] sm:$0x1] %vm753_vm2, %v11076_v41  ;;  %s11083_s3 = smov [#allocation28]  }
 0x1db   : > { %9856 = vmatprep.mubr.msk.f32.mxu0 %vm833_vm0, %v794_v10  ;;  %10273 = vmatpush3.bf16.msra.mxu1 %v10270_v40  ;;  %767 = vst.msk [vmem:[#allocation2 + $0x138] sm:$0x1] %vm753_vm2, %v11076_v41  ;;  %768 = vst.msk [vmem:[#allocation2 + $0x150] sm:$0x1] %vm753_vm2, %v11076_v41  ;;  %s10935_s4 = sshll.u32 %s11083_s3, 4  ;;  %s10936_s4 = int_to_ptr.vmem [resolvable:$false] %s10935_s4 }
 0x1dc   : > { %769 = vst.msk [vmem:[#allocation2 + $0x168] sm:$0x1] %vm753_vm2, %v11076_v41  ;;  %770 = vst.msk [vmem:[#allocation2 + $0x180] sm:$0x1] %vm753_vm2, %v11076_v41  ;;  %s10937_s5 = scalar_lea.vmem %s10936_s4, 128  ;;  %p10938_p5 = scmp.lt.s32.totalorder %s16348_s20, %s10936_s4 }
 0x1dd   : > { %774 = vst.msk [vmem:[#allocation2 + $0x41] sm:$0x1] %vm753_vm2, %v11076_v41  ;;  %775 = vst.msk [vmem:[#allocation2 + $0x59] sm:$0x1] %vm753_vm2, %v11076_v41 }
 0x1de   : > { %9857 = vmatmul.mubr.msk.f32.gmra.mrb[4].mxu0 %vm833_vm0, %v795_v11  ;;  %776 = vst.msk [vmem:[#allocation2 + $0x71] sm:$0x1] %vm753_vm2, %v11076_v41  ;;  %777 = vst.msk [vmem:[#allocation2 + $0x89] sm:$0x1] %vm753_vm2, %v11076_v41 }
 0x1df   : > { %9859 = vmatprep.mubr.msk.f32.mxu0 %vm833_vm0, %v796_v12  ;;  %778 = vst.msk [vmem:[#allocation2 + $0xa1] sm:$0x1] %vm753_vm2, %v11076_v41  ;;  %779 = vst.msk [vmem:[#allocation2 + $0xb9] sm:$0x1] %vm753_vm2, %v11076_v41 }
 0x1e0   : > { %780 = vst.msk [vmem:[#allocation2 + $0xd1] sm:$0x1] %vm753_vm2, %v11076_v41  ;;  %781 = vst.msk [vmem:[#allocation2 + $0xe9] sm:$0x1] %vm753_vm2, %v11076_v41 }
 0x1e1   : > { %782 = vst.msk [vmem:[#allocation2 + $0x101] sm:$0x1] %vm753_vm2, %v11076_v41  ;;  %783 = vst.msk [vmem:[#allocation2 + $0x119] sm:$0x1] %vm753_vm2, %v11076_v41 }
 0x1e2   : > { %9860 = vmatmul.mubr.msk.f32.gmra.mrb[6].mxu0 %vm833_vm0, %v797_v13  ;;  %784 = vst.msk [vmem:[#allocation2 + $0x131] sm:$0x1] %vm753_vm2, %v11076_v41  ;;  %785 = vst.msk [vmem:[#allocation2 + $0x149] sm:$0x1] %vm753_vm2, %v11076_v41 }
 0x1e3   : > { %9862 = vmatprep.mubr.msk.f32.mxu0 %vm833_vm0, %v798_v14  ;;  %786 = vst.msk [vmem:[#allocation2 + $0x161] sm:$0x1] %vm753_vm2, %v11076_v41  ;;  %787 = vst.msk [vmem:[#allocation2 + $0x179] sm:$0x1] %vm753_vm2, %v11076_v41 }
 0x1e4   : > { %788 = vst.msk [vmem:[#allocation2 + $0x191] sm:$0x1] %vm753_vm2, %v11076_v41  ;;  %754 = vst.msk [vmem:[#allocation2] sm:$0x1] %vm753_vm2, %v11076_v41 }
 0x1e5   : > { %771 = vst.msk [vmem:[#allocation2 + $0x198] sm:$0x1] %vm753_vm2, %v11076_v41 }
 0x1e6   : > { %9863 = vmatmul.mubr.msk.f32.gmra.mrb[8].mxu0 %vm833_vm0, %v799_v15  ;;  %748 = vst.msk [vmem:[#allocation2 + $0x10] sm:$0x3] %vm747_vm4, %v11076_v41  ;;  %752 = vst.msk [vmem:[#allocation2 + $0x1a8] sm:$0x3] %vm747_vm4, %v11076_v41 }
 0x1e7   : > { %9865 = vmatprep.mubr.msk.f32.mxu0 %vm833_vm0, %v800_v16  ;;  %772 = vst.msk [vmem:[#allocation2 + $0x11] sm:$0x1] %vm753_vm2, %v11076_v41  ;;  %789 = vst.msk [vmem:[#allocation2 + $0x1a9] sm:$0x1] %vm753_vm2, %v11076_v41 }
 0x1ea   : > { %9866 = vmatmul.mubr.msk.f32.gmra.mrb[10].mxu0 %vm833_vm0, %v801_v17 }
 0x1eb   : > { %9868 = vmatprep.mubr.msk.f32.mxu0 %vm833_vm0, %v802_v18 }
 0x1ee   : > { %9869 = vmatmul.mubr.msk.f32.gmra.mrb[12].mxu0 %vm833_vm0, %v803_v19 }
 0x1ef   : > { %9871 = vmatprep.mubr.msk.f32.mxu0 %vm833_vm0, %v804_v20 }
 0x1f2   : > { %9872 = vmatmul.mubr.msk.f32.gmra.mrb[14].mxu0 %vm833_vm0, %v805_v21 }
 0x1f3   : > { %9874 = vmatprep.mubr.msk.f32.mxu0 %vm833_vm0, %v806_v22 }
 0x1f6   : > { %9875 = vmatmul.mubr.msk.f32.gmra.mrb[16].mxu0 %vm833_vm0, %v807_v23 }
 0x1f7   : > { %9877 = vmatprep.mubr.msk.f32.mxu0 %vm833_vm0, %v808_v24 }
 0x1fa   : > { %9878 = vmatmul.mubr.msk.f32.gmra.mrb[18].mxu0 %vm833_vm0, %v809_v25 }
 0x1fb   : > { %9880 = vmatprep.mubr.msk.f32.mxu0 %vm833_vm0, %v810_v26 }
 0x1fe   : > { %9881 = vmatmul.mubr.msk.f32.gmra.mrb[20].mxu0 %vm833_vm0, %v811_v27 }
 0x1ff   : > { %9883 = vmatprep.mubr.msk.f32.mxu0 %vm833_vm0, %v812_v28 }
 0x202   : > { %9884 = vmatmul.mubr.msk.f32.gmra.mrb[22].mxu0 %vm833_vm0, %v813_v29 }
 0x203   : > { %9886 = vmatprep.mubr.msk.f32.mxu0 %vm833_vm0, %v814_v30 }
 0x206   : > { %9887 = vmatmul.mubr.msk.f32.gmra.mrb[24].mxu0 %vm833_vm0, %v815_v31 }
 0x207   : > { %9889 = vmatprep.mubr.msk.f32.mxu0 %vm833_vm0, %v816_v32 }
 0x20a   : > { %9890 = vmatmul.mubr.msk.f32.gmra.mrb[26].mxu0 %vm833_vm0, %v817_v33 }
 0x20b   : > { %9892 = vmatprep.mubr.msk.f32.mxu0 %vm833_vm0, %v818_v34 }
 0x20e   : > { %9893 = vmatmul.mubr.msk.f32.gmra.mrb[28].mxu0 %vm833_vm0, %v819_v35 }
 0x20f   : > { %9895 = vmatprep.mubr.msk.f32.mxu0 %vm833_vm0, %v820_v36 }
 0x212   : > { %9896 = vmatmul.mubr.msk.f32.gmra.mrb[30].mxu0 %vm833_vm0, %v821_v37 }
 0x2a9   : > { %v9852_v43 = vpop.f32.mrb[0].mxu0 }
 0x2aa   : > { %v1002_v44 = vadd.f32 %v9852_v43, %v11782_v42  ;;  %v996_v45 = vpop.f32.mrb[1].mxu0 }
 0x2ab   : > { %v997_v46 = vadd.f32 %v11782_v42, %v996_v45 }
 0x2ac   : > { %v1156_v49 = vmax.f32 %v1002_v44, 0.0 }
 0x2ad   : > { %v1155_v47 = vmax.f32 %v997_v46, 0.0  ;;  %v9855_v48 = vpop.f32.mrb[2].mxu0 }
 0x2ae   : > { %v1012_v50 = vadd.f32 %v9855_v48, %v11782_v42  ;;  %v1006_v51 = vpop.f32.mrb[3].mxu0 }
 0x2af   : > { %v1007_v52 = vadd.f32 %v11782_v42, %v1006_v51  ;;  %9902 = vmatprep.mubr.msk.f32.mxu1 %vm1189_vm3, %v1155_v47 }
 0x2b0   : > { %v1158_v53 = vmax.f32 %v1012_v50, 0.0  ;;  %9903 = vmatmul.mubr.msk.f32.vlgmr.msra.gmra.mrb[0].mxu1 %vm1189_vm3, %v1156_v49 }
 0x2b1   : > { %v1157_v54 = vmax.f32 %v1007_v52, 0.0  ;;  %v9858_v55 = vpop.f32.mrb[4].mxu0 }
 0x2b2   : > { %v1022_v56 = vadd.f32 %v9858_v55, %v11782_v42  ;;  %v1016_v57 = vpop.f32.mrb[5].mxu0 }
 0x2b3   : > { %v1017_v58 = vadd.f32 %v11782_v42, %v1016_v57  ;;  %9905 = vmatprep.mubr.msk.f32.mxu1 %vm1189_vm3, %v1157_v54 }
 0x2b4   : > { %v1160_v59 = vmax.f32 %v1022_v56, 0.0  ;;  %9906 = vmatmul.mubr.msk.f32.gmra.mrb[2].mxu1 %vm1189_vm3, %v1158_v53 }
 0x2b5   : > { %v1159_v60 = vmax.f32 %v1017_v58, 0.0  ;;  %v9861_v61 = vpop.f32.mrb[6].mxu0 }
 0x2b6   : > { %v1032_v62 = vadd.f32 %v9861_v61, %v11782_v42  ;;  %v1026_v63 = vpop.f32.mrb[7].mxu0 }
 0x2b7   : > { %v1027_v0 = vadd.f32 %v11782_v42, %v1026_v63  ;;  %9908 = vmatprep.mubr.msk.f32.mxu1 %vm1189_vm3, %v1159_v60 }
 0x2b8   : > { %v1162_v1 = vmax.f32 %v1032_v62, 0.0  ;;  %9909 = vmatmul.mubr.msk.f32.gmra.mrb[4].mxu1 %vm1189_vm3, %v1160_v59 }
 0x2b9   : > { %v1161_v2 = vmax.f32 %v1027_v0, 0.0  ;;  %v9864_v3 = vpop.f32.mrb[8].mxu0 }
 0x2ba   : > { %v1042_v4 = vadd.f32 %v9864_v3, %v11782_v42  ;;  %v1036_v5 = vpop.f32.mrb[9].mxu0 }
 0x2bb   : > { %v1037_v6 = vadd.f32 %v11782_v42, %v1036_v5  ;;  %9911 = vmatprep.mubr.msk.f32.mxu1 %vm1189_vm3, %v1161_v2 }
 0x2bc   : > { %v1164_v7 = vmax.f32 %v1042_v4, 0.0  ;;  %9912 = vmatmul.mubr.msk.f32.gmra.mrb[6].mxu1 %vm1189_vm3, %v1162_v1 }
 0x2bd   : > { %v1163_v8 = vmax.f32 %v1037_v6, 0.0  ;;  %v9867_v9 = vpop.f32.mrb[10].mxu0 }
 0x2be   : > { %v1052_v10 = vadd.f32 %v9867_v9, %v11782_v42  ;;  %v1046_v11 = vpop.f32.mrb[11].mxu0 }
 0x2bf   : > { %v1047_v12 = vadd.f32 %v11782_v42, %v1046_v11  ;;  %9914 = vmatprep.mubr.msk.f32.mxu1 %vm1189_vm3, %v1163_v8 }
 0x2c0   : > { %v1166_v13 = vmax.f32 %v1052_v10, 0.0  ;;  %9915 = vmatmul.mubr.msk.f32.gmra.mrb[8].mxu1 %vm1189_vm3, %v1164_v7 }
 0x2c1   : > { %v1165_v14 = vmax.f32 %v1047_v12, 0.0  ;;  %v9870_v15 = vpop.f32.mrb[12].mxu0 }
 0x2c2   : > { %v1062_v16 = vadd.f32 %v9870_v15, %v11782_v42  ;;  %v1056_v17 = vpop.f32.mrb[13].mxu0  ;;  %v1544_v15 = vld [vmem:[#allocation11] sm:$0xff] }
 0x2c3   : > { %v1057_v18 = vadd.f32 %v11782_v42, %v1056_v17  ;;  %9917 = vmatprep.mubr.msk.f32.mxu1 %vm1189_vm3, %v1165_v14 }
 0x2c4   : > { %v1168_v19 = vmax.f32 %v1062_v16, 0.0  ;;  %9918 = vmatmul.mubr.msk.f32.gmra.mrb[10].mxu1 %vm1189_vm3, %v1166_v13 }
 0x2c5   : > { %v1167_v20 = vmax.f32 %v1057_v18, 0.0  ;;  %v9873_v21 = vpop.f32.mrb[14].mxu0  ;;  %v1548_v18 = vld [vmem:[#allocation2 + $0x8] sm:$0xff] }
 0x2c6   : > { %v1072_v22 = vadd.f32 %v9873_v21, %v11782_v42  ;;  %v1066_v23 = vpop.f32.mrb[15].mxu0  ;;  %v1648_v21 = vld [vmem:[#allocation2 + $0x9] sm:$0xff] }
 0x2c7   : > { %v1067_v24 = vadd.f32 %v11782_v42, %v1066_v23  ;;  %9920 = vmatprep.mubr.msk.f32.mxu1 %vm1189_vm3, %v1167_v20  ;;  %v1647_v23 = vld [vmem:[#allocation2 + $0x1] sm:$0xff] }
 0x2c8   : > { %v1170_v25 = vmax.f32 %v1072_v22, 0.0  ;;  %9921 = vmatmul.mubr.msk.f32.gmra.mrb[12].mxu1 %vm1189_vm3, %v1168_v19  ;;  %v1547_v22 = vld [vmem:[#allocation2] sm:$0xff] }
 0x2c9   : > { %v1169_v26 = vmax.f32 %v1067_v24, 0.0  ;;  %v9876_v27 = vpop.f32.mrb[16].mxu0 }
 0x2ca   : > { %v1082_v28 = vadd.f32 %v9876_v27, %v11782_v42  ;;  %v1076_v29 = vpop.f32.mrb[17].mxu0 }
 0x2cb   : > { %v1077_v30 = vadd.f32 %v11782_v42, %v1076_v29  ;;  %9923 = vmatprep.mubr.msk.f32.mxu1 %vm1189_vm3, %v1169_v26 }
 0x2cc   : > { %v1172_v31 = vmax.f32 %v1082_v28, 0.0  ;;  %9924 = vmatmul.mubr.msk.f32.gmra.mrb[14].mxu1 %vm1189_vm3, %v1170_v25 }
 0x2cd   : > { %v1171_v32 = vmax.f32 %v1077_v30, 0.0  ;;  %v9879_v33 = vpop.f32.mrb[18].mxu0  ;;  %v1748_v30 = vld [vmem:[#allocation2 + $0xa] sm:$0xff] }
 0x2ce   : > { %v1092_v34 = vadd.f32 %v9879_v33, %v11782_v42  ;;  %v1086_v35 = vpop.f32.mrb[19].mxu0 }
 0x2cf   : > { %v1087_v36 = vadd.f32 %v11782_v42, %v1086_v35  ;;  %9926 = vmatprep.mubr.msk.f32.mxu1 %vm1189_vm3, %v1171_v32 }
 0x2d0   : > { %v1174_v37 = vmax.f32 %v1092_v34, 0.0  ;;  %9927 = vmatmul.mubr.msk.f32.gmra.mrb[16].mxu1 %vm1189_vm3, %v1172_v31  ;;  %v1747_v31 = vld [vmem:[#allocation2 + $0x2] sm:$0xff] }
 0x2d1   : > { %v1173_v38 = vmax.f32 %v1087_v36, 0.0  ;;  %v9882_v39 = vpop.f32.mrb[20].mxu0 }
 0x2d2   : > { %v1102_v40 = vadd.f32 %v9882_v39, %v11782_v42  ;;  %v1096_v43 = vpop.f32.mrb[21].mxu0 }
 0x2d3   : > { %v1097_v44 = vadd.f32 %v11782_v42, %v1096_v43  ;;  %9929 = vmatprep.mubr.msk.f32.mxu1 %vm1189_vm3, %v1173_v38 }
 0x2d4   : > { %v1176_v45 = vmax.f32 %v1102_v40, 0.0  ;;  %9930 = vmatmul.mubr.msk.f32.gmra.mrb[18].mxu1 %vm1189_vm3, %v1174_v37 }
 0x2d5   : > { %v1175_v46 = vmax.f32 %v1097_v44, 0.0  ;;  %v9885_v47 = vpop.f32.mrb[22].mxu0 }
 0x2d6   : > { %v1112_v48 = vadd.f32 %v9885_v47, %v11782_v42  ;;  %v1106_v49 = vpop.f32.mrb[23].mxu0 }
 0x2d7   : > { %v1107_v50 = vadd.f32 %v11782_v42, %v1106_v49  ;;  %9932 = vmatprep.mubr.msk.f32.mxu1 %vm1189_vm3, %v1175_v46 }
 0x2d8   : > { %v1178_v51 = vmax.f32 %v1112_v48, 0.0  ;;  %9933 = vmatmul.mubr.msk.f32.gmra.mrb[20].mxu1 %vm1189_vm3, %v1176_v45 }
 0x2d9   : > { %v1177_v52 = vmax.f32 %v1107_v50, 0.0  ;;  %v9888_v53 = vpop.f32.mrb[24].mxu0 }
 0x2da   : > { %v1122_v54 = vadd.f32 %v9888_v53, %v11782_v42  ;;  %v1116_v55 = vpop.f32.mrb[25].mxu0 }
 0x2db   : > { %v1117_v56 = vadd.f32 %v11782_v42, %v1116_v55  ;;  %9935 = vmatprep.mubr.msk.f32.mxu1 %vm1189_vm3, %v1177_v52 }
 0x2dc   : > { %v1180_v57 = vmax.f32 %v1122_v54, 0.0  ;;  %9936 = vmatmul.mubr.msk.f32.gmra.mrb[22].mxu1 %vm1189_vm3, %v1178_v51 }
 0x2dd   : > { %v1179_v58 = vmax.f32 %v1117_v56, 0.0  ;;  %v9891_v59 = vpop.f32.mrb[26].mxu0 }
 0x2de   : > { %v1132_v60 = vadd.f32 %v9891_v59, %v11782_v42  ;;  %v1126_v61 = vpop.f32.mrb[27].mxu0 }
 0x2df   : > { %v1127_v62 = vadd.f32 %v11782_v42, %v1126_v61  ;;  %9938 = vmatprep.mubr.msk.f32.mxu1 %vm1189_vm3, %v1179_v58 }
 0x2e0   : > { %v1182_v63 = vmax.f32 %v1132_v60, 0.0  ;;  %9939 = vmatmul.mubr.msk.f32.gmra.mrb[24].mxu1 %vm1189_vm3, %v1180_v57 }
 0x2e1   : > { %v1181_v0 = vmax.f32 %v1127_v62, 0.0  ;;  %v9894_v1 = vpop.f32.mrb[28].mxu0 }
 0x2e2   : > { %v1142_v2 = vadd.f32 %v9894_v1, %v11782_v42  ;;  %v1136_v3 = vpop.f32.mrb[29].mxu0 }
 0x2e3   : > { %v1137_v4 = vadd.f32 %v11782_v42, %v1136_v3  ;;  %9941 = vmatprep.mubr.msk.f32.mxu1 %vm1189_vm3, %v1181_v0  ;;  %v11910_v0 = vld [vmem:[#allocation11 + $0x8] ss:$0 sm:$0xff] }
 0x2e4   : > { %v1184_v5 = vmax.f32 %v1142_v2, 0.0  ;;  %9942 = vmatmul.mubr.msk.f32.gmra.mrb[26].mxu1 %vm1189_vm3, %v1182_v63 }
 0x2e5   : > { %v1183_v6 = vmax.f32 %v1137_v4, 0.0  ;;  %v9897_v7 = vpop.f32.mrb[30].mxu0 }
 0x2e6   : > { %v1152_v8 = vadd.f32 %v9897_v7, %v11782_v42  ;;  %v1146_v9 = vpop.f32.mrb[31].mxu0 }
 0x2e7   : > { %v1147_v10 = vadd.f32 %v11782_v42, %v1146_v9  ;;  %9944 = vmatprep.mubr.msk.f32.mxu1 %vm1189_vm3, %v1183_v6  ;;  %v1579_v42 = vlaneseq }
 0x2e8   : > { %v1186_v11 = vmax.f32 %v1152_v8, 0.0  ;;  %9945 = vmatmul.mubr.msk.f32.gmra.mrb[28].mxu1 %vm1189_vm3, %v1184_v5 }
 0x2e9   : > { %v1185_v12 = vmax.f32 %v1147_v10, 0.0  ;;  %v1580_v13 = vshrl.u32 %v1579_v42, 7 }
 0x2eb   : > { %9947 = vmatprep.mubr.msk.f32.mxu1 %vm1189_vm3, %v1185_v12  ;;  %v11854_v14 = vsub.s32 0, %v1580_v13  ;;  %v11856_v16 = vsub.s32 1, %v1580_v13  ;;  %v11864_v20 = vsub.s32 2, %v1580_v13  ;;  %v11875_v32 = vsub.s32 3, %v1580_v13 }
 0x2ec   : > { %9948 = vmatmul.mubr.msk.f32.gmra.mrb[30].mxu1 %vm1189_vm3, %v1186_v11  ;;  %v11877_v33 = vsub.s32 4, %v1580_v13  ;;  %v11879_v34 = vsub.s32 5, %v1580_v13  ;;  %v11884_v43 = vsub.s32 7, %v1580_v13  ;;  %v11890_v45 = vsub.s32 6, %v1580_v13 }
 0x2ed   : > { %16611 = vst [vmem:[#allocation45_spill] sm:$0xff] %v11854_v14  ;;  %16612 = vst [vmem:[#allocation46_spill] sm:$0xff] %v11856_v16  ;;  %v11859_v17 = vrot.slane %v1544_v15, %v11854_v14  ;;  %v11862_v19 = vrot.slane %v1544_v15, %v11856_v16  ;;  %v11869_v26 = vrot.slane %v1544_v15, %v11864_v20 }
 0x2ee   : > { %16613 = vst [vmem:[#allocation47_spill] sm:$0xff] %v11864_v20  ;;  %16614 = vst [vmem:[#allocation48_spill] sm:$0xff] %v11875_v32  ;;  %v11888_v44 = vrot.slane %v1544_v15, %v11875_v32  ;;  %v11893_v46 = vrot.slane %v1544_v15, %v11877_v33  ;;  %v11896_v47 = vrot.slane %v1544_v15, %v11879_v34 }
 0x2ef   : > { %v1584_v41 = vmul.f32 %v11859_v17, %v1548_v18  ;;  %v1684_v25 = vmul.f32 %v11862_v19, %v1648_v21  ;;  %v1583_v27 = vmul.f32 %v11859_v17, %v1547_v22  ;;  %v1683_v28 = vmul.f32 %v11862_v19, %v1647_v23  ;;  %16615 = vst [vmem:[#allocation49_spill] sm:$0xff] %v11877_v33 }
 0x2f0   : > { %16616 = vst [vmem:[#allocation50_spill] sm:$0xff] %v11879_v34  ;;  %v1784_v37 = vmul.f32 %v11869_v26, %v1748_v30  ;;  %v1783_v39 = vmul.f32 %v11869_v26, %v1747_v31  ;;  %16617 = vst [vmem:[#allocation51_spill] sm:$0xff] %v11884_v43  ;;  %v11900_v56 = vrot.slane %v1544_v15, %v11884_v43 }
 0x2f1   : > { %v1716_v36 = vadd.f32 %v1684_v25, %v1584_v41  ;;  %v1715_v38 = vadd.f32 %v1683_v28, %v1583_v27  ;;  %16618 = vst [vmem:[#allocation52_spill] sm:$0xff] %v11890_v45  ;;  %v11906_v60 = vrot.slane %v1544_v15, %v11890_v45  ;;  %v2179_v45 = vld [vmem:[#allocation2 + $0x1a0] sm:$0xff] }
 0x2f3   : > { %v1816_v50 = vadd.f32 %v1784_v37, %v1716_v36  ;;  %v1815_v52 = vadd.f32 %v1783_v39, %v1715_v38 }
 0x383   : > { %v9904_v24 = vpop.f32.mrb[0].mxu1 }
 0x384   : > { %1513 = vst.msk [vmem:[#allocation2 + $0x21] sm:$0xff] %vm744_vm1, %v9904_v24  ;;  %v1352_v29 = vpop.f32.mrb[1].mxu1 }
 0x385   : > { %1512 = vst.msk [vmem:[#allocation2 + $0x19] sm:$0xff] %vm744_vm1, %v1352_v29 }
 0x387   : > { %v9907_v35 = vpop.f32.mrb[2].mxu1 }
 0x388   : > { %1515 = vst.msk [vmem:[#allocation2 + $0x39] sm:$0xff] %vm744_vm1, %v9907_v35  ;;  %v1362_v40 = vpop.f32.mrb[3].mxu1 }
 0x389   : > { %1514 = vst.msk [vmem:[#allocation2 + $0x31] sm:$0xff] %vm744_vm1, %v1362_v40 }
 0x38b   : > { %v1750_v48 = vld [vmem:[#allocation2 + $0x22] sm:$0xff]  ;;  %v9910_v49 = vpop.f32.mrb[4].mxu1 }
 0x38c   : > { %v1948_v51 = vld [vmem:[#allocation2 + $0x21] sm:$0xff]  ;;  %v1549_v53 = vld [vmem:[#allocation2 + $0x18] sm:$0xff]  ;;  %1517 = vst.msk [vmem:[#allocation2 + $0x51] sm:$0xff] %vm744_vm1, %v9910_v49  ;;  %v1372_v55 = vpop.f32.mrb[5].mxu1  ;;  %v2084_v2 = vmul.f32 %v11896_v47, %v1750_v48  ;;  %v1786_v11 = vmul.f32 %v11869_v26, %v1750_v48 }
 0x38d   : > { %v1550_v54 = vld [vmem:[#allocation2 + $0x20] sm:$0xff]  ;;  %v1686_v57 = vmul.f32 %v1948_v51, %v11862_v19  ;;  %1516 = vst.msk [vmem:[#allocation2 + $0x49] sm:$0xff] %vm744_vm1, %v1372_v55  ;;  %v1883_v61 = vmul.f32 %v11888_v44, %v1549_v53  ;;  %v1585_v63 = vmul.f32 %v11859_v17, %v1549_v53  ;;  %v1984_v1 = vmul.f32 %v11893_v46, %v1948_v51 }
 0x38e   : > { %v1749_v58 = vld [vmem:[#allocation2 + $0x1a] sm:$0xff]  ;;  %v1884_v59 = vmul.f32 %v11888_v44, %v1550_v54  ;;  %v1586_v4 = vmul.f32 %v11859_v17, %v1550_v54 }
 0x38f   : > { %v1947_v62 = vld [vmem:[#allocation2 + $0x19] sm:$0xff]  ;;  %v9913_v6 = vpop.f32.mrb[6].mxu1  ;;  %v1915_v9 = vadd.f32 %v1883_v61, %v1815_v52  ;;  %v2083_v18 = vmul.f32 %v11896_v47, %v1749_v58  ;;  %v1785_v22 = vmul.f32 %v11869_v26, %v1749_v58 }
 0x390   : > { %v1685_v3 = vmul.f32 %v1947_v62, %v11862_v19  ;;  %v11916_v5 = vld [vmem:[#allocation2 + $0x3a] sm:$0xff]  ;;  %v1916_v7 = vadd.f32 %v1884_v59, %v1816_v50  ;;  %v1983_v10 = vmul.f32 %v11893_v46, %v1947_v62  ;;  %v11922_v12 = vld [vmem:[#allocation2 + $0x30] sm:$0xff]  ;;  %1519 = vst.msk [vmem:[#allocation2 + $0x69] sm:$0xff] %vm744_vm1, %v9913_v6  ;;  %v1382_v15 = vpop.f32.mrb[7].mxu1  ;;  %v1718_v23 = vadd.f32 %v1686_v57, %v1586_v4 }
 0x391   : > { %v11918_v8 = vld [vmem:[#allocation2 + $0x39] sm:$0xff]  ;;  %1518 = vst.msk [vmem:[#allocation2 + $0x61] sm:$0xff] %vm744_vm1, %v1382_v15  ;;  %v2385_v25 = vmul.f32 %v11910_v0, %v11916_v5  ;;  %v11934_v28 = vld [vmem:[#allocation2 + $0x31] sm:$0xff]  ;;  %v2184_v30 = vmul.f32 %v11906_v60, %v11922_v12  ;;  %v1885_v35 = vmul.f32 %v11888_v44, %v11922_v12 }
 0x392   : > { %v1552_v42 = vld [vmem:[#allocation2 + $0x38] sm:$0xff]  ;;  %v1717_v21 = vadd.f32 %v1685_v3, %v1585_v63  ;;  %v2016_v41 = vadd.f32 %v1984_v1, %v1916_v7  ;;  %v2285_v24 = vmul.f32 %v11900_v56, %v11918_v8  ;;  %v2015_v27 = vadd.f32 %v1983_v10, %v1915_v9  ;;  %v11971_v15 = vld [vmem:[#allocation12] ss:$0 sm:$0xff] }
 0x393   : > { %v11924_v13 = vld [vmem:[#allocation2 + $0x32] sm:$0xff]  ;;  %v2185_v29 = vmul.f32 %v11906_v60, %v1552_v42  ;;  %v9916_v36 = vpop.f32.mrb[8].mxu1  ;;  %v2284_v39 = vmul.f32 %v11900_v56, %v11934_v28  ;;  %v1985_v50 = vmul.f32 %v11934_v28, %v11893_v46  ;;  %v1818_v51 = vadd.f32 %v1786_v11, %v1718_v23 }
 0x394   : > { %v1817_v31 = vadd.f32 %v1785_v22, %v1717_v21  ;;  %v2116_v37 = vadd.f32 %v2084_v2, %v2016_v41  ;;  %v2115_v38 = vadd.f32 %v2083_v18, %v2015_v27  ;;  %v2384_v40 = vmul.f32 %v11910_v0, %v11924_v13  ;;  %1521 = vst.msk [vmem:[#allocation2 + $0x81] sm:$0xff] %vm744_vm1, %v9916_v36  ;;  %v1392_v48 = vpop.f32.mrb[9].mxu1  ;;  %v11949_v53 = vld [vmem:[#allocation2 + $0x48] sm:$0xff]  ;;  %v11964_v3 = vld [vmem:[#allocation2 + $0x50] sm:$0xff] }
 0x395   : > { %v1886_v52 = vmul.f32 %v11888_v44, %v1552_v42  ;;  %v11951_v54 = vld [vmem:[#allocation2 + $0x4a] sm:$0xff]  ;;  %1520 = vst.msk [vmem:[#allocation2 + $0x79] sm:$0xff] %vm744_vm1, %v1392_v48  ;;  %v2085_v58 = vmul.f32 %v11896_v47, %v11924_v13  ;;  %v1986_v59 = vmul.f32 %v11918_v8, %v11893_v46  ;;  %v2186_v62 = vmul.f32 %v11906_v60, %v11949_v53 }
 0x396   : > { %v1917_v49 = vadd.f32 %v1885_v35, %v1817_v31  ;;  %v2217_v55 = vadd.f32 %v2185_v29, %v2116_v37  ;;  %v2216_v57 = vadd.f32 %v2184_v30, %v2115_v38  ;;  %v11960_v63 = vld [vmem:[#allocation2 + $0x49] sm:$0xff]  ;;  %v2386_v1 = vmul.f32 %v11910_v0, %v11951_v54  ;;  %v11975_v23 = vld [vmem:[#allocation2 + $0x51] sm:$0xff] }
 0x397   : > { %v1918_v2 = vadd.f32 %v1886_v52, %v1818_v51  ;;  %v9919_v4 = vpop.f32.mrb[10].mxu1  ;;  %v2286_v9 = vmul.f32 %v11900_v56, %v11960_v63  ;;  %v2086_v10 = vmul.f32 %v11896_v47, %v11916_v5  ;;  %v2187_v22 = vmul.f32 %v11906_v60, %v11964_v3 }
 0x398   : > { %v2017_v61 = vadd.f32 %v1985_v50, %v1917_v49  ;;  %v2317_v6 = vadd.f32 %v2285_v24, %v2217_v55  ;;  %v2316_v7 = vadd.f32 %v2284_v39, %v2216_v57  ;;  %1523 = vst.msk [vmem:[#allocation2 + $0x99] sm:$0xff] %vm744_vm1, %v9919_v4  ;;  %v1402_v11 = vpop.f32.mrb[11].mxu1  ;;  %v1588_v41 = vmul.f32 %v11859_v17, %v1552_v42  ;;  %v11978_v24 = vld [vmem:[#allocation2 + $0x52] sm:$0xff]  ;;  %v11993_v49 = vld [vmem:[#allocation2 + $0x68] sm:$0xff] }
 0x399   : > { %v2018_v21 = vadd.f32 %v1986_v59, %v1918_v2  ;;  %1522 = vst.msk [vmem:[#allocation2 + $0x91] sm:$0xff] %vm744_vm1, %v1402_v11  ;;  %v2287_v30 = vmul.f32 %v11900_v56, %v11975_v23  ;;  %v1688_v31 = vmul.f32 %v11918_v8, %v11862_v19  ;;  %v2387_v37 = vmul.f32 %v11910_v0, %v11978_v24  ;;  %v12007_v2 = vld [vmem:[#allocation2 + $0x69] sm:$0xff] }
 0x39a   : > { %v2117_v18 = vadd.f32 %v2085_v58, %v2017_v61  ;;  %v2417_v27 = vadd.f32 %v2385_v25, %v2317_v6  ;;  %v2416_v29 = vadd.f32 %v2384_v40, %v2316_v7  ;;  %v1788_v42 = vmul.f32 %v11869_v26, %v11916_v5 }
 0x39b   : > { %v2118_v36 = vadd.f32 %v2086_v10, %v2018_v21  ;;  %v9922_v38 = vpop.f32.mrb[12].mxu1  ;;  %v1720_v40 = vadd.f32 %v1688_v31, %v1588_v41  ;;  %v1888_v48 = vmul.f32 %v11888_v44, %v11964_v3  ;;  %v1988_v52 = vmul.f32 %v11975_v23, %v11893_v46 }
 0x39c   : > { %v2218_v35 = vadd.f32 %v2186_v62, %v2117_v18  ;;  %v2455_v39 = vadd.f32 %v11971_v15, %v2417_v27  ;;  %v2454_v25 = vadd.f32 %v11971_v15, %v2416_v29  ;;  %1525 = vst.msk [vmem:[#allocation2 + $0xb1] sm:$0xff] %vm744_vm1, %v9922_v38  ;;  %v1412_v8 = vpop.f32.mrb[13].mxu1  ;;  %v2088_v5 = vmul.f32 %v11896_v47, %v11978_v24 }
 0x39d   : > { %v2219_v51 = vadd.f32 %v2187_v22, %v2118_v36  ;;  %1524 = vst.msk [vmem:[#allocation2 + $0xa9] sm:$0xff] %vm744_vm1, %v1412_v8  ;;  %v1820_v58 = vadd.f32 %v1788_v42, %v1720_v40  ;;  %v2189_v59 = vmul.f32 %v11906_v60, %v11993_v49  ;;  %v1587_v4 = vmul.f32 %v11859_v17, %v11922_v12  ;;  %v12021_v12 = vld [vmem:[#allocation2 + $0x6a] sm:$0xff] }
 0x39e   : > { %v2318_v50 = vadd.f32 %v2286_v9, %v2218_v35  ;;  %v12001_v55 = vmax.f32 %v2455_v39, 0.0  ;;  %v12003_v57 = vmax.f32 %v2454_v25, 0.0  ;;  %v1687_v6 = vmul.f32 %v11934_v28, %v11862_v19 }
 0x39f   : > { %v2319_v62 = vadd.f32 %v2287_v30, %v2219_v51  ;;  %v9925_v7 = vpop.f32.mrb[14].mxu1  ;;  %v1920_v9 = vadd.f32 %v1888_v48, %v1820_v58  ;;  %v1787_v10 = vmul.f32 %v11869_v26, %v11924_v13  ;;  %v1887_v22 = vmul.f32 %v11888_v44, %v11949_v53  ;;  %v12034_v30 = vld [vmem:[#allocation2 + $0x60] sm:$0xff] }
 0x3a0   : > { %v2418_v61 = vadd.f32 %v2386_v1, %v2318_v50  ;;  %3048 = vrot.lane.b32.xlu1 %v12001_v55, %s11077_s28  ;;  %2658 = vrot.lane.b32.xlu0 %v12003_v57, %s11078_s22  ;;  %v2289_v1 = vmul.f32 %v11900_v56, %v12007_v2  ;;  %1527 = vst.msk [vmem:[#allocation2 + $0xc9] sm:$0xff] %vm744_vm1, %v9925_v7  ;;  %v1422_v28 = vpop.f32.mrb[15].mxu1  ;;  %v2581_v41 = vsel %vm1189_vm3, %v12001_v55, 0.0  ;;  %v2550_v42 = vsel %vm1189_vm3, %v12003_v57, 0.0 }
 0x3a1   : > { %v2419_v18 = vadd.f32 %v2387_v37, %v2319_v62  ;;  %v1719_v21 = vadd.f32 %v1687_v6, %v1587_v4  ;;  %1526 = vst.msk [vmem:[#allocation2 + $0xc1] sm:$0xff] %vm744_vm1, %v1422_v28  ;;  %v2020_v27 = vadd.f32 %v1988_v52, %v1920_v9  ;;  %v2389_v13 = vmul.f32 %v11910_v0, %v12021_v12  ;;  %v12056_v52 = vld [vmem:[#allocation2 + $0x61] sm:$0xff] }
 0x3a2   : > { %v2456_v11 = vadd.f32 %v11971_v15, %v2418_v61  ;;  %v1987_v29 = vmul.f32 %v11960_v63, %v11893_v46  ;;  %v2087_v37 = vmul.f32 %v11896_v47, %v11951_v54  ;;  %v2188_v25 = vmul.f32 %v11906_v60, %v12034_v30  ;;  %v12067_v4 = vld [vmem:[#allocation2 + $0x62] sm:$0xff]  ;;  %2519 = vst.msk [vmem:[%s12289_s27 + $0x8] sm:$0xff] %vm1189_vm3, %v12001_v55 }
 0x3a3   : > { %v2457_v35 = vadd.f32 %v11971_v15, %v2419_v18  ;;  %v1819_v36 = vadd.f32 %v1787_v10, %v1719_v21  ;;  %v9928_v38 = vpop.f32.mrb[16].mxu1  ;;  %v2120_v39 = vadd.f32 %v2088_v5, %v2020_v27  ;;  %v1590_v40 = vmul.f32 %v11859_v17, %v11964_v3  ;;  %2518 = vst.msk [vmem:[%s12289_s27] sm:$0xff] %vm1189_vm3, %v12003_v57 }
 0x3a4   : > { %v12036_v31 = vmax.f32 %v2456_v11, 0.0  ;;  %3565 = vrot.lane.b32.xlu1 %v12001_v55, %s11079_s23  ;;  %2660 = vrot.lane.b32.xlu0 %v12001_v55, %s11078_s22  ;;  %1529 = vst.msk [vmem:[#allocation2 + $0xe1] sm:$0xff] %vm744_vm1, %v9928_v38  ;;  %v1432_v48 = vpop.f32.mrb[17].mxu1  ;;  %v1690_v5 = vmul.f32 %v11975_v23, %v11862_v19  ;;  %v2288_v3 = vmul.f32 %v11900_v56, %v12056_v52  ;;  %v12079_v11 = vld [vmem:[#allocation2 + $0x80] sm:$0xff]  ;;  %v12318_v55 = vld [vmem:[#allocation2 + $0xaa] sm:$0xff] }
 0x3a5   : > { %v12054_v50 = vmax.f32 %v2457_v35, 0.0  ;;  %v1919_v51 = vadd.f32 %v1887_v22, %v1819_v36  ;;  %1528 = vst.msk [vmem:[#allocation2 + $0xd9] sm:$0xff] %vm744_vm1, %v1432_v48  ;;  %v2221_v61 = vadd.f32 %v2189_v59, %v2120_v39  ;;  %v1790_v62 = vmul.f32 %v11869_v26, %v11978_v24  ;;  %v12089_v35 = vld [vmem:[#allocation2 + $0x81] sm:$0xff] }
 0x3a6   : > { %v2551_v8 = vsel %vm1189_vm3, %v12036_v31, 0.0  ;;  %v1722_v9 = vadd.f32 %v1690_v5, %v1590_v40  ;;  %v1890_v23 = vmul.f32 %v11888_v44, %v11993_v49  ;;  %v2388_v24 = vmul.f32 %v11910_v0, %v12067_v4  ;;  %2520 = vst.msk [vmem:[%s12289_s27 + $0x10] sm:$0xff] %vm1189_vm3, %v12036_v31 }
 0x3a7   : > { %v12061_v58 = vadd.f32 %v2551_v8, %v2550_v42  ;;  %v2582_v6 = vsel %vm1189_vm3, %v12054_v50, 0.0  ;;  %v2019_v7 = vadd.f32 %v1987_v29, %v1919_v51  ;;  %v9931_v10 = vpop.f32.mrb[18].mxu1  ;;  %v2321_v28 = vadd.f32 %v2289_v1, %v2221_v61  ;;  %v12108_v8 = vld [vmem:[#allocation2 + $0x78] sm:$0xff]  ;;  %2521 = vst.msk [vmem:[%s12289_s27 + $0x18] sm:$0xff] %vm1189_vm3, %v12054_v50 }
 0x3a8   : > { %2662 = vrot.lane.b32.xlu1 %v12036_v31, %s11078_s22  ;;  %3046 = vrot.lane.b32.xlu0 %v12003_v57, %s11077_s28  ;;  %v2583_v59 = vadd.f32 %v2582_v6, %v2581_v41  ;;  %1531 = vst.msk [vmem:[#allocation2 + $0xf9] sm:$0xff] %vm744_vm1, %v9931_v10  ;;  %v1442_v18 = vpop.f32.mrb[19].mxu1  ;;  %v1822_v22 = vadd.f32 %v1790_v62, %v1722_v9 }
 0x3a9   : > { %v2119_v21 = vadd.f32 %v2087_v37, %v2019_v7  ;;  %v1990_v27 = vmul.f32 %v12007_v2, %v11893_v46  ;;  %v2090_v29 = vmul.f32 %v11896_v47, %v12021_v12  ;;  %1530 = vst.msk [vmem:[#allocation2 + $0xf1] sm:$0xff] %vm744_vm1, %v1442_v18  ;;  %v2421_v41 = vadd.f32 %v2389_v13, %v2321_v28  ;;  %v12099_v13 = vld [vmem:[#allocation2 + $0x82] sm:$0xff] }
 0x3aa   : > { %v2191_v1 = vmul.f32 %v11906_v60, %v12079_v11  ;;  %v1589_v36 = vmul.f32 %v11859_v17, %v11949_v53  ;;  %v1689_v37 = vmul.f32 %v11960_v63, %v11862_v19  ;;  %v1922_v38 = vadd.f32 %v1890_v23, %v1822_v22 }
 0x3ab   : > { %v2220_v42 = vadd.f32 %v2188_v25, %v2119_v21  ;;  %v2291_v39 = vmul.f32 %v11900_v56, %v12089_v35  ;;  %v1789_v40 = vmul.f32 %v11869_v26, %v11951_v54  ;;  %v9934_v48 = vpop.f32.mrb[20].mxu1  ;;  %v2459_v53 = vadd.f32 %v11971_v15, %v2421_v41 }
 0x3ac   : > { %2664 = vrot.lane.b32.xlu1 %v12054_v50, %s11078_s22  ;;  %3563 = vrot.lane.b32.xlu0 %v12003_v57, %s11079_s23  ;;  %v1721_v63 = vadd.f32 %v1689_v37, %v1589_v36  ;;  %v1889_v25 = vmul.f32 %v11888_v44, %v12034_v30  ;;  %1533 = vst.msk [vmem:[#allocation2 + $0x111] sm:$0xff] %vm744_vm1, %v9934_v48  ;;  %v1452_v54 = vpop.f32.mrb[21].mxu1 }
 0x3ad   : > { %v2320_v51 = vadd.f32 %v2288_v3, %v2220_v42  ;;  %v2022_v5 = vadd.f32 %v1990_v27, %v1922_v38  ;;  %v2391_v61 = vmul.f32 %v11910_v0, %v12099_v13  ;;  %v1989_v62 = vmul.f32 %v12056_v52, %v11893_v46  ;;  %1532 = vst.msk [vmem:[#allocation2 + $0x109] sm:$0xff] %vm744_vm1, %v1452_v54  ;;  %v12142_v42 = vld [vmem:[#allocation2 + $0x79] sm:$0xff] }
 0x3ae   : > { %v12116_v6 = vmax.f32 %v2459_v53, 0.0  ;;  %v1821_v7 = vadd.f32 %v1789_v40, %v1721_v63  ;;  %v2089_v9 = vmul.f32 %v11896_v47, %v12067_v4  ;;  %v2190_v23 = vmul.f32 %v11906_v60, %v12108_v8 }
 0x3af   : > { %v2420_v10 = vadd.f32 %v2388_v24, %v2320_v51  ;;  %v2122_v3 = vadd.f32 %v2090_v29, %v2022_v5  ;;  %v1592_v28 = vmul.f32 %v11859_v17, %v11993_v49  ;;  %v1692_v18 = vmul.f32 %v12007_v2, %v11862_v19  ;;  %v9937_v21 = vpop.f32.mrb[22].mxu1  ;;  %v12136_v29 = vld [vmem:[#allocation2 + $0x7a] sm:$0xff] }
 0x3b0   : > { %3052 = vrot.lane.b32.xlu1 %v12054_v50, %s11077_s28  ;;  %3050 = vrot.lane.b32.xlu0 %v12036_v31, %s11077_s28  ;;  %v2584_v22 = vsel %vm1189_vm3, %v12116_v6, 0.0  ;;  %v1921_v27 = vadd.f32 %v1889_v25, %v1821_v7  ;;  %v1792_v24 = vmul.f32 %v11869_v26, %v12021_v12  ;;  %v1892_v49 = vmul.f32 %v11888_v44, %v12079_v11  ;;  %v1462_v2 = vpop.f32.mrb[23].mxu1 }
 0x3b1   : > { %1535 = vst.msk [vmem:[#allocation2 + $0x129] sm:$0xff] %vm744_vm1, %v9937_v21  ;;  %v12139_v41 = vadd.f32 %v2584_v22, %v2583_v59  ;;  %v2458_v36 = vadd.f32 %v11971_v15, %v2420_v10  ;;  %v2223_v37 = vadd.f32 %v2191_v1, %v2122_v3  ;;  %v1724_v38 = vadd.f32 %v1692_v18, %v1592_v28  ;;  %v12151_v59 = vld [vmem:[#allocation2 + $0x98] sm:$0xff] }
 0x3b2   : > { %1534 = vst.msk [vmem:[#allocation2 + $0x121] sm:$0xff] %vm744_vm1, %v1462_v2  ;;  %v2021_v40 = vadd.f32 %v1989_v62, %v1921_v27  ;;  %v2290_v12 = vmul.f32 %v11900_v56, %v12142_v42  ;;  %v2390_v48 = vmul.f32 %v11910_v0, %v12136_v29  ;;  %v1992_v53 = vmul.f32 %v12089_v35, %v11893_v46  ;;  %v12168_v18 = vld [vmem:[#allocation2 + $0x99] sm:$0xff] }
 0x3b3   : > { %v12153_v63 = vmax.f32 %v2458_v36, 0.0  ;;  %v2323_v1 = vadd.f32 %v2291_v39, %v2223_v37  ;;  %v1824_v25 = vadd.f32 %v1792_v24, %v1724_v38  ;;  %v2092_v54 = vmul.f32 %v11896_v47, %v12099_v13  ;;  %v9940_v51 = vpop.f32.mrb[24].mxu1  ;;  %v12180_v24 = vld [vmem:[#allocation2 + $0x9a] sm:$0xff]  ;;  %v12193_v37 = vld [vmem:[#allocation2 + $0x90] sm:$0xff]  ;;  %2523 = vst.msk [vmem:[%s12289_s27 + $0x28] sm:$0xff] %vm1189_vm3, %v12116_v6 }
 0x3b4   : > { %3569 = vrot.lane.b32.xlu1 %v12054_v50, %s11079_s23  ;;  %3567 = vrot.lane.b32.xlu0 %v12036_v31, %s11079_s23  ;;  %v2121_v5 = vadd.f32 %v2089_v9, %v2021_v40  ;;  %v2193_v62 = vmul.f32 %v11906_v60, %v12151_v59  ;;  %v1591_v7 = vmul.f32 %v11859_v17, %v12034_v30  ;;  %v1472_v39 = vpop.f32.mrb[25].mxu1 }
 0x3b5   : > { %1537 = vst.msk [vmem:[#allocation2 + $0x141] sm:$0xff] %vm744_vm1, %v9940_v51  ;;  %v2553_v10 = vsel %vm1189_vm3, %v12153_v63, 0.0  ;;  %v2423_v3 = vadd.f32 %v2391_v61, %v2323_v1  ;;  %v1924_v28 = vadd.f32 %v1892_v49, %v1824_v25  ;;  %v1691_v21 = vmul.f32 %v12056_v52, %v11862_v19  ;;  %1536 = vst.msk [vmem:[#allocation2 + $0x139] sm:$0xff] %vm744_vm1, %v1472_v39 }
 0x3b6   : > { %v12174_v9 = vadd.f32 %v2553_v10, %v12061_v58  ;;  %v2222_v22 = vadd.f32 %v2190_v23, %v2121_v5  ;;  %v2293_v30 = vmul.f32 %v11900_v56, %v12168_v18  ;;  %v1791_v27 = vmul.f32 %v11869_v26, %v12067_v4  ;;  %2522 = vst.msk [vmem:[%s12289_s27 + $0x20] sm:$0xff] %vm1189_vm3, %v12153_v63 }
 0x3b7   : > { %v2461_v61 = vadd.f32 %v11971_v15, %v2423_v3  ;;  %v2024_v49 = vadd.f32 %v1992_v53, %v1924_v28  ;;  %v1723_v2 = vadd.f32 %v1691_v21, %v1591_v7  ;;  %v1891_v52 = vmul.f32 %v11888_v44, %v12108_v8  ;;  %v9943_v36 = vpop.f32.mrb[26].mxu1 }
 0x3b8   : > { %2668 = vrot.lane.b32.xlu1 %v12116_v6, %s11078_s22  ;;  %2666 = vrot.lane.b32.xlu0 %v12153_v63, %s11078_s22  ;;  %v2322_v58 = vadd.f32 %v2290_v12, %v2222_v22  ;;  %v2393_v4 = vmul.f32 %v11910_v0, %v12180_v24  ;;  %v1991_v23 = vmul.f32 %v12142_v42, %v11893_v46  ;;  %v1482_v38 = vpop.f32.mrb[27].mxu1 }
 0x3b9   : > { %1539 = vst.msk [vmem:[#allocation2 + $0x159] sm:$0xff] %vm744_vm1, %v9943_v36  ;;  %v12196_v40 = vmax.f32 %v2461_v61, 0.0  ;;  %v2124_v53 = vadd.f32 %v2092_v54, %v2024_v49  ;;  %v1823_v1 = vadd.f32 %v1791_v27, %v1723_v2  ;;  %v2091_v25 = vmul.f32 %v11896_v47, %v12136_v29  ;;  %1538 = vst.msk [vmem:[#allocation2 + $0x151] sm:$0xff] %vm744_vm1, %v1482_v38 }
 0x3ba   : > { %v2422_v12 = vadd.f32 %v2390_v48, %v2322_v58  ;;  %v2192_v51 = vmul.f32 %v11906_v60, %v12193_v37  ;;  %v1594_v5 = vmul.f32 %v11859_v17, %v12079_v11  ;;  %v1694_v7 = vmul.f32 %v12089_v35, %v11862_v19  ;;  %v12219_v48 = vld [vmem:[#allocation2 + $0x91] sm:$0xff] }
 0x3bb   : > { %v2586_v39 = vsel %vm1189_vm3, %v12196_v40, 0.0  ;;  %v2225_v54 = vadd.f32 %v2193_v62, %v2124_v53  ;;  %v1923_v10 = vadd.f32 %v1891_v52, %v1823_v1  ;;  %v1794_v3 = vmul.f32 %v11869_v26, %v12099_v13  ;;  %v9946_v28 = vpop.f32.mrb[28].mxu1  ;;  %v12221_v62 = vld [vmem:[#allocation2 + $0x92] sm:$0xff]  ;;  %2525 = vst.msk [vmem:[%s12289_s27 + $0x38] sm:$0xff] %vm1189_vm3, %v12196_v40 }
 0x3bc   : > { %3056 = vrot.lane.b32.xlu1 %v12116_v6, %s11077_s28  ;;  %3054 = vrot.lane.b32.xlu0 %v12153_v63, %s11077_s28  ;;  %v12216_v11 = vadd.f32 %v2586_v39, %v12139_v41  ;;  %v2460_v35 = vadd.f32 %v11971_v15, %v2422_v12  ;;  %v1726_v21 = vadd.f32 %v1694_v7, %v1594_v5  ;;  %v1492_v13 = vpop.f32.mrb[29].mxu1  ;;  %v12228_v41 = vld [vmem:[#allocation2 + $0xb0] sm:$0xff] }
 0x3bd   : > { %1541 = vst.msk [vmem:[#allocation2 + $0x171] sm:$0xff] %vm744_vm1, %v9946_v28  ;;  %v2325_v22 = vadd.f32 %v2293_v30, %v2225_v54  ;;  %v2023_v27 = vadd.f32 %v1991_v23, %v1923_v10  ;;  %v2292_v61 = vmul.f32 %v11900_v56, %v12219_v48  ;;  %v1894_v49 = vmul.f32 %v11888_v44, %v12151_v59 }
 0x3be   : > { %1540 = vst.msk [vmem:[#allocation2 + $0x169] sm:$0xff] %vm744_vm1, %v1492_v13  ;;  %v12231_v2 = vmax.f32 %v2460_v35, 0.0  ;;  %v2392_v52 = vmul.f32 %v11910_v0, %v12221_v62  ;;  %v1826_v36 = vadd.f32 %v1794_v3, %v1726_v21  ;;  %v1994_v30 = vmul.f32 %v12168_v18, %v11893_v46  ;;  %v12256_v3 = vld [vmem:[#allocation2 + $0xb1] sm:$0xff] }
 0x3bf   : > { %v2425_v58 = vadd.f32 %v2393_v4, %v2325_v22  ;;  %v2123_v23 = vadd.f32 %v2091_v25, %v2023_v27  ;;  %v2094_v38 = vmul.f32 %v11896_v47, %v12180_v24  ;;  %v2195_v53 = vmul.f32 %v11906_v60, %v12228_v41  ;;  %v9949_v1 = vpop.f32.mrb[30].mxu1  ;;  %v12260_v35 = vld [vmem:[#allocation2 + $0xb2] sm:$0xff]  ;;  %v12273_v27 = vld [vmem:[#allocation2 + $0xa8] sm:$0xff] }
 0x3c0   : > { %3573 = vrot.lane.b32.xlu1 %v12116_v6, %s11079_s23  ;;  %3571 = vrot.lane.b32.xlu0 %v12153_v63, %s11079_s23  ;;  %v2555_v12 = vsel %vm1189_vm3, %v12231_v2, 0.0  ;;  %v1926_v5 = vadd.f32 %v1894_v49, %v1826_v36  ;;  %v1593_v4 = vmul.f32 %v11859_v17, %v12108_v8  ;;  %v1693_v25 = vmul.f32 %v12142_v42, %v11862_v19  ;;  %v1502_v7 = vpop.f32.mrb[31].mxu1 }
 0x3c1   : > { %1543 = vst.msk [vmem:[#allocation2 + $0x189] sm:$0xff] %vm744_vm1, %v9949_v1  ;;  %v12253_v39 = vadd.f32 %v2555_v12, %v12174_v9  ;;  %v2463_v54 = vadd.f32 %v11971_v15, %v2425_v58  ;;  %v2224_v10 = vadd.f32 %v2192_v51, %v2123_v23  ;;  %v1793_v28 = vmul.f32 %v11869_v26, %v12136_v29 }
 0x3c2   : > { %1542 = vst.msk [vmem:[#allocation2 + $0x181] sm:$0xff] %vm744_vm1, %v1502_v7  ;;  %v2026_v8 = vadd.f32 %v1994_v30, %v1926_v5  ;;  %v2295_v42 = vmul.f32 %v11900_v56, %v12256_v3  ;;  %v1725_v21 = vadd.f32 %v1693_v25, %v1593_v4  ;;  %v1893_v9 = vmul.f32 %v11888_v44, %v12193_v37  ;;  %v12336_v5 = vld [vmem:[#allocation2 + $0xc8] sm:$0xff] }
 0x3c3   : > { %v12267_v13 = vmax.f32 %v2463_v54, 0.0  ;;  %v2324_v51 = vadd.f32 %v2292_v61, %v2224_v10  ;;  %v2395_v22 = vmul.f32 %v11910_v0, %v12260_v35  ;;  %v1993_v29 = vmul.f32 %v12219_v48, %v11893_v46  ;;  %2524 = vst.msk [vmem:[%s12289_s27 + $0x30] sm:$0xff] %vm1189_vm3, %v12231_v2 }
 0x3c4   : > { %2672 = vrot.lane.b32.xlu1 %v12196_v40, %s11078_s22  ;;  %2670 = vrot.lane.b32.xlu0 %v12231_v2, %s11078_s22  ;;  %v2126_v49 = vadd.f32 %v2094_v38, %v2026_v8  ;;  %v1825_v36 = vadd.f32 %v1793_v28, %v1725_v21  ;;  %v2093_v30 = vmul.f32 %v11896_v47, %v12221_v62 }
 0x3c5   : > { %v2588_v61 = vsel %vm1189_vm3, %v12267_v13, 0.0  ;;  %v2424_v58 = vadd.f32 %v2392_v52, %v2324_v51  ;;  %v2194_v23 = vmul.f32 %v11906_v60, %v12273_v27  ;;  %v1596_v1 = vmul.f32 %v11859_v17, %v12151_v59  ;;  %2527 = vst.msk [vmem:[%s12289_s27 + $0x48] sm:$0xff] %vm1189_vm3, %v12267_v13  ;;  %v12321_v59 = vld [vmem:[#allocation2 + $0xa9] sm:$0xff] }
 0x3c6   : > { %v2589_v57 = vadd.f32 %v2588_v61, %v12216_v11  ;;  %v2227_v31 = vadd.f32 %v2195_v53, %v2126_v49  ;;  %v1925_v50 = vadd.f32 %v1893_v9, %v1825_v36  ;;  %v1696_v6 = vmul.f32 %v12168_v18, %v11862_v19  ;;  %v12365_v49 = vld [vmem:[#allocation2 + $0xc9] sm:$0xff]  ;;  %v12373_v61 = vld [vmem:[#allocation2 + $0xc0] sm:$0xff] }
 0x3c7   : > { %v2462_v63 = vadd.f32 %v11971_v15, %v2424_v58  ;;  %v2294_v52 = vmul.f32 %v11900_v56, %v12321_v59  ;;  %v2394_v38 = vmul.f32 %v11910_v0, %v12318_v55  ;;  %v1796_v12 = vmul.f32 %v11869_v26, %v12180_v24 }
 0x3c8   : > { %3060 = vrot.lane.b32.xlu1 %v12196_v40, %s11077_s28  ;;  %3058 = vrot.lane.b32.xlu0 %v12231_v2, %s11077_s28  ;;  %v2327_v11 = vadd.f32 %v2295_v42, %v2227_v31  ;;  %v2025_v18 = vadd.f32 %v1993_v29, %v1925_v50  ;;  %v1728_v53 = vadd.f32 %v1696_v6, %v1596_v1 }
 0x3c9   : > { %v12338_v4 = vmax.f32 %v2462_v63, 0.0  ;;  %v1896_v25 = vmul.f32 %v11888_v44, %v12228_v41  ;;  %v1996_v24 = vmul.f32 %v12256_v3, %v11893_v46  ;;  %v2096_v7 = vmul.f32 %v11896_v47, %v12260_v35 }
 0x3ca   : > { %v2427_v54 = vadd.f32 %v2395_v22, %v2327_v11  ;;  %v2125_v10 = vadd.f32 %v2093_v30, %v2025_v18  ;;  %v1828_v28 = vadd.f32 %v1796_v12, %v1728_v53  ;;  %v2197_v8 = vmul.f32 %v11906_v60, %v12336_v5 }
 0x3cb   : > { %v2557_v42 = vsel %vm1189_vm3, %v12338_v4, 0.0  ;;  %v1595_v21 = vmul.f32 %v11859_v17, %v12193_v37  ;;  %v1695_v9 = vmul.f32 %v12219_v48, %v11862_v19  ;;  %v1795_v51 = vmul.f32 %v11869_v26, %v12221_v62  ;;  %2526 = vst.msk [vmem:[%s12289_s27 + $0x40] sm:$0xff] %vm1189_vm3, %v12338_v4  ;;  %v12367_v48 = vld [vmem:[#allocation2 + $0xca] sm:$0xff] }
 0x3cc   : > { %3577 = vrot.lane.b32.xlu1 %v12196_v40, %s11079_s23  ;;  %3575 = vrot.lane.b32.xlu0 %v12231_v2, %s11079_s23  ;;  %v2558_v22 = vadd.f32 %v2557_v42, %v12253_v39  ;;  %v2465_v29 = vadd.f32 %v11971_v15, %v2427_v54  ;;  %v2226_v37 = vadd.f32 %v2194_v23, %v2125_v10  ;;  %v12404_v10 = vld [vmem:[#allocation2 + $0xc2] sm:$0xff] }
 0x3cd   : > { %v1928_v36 = vadd.f32 %v1896_v25, %v1828_v28  ;;  %v2297_v62 = vmul.f32 %v11900_v56, %v12365_v49  ;;  %v1727_v30 = vadd.f32 %v1695_v9, %v1595_v21  ;;  %v1895_v40 = vmul.f32 %v11888_v44, %v12273_v27 }
 0x3ce   : > { %v12375_v2 = vmax.f32 %v2465_v29, 0.0  ;;  %v2326_v39 = vadd.f32 %v2294_v52, %v2226_v37  ;;  %v2397_v58 = vmul.f32 %v11910_v0, %v12367_v48  ;;  %v1995_v23 = vmul.f32 %v12321_v59, %v11893_v46 }
 0x3cf   : > { %v2028_v1 = vadd.f32 %v1996_v24, %v1928_v36  ;;  %v1827_v31 = vadd.f32 %v1795_v51, %v1727_v30  ;;  %v2095_v50 = vmul.f32 %v11896_v47, %v12318_v55  ;;  %v2196_v6 = vmul.f32 %v11906_v60, %v12373_v61  ;;  %v12400_v24 = vld [vmem:[#allocation2 + $0xc1] sm:$0xff] }
 0x3d0   : > { %2676 = vrot.lane.b32.xlu1 %v12267_v13, %s11078_s22  ;;  %2674 = vrot.lane.b32.xlu0 %v12338_v4, %s11078_s22  ;;  %v2590_v63 = vsel %vm1189_vm3, %v12375_v2, 0.0  ;;  %v2426_v52 = vadd.f32 %v2394_v38, %v2326_v39  ;;  %v1598_v12 = vmul.f32 %v11859_v17, %v12228_v41  ;;  %v1698_v11 = vmul.f32 %v12256_v3, %v11862_v19 }
 0x3d1   : > { %2529 = vst.msk [vmem:[%s12289_s27 + $0x58] sm:$0xff] %vm1189_vm3, %v12375_v2  ;;  %v12398_v18 = vadd.f32 %v2590_v63, %v2589_v57  ;;  %v2128_v53 = vadd.f32 %v2096_v7, %v2028_v1  ;;  %v1927_v25 = vadd.f32 %v1895_v40, %v1827_v31  ;;  %v1798_v54 = vmul.f32 %v11869_v26, %v12260_v35  ;;  %v12411_v57 = vld [vmem:[#allocation2 + $0xe0] sm:$0xff] }
 0x3d2   : > { %v2464_v38 = vadd.f32 %v11971_v15, %v2426_v52  ;;  %v2296_v41 = vmul.f32 %v11900_v56, %v12400_v24  ;;  %v1730_v3 = vadd.f32 %v1698_v11, %v1598_v12  ;;  %v1898_v28 = vmul.f32 %v11888_v44, %v12336_v5  ;;  %v12442_v52 = vld [vmem:[#allocation2 + $0xe1] sm:$0xff] }
 0x3d3   : > { %v2229_v7 = vadd.f32 %v2197_v8, %v2128_v53  ;;  %v2027_v42 = vadd.f32 %v1995_v23, %v1927_v25  ;;  %v2396_v21 = vmul.f32 %v11910_v0, %v12404_v10  ;;  %v1998_v35 = vmul.f32 %v12365_v49, %v11893_v46  ;;  %v12452_v53 = vld [vmem:[#allocation2 + $0xd8] sm:$0xff] }
 0x3d4   : > { %3064 = vrot.lane.b32.xlu1 %v12267_v13, %s11077_s28  ;;  %3062 = vrot.lane.b32.xlu0 %v12338_v4, %s11077_s28  ;;  %v12421_v9 = vmax.f32 %v2464_v38, 0.0  ;;  %v1830_v51 = vadd.f32 %v1798_v54, %v1730_v3  ;;  %v2098_v8 = vmul.f32 %v11896_v47, %v12367_v48  ;;  %v2199_v29 = vmul.f32 %v11906_v60, %v12411_v57 }
 0x3d5   : > { %v2329_v37 = vadd.f32 %v2297_v62, %v2229_v7  ;;  %v2127_v36 = vadd.f32 %v2095_v50, %v2027_v42  ;;  %v1597_v30 = vmul.f32 %v11859_v17, %v12273_v27  ;;  %v1697_v40 = vmul.f32 %v12321_v59, %v11862_v19  ;;  %v12440_v62 = vld [vmem:[#allocation2 + $0xe2] sm:$0xff] }
 0x3d6   : > { %v2559_v39 = vsel %vm1189_vm3, %v12421_v9, 0.0  ;;  %v1930_v23 = vadd.f32 %v1898_v28, %v1830_v51  ;;  %v1797_v1 = vmul.f32 %v11869_v26, %v12318_v55  ;;  %v1897_v31 = vmul.f32 %v11888_v44, %v12373_v61  ;;  %2528 = vst.msk [vmem:[%s12289_s27 + $0x50] sm:$0xff] %vm1189_vm3, %v12421_v9 }
 0x3d7   : > { %v2560_v50 = vadd.f32 %v2559_v39, %v2558_v22  ;;  %v2429_v27 = vadd.f32 %v2397_v58, %v2329_v37  ;;  %v2228_v63 = vadd.f32 %v2196_v6, %v2127_v36  ;;  %v1729_v59 = vadd.f32 %v1697_v40, %v1597_v30  ;;  %v12486_v30 = vld [vmem:[#allocation2 + $0xda] sm:$0xff] }
 0x3d8   : > { %3581 = vrot.lane.b32.xlu1 %v12267_v13, %s11079_s23  ;;  %3579 = vrot.lane.b32.xlu0 %v12338_v4, %s11079_s23  ;;  %v2030_v55 = vadd.f32 %v1998_v35, %v1930_v23  ;;  %v2299_v12 = vmul.f32 %v11900_v56, %v12442_v52  ;;  %v2399_v11 = vmul.f32 %v11910_v0, %v12440_v62 }
 0x3d9   : > { %v2467_v22 = vadd.f32 %v11971_v15, %v2429_v27  ;;  %v2328_v58 = vadd.f32 %v2296_v41, %v2228_v63  ;;  %v1829_v6 = vadd.f32 %v1797_v1, %v1729_v59  ;;  %v1997_v25 = vmul.f32 %v12400_v24, %v11893_v46 }
 0x3da   : > { %v2130_v13 = vadd.f32 %v2098_v8, %v2030_v55  ;;  %v2097_v4 = vmul.f32 %v11896_v47, %v12404_v10  ;;  %v2198_v54 = vmul.f32 %v11906_v60, %v12452_v53  ;;  %v1600_v38 = vmul.f32 %v11859_v17, %v12336_v5 }
 0x3db   : > { %v12463_v3 = vmax.f32 %v2467_v22, 0.0  ;;  %v2428_v28 = vadd.f32 %v2396_v21, %v2328_v58  ;;  %v1929_v7 = vadd.f32 %v1897_v31, %v1829_v6  ;;  %v1700_v41 = vmul.f32 %v12365_v49, %v11862_v19  ;;  %v12478_v49 = vld [vmem:[#allocation2 + $0xd9] sm:$0xff] }
 0x3dc   : > { %2680 = vrot.lane.b32.xlu1 %v12375_v2, %s11078_s22  ;;  %2678 = vrot.lane.b32.xlu0 %v12421_v9, %s11078_s22  ;;  %v2231_v42 = vadd.f32 %v2199_v29, %v2130_v13  ;;  %v1800_v35 = vmul.f32 %v11869_v26, %v12367_v48  ;;  %v1900_v5 = vmul.f32 %v11888_v44, %v12411_v57  ;;  %v12507_v22 = vld [vmem:[#allocation2 + $0xf8] sm:$0xff] }
 0x3dd   : > { %v2592_v21 = vsel %vm1189_vm3, %v12463_v3, 0.0  ;;  %v2466_v51 = vadd.f32 %v11971_v15, %v2428_v28  ;;  %v2029_v8 = vadd.f32 %v1997_v25, %v1929_v7  ;;  %v1732_v37 = vadd.f32 %v1700_v41, %v1600_v38  ;;  %2531 = vst.msk [vmem:[%s12289_s27 + $0x68] sm:$0xff] %vm1189_vm3, %v12463_v3  ;;  %v12510_v6 = vld [vmem:[#allocation2 + $0xf9] sm:$0xff] }
 0x3de   : > { %v2593_v29 = vadd.f32 %v2592_v21, %v12398_v18  ;;  %v2331_v36 = vadd.f32 %v2299_v12, %v2231_v42  ;;  %v2298_v48 = vmul.f32 %v11900_v56, %v12478_v49  ;;  %v2000_v1 = vmul.f32 %v12442_v52, %v11893_v46 }
 0x3df   : > { %v12488_v40 = vmax.f32 %v2466_v51, 0.0  ;;  %v2129_v39 = vadd.f32 %v2097_v4, %v2029_v8  ;;  %v1832_v23 = vadd.f32 %v1800_v35, %v1732_v37  ;;  %v2398_v31 = vmul.f32 %v11910_v0, %v12486_v30  ;;  %v12516_v4 = vld [vmem:[#allocation2 + $0xfa] sm:$0xff] }
 0x3e0   : > { %3068 = vrot.lane.b32.xlu1 %v12375_v2, %s11077_s28  ;;  %3066 = vrot.lane.b32.xlu0 %v12421_v9, %s11077_s28  ;;  %v2431_v18 = vadd.f32 %v2399_v11, %v2331_v36  ;;  %v2100_v27 = vmul.f32 %v11896_v47, %v12440_v62  ;;  %v1599_v12 = vmul.f32 %v11859_v17, %v12373_v61 }
 0x3e1   : > { %v2561_v63 = vsel %vm1189_vm3, %v12488_v40, 0.0  ;;  %v2230_v59 = vadd.f32 %v2198_v54, %v2129_v39  ;;  %v1932_v55 = vadd.f32 %v1900_v5, %v1832_v23  ;;  %2530 = vst.msk [vmem:[%s12289_s27 + $0x60] sm:$0xff] %vm1189_vm3, %v12488_v40  ;;  %v1699_v25 = vmul.f32 %v12400_v24, %v11862_v19 }
 0x3e2   : > { %v2562_v11 = vadd.f32 %v2561_v63, %v2560_v50  ;;  %v2469_v58 = vadd.f32 %v11971_v15, %v2431_v18  ;;  %v1799_v13 = vmul.f32 %v11869_v26, %v12404_v10  ;;  %v2201_v38 = vmul.f32 %v11906_v60, %v12507_v22 }
 0x3e3   : > { %v2330_v54 = vadd.f32 %v2298_v48, %v2230_v59  ;;  %v2032_v61 = vadd.f32 %v2000_v1, %v1932_v55  ;;  %v2301_v50 = vmul.f32 %v11900_v56, %v12510_v6  ;;  %v2401_v10 = vmul.f32 %v11910_v0, %v12516_v4  ;;  %v12550_v48 = vld [vmem:[#allocation2 + $0xf0] sm:$0xff] }
 0x3e4   : > { %3585 = vrot.lane.b32.xlu1 %v12375_v2, %s11079_s23  ;;  %3583 = vrot.lane.b32.xlu0 %v12421_v9, %s11079_s23  ;;  %v12526_v24 = vmax.f32 %v2469_v58, 0.0  ;;  %v1731_v28 = vadd.f32 %v1699_v25, %v1599_v12  ;;  %v1899_v7 = vmul.f32 %v11888_v44, %v12452_v53  ;;  %v1999_v35 = vmul.f32 %v12478_v49, %v11893_v46  ;;  %v12562_v1 = vld [vmem:[#allocation2 + $0xf1] sm:$0xff] }
 0x3e5   : > { %v2430_v41 = vadd.f32 %v2398_v31, %v2330_v54  ;;  %v2132_v42 = vadd.f32 %v2100_v27, %v2032_v61  ;;  %v2099_v2 = vmul.f32 %v11896_v47, %v12486_v30  ;;  %v1602_v21 = vmul.f32 %v11859_v17, %v12411_v57  ;;  %v1767_v61 = vld [vmem:[#allocation2 + $0xf2] sm:$0xff] }
 0x3e6   : > { %v2594_v9 = vsel %vm1189_vm3, %v12526_v24, 0.0  ;;  %v1831_v5 = vadd.f32 %v1799_v13, %v1731_v28  ;;  %v1702_v0 = vmul.f32 %v12442_v52, %v11862_v19  ;;  %2533 = vst.msk [vmem:[%s12289_s27 + $0x78] sm:$0xff] %vm1189_vm3, %v12526_v24  ;;  %v1802_v36 = vmul.f32 %v11869_v26, %v12440_v62 }
 0x3e7   : > { %v12545_v51 = vadd.f32 %v2594_v9, %v2593_v29  ;;  %v2468_v8 = vadd.f32 %v11971_v15, %v2430_v41  ;;  %v2233_v37 = vadd.f32 %v2201_v38, %v2132_v42  ;;  %v1902_v29 = vmul.f32 %v11888_v44, %v12507_v22  ;;  %v12583_v38 = vld [vmem:[#allocation2 + $0x110] sm:$0xff] }
 0x3e8   : > { %2684 = vrot.lane.b32.xlu1 %v12463_v3, %s11078_s22  ;;  %2682 = vrot.lane.b32.xlu0 %v12488_v40, %s11078_s22  ;;  %v1931_v57 = vadd.f32 %v1899_v7, %v1831_v5  ;;  %v1734_v52 = vadd.f32 %v1702_v0, %v1602_v21  ;;  %v2200_v62 = vmul.f32 %v11906_v60, %v12550_v48  ;;  %v12590_v7 = vld [vmem:[#allocation11 + $0x8] ss:$0 sm:$0xff]  ;;  %v2367_v9 = vld [vmem:[#allocation2 + $0x112] sm:$0xff] }
 0x3e9   : > { %v12558_v39 = vmax.f32 %v2468_v8, 0.0  ;;  %v2333_v23 = vadd.f32 %v2301_v50, %v2233_v37  ;;  %v2300_v31 = vmul.f32 %v11900_v56, %v12562_v1  ;;  %v2002_v63 = vmul.f32 %v12510_v6, %v11893_v46 }
 0x3ea   : > { %v2031_v18 = vadd.f32 %v1999_v35, %v1931_v57  ;;  %v1834_v27 = vadd.f32 %v1802_v36, %v1734_v52  ;;  %v2102_v12 = vmul.f32 %v11896_v47, %v12516_v4  ;;  %v1601_v58 = vmul.f32 %v11859_v17, %v12452_v53 }
 0x3eb   : > { %v2563_v59 = vsel %vm1189_vm3, %v12558_v39, 0.0  ;;  %v2433_v55 = vadd.f32 %v2401_v10, %v2333_v23  ;;  %2532 = vst.msk [vmem:[%s12289_s27 + $0x70] sm:$0xff] %vm1189_vm3, %v12558_v39  ;;  %v1701_v53 = vmul.f32 %v12478_v49, %v11862_v19  ;;  %v1801_v10 = vmul.f32 %v11869_v26, %v12486_v30  ;;  %v12619_v23 = vld [vmem:[#allocation2 + $0x108] sm:$0xff] }
 0x3ec   : > { %3072 = vrot.lane.b32.xlu1 %v12463_v3, %s11077_s28  ;;  %3070 = vrot.lane.b32.xlu0 %v12488_v40, %s11077_s28  ;;  %v12581_v25 = vadd.f32 %v2563_v59, %v2562_v11  ;;  %v2131_v13 = vadd.f32 %v2099_v2, %v2031_v18  ;;  %v1934_v54 = vadd.f32 %v1902_v29, %v1834_v27  ;;  %v12597_v2 = vld [vmem:[#allocation2 + $0x111] sm:$0xff] }
 0x3ed   : > { %v2471_v50 = vadd.f32 %v11971_v15, %v2433_v55  ;;  %v2400_v41 = vmul.f32 %v12590_v7, %v1767_v61  ;;  %v2203_v42 = vmul.f32 %v11906_v60, %v12583_v38  ;;  %v1733_v5 = vadd.f32 %v1701_v53, %v1601_v58  ;;  %v1770_v59 = vld [vmem:[#allocation2 + $0x112] sm:$0xff] }
 0x3ee   : > { %v2232_v28 = vadd.f32 %v2200_v62, %v2131_v13  ;;  %v2034_v11 = vadd.f32 %v2002_v63, %v1934_v54  ;;  %v1901_v49 = vmul.f32 %v11888_v44, %v12550_v48  ;;  %v2303_v0 = vmul.f32 %v11900_v56, %v12597_v2  ;;  %v12631_v63 = vld [vmem:[#allocation2 + $0x109] sm:$0xff] }
 0x3ef   : > { %v12595_v35 = vmax.f32 %v2471_v50, 0.0  ;;  %v1833_v8 = vadd.f32 %v1801_v10, %v1733_v5  ;;  %v2001_v37 = vmul.f32 %v12562_v1, %v11893_v46  ;;  %v1604_v36 = vmul.f32 %v11859_v17, %v12507_v22  ;;  %v1769_v10 = vld [vmem:[#allocation2 + $0x10a] sm:$0xff] }
 0x3f0   : > { %3589 = vrot.lane.b32.xlu1 %v12463_v3, %s11079_s23  ;;  %3587 = vrot.lane.b32.xlu0 %v12488_v40, %s11079_s23  ;;  %v2332_v30 = vadd.f32 %v2300_v31, %v2232_v28  ;;  %v2134_v21 = vadd.f32 %v2102_v12, %v2034_v11  ;;  %v1704_v57 = vmul.f32 %v12510_v6, %v11862_v19  ;;  %v12642_v28 = vld [vmem:[#allocation2 + $0x128] sm:$0xff] }
 0x3f1   : > { %2535 = vst.msk [vmem:[%s12289_s27 + $0x88] sm:$0xff] %vm1189_vm3, %v12595_v35  ;;  %v2403_v52 = vmul.f32 %v12590_v7, %v2367_v9  ;;  %v1804_v29 = vmul.f32 %v11869_v26, %v12516_v4  ;;  %v1933_v62 = vadd.f32 %v1901_v49, %v1833_v8  ;;  %v2101_v18 = vmul.f32 %v11896_v47, %v1767_v61  ;;  %v12651_v49 = vld [vmem:[#allocation12] ss:$0 sm:$0xff] }
 0x3f2   : > { %v2432_v3 = vadd.f32 %v2400_v41, %v2332_v30  ;;  %v2235_v40 = vadd.f32 %v2203_v42, %v2134_v21  ;;  %v1736_v31 = vadd.f32 %v1704_v57, %v1604_v36  ;;  %v1904_v22 = vmul.f32 %v11888_v44, %v12583_v38  ;;  %v2369_v42 = vld [vmem:[#allocation2 + $0x12a] sm:$0xff] }
 0x3f3   : > { %v2202_v4 = vmul.f32 %v11906_v60, %v12619_v23  ;;  %v2033_v55 = vadd.f32 %v2001_v37, %v1933_v62  ;;  %v2302_v12 = vmul.f32 %v11900_v56, %v12631_v63  ;;  %v2004_v13 = vmul.f32 %v12597_v2, %v11893_v46 }
 0x3f4   : > { %2688 = vrot.lane.b32.xlu1 %v12526_v24, %s11078_s22  ;;  %2686 = vrot.lane.b32.xlu0 %v12558_v39, %s11078_s22  ;;  %v2470_v6 = vadd.f32 %v11971_v15, %v2432_v3  ;;  %v2335_v27 = vadd.f32 %v2303_v0, %v2235_v40  ;;  %v1836_v58 = vadd.f32 %v1804_v29, %v1736_v31  ;;  %v12660_v0 = vld [vmem:[#allocation2 + $0x129] sm:$0xff] }
 0x3f5   : > { %v2104_v15 = vmul.f32 %v11896_v47, %v1770_v59  ;;  %v1603_v53 = vmul.f32 %v11859_v17, %v12550_v48  ;;  %v2133_v41 = vadd.f32 %v2101_v18, %v2033_v55  ;;  %v1703_v9 = vmul.f32 %v12562_v1, %v11862_v19  ;;  %v2168_v18 = vld [vmem:[#allocation2 + $0x120] sm:$0xff] }
 0x3f6   : > { %v12637_v54 = vmax.f32 %v2470_v6, 0.0  ;;  %v2435_v50 = vadd.f32 %v2403_v52, %v2335_v27  ;;  %v1936_v11 = vadd.f32 %v1904_v22, %v1836_v58  ;;  %v1803_v5 = vmul.f32 %v11869_v26, %v1767_v61 }
 0x3f7   : > { %v2402_v30 = vmul.f32 %v12590_v7, %v1769_v10  ;;  %v2205_v21 = vmul.f32 %v11906_v60, %v12642_v28  ;;  %v2234_v1 = vadd.f32 %v2202_v4, %v2133_v41  ;;  %v1735_v8 = vadd.f32 %v1703_v9, %v1603_v53  ;;  %v1772_v41 = vld [vmem:[#allocation2 + $0x12a] sm:$0xff] }
 0x3f8   : > { %3076 = vrot.lane.b32.xlu1 %v12526_v24, %s11077_s28  ;;  %3074 = vrot.lane.b32.xlu0 %v12558_v39, %s11077_s28  ;;  %v2473_v48 = vadd.f32 %v12651_v49, %v2435_v50  ;;  %2534 = vst.msk [vmem:[%s12289_s27 + $0x80] sm:$0xff] %vm1189_vm3, %v12637_v54  ;;  %v2036_v61 = vadd.f32 %v2004_v13, %v1936_v11  ;;  %v12688_v50 = vld [vmem:[#allocation2 + $0x121] sm:$0xff] }
 0x3f9   : > { %v1903_v37 = vmul.f32 %v11888_v44, %v12619_v23  ;;  %v2305_v57 = vmul.f32 %v11900_v56, %v12660_v0  ;;  %v2405_v3 = vmul.f32 %v12590_v7, %v2369_v42  ;;  %v2334_v40 = vadd.f32 %v2302_v12, %v2234_v1  ;;  %v1571_v11 = vld [vmem:[#allocation2 + $0x120] sm:$0xff] }
 0x3fa   : > { %v12664_v36 = vmax.f32 %v2473_v48, 0.0  ;;  %v2136_v52 = vadd.f32 %v2104_v15, %v2036_v61  ;;  %v1835_v29 = vadd.f32 %v1803_v5, %v1735_v8  ;;  %v2003_v62 = vmul.f32 %v12631_v63, %v11893_v46 }
 0x3fb   : > { %v1606_v31 = vmul.f32 %v11859_v17, %v12583_v38  ;;  %v1706_v22 = vmul.f32 %v12597_v2, %v11862_v19  ;;  %v1806_v6 = vmul.f32 %v11869_v26, %v1770_v59  ;;  %v2434_v27 = vadd.f32 %v2402_v30, %v2334_v40  ;;  %v1771_v30 = vld [vmem:[#allocation2 + $0x122] sm:$0xff] }
 0x3fc   : > { %3593 = vrot.lane.b32.xlu1 %v12526_v24, %s11079_s23  ;;  %3591 = vrot.lane.b32.xlu0 %v12558_v39, %s11079_s23  ;;  %2537 = vst.msk [vmem:[%s12289_s27 + $0x98] sm:$0xff] %vm1189_vm3, %v12664_v36  ;;  %v2237_v4 = vadd.f32 %v2205_v21, %v2136_v52  ;;  %v1935_v55 = vadd.f32 %v1903_v37, %v1835_v29  ;;  %v12702_v21 = vld [vmem:[#allocation2 + $0x140] sm:$0xff] }
 0x3fd   : > { %v2103_v24 = vmul.f32 %v11896_v47, %v1769_v10  ;;  %v1738_v12 = vadd.f32 %v1706_v22, %v1606_v31  ;;  %v1906_v39 = vmul.f32 %v11888_v44, %v12642_v28  ;;  %v2472_v58 = vadd.f32 %v12651_v49, %v2434_v27  ;;  %v12722_v31 = vld [vmem:[#allocation2 + $0x141] sm:$0xff] }
 0x3fe   : > { %v2337_v38 = vadd.f32 %v2305_v57, %v2237_v4  ;;  %v2035_v13 = vadd.f32 %v2003_v62, %v1935_v55  ;;  %v2204_v2 = vmul.f32 %v11906_v60, %v2168_v18  ;;  %v2304_v59 = vmul.f32 %v11900_v56, %v12688_v50 }
 0x3ff   : > { %v1838_v15 = vadd.f32 %v1806_v6, %v1738_v12  ;;  %v2006_v53 = vmul.f32 %v12660_v0, %v11893_v46  ;;  %v12698_v42 = vmax.f32 %v2472_v58, 0.0  ;;  %v1605_v48 = vmul.f32 %v11859_v17, %v12619_v23  ;;  %v2170_v12 = vld [vmem:[#allocation2 + $0x138] sm:$0xff] }
 0x400   : > { %2692 = vrot.lane.b32.xlu1 %v12595_v35, %s11078_s22  ;;  %2690 = vrot.lane.b32.xlu0 %v12637_v54, %s11078_s22  ;;  %v2437_v9 = vadd.f32 %v2405_v3, %v2337_v38  ;;  %v2135_v5 = vadd.f32 %v2103_v24, %v2035_v13  ;;  %v2106_v61 = vmul.f32 %v11896_v47, %v1772_v41 }
 0x401   : > { %v1938_v1 = vadd.f32 %v1906_v39, %v1838_v15  ;;  %v1705_v8 = vmul.f32 %v12631_v63, %v11862_v19  ;;  %v1805_v37 = vmul.f32 %v11869_v26, %v1769_v10  ;;  %v2404_v3 = vmul.f32 %v12590_v7, %v1771_v30  ;;  %2536 = vst.msk [vmem:[%s12289_s27 + $0x90] sm:$0xff] %vm1189_vm3, %v12698_v42  ;;  %v2371_v63 = vld [vmem:[#allocation2 + $0x142] sm:$0xff] }
 0x402   : > { %v2475_v57 = vadd.f32 %v12651_v49, %v2437_v9  ;;  %v2236_v40 = vadd.f32 %v2204_v2, %v2135_v5  ;;  %v2207_v52 = vmul.f32 %v11906_v60, %v12702_v21  ;;  %v1905_v29 = vmul.f32 %v11888_v44, %v1571_v11 }
 0x403   : > { %v2038_v23 = vadd.f32 %v2006_v53, %v1938_v1  ;;  %v1737_v10 = vadd.f32 %v1705_v8, %v1605_v48  ;;  %v2307_v6 = vmul.f32 %v11900_v56, %v12722_v31  ;;  %v2005_v4 = vmul.f32 %v12688_v50, %v11893_v46  ;;  %v12744_v48 = vld [vmem:[#allocation2 + $0x139] sm:$0xff] }
 0x404   : > { %2696 = vrot.lane.b32.xlu1 %v12664_v36, %s11078_s22  ;;  %2694 = vrot.lane.b32.xlu0 %v12698_v42, %s11078_s22  ;;  %v12720_v62 = vmax.f32 %v2475_v57, 0.0  ;;  %v2336_v18 = vadd.f32 %v2304_v59, %v2236_v40  ;;  %v2407_v24 = vmul.f32 %v12590_v7, %v2371_v63  ;;  %v1608_v39 = vmul.f32 %v11859_v17, %v12642_v28  ;;  %v12746_v1 = vld [vmem:[#allocation2 + $0x138] sm:$0xff]  ;;  %v1774_v57 = vld [vmem:[#allocation2 + $0x142] sm:$0xff] }
 0x405   : > { %v2138_v22 = vadd.f32 %v2106_v61, %v2038_v23  ;;  %v1837_v27 = vadd.f32 %v1805_v37, %v1737_v10  ;;  %v1708_v58 = vmul.f32 %v12660_v0, %v11862_v19  ;;  %v2105_v2 = vmul.f32 %v11896_v47, %v1771_v30  ;;  %v12754_v40 = vld [vmem:[#allocation2 + $0x13a] sm:$0xff] }
 0x406   : > { %v2436_v55 = vadd.f32 %v2404_v3, %v2336_v18  ;;  %2539 = vst.msk [vmem:[%s12289_s27 + $0xa8] sm:$0xff] %vm1189_vm3, %v12720_v62  ;;  %v1808_v59 = vmul.f32 %v11869_v26, %v1772_v41  ;;  %v1908_v28 = vmul.f32 %v11888_v44, %v12702_v21  ;;  %v2206_v5 = vmul.f32 %v11906_v60, %v2170_v12 }
 0x407   : > { %v2239_v38 = vadd.f32 %v2207_v52, %v2138_v22  ;;  %v1937_v13 = vadd.f32 %v1905_v29, %v1837_v27  ;;  %v1740_v53 = vadd.f32 %v1708_v58, %v1608_v39  ;;  %v2306_v8 = vmul.f32 %v11900_v56, %v12744_v48  ;;  %v2625_v27 = vld [vmem:[#allocation14 + $0x8] sm:$0xff] }
 0x408   : > { %2700 = vrot.lane.b32.xlu1 %v12720_v62, %s11078_s22  ;;  %v2474_v15 = vadd.f32 %v12651_v49, %v2436_v55  ;;  %v2008_v37 = vmul.f32 %v12722_v31, %v11893_v46  ;;  %v1607_v23 = vmul.f32 %v11859_v17, %v1571_v11  ;;  %v1707_v63 = vmul.f32 %v12688_v50, %v11862_v19  ;;  %v12768_v11 = vld [vmem:[#allocation2 + $0x158] sm:$0xff] }
 0x409   : > { %v2339_v9 = vadd.f32 %v2307_v6, %v2239_v38  ;;  %v2037_v0 = vadd.f32 %v2005_v4, %v1937_v13  ;;  %v1840_v41 = vadd.f32 %v1808_v59, %v1740_v53  ;;  %v2406_v10 = vmul.f32 %v12590_v7, %v12754_v40  ;;  %v2624_v6 = vld [vmem:[#allocation14] sm:$0xff] }
 0x40a   : > { %v12748_v61 = vmax.f32 %v2474_v15, 0.0  ;;  %v2108_v18 = vmul.f32 %v11896_v47, %v1774_v57  ;;  %v1807_v22 = vmul.f32 %v11869_v26, %v1771_v30  ;;  %v12771_v55 = vld [vmem:[#allocation2 + $0x159] sm:$0xff]  ;;  %v1739_v12 = vadd.f32 %v1707_v63, %v1607_v23  ;;  %v2172_v53 = vld [vmem:[#allocation2 + $0x150] sm:$0xff] }
 0x40b   : > { %v2439_v3 = vadd.f32 %v2407_v24, %v2339_v9  ;;  %v2137_v52 = vadd.f32 %v2105_v2, %v2037_v0  ;;  %v1940_v29 = vadd.f32 %v1908_v28, %v1840_v41  ;;  %v2373_v24 = vld [vmem:[#allocation2 + $0x15a] sm:$0xff]  ;;  %v1907_v39 = vmul.f32 %v11888_v44, %v12746_v1 }
 0x40c   : > { %2698 = vrot.lane.b32.xlu0 %v12748_v61, %s11078_s22  ;;  %2538 = vst.msk [vmem:[%s12289_s27 + $0xa0] sm:$0xff] %vm1189_vm3, %v12748_v61  ;;  %v2209_v30 = vmul.f32 %v11906_v60, %v12768_v11  ;;  %v2309_v38 = vmul.f32 %v11900_v56, %v12771_v55  ;;  %v1839_v59 = vadd.f32 %v1807_v22, %v1739_v12  ;;  %v12801_v22 = vld [vmem:[#allocation2 + $0x151] sm:$0xff] }
 0x40d   : > { %v2477_v50 = vadd.f32 %v12651_v49, %v2439_v3  ;;  %v2238_v4 = vadd.f32 %v2206_v5, %v2137_v52  ;;  %v2040_v58 = vadd.f32 %v2008_v37, %v1940_v29  ;;  %v2007_v15 = vmul.f32 %v12744_v48, %v11893_v46 }
 0x40e   : > { %v2409_v9 = vmul.f32 %v12590_v7, %v2373_v24  ;;  %v10274_v0 = vpack.c.bf16 %v2625_v27, %v2624_v6  ;;  %v1610_v5 = vmul.f32 %v11859_v17, %v12702_v21  ;;  %v1939_v37 = vadd.f32 %v1907_v39, %v1839_v59  ;;  %v12809_v24 = vld [vmem:[#allocation2 + $0x152] sm:$0xff]  ;;  %v1776_v59 = vld [vmem:[#allocation2 + $0x15a] sm:$0xff] }
 0x40f   : > { %v12779_v13 = vmax.f32 %v2477_v50, 0.0  ;;  %v2338_v2 = vadd.f32 %v2306_v8, %v2238_v4  ;;  %v2140_v28 = vadd.f32 %v2108_v18, %v2040_v58  ;;  %v2107_v8 = vmul.f32 %v11896_v47, %v12754_v40  ;;  %v12807_v4 = vld [vmem:[#allocation2 + $0x150] sm:$0xff] }
 0x410   : > { %v1710_v23 = vmul.f32 %v12722_v31, %v11862_v19  ;;  %v2208_v21 = vmul.f32 %v11906_v60, %v2172_v53  ;;  %10275 = vmatprep.subr.bf16.mxu1 %v10274_v0  ;;  %v2039_v18 = vadd.f32 %v2007_v15, %v1939_v37  ;;  %v1910_v31 = vmul.f32 %v11888_v44, %v12768_v11  ;;  %v12832_v37 = vld [vmem:[#allocation2 + $0x170] sm:$0xff] }
 0x411   : > { %2704 = vrot.lane.b32.xlu1 %v12779_v13, %s11078_s22  ;;  %v2438_v41 = vadd.f32 %v2406_v10, %v2338_v2  ;;  %2541 = vst.msk [vmem:[%s12289_s27 + $0xb8] sm:$0xff] %vm1189_vm3, %v12779_v13  ;;  %v2241_v63 = vadd.f32 %v2209_v30, %v2140_v28  ;;  %v1810_v10 = vmul.f32 %v11869_v26, %v1774_v57 }
 0x412   : > { %v12790_v3 = vpop.permute.xlu1 %3048  ;;  %v2659_v52 = vpop.permute.xlu0 %2658  ;;  %10277 = vmatpush3.bf16.msra.mxu1 %v10274_v0  ;;  %v1742_v6 = vadd.f32 %v1710_v23, %v1610_v5  ;;  %v2308_v50 = vmul.f32 %v11900_v56, %v12801_v22  ;;  %v2139_v57 = vadd.f32 %v2107_v8, %v2039_v18  ;;  %v2010_v58 = vmul.f32 %v12771_v55, %v11893_v46  ;;  %v3045_v23 = vld [vmem:[#allocation14 + $0x18] sm:$0xff] }
 0x413   : > { %9954 = vmatprep.mubr.msk.f32.mxu1 %vm1189_vm3, %v2659_v52  ;;  %v2476_v29 = vadd.f32 %v12651_v49, %v2438_v41  ;;  %v2341_v27 = vadd.f32 %v2309_v38, %v2241_v63  ;;  %v2408_v15 = vmul.f32 %v12590_v7, %v12809_v24  ;;  %v1609_v53 = vmul.f32 %v11859_v17, %v12746_v1  ;;  %v3044_v52 = vld [vmem:[#allocation14 + $0x10] sm:$0xff] }
 0x414   : > { %v1842_v39 = vadd.f32 %v1810_v10, %v1742_v6  ;;  %v1709_v28 = vmul.f32 %v12744_v48, %v11862_v19  ;;  %v2240_v0 = vadd.f32 %v2208_v21, %v2139_v57  ;;  %v2110_v41 = vmul.f32 %v11896_v47, %v1776_v59  ;;  %v12841_v6 = vld [vmem:[#allocation2 + $0x171] sm:$0xff] }
 0x415   : > { %v12811_v12 = vmax.f32 %v2476_v29, 0.0  ;;  %v2441_v38 = vadd.f32 %v2409_v9, %v2341_v27  ;;  %v1809_v9 = vmul.f32 %v11869_v26, %v12754_v40  ;;  %v1909_v8 = vmul.f32 %v11888_v44, %v12807_v4 }
 0x416   : > { %v12815_v30 = vpop.permute.xlu1 %3565  ;;  %v2661_v2 = vpop.permute.xlu0 %2660  ;;  %v1942_v5 = vadd.f32 %v1910_v31, %v1842_v39  ;;  %v1741_v48 = vadd.f32 %v1709_v28, %v1609_v53  ;;  %v2340_v63 = vadd.f32 %v2308_v50, %v2240_v0  ;;  %v2211_v10 = vmul.f32 %v11906_v60, %v12832_v37  ;;  %v2375_v31 = vld [vmem:[#allocation2 + $0x172] sm:$0xff] }
 0x417   : > { %9955 = vmatmul.mubr.msk.f32.vlgmr.msra.gmra.mrb[32].mxu1 %vm1189_vm3, %v2661_v2  ;;  %2702 = vrot.lane.b32.xlu0 %v12811_v12, %s11078_s22  ;;  %2540 = vst.msk [vmem:[%s12289_s27 + $0xb0] sm:$0xff] %vm1189_vm3, %v12811_v12  ;;  %v2479_v1 = vadd.f32 %v12651_v49, %v2441_v38  ;;  %v2009_v57 = vmul.f32 %v12801_v22, %v11893_v46  ;;  %v2174_v2 = vld [vmem:[#allocation2 + $0x168] sm:$0xff] }
 0x418   : > { %v2042_v21 = vadd.f32 %v2010_v58, %v1942_v5  ;;  %v1841_v27 = vadd.f32 %v1809_v9, %v1741_v48  ;;  %v2440_v50 = vadd.f32 %v2408_v15, %v2340_v63  ;;  %v2311_v58 = vmul.f32 %v11900_v56, %v12841_v6 }
 0x419   : > { %v12839_v18 = vmax.f32 %v2479_v1, 0.0  ;;  %v10278_v38 = vpack.c.bf16 %v3045_v23, %v3044_v52  ;;  %v2109_v28 = vmul.f32 %v11896_v47, %v12809_v24  ;;  %v1612_v0 = vmul.f32 %v11859_v17, %v12768_v11  ;;  %v12866_v23 = vld [vmem:[#allocation2 + $0x169] sm:$0xff] }
 0x41a   : > { %v2663_v29 = vpop.permute.xlu1 %2662  ;;  %v3047_v40 = vpop.permute.xlu0 %3046  ;;  %v2142_v39 = vadd.f32 %v2110_v41, %v2042_v21  ;;  %v1941_v53 = vadd.f32 %v1909_v8, %v1841_v27  ;;  %v1712_v5 = vmul.f32 %v12771_v55, %v11862_v19  ;;  %v2478_v15 = vadd.f32 %v12651_v49, %v2440_v50  ;;  %v12870_v21 = vld [vmem:[#allocation2 + $0x16a] sm:$0xff] }
 0x41b   : > { %9957 = vmatprep.mubr.msk.f32.mxu1 %vm1189_vm3, %v2663_v29  ;;  %10006 = vmatprep.mubr.msk.f32.mxu0 %vm1189_vm3, %v3047_v40  ;;  %2543 = vst.msk [vmem:[%s12289_s27 + $0xc8] sm:$0xff] %vm1189_vm3, %v12839_v18  ;;  %v2411_v9 = vmul.f32 %v12590_v7, %v2375_v31  ;;  %v1812_v1 = vmul.f32 %v11869_v26, %v1776_v59  ;;  %v12877_v40 = vld [vmem:[#allocation2 + $0x168] sm:$0xff] }
 0x41c   : > { %2708 = vrot.lane.b32.xlu1 %v12839_v18, %s11078_s22  ;;  %v2243_v41 = vadd.f32 %v2211_v10, %v2142_v39  ;;  %10279 = vmatprep.subr.bf16.mxu0 %v10278_v38  ;;  %v2041_v52 = vadd.f32 %v2009_v57, %v1941_v53  ;;  %v2210_v11 = vmul.f32 %v11906_v60, %v2174_v2  ;;  %v12872_v10 = vmax.f32 %v2478_v15, 0.0  ;;  %v1778_v39 = vld [vmem:[#allocation2 + $0x172] sm:$0xff] }
 0x41d   : > { %v1744_v55 = vadd.f32 %v1712_v5, %v1612_v0  ;;  %v1912_v63 = vmul.f32 %v11888_v44, %v12832_v37  ;;  %10281 = vmatpush3.bf16.msra.mxu0 %v10278_v38  ;;  %v2310_v59 = vmul.f32 %v11900_v56, %v12866_v23  ;;  %v2410_v27 = vmul.f32 %v12590_v7, %v12870_v21 }
 0x41e   : > { %v2665_v48 = vpop.permute.xlu1 %2664  ;;  %v12863_v8 = vpop.permute.xlu0 %3563  ;;  %v2343_v29 = vadd.f32 %v2311_v58, %v2243_v41  ;;  %v2141_v31 = vadd.f32 %v2109_v28, %v2041_v52  ;;  %v2012_v50 = vmul.f32 %v12841_v6, %v11893_v46  ;;  %2706 = vrot.lane.b32.xlu0 %v12872_v10, %s11078_s22  ;;  %v1611_v2 = vmul.f32 %v11859_v17, %v12807_v4  ;;  %v1878_v4 = vld [vmem:[#allocation2 + $0x188] sm:$0xff] }
 0x41f   : > { %9958 = vmatmul.mubr.msk.f32.gmra.mrb[34].mxu1 %vm1189_vm3, %v2665_v48  ;;  %v1844_v57 = vadd.f32 %v1812_v1, %v1744_v55  ;;  %v1711_v38 = vmul.f32 %v12801_v22, %v11862_v19  ;;  %2542 = vst.msk [vmem:[%s12289_s27 + $0xc0] sm:$0xff] %vm1189_vm3, %v12872_v10  ;;  %v2112_v15 = vmul.f32 %v11896_v47, %v1778_v39  ;;  %v2377_v55 = vld [vmem:[#allocation2 + $0x18a] sm:$0xff] }
 0x420   : > { %v2443_v58 = vadd.f32 %v2411_v9, %v2343_v29  ;;  %10007 = vmatmul.mubr.msk.f32.vlgmr.msra.gmra.mrb[32].mxu0 %vm1189_vm3, %v12790_v3  ;;  %v2242_v0 = vadd.f32 %v2210_v11, %v2141_v31  ;;  %v1811_v41 = vmul.f32 %v11869_v26, %v12809_v24  ;;  %v1911_v3 = vmul.f32 %v11888_v44, %v12877_v40  ;;  %v2277_v11 = vld [vmem:[#allocation2 + $0x189] sm:$0xff] }
 0x421   : > { %v1944_v5 = vadd.f32 %v1912_v63, %v1844_v57  ;;  %v1743_v9 = vadd.f32 %v1711_v38, %v1611_v2  ;;  %v2213_v52 = vmul.f32 %v11906_v60, %v1878_v4  ;;  %v2313_v29 = vmul.f32 %v11900_v56, %v2277_v11  ;;  %v2176_v2 = vld [vmem:[#allocation2 + $0x180] sm:$0xff] }
 0x422   : > { %v3053_v53 = vpop.permute.xlu1 %3052  ;;  %v3051_v28 = vpop.permute.xlu0 %3050  ;;  %v2481_v22 = vadd.f32 %v12651_v49, %v2443_v58  ;;  %v2342_v1 = vadd.f32 %v2310_v59, %v2242_v0  ;;  %v2011_v31 = vmul.f32 %v12866_v23, %v11893_v46  ;;  %v1614_v38 = vmul.f32 %v11859_v17, %v12832_v37 }
 0x423   : > { %10009 = vmatprep.mubr.msk.f32.mxu0 %vm1189_vm3, %v3051_v28  ;;  %v2044_v48 = vadd.f32 %v2012_v50, %v1944_v5  ;;  %v1843_v24 = vadd.f32 %v1811_v41, %v1743_v9  ;;  %v1714_v28 = vmul.f32 %v12841_v6, %v11862_v19  ;;  %v2413_v0 = vmul.f32 %v12590_v7, %v2377_v55 }
 0x424   : > { %v12902_v63 = vmax.f32 %v2481_v22, 0.0  ;;  %10010 = vmatmul.mubr.msk.f32.gmra.mrb[34].mxu0 %vm1189_vm3, %v3053_v53  ;;  %v2442_v59 = vadd.f32 %v2410_v27, %v2342_v1  ;;  %v2111_v53 = vmul.f32 %v11896_v47, %v12870_v21  ;;  %v1814_v41 = vmul.f32 %v11869_v26, %v1778_v39  ;;  %v2078_v22 = vld [vmem:[#allocation2 + $0x18a] sm:$0xff] }
 0x425   : > { %v2144_v50 = vadd.f32 %v2112_v15, %v2044_v48  ;;  %v1943_v5 = vadd.f32 %v1911_v3, %v1843_v24  ;;  %v1746_v15 = vadd.f32 %v1714_v28, %v1614_v38  ;;  %v1914_v6 = vmul.f32 %v11888_v44, %v1878_v4  ;;  %v1877_v24 = vld [vmem:[#allocation2 + $0x180] sm:$0xff] }
 0x426   : > { %v12908_v57 = vpop.permute.xlu1 %3569  ;;  %v12910_v58 = vpop.permute.xlu0 %3567  ;;  %2712 = vrot.lane.b32.xlu1 %v12902_v63, %s11078_s22  ;;  %2545 = vst.msk [vmem:[%s12289_s27 + $0xd8] sm:$0xff] %vm1189_vm3, %v12902_v63  ;;  %v2480_v27 = vadd.f32 %v12651_v49, %v2442_v59  ;;  %v2596_v9 = vsel %vm1189_vm3, %v12595_v35, 0.0  ;;  %v2565_v3 = vsel %vm1189_vm3, %v12637_v54, 0.0  ;;  %v2212_v48 = vmul.f32 %v11906_v60, %v2176_v2 }
 0x427   : > { %v2245_v37 = vadd.f32 %v2213_v52, %v2144_v50  ;;  %v2043_v1 = vadd.f32 %v2011_v31, %v1943_v5  ;;  %v2276_v52 = vld [vmem:[#allocation2 + $0x181] sm:$0xff]  ;;  %v1846_v50 = vadd.f32 %v1814_v41, %v1746_v15  ;;  %v2014_v4 = vmul.f32 %v2277_v11, %v11893_v46 }
 0x428   : > { %v12932_v43 = vmax.f32 %v2480_v27, 0.0  ;;  %v2312_v28 = vmul.f32 %v11900_v56, %v2276_v52  ;;  %v1613_v31 = vmul.f32 %v11859_v17, %v12877_v40  ;;  %v1713_v2 = vmul.f32 %v12866_v23, %v11862_v19  ;;  %v2279_v19 = vld [vmem:[#allocation2 + $0x1a1] sm:$0xff] }
 0x429   : > { %v2345_v59 = vadd.f32 %v2313_v29, %v2245_v37  ;;  %v2143_v38 = vadd.f32 %v2111_v53, %v2043_v1  ;;  %v2077_v29 = vld [vmem:[#allocation2 + $0x182] sm:$0xff]  ;;  %v1946_v11 = vadd.f32 %v1914_v6, %v1846_v50  ;;  %v2114_v41 = vmul.f32 %v11896_v47, %v2078_v22 }
 0x42a   : > { %v2669_v39 = vpop.permute.xlu1 %2668  ;;  %v2667_v55 = vpop.permute.xlu0 %2666  ;;  %2710 = vrot.lane.b32.xlu0 %v12932_v43, %s11078_s22  ;;  %v1813_v53 = vmul.f32 %v11869_v26, %v12870_v21  ;;  %2544 = vst.msk [vmem:[%s12289_s27 + $0xd0] sm:$0xff] %vm1189_vm3, %v12932_v43  ;;  %v2412_v40 = vmul.f32 %v12590_v7, %v2077_v29  ;;  %v1745_v23 = vadd.f32 %v1713_v2, %v1613_v31  ;;  %v2598_v26 = vsel %vm1189_vm3, %v12664_v36, 0.0  ;;  %v2278_v2 = vld [vmem:[#allocation2 + $0x199] sm:$0xff] }
 0x42b   : > { %9960 = vmatprep.mubr.msk.f32.mxu1 %vm1189_vm3, %v2667_v55  ;;  %v2445_v5 = vadd.f32 %v2413_v0, %v2345_v59  ;;  %v2244_v17 = vadd.f32 %v2212_v48, %v2143_v38  ;;  %v1913_v27 = vmul.f32 %v11888_v44, %v1877_v24  ;;  %v2597_v0 = vadd.f32 %v2596_v9, %v12545_v51  ;;  %v2379_v48 = vld [vmem:[#allocation2 + $0x1a2] sm:$0xff]  ;;  %v2178_v24 = vld [vmem:[#allocation2 + $0x198] sm:$0xff] }
 0x42c   : > { %9961 = vmatmul.mubr.msk.f32.gmra.mrb[36].mxu1 %vm1189_vm3, %v2669_v39  ;;  %v2046_v22 = vadd.f32 %v2014_v4, %v1946_v11  ;;  %v2215_v1 = vmul.f32 %v11906_v60, %v2179_v45  ;;  %v1845_v39 = vadd.f32 %v1813_v53, %v1745_v23  ;;  %v2013_v55 = vmul.f32 %v2276_v52, %v11893_v46  ;;  %v3561_v23 = vld [vmem:[#allocation14 + $0x20] sm:$0xff] }
 0x42d   : > { %v2483_v6 = vadd.f32 %v12651_v49, %v2445_v5  ;;  %v2344_v21 = vadd.f32 %v2312_v28, %v2244_v17  ;;  %v2566_v44 = vadd.f32 %v2565_v3, %v12581_v25  ;;  %v2315_v45 = vmul.f32 %v11900_v56, %v2279_v19  ;;  %v2378_v19 = vld [vmem:[#allocation2 + $0x19a] sm:$0xff] }
 0x42e   : > { %v3057_v37 = vpop.permute.xlu1 %3056  ;;  %v3055_v15 = vpop.permute.xlu0 %3054  ;;  %v2146_v9 = vadd.f32 %v2114_v41, %v2046_v22  ;;  %v2600_v59 = vsel %vm1189_vm3, %v12720_v62, 0.0  ;;  %v1945_v4 = vadd.f32 %v1913_v27, %v1845_v39  ;;  %v2113_v38 = vmul.f32 %v11896_v47, %v2077_v29  ;;  %v3562_v27 = vld [vmem:[#allocation14 + $0x28] sm:$0xff] }
 0x42f   : > { %10012 = vmatprep.mubr.msk.f32.mxu0 %vm1189_vm3, %v3055_v15  ;;  %v12961_v51 = vmax.f32 %v2483_v6, 0.0  ;;  %v2444_v50 = vadd.f32 %v2412_v40, %v2344_v21  ;;  %v2599_v52 = vadd.f32 %v2598_v26, %v2597_v0  ;;  %v2567_v25 = vsel %vm1189_vm3, %v12698_v42, 0.0 }
 0x430   : > { %10013 = vmatmul.mubr.msk.f32.gmra.mrb[36].mxu0 %vm1189_vm3, %v3057_v37  ;;  %v2247_v3 = vadd.f32 %v2215_v1, %v2146_v9  ;;  %v2415_v31 = vmul.f32 %v12590_v7, %v2379_v48  ;;  %v2602_v47 = vsel %vm1189_vm3, %v12779_v13, 0.0  ;;  %v2045_v5 = vadd.f32 %v2013_v55, %v1945_v4 }
 0x431   : > { %2716 = vrot.lane.b32.xlu1 %v12961_v51, %s11078_s22  ;;  %2547 = vst.msk [vmem:[%s12289_s27 + $0xe8] sm:$0xff] %vm1189_vm3, %v12961_v51  ;;  %v2482_v29 = vadd.f32 %v12651_v49, %v2444_v50  ;;  %v2214_v11 = vmul.f32 %v11906_v60, %v2178_v24  ;;  %v2601_v41 = vadd.f32 %v2600_v59, %v2599_v52  ;;  %v2569_v53 = vsel %vm1189_vm3, %v12748_v61, 0.0 }
 0x432   : > { %v12967_v28 = vpop.permute.xlu1 %3573  ;;  %v12969_v46 = vpop.permute.xlu0 %3571  ;;  %v2604_v17 = vsel %vm1189_vm3, %v12839_v18, 0.0  ;;  %v2347_v40 = vadd.f32 %v2315_v45, %v2247_v3  ;;  %v2145_v15 = vadd.f32 %v2113_v38, %v2045_v5  ;;  %v2314_v0 = vmul.f32 %v11900_v56, %v2278_v2 }
 0x433   : > { %v12987_v37 = vmax.f32 %v2482_v29, 0.0  ;;  %v10282_v60 = vpack.c.bf16 %v3562_v27, %v3561_v23  ;;  %v2568_v1 = vadd.f32 %v2567_v25, %v2566_v44  ;;  %v2603_v26 = vadd.f32 %v2602_v47, %v2601_v41 }
 0x434   : > { %v2447_v21 = vadd.f32 %v2415_v31, %v2347_v40  ;;  %v2571_v48 = vsel %vm1189_vm3, %v12811_v12, 0.0  ;;  %v2606_v39 = vsel %vm1189_vm3, %v12902_v63, 0.0  ;;  %v2246_v55 = vadd.f32 %v2214_v11, %v2145_v15 }
 0x435   : > { %2714 = vrot.lane.b32.xlu0 %v12987_v37, %s11078_s22  ;;  %v2414_v56 = vmul.f32 %v12590_v7, %v2378_v19  ;;  %2546 = vst.msk [vmem:[%s12289_s27 + $0xe0] sm:$0xff] %vm1189_vm3, %v12987_v37  ;;  %v2570_v44 = vadd.f32 %v2569_v53, %v2568_v1  ;;  %v2605_v9 = vadd.f32 %v2604_v17, %v2603_v26  ;;  %v2573_v24 = vsel %vm1189_vm3, %v12872_v10, 0.0 }
 0x436   : > { %v2673_v6 = vpop.permute.xlu1 %2672  ;;  %v2671_v22 = vpop.permute.xlu0 %2670  ;;  %v2485_v45 = vadd.f32 %v12651_v49, %v2447_v21  ;;  %10283 = vmatprep.subr.bf16.mxu1 %v10282_v60  ;;  %v2608_v59 = vsel %vm1189_vm3, %v12961_v51, 0.0  ;;  %v2346_v50 = vadd.f32 %v2314_v0, %v2246_v55  ;;  %v2575_v3 = vsel %vm1189_vm3, %v12932_v43, 0.0 }
 0x437   : > { %9963 = vmatprep.mubr.msk.f32.mxu1 %vm1189_vm3, %v2671_v22  ;;  %10285 = vmatpush3.bf16.msra.mxu1 %v10282_v60  ;;  %v2572_v38 = vadd.f32 %v2571_v48, %v2570_v44  ;;  %v2607_v52 = vadd.f32 %v2606_v39, %v2605_v9  ;;  %v2577_v5 = vsel %vm1189_vm3, %v12987_v37, 0.0 }
 0x438   : > { %9964 = vmatmul.mubr.msk.f32.gmra.mrb[38].mxu1 %vm1189_vm3, %v2673_v6  ;;  %v13007_v25 = vmax.f32 %v2485_v45, 0.0  ;;  %v2446_v31 = vadd.f32 %v2414_v56, %v2346_v50 }
 0x439   : > { %v2574_v2 = vadd.f32 %v2573_v24, %v2572_v38  ;;  %v2609_v47 = vadd.f32 %v2608_v59, %v2607_v52 }
 0x43a   : > { %v3061_v4 = vpop.permute.xlu1 %3060  ;;  %v3059_v7 = vpop.permute.xlu0 %3058  ;;  %v2610_v29 = vsel %vm1189_vm3, %v13007_v25, 0.0  ;;  %2720 = vrot.lane.b32.xlu1 %v13007_v25, %s11078_s22  ;;  %2549 = vst.msk [vmem:[%s12289_s27 + $0xf8] sm:$0xff] %vm1189_vm3, %v13007_v25  ;;  %v2484_v11 = vadd.f32 %v12651_v49, %v2446_v31 }
 0x43b   : > { %10015 = vmatprep.mubr.msk.f32.mxu0 %vm1189_vm3, %v3059_v7  ;;  %v2576_v17 = vadd.f32 %v2575_v3, %v2574_v2  ;;  %v2611_v40 = vadd.f32 %v2610_v29, %v2609_v47 }
 0x43c   : > { %10016 = vmatmul.mubr.msk.f32.gmra.mrb[38].mxu0 %vm1189_vm3, %v3061_v4  ;;  %v13027_v19 = vmax.f32 %v2484_v11, 0.0 }
 0x43d   : > { %v2578_v23 = vadd.f32 %v2577_v5, %v2576_v17  ;;  %v2613_v0 = vsel %vm1189_vm3, %v2611_v40, 0.0 }
 0x43e   : > { %v13023_v41 = vpop.permute.xlu1 %3577  ;;  %v13025_v53 = vpop.permute.xlu0 %3575  ;;  %3080 = vrot.lane.b32.xlu1 %v12595_v35, %s11077_s28  ;;  %v2579_v27 = vsel %vm1189_vm3, %v13027_v19, 0.0  ;;  %2718 = vrot.lane.b32.xlu0 %v13027_v19, %s11078_s22  ;;  %2548 = vst.msk [vmem:[%s12289_s27 + $0xf0] sm:$0xff] %vm1189_vm3, %v13027_v19 }
 0x43f   : > { %v2580_v6 = vadd.f32 %v2579_v27, %v2578_v23 }
 0x441   : > { %v2612_v22 = vsel %vm1189_vm3, %v2580_v6, 0.0 }
 0x442   : > { %v2677_v15 = vpop.permute.xlu1 %2676  ;;  %v2675_v49 = vpop.permute.xlu0 %2674  ;;  %3597 = vrot.lane.b32.xlu1 %v12595_v35, %s11079_s23  ;;  %v2614_v60 = vadd.f32 %v2613_v0, %v2612_v22  ;;  %3078 = vrot.lane.b32.xlu0 %v12637_v54, %s11077_s28 }
 0x443   : > { %9966 = vmatprep.mubr.msk.f32.mxu1 %vm1189_vm3, %v2675_v49 }
 0x444   : > { %9967 = vmatmul.mubr.msk.f32.gmra.mrb[40].mxu1 %vm1189_vm3, %v2677_v15  ;;  %v2615_v21 = vrot.slane %v2614_v60, 4 }
 0x446   : > { %v3065_v1 = vpop.permute.xlu1 %3064  ;;  %v3063_v26 = vpop.permute.xlu0 %3062  ;;  %3084 = vrot.lane.b32.xlu1 %v12664_v36, %s11077_s28  ;;  %3595 = vrot.lane.b32.xlu0 %v12637_v54, %s11079_s23  ;;  %v2616_v39 = vadd.f32 %v2615_v21, %v2614_v60 }
 0x447   : > { %10018 = vmatprep.mubr.msk.f32.mxu0 %vm1189_vm3, %v3063_v26 }
 0x448   : > { %10019 = vmatmul.mubr.msk.f32.gmra.mrb[40].mxu0 %vm1189_vm3, %v3065_v1  ;;  %v2617_v55 = vrot.slane %v2616_v39, 2 }
 0x44a   : > { %v13052_v48 = vpop.permute.xlu1 %3581  ;;  %v13054_v35 = vpop.permute.xlu0 %3579  ;;  %3601 = vrot.lane.b32.xlu1 %v12664_v36, %s11079_s23  ;;  %3082 = vrot.lane.b32.xlu0 %v12698_v42, %s11077_s28  ;;  %v2618_v9 = vadd.f32 %v2617_v55, %v2616_v39 }
 0x44c   : > { %v2619_v54 = vrot.slane %v2618_v9, 1 }
 0x44e   : > { %v2681_v56 = vpop.permute.xlu1 %2680  ;;  %v2679_v44 = vpop.permute.xlu0 %2678  ;;  %3088 = vrot.lane.b32.xlu1 %v12720_v62, %s11077_s28  ;;  %3599 = vrot.lane.b32.xlu0 %v12698_v42, %s11079_s23  ;;  %v2620_v24 = vadd.f32 %v2619_v54, %v2618_v9 }
 0x44f   : > { %9969 = vmatprep.mubr.msk.f32.mxu1 %vm1189_vm3, %v2679_v44 }
 0x450   : > { %9970 = vmatmul.mubr.msk.f32.gmra.mrb[42].mxu1 %vm1189_vm3, %v2681_v56  ;;  %v2621_v59 = vmul.f32 0.00390625, %v2620_v24 }
 0x452   : > { %v3069_v45 = vpop.permute.xlu1 %3068  ;;  %v3067_v36 = vpop.permute.xlu0 %3066  ;;  %3605 = vrot.lane.b32.xlu1 %v12720_v62, %s11079_s23  ;;  %3086 = vrot.lane.b32.xlu0 %v12748_v61, %s11077_s28  ;;  %2623 = vst.msk [vmem:[%s13077_s29] sm:$0x1] %vm2622_vm5, %v2621_v59 }
 0x453   : > { %10021 = vmatprep.mubr.msk.f32.mxu0 %vm1189_vm3, %v3067_v36 }
 0x454   : > { %10022 = vmatmul.mubr.msk.f32.gmra.mrb[42].mxu0 %vm1189_vm3, %v3069_v45 }
 0x456   : > { %v13073_v50 = vpop.permute.xlu1 %3585  ;;  %v13075_v4 = vpop.permute.xlu0 %3583  ;;  %3092 = vrot.lane.b32.xlu1 %v12779_v13, %s11077_s28  ;;  %3603 = vrot.lane.b32.xlu0 %v12748_v61, %s11079_s23 }
 0x45a   : > { %v2685_v42 = vpop.permute.xlu1 %2684  ;;  %v2683_v62 = vpop.permute.xlu0 %2682  ;;  %3609 = vrot.lane.b32.xlu1 %v12779_v13, %s11079_s23  ;;  %3090 = vrot.lane.b32.xlu0 %v12811_v12, %s11077_s28 }
 0x45b   : > { %9972 = vmatprep.mubr.msk.f32.mxu1 %vm1189_vm3, %v2683_v62 }
 0x45c   : > { %9973 = vmatmul.mubr.msk.f32.gmra.mrb[44].mxu1 %vm1189_vm3, %v2685_v42 }
 0x45e   : > { %v3073_v7 = vpop.permute.xlu1 %3072  ;;  %v3071_v38 = vpop.permute.xlu0 %3070  ;;  %3096 = vrot.lane.b32.xlu1 %v12839_v18, %s11077_s28  ;;  %3607 = vrot.lane.b32.xlu0 %v12811_v12, %s11079_s23 }
 0x45f   : > { %10024 = vmatprep.mubr.msk.f32.mxu0 %vm1189_vm3, %v3071_v38 }
 0x460   : > { %10025 = vmatmul.mubr.msk.f32.gmra.mrb[44].mxu0 %vm1189_vm3, %v3073_v7 }
 0x462   : > { %v13097_v61 = vpop.permute.xlu1 %3589  ;;  %v13099_v52 = vpop.permute.xlu0 %3587  ;;  %3613 = vrot.lane.b32.xlu1 %v12839_v18, %s11079_s23  ;;  %3094 = vrot.lane.b32.xlu0 %v12872_v10, %s11077_s28 }
 0x466   : > { %v2689_v13 = vpop.permute.xlu1 %2688  ;;  %v2687_v3 = vpop.permute.xlu0 %2686  ;;  %3100 = vrot.lane.b32.xlu1 %v12902_v63, %s11077_s28  ;;  %3611 = vrot.lane.b32.xlu0 %v12872_v10, %s11079_s23 }
 0x467   : > { %9975 = vmatprep.mubr.msk.f32.mxu1 %vm1189_vm3, %v2687_v3 }
 0x468   : > { %9976 = vmatmul.mubr.msk.f32.gmra.mrb[46].mxu1 %vm1189_vm3, %v2689_v13 }
 0x46a   : > { %v3077_v12 = vpop.permute.xlu1 %3076  ;;  %v3075_v31 = vpop.permute.xlu0 %3074  ;;  %3617 = vrot.lane.b32.xlu1 %v12902_v63, %s11079_s23  ;;  %3098 = vrot.lane.b32.xlu0 %v12932_v43, %s11077_s28 }
 0x46b   : > { %10027 = vmatprep.mubr.msk.f32.mxu0 %vm1189_vm3, %v3075_v31 }
 0x46c   : > { %10028 = vmatmul.mubr.msk.f32.gmra.mrb[46].mxu0 %vm1189_vm3, %v3077_v12 }
 0x46e   : > { %v13117_v18 = vpop.permute.xlu1 %3593  ;;  %v13119_v2 = vpop.permute.xlu0 %3591  ;;  %3104 = vrot.lane.b32.xlu1 %v12961_v51, %s11077_s28  ;;  %3615 = vrot.lane.b32.xlu0 %v12932_v43, %s11079_s23 }
 0x472   : > { %v2693_v10 = vpop.permute.xlu1 %2692  ;;  %v2691_v47 = vpop.permute.xlu0 %2690  ;;  %3621 = vrot.lane.b32.xlu1 %v12961_v51, %s11079_s23  ;;  %3102 = vrot.lane.b32.xlu0 %v12987_v37, %s11077_s28 }
 0x473   : > { %9978 = vmatprep.mubr.msk.f32.mxu1 %vm1189_vm3, %v2691_v47 }
 0x474   : > { %9979 = vmatmul.mubr.msk.f32.gmra.mrb[48].mxu1 %vm1189_vm3, %v2693_v10 }
 0x476   : > { %v2697_v63 = vpop.permute.xlu1 %2696  ;;  %v2695_v29 = vpop.permute.xlu0 %2694  ;;  %3108 = vrot.lane.b32.xlu1 %v13007_v25, %s11077_s28  ;;  %3619 = vrot.lane.b32.xlu0 %v12987_v37, %s11079_s23 }
 0x477   : > { %9981 = vmatprep.mubr.msk.f32.mxu1 %vm1189_vm3, %v2695_v29 }
 0x478   : > { %9982 = vmatmul.mubr.msk.f32.gmra.mrb[50].mxu1 %vm1189_vm3, %v2697_v63 }
 0x47a   : > { %3625 = vrot.lane.b32.xlu1 %v13007_v25, %s11079_s23  ;;  %3106 = vrot.lane.b32.xlu0 %v13027_v19, %s11077_s28  ;;  %v2701_v43 = vpop.permute.xlu1 %2700 }
 0x47e   : > { %v2699_v51 = vpop.permute.xlu0 %2698  ;;  %3623 = vrot.lane.b32.xlu0 %v13027_v19, %s11079_s23  ;;  %s16724_s23 = sld [smem:[#allocation97_spill]] }
 0x47f   : > { %9984 = vmatprep.mubr.msk.f32.mxu1 %vm1189_vm3, %v2699_v51 }
 0x480   : > { %9985 = vmatmul.mubr.msk.f32.gmra.mrb[52].mxu1 %vm1189_vm3, %v2701_v43 }
 0x483   : > { %v2705_v5 = vpop.permute.xlu1 %2704 }
 0x484   : > { %s16725_s19 = smov %s16724_s23 }
 0x489   : > { %v2703_v11 = vpop.permute.xlu0 %2702 }
 0x48a   : > { %9987 = vmatprep.mubr.msk.f32.mxu1 %vm1189_vm3, %v2703_v11 }
 0x48b   : > { %9988 = vmatmul.mubr.msk.f32.gmra.mrb[54].mxu1 %vm1189_vm3, %v2705_v5 }
 0x48e   : > { %v2709_v37 = vpop.permute.xlu1 %2708 }
 0x490   : > { %v2707_v25 = vpop.permute.xlu0 %2706 }
 0x491   : > { %9990 = vmatprep.mubr.msk.f32.mxu1 %vm1189_vm3, %v2707_v25 }
 0x492   : > { %9991 = vmatmul.mubr.msk.f32.gmra.mrb[56].mxu1 %vm1189_vm3, %v2709_v37 }
 0x498   : > { %v2713_v17 = vpop.permute.xlu1 %2712 }
 0x49c   : > { %v2711_v40 = vpop.permute.xlu0 %2710 }
 0x49d   : > { %9993 = vmatprep.mubr.msk.f32.mxu1 %vm1189_vm3, %v2711_v40 }
 0x49e   : > { %9994 = vmatmul.mubr.msk.f32.gmra.mrb[58].mxu1 %vm1189_vm3, %v2713_v17 }
 0x4a3   : > { %v2717_v23 = vpop.permute.xlu1 %2716 }
 0x4a7   : > { %v2715_v19 = vpop.permute.xlu0 %2714 }
 0x4a8   : > { %9996 = vmatprep.mubr.msk.f32.mxu1 %vm1189_vm3, %v2715_v19 }
 0x4a9   : > { %9997 = vmatmul.mubr.msk.f32.gmra.mrb[60].mxu1 %vm1189_vm3, %v2717_v23 }
 0x4ac   : > { %v2721_v27 = vpop.permute.xlu1 %2720 }
 0x4b0   : > { %v3081_v15 = vpop.permute.xlu1 %3080  ;;  %v2719_v49 = vpop.permute.xlu0 %2718 }
 0x4b1   : > { %9999 = vmatprep.mubr.msk.f32.mxu1 %vm1189_vm3, %v2719_v49 }
 0x4b2   : > { %10000 = vmatmul.mubr.msk.f32.gmra.mrb[62].mxu1 %vm1189_vm3, %v2721_v27 }
 0x4b3   : > { %10058 = vmatprep.mubr.msk.f32.mxu1 %vm1189_vm3, %v12863_v8 }
 0x4b4   : > { %v3598_v0 = vpop.permute.xlu1 %3597  ;;  %v3079_v6 = vpop.permute.xlu0 %3078 }
 0x4b5   : > { %10030 = vmatprep.mubr.msk.f32.mxu0 %vm1189_vm3, %v3079_v6 }
 0x4b6   : > { %10031 = vmatmul.mubr.msk.f32.gmra.mrb[48].mxu0 %vm1189_vm3, %v3081_v15  ;;  %10059 = vmatmul.mubr.msk.f32.vlgmr.msra.gmra.mrb[64].mxu1 %vm1189_vm3, %v12815_v30 }
 0x4b7   : > { %10061 = vmatprep.mubr.msk.f32.mxu1 %vm1189_vm3, %v12910_v58 }
 0x4b8   : > { %v3085_v22 = vpop.permute.xlu1 %3084  ;;  %v3596_v60 = vpop.permute.xlu0 %3595 }
 0x4ba   : > { %10062 = vmatmul.mubr.msk.f32.gmra.mrb[66].mxu1 %vm1189_vm3, %v12908_v57 }
 0x4bb   : > { %10064 = vmatprep.mubr.msk.f32.mxu1 %vm1189_vm3, %v12969_v46 }
 0x4bc   : > { %v3602_v8 = vpop.permute.xlu1 %3601  ;;  %v3083_v1 = vpop.permute.xlu0 %3082 }
 0x4bd   : > { %10033 = vmatprep.mubr.msk.f32.mxu0 %vm1189_vm3, %v3083_v1 }
 0x4be   : > { %10034 = vmatmul.mubr.msk.f32.gmra.mrb[50].mxu0 %vm1189_vm3, %v3085_v22  ;;  %10065 = vmatmul.mubr.msk.f32.gmra.mrb[68].mxu1 %vm1189_vm3, %v12967_v28 }
 0x4bf   : > { %10067 = vmatprep.mubr.msk.f32.mxu1 %vm1189_vm3, %v13025_v53 }
 0x4c0   : > { %v3089_v30 = vpop.permute.xlu1 %3088  ;;  %v3600_v58 = vpop.permute.xlu0 %3599 }
 0x4c2   : > { %10068 = vmatmul.mubr.msk.f32.gmra.mrb[70].mxu1 %vm1189_vm3, %v13023_v41 }
 0x4c3   : > { %10070 = vmatprep.mubr.msk.f32.mxu1 %vm1189_vm3, %v13054_v35 }
 0x4c4   : > { %v3606_v57 = vpop.permute.xlu1 %3605  ;;  %v3087_v46 = vpop.permute.xlu0 %3086 }
 0x4c5   : > { %10036 = vmatprep.mubr.msk.f32.mxu0 %vm1189_vm3, %v3087_v46 }
 0x4c6   : > { %10037 = vmatmul.mubr.msk.f32.gmra.mrb[52].mxu0 %vm1189_vm3, %v3089_v30  ;;  %10071 = vmatmul.mubr.msk.f32.gmra.mrb[72].mxu1 %vm1189_vm3, %v13052_v48 }
 0x4c7   : > { %10073 = vmatprep.mubr.msk.f32.mxu1 %vm1189_vm3, %v13075_v4 }
 0x4c8   : > { %v3093_v28 = vpop.permute.xlu1 %3092  ;;  %v3604_v53 = vpop.permute.xlu0 %3603 }
 0x4ca   : > { %10074 = vmatmul.mubr.msk.f32.gmra.mrb[74].mxu1 %vm1189_vm3, %v13073_v50 }
 0x4cb   : > { %10076 = vmatprep.mubr.msk.f32.mxu1 %vm1189_vm3, %v13099_v52 }
 0x4cc   : > { %v3610_v41 = vpop.permute.xlu1 %3609  ;;  %v3091_v26 = vpop.permute.xlu0 %3090 }
 0x4cd   : > { %10039 = vmatprep.mubr.msk.f32.mxu0 %vm1189_vm3, %v3091_v26 }
 0x4ce   : > { %10040 = vmatmul.mubr.msk.f32.gmra.mrb[54].mxu0 %vm1189_vm3, %v3093_v28  ;;  %10077 = vmatmul.mubr.msk.f32.gmra.mrb[76].mxu1 %vm1189_vm3, %v13097_v61 }
 0x4cf   : > { %10079 = vmatprep.mubr.msk.f32.mxu1 %vm1189_vm3, %v13119_v2 }
 0x4d0   : > { %v3097_v21 = vpop.permute.xlu1 %3096  ;;  %v3608_v48 = vpop.permute.xlu0 %3607 }
 0x4d2   : > { %10080 = vmatmul.mubr.msk.f32.gmra.mrb[78].mxu1 %vm1189_vm3, %v13117_v18 }
 0x4d3   : > { %10082 = vmatprep.mubr.msk.f32.mxu1 %vm1189_vm3, %v3596_v60 }
 0x4d4   : > { %v3614_v35 = vpop.permute.xlu1 %3613  ;;  %v3095_v39 = vpop.permute.xlu0 %3094 }
 0x4d5   : > { %10042 = vmatprep.mubr.msk.f32.mxu0 %vm1189_vm3, %v3095_v39 }
 0x4d6   : > { %10043 = vmatmul.mubr.msk.f32.gmra.mrb[56].mxu0 %vm1189_vm3, %v3097_v21  ;;  %10083 = vmatmul.mubr.msk.f32.gmra.mrb[80].mxu1 %vm1189_vm3, %v3598_v0 }
 0x4d7   : > { %10085 = vmatprep.mubr.msk.f32.mxu1 %vm1189_vm3, %v3600_v58 }
 0x4d8   : > { %v3101_v55 = vpop.permute.xlu1 %3100  ;;  %v3612_v56 = vpop.permute.xlu0 %3611 }
 0x4da   : > { %10086 = vmatmul.mubr.msk.f32.gmra.mrb[82].mxu1 %vm1189_vm3, %v3602_v8 }
 0x4db   : > { %10088 = vmatprep.mubr.msk.f32.mxu1 %vm1189_vm3, %v3604_v53 }
 0x4dc   : > { %v3618_v44 = vpop.permute.xlu1 %3617  ;;  %v3099_v9 = vpop.permute.xlu0 %3098 }
 0x4dd   : > { %10045 = vmatprep.mubr.msk.f32.mxu0 %vm1189_vm3, %v3099_v9 }
 0x4de   : > { %10046 = vmatmul.mubr.msk.f32.gmra.mrb[58].mxu0 %vm1189_vm3, %v3101_v55  ;;  %10089 = vmatmul.mubr.msk.f32.gmra.mrb[84].mxu1 %vm1189_vm3, %v3606_v57 }
 0x4df   : > { %10091 = vmatprep.mubr.msk.f32.mxu1 %vm1189_vm3, %v3608_v48 }
 0x4e0   : > { %v3105_v54 = vpop.permute.xlu1 %3104  ;;  %v3616_v45 = vpop.permute.xlu0 %3615 }
 0x4e2   : > { %10092 = vmatmul.mubr.msk.f32.gmra.mrb[86].mxu1 %vm1189_vm3, %v3610_v41 }
 0x4e3   : > { %10094 = vmatprep.mubr.msk.f32.mxu1 %vm1189_vm3, %v3612_v56 }
 0x4e4   : > { %v3622_v36 = vpop.permute.xlu1 %3621  ;;  %v3103_v24 = vpop.permute.xlu0 %3102 }
 0x4e5   : > { %10048 = vmatprep.mubr.msk.f32.mxu0 %vm1189_vm3, %v3103_v24 }
 0x4e6   : > { %10049 = vmatmul.mubr.msk.f32.gmra.mrb[60].mxu0 %vm1189_vm3, %v3105_v54  ;;  %10095 = vmatmul.mubr.msk.f32.gmra.mrb[88].mxu1 %vm1189_vm3, %v3614_v35 }
 0x4e7   : > { %10097 = vmatprep.mubr.msk.f32.mxu1 %vm1189_vm3, %v3616_v45 }
 0x4e8   : > { %v3620_v4 = vpop.permute.xlu0 %3619  ;;  %v3109_v42 = vpop.permute.xlu1 %3108 }
 0x4ea   : > { %v9956_v59 = vpop.f32.mrb[32].mxu1  ;;  %10098 = vmatmul.mubr.msk.f32.gmra.mrb[90].mxu1 %vm1189_vm3, %v3618_v44 }
 0x4eb   : > { %3012 = vst.msk [vmem:[#allocation2 + $0x21] sm:$0xff] %vm1189_vm3, %v9956_v59  ;;  %v2852_v50 = vpop.f32.mrb[33].mxu1  ;;  %10100 = vmatprep.mubr.msk.f32.mxu1 %vm1189_vm3, %v3620_v4 }
 0x4ec   : > { %3011 = vst.msk [vmem:[#allocation2 + $0x19] sm:$0xff] %vm1189_vm3, %v2852_v50  ;;  %v3107_v62 = vpop.permute.xlu0 %3106  ;;  %v3626_v7 = vpop.permute.xlu1 %3625 }
 0x4ed   : > { %10051 = vmatprep.mubr.msk.f32.mxu0 %vm1189_vm3, %v3107_v62 }
 0x4ee   : > { %10052 = vmatmul.mubr.msk.f32.gmra.mrb[62].mxu0 %vm1189_vm3, %v3109_v42  ;;  %10101 = vmatmul.mubr.msk.f32.gmra.mrb[92].mxu1 %vm1189_vm3, %v3622_v36 }
 0x4f0   : > { %v3624_v61 = vpop.permute.xlu0 %3623 }
 0x4f1   : > { %10103 = vmatprep.mubr.msk.f32.mxu1 %vm1189_vm3, %v3624_v61 }
 0x4f2   : > { %v9959_v38 = vpop.f32.mrb[34].mxu1  ;;  %10104 = vmatmul.mubr.msk.f32.gmra.mrb[94].mxu1 %vm1189_vm3, %v3626_v7 }
 0x4f3   : > { %3014 = vst.msk [vmem:[#allocation2 + $0x39] sm:$0xff] %vm1189_vm3, %v9959_v38  ;;  %v2862_v52 = vpop.f32.mrb[35].mxu1  ;;  %v10008_v13 = vpop.f32.mrb[32].mxu0 }
 0x4f4   : > { %3013 = vst.msk [vmem:[#allocation2 + $0x31] sm:$0xff] %vm1189_vm3, %v2862_v52  ;;  %3433 = vrot.lane.b32.xlu1 %v10008_v13, %s11080_s1  ;;  %v3240_v3 = vpop.f32.mrb[33].mxu0 }
 0x4f5   : > { %3431 = vrot.lane.b32.xlu0 %v3240_v3, %s11080_s1 }
 0x4f7   : > { %v10011_v12 = vpop.f32.mrb[34].mxu0 }
 0x4f8   : > { %3437 = vrot.lane.b32.xlu1 %v10011_v12, %s11080_s1  ;;  %v3250_v31 = vpop.f32.mrb[35].mxu0 }
 0x4f9   : > { %3435 = vrot.lane.b32.xlu0 %v3250_v31, %s11080_s1 }
 0x4ff   : > { %v9962_v18 = vpop.f32.mrb[36].mxu1 }
 0x500   : > { %3016 = vst.msk [vmem:[#allocation2 + $0x51] sm:$0xff] %vm1189_vm3, %v9962_v18  ;;  %v2872_v2 = vpop.f32.mrb[37].mxu1 }
 0x501   : > { %3015 = vst.msk [vmem:[#allocation2 + $0x49] sm:$0xff] %vm1189_vm3, %v2872_v2 }
 0x503   : > { %v10014_v10 = vpop.f32.mrb[36].mxu0 }
 0x504   : > { %3441 = vrot.lane.b32.xlu1 %v10014_v10, %s11080_s1  ;;  %v3260_v47 = vpop.f32.mrb[37].mxu0 }
 0x505   : > { %3439 = vrot.lane.b32.xlu0 %v3260_v47, %s11080_s1 }
 0x50b   : > { %v9965_v63 = vpop.f32.mrb[38].mxu1 }
 0x50c   : > { %3018 = vst.msk [vmem:[#allocation2 + $0x69] sm:$0xff] %vm1189_vm3, %v9965_v63  ;;  %v2882_v29 = vpop.f32.mrb[39].mxu1 }
 0x50d   : > { %3017 = vst.msk [vmem:[#allocation2 + $0x61] sm:$0xff] %vm1189_vm3, %v2882_v29 }
 0x50f   : > { %v10017_v43 = vpop.f32.mrb[38].mxu0 }
 0x510   : > { %3445 = vrot.lane.b32.xlu1 %v10017_v43, %s11080_s1  ;;  %v3270_v51 = vpop.f32.mrb[39].mxu0 }
 0x511   : > { %3443 = vrot.lane.b32.xlu0 %v3270_v51, %s11080_s1 }
 0x517   : > { %v9968_v5 = vpop.f32.mrb[40].mxu1 }
 0x518   : > { %3020 = vst.msk [vmem:[#allocation2 + $0x81] sm:$0xff] %vm1189_vm3, %v9968_v5  ;;  %v2892_v11 = vpop.f32.mrb[41].mxu1 }
 0x519   : > { %3019 = vst.msk [vmem:[#allocation2 + $0x79] sm:$0xff] %vm1189_vm3, %v2892_v11 }
 0x51b   : > { %v10020_v37 = vpop.f32.mrb[40].mxu0 }
 0x51c   : > { %3449 = vrot.lane.b32.xlu1 %v10020_v37, %s11080_s1  ;;  %v3280_v25 = vpop.f32.mrb[41].mxu0 }
 0x51d   : > { %3447 = vrot.lane.b32.xlu0 %v3280_v25, %s11080_s1 }
 0x523   : > { %v9971_v17 = vpop.f32.mrb[42].mxu1 }
 0x524   : > { %3022 = vst.msk [vmem:[#allocation2 + $0x99] sm:$0xff] %vm1189_vm3, %v9971_v17  ;;  %v2902_v40 = vpop.f32.mrb[43].mxu1 }
 0x525   : > { %3021 = vst.msk [vmem:[#allocation2 + $0x91] sm:$0xff] %vm1189_vm3, %v2902_v40 }
 0x527   : > { %v10023_v23 = vpop.f32.mrb[42].mxu0 }
 0x528   : > { %3453 = vrot.lane.b32.xlu1 %v10023_v23, %s11080_s1  ;;  %v3290_v19 = vpop.f32.mrb[43].mxu0 }
 0x529   : > { %3451 = vrot.lane.b32.xlu0 %v3290_v19, %s11080_s1 }
 0x52f   : > { %v9974_v27 = vpop.f32.mrb[44].mxu1 }
 0x530   : > { %3024 = vst.msk [vmem:[#allocation2 + $0xb1] sm:$0xff] %vm1189_vm3, %v9974_v27  ;;  %v2912_v15 = vpop.f32.mrb[45].mxu1 }
 0x531   : > { %3023 = vst.msk [vmem:[#allocation2 + $0xa9] sm:$0xff] %vm1189_vm3, %v2912_v15 }
 0x533   : > { %v10026_v49 = vpop.f32.mrb[44].mxu0 }
 0x534   : > { %3457 = vrot.lane.b32.xlu1 %v10026_v49, %s11080_s1  ;;  %v3300_v0 = vpop.f32.mrb[45].mxu0 }
 0x535   : > { %3455 = vrot.lane.b32.xlu0 %v3300_v0, %s11080_s1 }
 0x53b   : > { %v9977_v6 = vpop.f32.mrb[46].mxu1 }
 0x53c   : > { %3026 = vst.msk [vmem:[#allocation2 + $0xc9] sm:$0xff] %vm1189_vm3, %v9977_v6  ;;  %v2922_v22 = vpop.f32.mrb[47].mxu1 }
 0x53d   : > { %3025 = vst.msk [vmem:[#allocation2 + $0xc1] sm:$0xff] %vm1189_vm3, %v2922_v22 }
 0x53f   : > { %v10029_v60 = vpop.f32.mrb[46].mxu0 }
 0x540   : > { %3461 = vrot.lane.b32.xlu1 %v10029_v60, %s11080_s1  ;;  %v3310_v8 = vpop.f32.mrb[47].mxu0 }
 0x541   : > { %3459 = vrot.lane.b32.xlu0 %v3310_v8, %s11080_s1 }
 0x547   : > { %v9980_v1 = vpop.f32.mrb[48].mxu1 }
 0x548   : > { %3028 = vst.msk [vmem:[#allocation2 + $0xe1] sm:$0xff] %vm1189_vm3, %v9980_v1  ;;  %v2932_v30 = vpop.f32.mrb[49].mxu1 }
 0x549   : > { %3027 = vst.msk [vmem:[#allocation2 + $0xd9] sm:$0xff] %vm1189_vm3, %v2932_v30 }
 0x54b   : > { %v9983_v58 = vpop.f32.mrb[50].mxu1 }
 0x54c   : > { %3030 = vst.msk [vmem:[#allocation2 + $0xf9] sm:$0xff] %vm1189_vm3, %v9983_v58  ;;  %v2942_v57 = vpop.f32.mrb[51].mxu1 }
 0x54d   : > { %3029 = vst.msk [vmem:[#allocation2 + $0xf1] sm:$0xff] %vm1189_vm3, %v2942_v57 }
 0x553   : > { %v9986_v46 = vpop.f32.mrb[52].mxu1 }
 0x554   : > { %3032 = vst.msk [vmem:[#allocation2 + $0x111] sm:$0xff] %vm1189_vm3, %v9986_v46  ;;  %v2952_v28 = vpop.f32.mrb[53].mxu1 }
 0x555   : > { %3031 = vst.msk [vmem:[#allocation2 + $0x109] sm:$0xff] %vm1189_vm3, %v2952_v28 }
 0x55e   : > { %v9989_v53 = vpop.f32.mrb[54].mxu1 }
 0x55f   : > { %3034 = vst.msk [vmem:[#allocation2 + $0x129] sm:$0xff] %vm1189_vm3, %v9989_v53  ;;  %v2962_v41 = vpop.f32.mrb[55].mxu1 }
 0x560   : > { %3033 = vst.msk [vmem:[#allocation2 + $0x121] sm:$0xff] %vm1189_vm3, %v2962_v41 }
 0x565   : > { %v9992_v21 = vpop.f32.mrb[56].mxu1 }
 0x566   : > { %v3434_v26 = vpop.permute.xlu1 %3433  ;;  %3036 = vst.msk [vmem:[#allocation2 + $0x141] sm:$0xff] %vm1189_vm3, %v9992_v21  ;;  %v2972_v35 = vpop.f32.mrb[57].mxu1 }
 0x567   : > { %3529 = vst.msk [vmem:[#allocation2 + $0x21] sm:$0xff] %vm3527_vm6, %v3434_v26  ;;  %v3432_v48 = vpop.permute.xlu0 %3431 }
 0x568   : > { %3528 = vst.msk [vmem:[#allocation2 + $0x19] sm:$0xff] %vm3527_vm6, %v3432_v48 }
 0x569   : > { %3035 = vst.msk [vmem:[#allocation2 + $0x139] sm:$0xff] %vm1189_vm3, %v2972_v35 }
 0x56a   : > { %v3438_v39 = vpop.permute.xlu1 %3437 }
 0x56b   : > { %3531 = vst.msk [vmem:[#allocation2 + $0x39] sm:$0xff] %vm3527_vm6, %v3438_v39  ;;  %v3436_v55 = vpop.permute.xlu0 %3435 }
 0x56c   : > { %3530 = vst.msk [vmem:[#allocation2 + $0x31] sm:$0xff] %vm3527_vm6, %v3436_v55 }
 0x571   : > { %v9995_v56 = vpop.f32.mrb[58].mxu1 }
 0x572   : > { %3038 = vst.msk [vmem:[#allocation2 + $0x159] sm:$0xff] %vm1189_vm3, %v9995_v56  ;;  %v2982_v44 = vpop.f32.mrb[59].mxu1 }
 0x573   : > { %3037 = vst.msk [vmem:[#allocation2 + $0x151] sm:$0xff] %vm1189_vm3, %v2982_v44 }
 0x576   : > { %v3442_v9 = vpop.permute.xlu1 %3441 }
 0x577   : > { %3533 = vst.msk [vmem:[#allocation2 + $0x51] sm:$0xff] %vm3527_vm6, %v3442_v9  ;;  %v3440_v54 = vpop.permute.xlu0 %3439 }
 0x578   : > { %3532 = vst.msk [vmem:[#allocation2 + $0x49] sm:$0xff] %vm3527_vm6, %v3440_v54 }
 0x57c   : > { %v9998_v45 = vpop.f32.mrb[60].mxu1 }
 0x57d   : > { %3040 = vst.msk [vmem:[#allocation2 + $0x171] sm:$0xff] %vm1189_vm3, %v9998_v45  ;;  %v2992_v36 = vpop.f32.mrb[61].mxu1 }
 0x57e   : > { %3039 = vst.msk [vmem:[#allocation2 + $0x169] sm:$0xff] %vm1189_vm3, %v2992_v36 }
 0x582   : > { %v3446_v24 = vpop.permute.xlu1 %3445 }
 0x583   : > { %3535 = vst.msk [vmem:[#allocation2 + $0x69] sm:$0xff] %vm3527_vm6, %v3446_v24  ;;  %v3444_v59 = vpop.permute.xlu0 %3443 }
 0x584   : > { %3534 = vst.msk [vmem:[#allocation2 + $0x61] sm:$0xff] %vm3527_vm6, %v3444_v59 }
 0x585   : > { %v10001_v50 = vpop.f32.mrb[62].mxu1 }
 0x586   : > { %3042 = vst.msk [vmem:[#allocation2 + $0x189] sm:$0xff] %vm1189_vm3, %v10001_v50  ;;  %v3002_v4 = vpop.f32.mrb[63].mxu1 }
 0x587   : > { %3041 = vst.msk [vmem:[#allocation2 + $0x181] sm:$0xff] %vm1189_vm3, %v3002_v4 }
 0x589   : > { %v10032_v42 = vpop.f32.mrb[48].mxu0  ;;  %v13275_v62 = vpop.f32.mrb[64].mxu1 }
 0x58a   : > { %v13277_v7 = vpop.f32.mrb[65].mxu1  ;;  %3465 = vrot.lane.b32.xlu1 %v10032_v42, %s11080_s1  ;;  %v3320_v38 = vpop.f32.mrb[49].mxu0 }
 0x58b   : > { %3463 = vrot.lane.b32.xlu0 %v3320_v38, %s11080_s1 }
 0x58d   : > { %v13283_v13 = vpop.f32.mrb[66].mxu1 }
 0x58e   : > { %v3450_v61 = vpop.permute.xlu1 %3449  ;;  %v13285_v3 = vpop.f32.mrb[67].mxu1 }
 0x58f   : > { %v3448_v52 = vpop.permute.xlu0 %3447  ;;  %3537 = vst.msk [vmem:[#allocation2 + $0x81] sm:$0xff] %vm3527_vm6, %v3450_v61 }
 0x590   : > { %3536 = vst.msk [vmem:[#allocation2 + $0x79] sm:$0xff] %vm3527_vm6, %v3448_v52 }
 0x591   : > { %v10035_v12 = vpop.f32.mrb[50].mxu0  ;;  %v13287_v31 = vpop.f32.mrb[68].mxu1 }
 0x592   : > { %v13289_v18 = vpop.f32.mrb[69].mxu1  ;;  %3469 = vrot.lane.b32.xlu1 %v10035_v12, %s11080_s1  ;;  %v3330_v2 = vpop.f32.mrb[51].mxu0 }
 0x593   : > { %3467 = vrot.lane.b32.xlu0 %v3330_v2, %s11080_s1 }
 0x595   : > { %v13293_v10 = vpop.f32.mrb[70].mxu1 }
 0x596   : > { %v13295_v47 = vpop.f32.mrb[71].mxu1 }
 0x599   : > { %v10038_v43 = vpop.f32.mrb[52].mxu0  ;;  %v13299_v51 = vpop.f32.mrb[72].mxu1 }
 0x59a   : > { %v3454_v63 = vpop.permute.xlu1 %3453  ;;  %v13301_v5 = vpop.f32.mrb[73].mxu1  ;;  %3473 = vrot.lane.b32.xlu1 %v10038_v43, %s11080_s1 }
 0x59b   : > { %3539 = vst.msk [vmem:[#allocation2 + $0x99] sm:$0xff] %vm3527_vm6, %v3454_v63  ;;  %v3452_v29 = vpop.permute.xlu0 %3451  ;;  %v3340_v11 = vpop.f32.mrb[53].mxu0  ;;  %v4081_v63 = vld [vmem:[#allocation2 + $0x8] sm:$0xff] }
 0x59c   : > { %3538 = vst.msk [vmem:[#allocation2 + $0x91] sm:$0xff] %vm3527_vm6, %v3452_v29  ;;  %3471 = vrot.lane.b32.xlu0 %v3340_v11, %s11080_s1  ;;  %v4080_v11 = vld [vmem:[#allocation2] sm:$0xff] }
 0x59d   : > { %v10075_v37 = vpop.f32.mrb[74].mxu1 }
 0x59e   : > { %v3807_v25 = vpop.f32.mrb[75].mxu1 }
 0x5a1   : > { %v10041_v17 = vpop.f32.mrb[54].mxu0  ;;  %v10078_v40 = vpop.f32.mrb[76].mxu1 }
 0x5a2   : > { %v3817_v23 = vpop.f32.mrb[77].mxu1  ;;  %3477 = vrot.lane.b32.xlu1 %v10041_v17, %s11080_s1  ;;  %v3350_v19 = vpop.f32.mrb[55].mxu0 }
 0x5a3   : > { %3475 = vrot.lane.b32.xlu0 %v3350_v19, %s11080_s1 }
 0x5a5   : > { %v10081_v49 = vpop.f32.mrb[78].mxu1 }
 0x5a6   : > { %v3458_v27 = vpop.permute.xlu1 %3457  ;;  %v3827_v0 = vpop.f32.mrb[79].mxu1 }
 0x5a7   : > { %v3456_v15 = vpop.permute.xlu0 %3455  ;;  %3541 = vst.msk [vmem:[#allocation2 + $0xb1] sm:$0xff] %vm3527_vm6, %v3458_v27 }
 0x5a8   : > { %3540 = vst.msk [vmem:[#allocation2 + $0xa9] sm:$0xff] %vm3527_vm6, %v3456_v15 }
 0x5a9   : > { %v10044_v6 = vpop.f32.mrb[56].mxu0  ;;  %v10084_v22 = vpop.f32.mrb[80].mxu1 }
 0x5aa   : > { %v3837_v60 = vpop.f32.mrb[81].mxu1  ;;  %3481 = vrot.lane.b32.xlu1 %v10044_v6, %s11080_s1  ;;  %v3360_v8 = vpop.f32.mrb[57].mxu0 }
 0x5ab   : > { %3479 = vrot.lane.b32.xlu0 %v3360_v8, %s11080_s1 }
 0x5ad   : > { %v10087_v1 = vpop.f32.mrb[82].mxu1 }
 0x5ae   : > { %v3847_v30 = vpop.f32.mrb[83].mxu1 }
 0x5b1   : > { %v10047_v46 = vpop.f32.mrb[58].mxu0  ;;  %v10090_v28 = vpop.f32.mrb[84].mxu1 }
 0x5b2   : > { %v3462_v58 = vpop.permute.xlu1 %3461  ;;  %v3857_v53 = vpop.f32.mrb[85].mxu1  ;;  %3485 = vrot.lane.b32.xlu1 %v10047_v46, %s11080_s1 }
 0x5b3   : > { %3543 = vst.msk [vmem:[#allocation2 + $0xc9] sm:$0xff] %vm3527_vm6, %v3462_v58  ;;  %v3460_v57 = vpop.permute.xlu0 %3459  ;;  %v3370_v41 = vpop.f32.mrb[59].mxu0 }
 0x5b4   : > { %3542 = vst.msk [vmem:[#allocation2 + $0xc1] sm:$0xff] %vm3527_vm6, %v3460_v57  ;;  %3483 = vrot.lane.b32.xlu0 %v3370_v41, %s11080_s1 }
 0x5b5   : > { %v10093_v26 = vpop.f32.mrb[86].mxu1 }
 0x5b6   : > { %v3867_v21 = vpop.f32.mrb[87].mxu1 }
 0x5b9   : > { %v10050_v48 = vpop.f32.mrb[60].mxu0  ;;  %v10096_v35 = vpop.f32.mrb[88].mxu1 }
 0x5ba   : > { %v3877_v39 = vpop.f32.mrb[89].mxu1  ;;  %3489 = vrot.lane.b32.xlu1 %v10050_v48, %s11080_s1  ;;  %v3380_v55 = vpop.f32.mrb[61].mxu0 }
 0x5bb   : > { %3487 = vrot.lane.b32.xlu0 %v3380_v55, %s11080_s1 }
 0x5bd   : > { %v10099_v56 = vpop.f32.mrb[90].mxu1 }
 0x5be   : > { %v3887_v44 = vpop.f32.mrb[91].mxu1 }
 0x5c1   : > { %v10053_v9 = vpop.f32.mrb[62].mxu0  ;;  %v10102_v54 = vpop.f32.mrb[92].mxu1 }
 0x5c2   : > { %v3897_v45 = vpop.f32.mrb[93].mxu1  ;;  %3493 = vrot.lane.b32.xlu1 %v10053_v9, %s11080_s1  ;;  %v3390_v36 = vpop.f32.mrb[63].mxu0 }
 0x5c3   : > { %3491 = vrot.lane.b32.xlu0 %v3390_v36, %s11080_s1  ;;  %v16619_v36 = vld [vmem:[#allocation52_spill] sm:$0xff] }
 0x5c5   : > { %v10105_v24 = vpop.f32.mrb[94].mxu1 }
 0x5c6   : > { %3950 = vrot.lane.b32.xlu1 %v13275_v62, %s11081_s16  ;;  %v3907_v59 = vpop.f32.mrb[95].mxu1 }
 0x5c7   : > { %3948 = vrot.lane.b32.xlu0 %v13277_v7, %s11081_s16 }
 0x5ca   : > { %3954 = vrot.lane.b32.xlu1 %v13283_v13, %s11081_s16 }
 0x5cb   : > { %3952 = vrot.lane.b32.xlu0 %v13285_v3, %s11081_s16 }
 0x5ce   : > { %3958 = vrot.lane.b32.xlu1 %v13287_v31, %s11081_s16 }
 0x5cf   : > { %3956 = vrot.lane.b32.xlu0 %v13289_v18, %s11081_s16 }
 0x5d2   : > { %3962 = vrot.lane.b32.xlu1 %v13293_v10, %s11081_s16  ;;  %v4077_v10 = vld [vmem:[#allocation15] sm:$0xff] }
 0x5d3   : > { %3960 = vrot.lane.b32.xlu0 %v13295_v47, %s11081_s16  ;;  %v13376_v29 = vrot.slane %v4077_v10, %v11854_v14  ;;  %v13379_v43 = vrot.slane %v4077_v10, %v11856_v16  ;;  %v13397_v58 = vrot.slane %v4077_v10, %v11875_v32 }
 0x5d5   : > { %v4116_v19 = vmul.f32 %v13376_v29, %v4080_v11 }
 0x5d6   : > { %3966 = vrot.lane.b32.xlu1 %v13299_v51, %s11081_s16 }
 0x5d7   : > { %3964 = vrot.lane.b32.xlu0 %v13301_v5, %s11081_s16  ;;  %v4181_v5 = vld [vmem:[#allocation2 + $0x9] sm:$0xff] }
 0x5da   : > { %3970 = vrot.lane.b32.xlu1 %v10075_v37, %s11081_s16  ;;  %v4180_v37 = vld [vmem:[#allocation2 + $0x1] sm:$0xff] }
 0x5db   : > { %3968 = vrot.lane.b32.xlu0 %v3807_v25, %s11081_s16  ;;  %v13384_v25 = vrot.slane %v4077_v10, %v11864_v20  ;;  %v4216_v27 = vmul.f32 %v13379_v43, %v4180_v37  ;;  %v13430_v37 = vld [vmem:[#allocation15 + $0x8] ss:$0 sm:$0xff] }
 0x5dd   : > { %v4248_v8 = vadd.f32 %v4216_v27, %v4116_v19 }
 0x5de   : > { %3974 = vrot.lane.b32.xlu1 %v10078_v40, %s11081_s16  ;;  %v4117_v40 = vmul.f32 %v13376_v29, %v4081_v63 }
 0x5df   : > { %3972 = vrot.lane.b32.xlu0 %v3817_v23, %s11081_s16  ;;  %v4217_v23 = vmul.f32 %v13379_v43, %v4181_v5 }
 0x5e2   : > { %3978 = vrot.lane.b32.xlu1 %v10081_v49, %s11081_s16  ;;  %v4281_v49 = vld [vmem:[#allocation2 + $0xa] sm:$0xff] }
 0x5e3   : > { %3976 = vrot.lane.b32.xlu0 %v3827_v0, %s11081_s16  ;;  %v4280_v0 = vld [vmem:[#allocation2 + $0x2] sm:$0xff] }
 0x5e6   : > { %3982 = vrot.lane.b32.xlu1 %v10084_v22, %s11081_s16  ;;  %v4249_v22 = vadd.f32 %v4217_v23, %v4117_v40 }
 0x5e7   : > { %3980 = vrot.lane.b32.xlu0 %v3837_v60, %s11081_s16  ;;  %v4317_v60 = vmul.f32 %v13384_v25, %v4281_v49 }
 0x5e9   : > { %v4349_v46 = vadd.f32 %v4317_v60, %v4249_v22 }
 0x5ea   : > { %3986 = vrot.lane.b32.xlu1 %v10087_v1, %s11081_s16  ;;  %v4316_v1 = vmul.f32 %v13384_v25, %v4280_v0 }
 0x5eb   : > { %3984 = vrot.lane.b32.xlu0 %v3847_v30, %s11081_s16 }
 0x5ec   : > { %v4348_v41 = vadd.f32 %v4316_v1, %v4248_v8 }
 0x5ee   : > { %3990 = vrot.lane.b32.xlu1 %v10090_v28, %s11081_s16 }
 0x5ef   : > { %3988 = vrot.lane.b32.xlu0 %v3857_v53, %s11081_s16  ;;  %v13400_v53 = vrot.slane %v4077_v10, %v11877_v33 }
 0x5f2   : > { %3994 = vrot.lane.b32.xlu1 %v10093_v26, %s11081_s16 }
 0x5f3   : > { %3992 = vrot.lane.b32.xlu0 %v3867_v21, %s11081_s16 }
 0x5f6   : > { %3998 = vrot.lane.b32.xlu1 %v10096_v35, %s11081_s16 }
 0x5f7   : > { %3996 = vrot.lane.b32.xlu0 %v3877_v39, %s11081_s16 }
 0x5fa   : > { %4002 = vrot.lane.b32.xlu1 %v10099_v56, %s11081_s16  ;;  %v13407_v56 = vrot.slane %v4077_v10, %v11879_v34 }
 0x5fb   : > { %4000 = vrot.lane.b32.xlu0 %v3887_v44, %s11081_s16 }
 0x5fc   : > { %v3466_v50 = vpop.permute.xlu1 %3465 }
 0x5fd   : > { %3545 = vst.msk [vmem:[#allocation2 + $0xe1] sm:$0xff] %vm3527_vm6, %v3466_v50  ;;  %v3464_v4 = vpop.permute.xlu0 %3463 }
 0x5fe   : > { %3544 = vst.msk [vmem:[#allocation2 + $0xd9] sm:$0xff] %vm3527_vm6, %v3464_v4  ;;  %4006 = vrot.lane.b32.xlu1 %v10102_v54, %s11081_s16 }
 0x5ff   : > { %4004 = vrot.lane.b32.xlu0 %v3897_v45, %s11081_s16 }
 0x602   : > { %4010 = vrot.lane.b32.xlu1 %v10105_v24, %s11081_s16  ;;  %v13412_v24 = vrot.slane %v4077_v10, %v16619_v36 }
 0x603   : > { %4008 = vrot.lane.b32.xlu0 %v3907_v59, %s11081_s16  ;;  %v16620_v59 = vld [vmem:[#allocation51_spill] sm:$0xff] }
 0x604   : > { %v3470_v42 = vpop.permute.xlu1 %3469  ;;  %v13415_v50 = vrot.slane %v4077_v10, %v16620_v59 }
 0x605   : > { %3547 = vst.msk [vmem:[#allocation2 + $0xf9] sm:$0xff] %vm3527_vm6, %v3470_v42  ;;  %v3468_v62 = vpop.permute.xlu0 %3467 }
 0x606   : > { %3546 = vst.msk [vmem:[#allocation2 + $0xf1] sm:$0xff] %vm3527_vm6, %v3468_v62 }
 0x60c   : > { %v3474_v7 = vpop.permute.xlu1 %3473 }
 0x60d   : > { %3549 = vst.msk [vmem:[#allocation2 + $0x111] sm:$0xff] %vm3527_vm6, %v3474_v7 }
 0x60e   : > { %v3472_v38 = vpop.permute.xlu0 %3471 }
 0x60f   : > { %3548 = vst.msk [vmem:[#allocation2 + $0x109] sm:$0xff] %vm3527_vm6, %v3472_v38 }
 0x614   : > { %v3478_v61 = vpop.permute.xlu1 %3477 }
 0x615   : > { %3551 = vst.msk [vmem:[#allocation2 + $0x129] sm:$0xff] %vm3527_vm6, %v3478_v61  ;;  %v3476_v52 = vpop.permute.xlu0 %3475 }
 0x616   : > { %3550 = vst.msk [vmem:[#allocation2 + $0x121] sm:$0xff] %vm3527_vm6, %v3476_v52 }
 0x61c   : > { %v3482_v13 = vpop.permute.xlu1 %3481 }
 0x61d   : > { %3553 = vst.msk [vmem:[#allocation2 + $0x141] sm:$0xff] %vm3527_vm6, %v3482_v13  ;;  %v3480_v3 = vpop.permute.xlu0 %3479 }
 0x61e   : > { %3552 = vst.msk [vmem:[#allocation2 + $0x139] sm:$0xff] %vm3527_vm6, %v3480_v3 }
 0x624   : > { %v3486_v12 = vpop.permute.xlu1 %3485 }
 0x625   : > { %3555 = vst.msk [vmem:[#allocation2 + $0x159] sm:$0xff] %vm3527_vm6, %v3486_v12 }
 0x626   : > { %v3484_v31 = vpop.permute.xlu0 %3483 }
 0x627   : > { %3554 = vst.msk [vmem:[#allocation2 + $0x151] sm:$0xff] %vm3527_vm6, %v3484_v31 }
 0x62c   : > { %v3490_v18 = vpop.permute.xlu1 %3489 }
 0x62d   : > { %3557 = vst.msk [vmem:[#allocation2 + $0x171] sm:$0xff] %vm3527_vm6, %v3490_v18  ;;  %v3488_v2 = vpop.permute.xlu0 %3487 }
 0x62e   : > { %3556 = vst.msk [vmem:[#allocation2 + $0x169] sm:$0xff] %vm3527_vm6, %v3488_v2 }
 0x634   : > { %v3494_v47 = vpop.permute.xlu1 %3493 }
 0x635   : > { %3559 = vst.msk [vmem:[#allocation2 + $0x189] sm:$0xff] %vm3527_vm6, %v3494_v47  ;;  %v3492_v51 = vpop.permute.xlu0 %3491 }
 0x636   : > { %3558 = vst.msk [vmem:[#allocation2 + $0x181] sm:$0xff] %vm3527_vm6, %v3492_v51 }
 0x638   : > { %v3951_v17 = vpop.permute.xlu1 %3950 }
 0x639   : > { %4046 = vst.msk [vmem:[#allocation2 + $0x21] sm:$0xff] %vm4044_vm7, %v3951_v17  ;;  %v3949_v15 = vpop.permute.xlu0 %3948 }
 0x63a   : > { %4045 = vst.msk [vmem:[#allocation2 + $0x19] sm:$0xff] %vm4044_vm7, %v3949_v15 }
 0x63c   : > { %v3955_v6 = vpop.permute.xlu1 %3954 }
 0x63d   : > { %4048 = vst.msk [vmem:[#allocation2 + $0x39] sm:$0xff] %vm4044_vm7, %v3955_v6  ;;  %v3953_v30 = vpop.permute.xlu0 %3952 }
 0x63e   : > { %4047 = vst.msk [vmem:[#allocation2 + $0x31] sm:$0xff] %vm4044_vm7, %v3953_v30 }
 0x640   : > { %v3959_v57 = vpop.permute.xlu1 %3958  ;;  %v4481_v28 = vld [vmem:[#allocation2 + $0x21] sm:$0xff] }
 0x641   : > { %4050 = vst.msk [vmem:[#allocation2 + $0x51] sm:$0xff] %vm4044_vm7, %v3959_v57  ;;  %v3957_v26 = vpop.permute.xlu0 %3956  ;;  %v4381_v21 = vld [vmem:[#allocation2 + $0x20] sm:$0xff]  ;;  %v4380_v48 = vld [vmem:[#allocation2 + $0x18] sm:$0xff]  ;;  %v4219_v39 = vmul.f32 %v4481_v28, %v13379_v43  ;;  %v4517_v38 = vmul.f32 %v13400_v53, %v4481_v28 }
 0x642   : > { %v4480_v35 = vld [vmem:[#allocation2 + $0x19] sm:$0xff]  ;;  %4049 = vst.msk [vmem:[#allocation2 + $0x49] sm:$0xff] %vm4044_vm7, %v3957_v26  ;;  %v4417_v55 = vmul.f32 %v13397_v58, %v4381_v21  ;;  %v4416_v44 = vmul.f32 %v13397_v58, %v4380_v48  ;;  %v4118_v54 = vmul.f32 %v4380_v48, %v13376_v29  ;;  %v4581_v45 = vld [vmem:[#allocation2 + $0x22] sm:$0xff]  ;;  %v4119_v42 = vmul.f32 %v4381_v21, %v13376_v29 }
 0x643   : > { %v4580_v9 = vld [vmem:[#allocation2 + $0x1a] sm:$0xff]  ;;  %v4218_v4 = vmul.f32 %v4480_v35, %v13379_v43  ;;  %v4516_v13 = vmul.f32 %v13400_v53, %v4480_v35  ;;  %v4617_v63 = vmul.f32 %v13407_v56, %v4581_v45  ;;  %v4319_v27 = vmul.f32 %v4581_v45, %v13384_v25 }
 0x644   : > { %v3963_v62 = vpop.permute.xlu1 %3962  ;;  %v4449_v7 = vadd.f32 %v4417_v55, %v4349_v46  ;;  %v13420_v61 = vld [vmem:[#allocation2 + $0x39] sm:$0xff]  ;;  %v4448_v52 = vadd.f32 %v4416_v44, %v4348_v41  ;;  %v4318_v2 = vmul.f32 %v4580_v9, %v13384_v25  ;;  %v4251_v10 = vadd.f32 %v4219_v39, %v4119_v42 }
 0x645   : > { %4052 = vst.msk [vmem:[#allocation2 + $0x69] sm:$0xff] %vm4044_vm7, %v3963_v62  ;;  %v3961_v3 = vpop.permute.xlu0 %3960  ;;  %v13424_v12 = vld [vmem:[#allocation2 + $0x38] sm:$0xff]  ;;  %v4680_v31 = vld [vmem:[#allocation2 + $0x30] sm:$0xff]  ;;  %v4250_v18 = vadd.f32 %v4218_v4, %v4118_v54  ;;  %v4616_v5 = vmul.f32 %v13407_v56, %v4580_v9  ;;  %v4817_v17 = vmul.f32 %v13415_v50, %v13420_v61  ;;  %v4519_v9 = vmul.f32 %v13420_v61, %v13400_v53 }
 0x646   : > { %4051 = vst.msk [vmem:[#allocation2 + $0x61] sm:$0xff] %vm4044_vm7, %v3961_v3  ;;  %v4549_v47 = vadd.f32 %v4517_v38, %v4449_v7  ;;  %v4548_v51 = vadd.f32 %v4516_v13, %v4448_v52  ;;  %v4780_v11 = vld [vmem:[#allocation2 + $0x31] sm:$0xff]  ;;  %v13434_v40 = vld [vmem:[#allocation2 + $0x3a] sm:$0xff]  ;;  %v4418_v19 = vmul.f32 %v4680_v31, %v13397_v58  ;;  %v4717_v0 = vmul.f32 %v13412_v24, %v13424_v12 }
 0x647   : > { %v4350_v23 = vadd.f32 %v4318_v2, %v4250_v18  ;;  %v4716_v22 = vmul.f32 %v13412_v24, %v4680_v31  ;;  %v4880_v60 = vld [vmem:[#allocation2 + $0x32] sm:$0xff]  ;;  %v4518_v30 = vmul.f32 %v4780_v11, %v13400_v53  ;;  %v4351_v46 = vadd.f32 %v4319_v27, %v4251_v10 }
 0x648   : > { %v3967_v15 = vpop.permute.xlu1 %3966  ;;  %v4649_v49 = vadd.f32 %v4617_v63, %v4549_v47  ;;  %v4648_v6 = vadd.f32 %v4616_v5, %v4548_v51  ;;  %v4419_v28 = vmul.f32 %v13424_v12, %v13397_v58  ;;  %v4917_v26 = vmul.f32 %v13430_v37, %v13434_v40  ;;  %v13462_v52 = vld [vmem:[#allocation17] ss:$0 sm:$0xff] }
 0x649   : > { %4054 = vst.msk [vmem:[#allocation2 + $0x81] sm:$0xff] %vm4044_vm7, %v3967_v15  ;;  %v3965_v8 = vpop.permute.xlu0 %3964  ;;  %v4450_v1 = vadd.f32 %v4418_v19, %v4350_v23  ;;  %v13443_v57 = vld [vmem:[#allocation2 + $0x48] sm:$0xff]  ;;  %v4816_v48 = vmul.f32 %v13415_v50, %v4780_v11  ;;  %v4618_v39 = vmul.f32 %v4880_v60, %v13407_v56  ;;  %v4916_v42 = vmul.f32 %v13430_v37, %v4880_v60  ;;  %v13459_v7 = vld [vmem:[#allocation2 + $0x50] sm:$0xff] }
 0x64a   : > { %4053 = vst.msk [vmem:[#allocation2 + $0x79] sm:$0xff] %vm4044_vm7, %v3965_v8  ;;  %v4749_v41 = vadd.f32 %v4717_v0, %v4649_v49  ;;  %v4748_v21 = vadd.f32 %v4716_v22, %v4648_v6  ;;  %v13452_v55 = vld [vmem:[#allocation2 + $0x49] sm:$0xff]  ;;  %v4451_v44 = vadd.f32 %v4419_v28, %v4351_v46  ;;  %v4718_v62 = vmul.f32 %v13412_v24, %v13443_v57  ;;  %v13472_v5 = vld [vmem:[#allocation2 + $0x51] sm:$0xff] }
 0x64b   : > { %v4550_v35 = vadd.f32 %v4518_v30, %v4450_v1  ;;  %v4619_v18 = vmul.f32 %v13434_v40, %v13407_v56  ;;  %v4120_v2 = vmul.f32 %v4680_v31, %v13376_v29  ;;  %v4818_v63 = vmul.f32 %v13415_v50, %v13452_v55  ;;  %v13470_v51 = vld [vmem:[#allocation2 + $0x4a] sm:$0xff]  ;;  %v13477_v15 = vld [vmem:[#allocation2 + $0x52] sm:$0xff] }
 0x64c   : > { %v3971_v54 = vpop.permute.xlu1 %3970  ;;  %v4849_v45 = vadd.f32 %v4817_v17, %v4749_v41  ;;  %v4848_v4 = vadd.f32 %v4816_v48, %v4748_v21  ;;  %v4551_v3 = vadd.f32 %v4519_v9, %v4451_v44  ;;  %v4220_v17 = vmul.f32 %v4780_v11, %v13379_v43 }
 0x64d   : > { %4056 = vst.msk [vmem:[#allocation2 + $0x99] sm:$0xff] %vm4044_vm7, %v3971_v54  ;;  %v3969_v38 = vpop.permute.xlu0 %3968  ;;  %v4650_v13 = vadd.f32 %v4618_v39, %v4550_v35  ;;  %v4719_v27 = vmul.f32 %v13412_v24, %v13459_v7  ;;  %v4320_v31 = vmul.f32 %v4880_v60, %v13384_v25  ;;  %v4420_v8 = vmul.f32 %v13443_v57, %v13397_v58 }
 0x64e   : > { %4055 = vst.msk [vmem:[#allocation2 + $0x91] sm:$0xff] %vm4044_vm7, %v3969_v38  ;;  %v4949_v10 = vadd.f32 %v4917_v26, %v4849_v45  ;;  %v4948_v47 = vadd.f32 %v4916_v42, %v4848_v4  ;;  %v4651_v19 = vadd.f32 %v4619_v18, %v4551_v3  ;;  %v4252_v22 = vadd.f32 %v4220_v17, %v4120_v2  ;;  %v13517_v2 = vld [vmem:[#allocation2 + $0x61] sm:$0xff] }
 0x64f   : > { %v4750_v23 = vadd.f32 %v4718_v62, %v4650_v13  ;;  %v4918_v30 = vmul.f32 %v13430_v37, %v13470_v51  ;;  %v4819_v60 = vmul.f32 %v13415_v50, %v13472_v5  ;;  %v4919_v26 = vmul.f32 %v13430_v37, %v13477_v15  ;;  %v13510_v62 = vld [vmem:[#allocation2 + $0x60] sm:$0xff] }
 0x650   : > { %v3975_v49 = vpop.permute.xlu1 %3974  ;;  %v4987_v0 = vadd.f32 %v13462_v52, %v4949_v10  ;;  %v4986_v6 = vadd.f32 %v13462_v52, %v4948_v47  ;;  %v4751_v46 = vadd.f32 %v4719_v27, %v4651_v19  ;;  %v4352_v21 = vadd.f32 %v4320_v31, %v4252_v22 }
 0x651   : > { %4058 = vst.msk [vmem:[#allocation2 + $0xb1] sm:$0xff] %vm4044_vm7, %v3975_v49  ;;  %v3973_v11 = vpop.permute.xlu0 %3972  ;;  %v4850_v1 = vadd.f32 %v4818_v63, %v4750_v23  ;;  %v4121_v39 = vmul.f32 %v13424_v12, %v13376_v29  ;;  %v4221_v44 = vmul.f32 %v13420_v61, %v13379_v43  ;;  %v4520_v45 = vmul.f32 %v13452_v55, %v13400_v53 }
 0x652   : > { %4057 = vst.msk [vmem:[#allocation2 + $0xa9] sm:$0xff] %vm4044_vm7, %v3973_v11  ;;  %v13490_v28 = vmax.f32 %v4987_v0, 0.0  ;;  %v13492_v41 = vmax.f32 %v4986_v6, 0.0  ;;  %v4851_v35 = vadd.f32 %v4819_v60, %v4751_v46  ;;  %v4452_v54 = vadd.f32 %v4420_v8, %v4352_v21  ;;  %v4884_v6 = vld [vmem:[#allocation2 + $0x62] sm:$0xff] }
 0x653   : > { %v4950_v48 = vadd.f32 %v4918_v30, %v4850_v1  ;;  %v4321_v4 = vmul.f32 %v13434_v40, %v13384_v25  ;;  %v4253_v38 = vadd.f32 %v4221_v44, %v4121_v39  ;;  %v4421_v13 = vmul.f32 %v13459_v7, %v13397_v58 }
 0x654   : > { %16621 = vst [vmem:[#allocation53_spill] sm:$0xff] %v13492_v41  ;;  %v3979_v9 = vpop.permute.xlu1 %3978  ;;  %5675 = vrot.lane.b32.xlu1 %v13490_v28, %s11077_s28  ;;  %5673 = vrot.lane.b32.xlu0 %v13492_v41, %s11077_s28  ;;  %v4951_v61 = vadd.f32 %v4919_v26, %v4851_v35  ;;  %v4552_v3 = vadd.f32 %v4520_v45, %v4452_v54  ;;  %v4785_v35 = vld [vmem:[#allocation2 + $0x69] sm:$0xff] }
 0x655   : > { %4060 = vst.msk [vmem:[#allocation2 + $0xc9] sm:$0xff] %vm4044_vm7, %v3979_v9  ;;  %v3977_v12 = vpop.permute.xlu0 %3976  ;;  %v4988_v42 = vadd.f32 %v13462_v52, %v4950_v48  ;;  %v4620_v18 = vmul.f32 %v13470_v51, %v13407_v56  ;;  %v4353_v47 = vadd.f32 %v4321_v4, %v4253_v38  ;;  %v4720_v23 = vmul.f32 %v13412_v24, %v13510_v62  ;;  %v13557_v4 = vld [vmem:[#allocation2 + $0x6a] sm:$0xff] }
 0x656   : > { %4059 = vst.msk [vmem:[#allocation2 + $0xc1] sm:$0xff] %vm4044_vm7, %v3977_v12  ;;  %v4989_v10 = vadd.f32 %v13462_v52, %v4951_v61  ;;  %v4122_v19 = vmul.f32 %v13443_v57, %v13376_v29  ;;  %v4222_v27 = vmul.f32 %v13452_v55, %v13379_v43  ;;  %v4820_v0 = vmul.f32 %v13415_v50, %v13517_v2  ;;  %v13540_v55 = vld [vmem:[#allocation2 + $0x68] sm:$0xff]  ;;  %v13561_v61 = vld [vmem:[#allocation2 + $0x78] sm:$0xff] }
 0x657   : > { %v13519_v40 = vmax.f32 %v4988_v42, 0.0  ;;  %v4652_v17 = vadd.f32 %v4620_v18, %v4552_v3  ;;  %v4453_v22 = vadd.f32 %v4421_v13, %v4353_v47  ;;  %v4521_v8 = vmul.f32 %v13472_v5, %v13400_v53 }
 0x658   : > { %v3983_v63 = vpop.permute.xlu1 %3982  ;;  %5285 = vrot.lane.b32.xlu1 %v13492_v41, %s11078_s22  ;;  %v13533_v49 = vmax.f32 %v4989_v10, 0.0  ;;  %v4254_v11 = vadd.f32 %v4222_v27, %v4122_v19  ;;  %v4322_v1 = vmul.f32 %v13470_v51, %v13384_v25  ;;  %v4422_v30 = vmul.f32 %v13510_v62, %v13397_v58 }
 0x659   : > { %4062 = vst.msk [vmem:[#allocation2 + $0xe1] sm:$0xff] %vm4044_vm7, %v3983_v63  ;;  %5677 = vrot.lane.b32.xlu0 %v13519_v40, %s11077_s28  ;;  %v3981_v31 = vpop.permute.xlu0 %3980  ;;  %v4752_v57 = vadd.f32 %v4720_v23, %v4652_v17  ;;  %v4553_v46 = vadd.f32 %v4521_v8, %v4453_v22  ;;  %v4621_v60 = vmul.f32 %v13477_v15, %v13407_v56  ;;  %v13570_v17 = vld [vmem:[#allocation2 + $0x79] sm:$0xff] }
 0x65a   : > { %4061 = vst.msk [vmem:[#allocation2 + $0xd9] sm:$0xff] %vm4044_vm7, %v3981_v31  ;;  %v4920_v48 = vmul.f32 %v13430_v37, %v4884_v6  ;;  %v4354_v39 = vadd.f32 %v4322_v1, %v4254_v11  ;;  %v4721_v9 = vmul.f32 %v13412_v24, %v13540_v55  ;;  %v4123_v54 = vmul.f32 %v13459_v7, %v13376_v29 }
 0x65b   : > { %v4852_v21 = vadd.f32 %v4820_v0, %v4752_v57  ;;  %v4653_v51 = vadd.f32 %v4621_v60, %v4553_v46  ;;  %v4522_v42 = vmul.f32 %v13517_v2, %v13400_v53  ;;  %v4223_v38 = vmul.f32 %v13472_v5, %v13379_v43  ;;  %v13583_v57 = vld [vmem:[#allocation2 + $0x7a] sm:$0xff] }
 0x65c   : > { %v3987_v26 = vpop.permute.xlu1 %3986  ;;  %5679 = vrot.lane.b32.xlu1 %v13533_v49, %s11077_s28  ;;  %v4454_v12 = vadd.f32 %v4422_v30, %v4354_v39  ;;  %v4821_v3 = vmul.f32 %v13415_v50, %v4785_v35  ;;  %v4622_v18 = vmul.f32 %v4884_v6, %v13407_v56  ;;  %v4323_v7 = vmul.f32 %v13477_v15, %v13384_v25  ;;  %v13594_v39 = vld [vmem:[#allocation2 + $0x80] sm:$0xff] }
 0x65d   : > { %4064 = vst.msk [vmem:[#allocation2 + $0xf9] sm:$0xff] %vm4044_vm7, %v3987_v26  ;;  %v3985_v44 = vpop.permute.xlu0 %3984  ;;  %v4952_v45 = vadd.f32 %v4920_v48, %v4852_v21  ;;  %v4753_v13 = vadd.f32 %v4721_v9, %v4653_v51  ;;  %v4255_v23 = vadd.f32 %v4223_v38, %v4123_v54  ;;  %v4423_v19 = vmul.f32 %v13540_v55, %v13397_v58 }
 0x65e   : > { %4063 = vst.msk [vmem:[#allocation2 + $0xf1] sm:$0xff] %vm4044_vm7, %v3985_v44  ;;  %v4554_v63 = vadd.f32 %v4522_v42, %v4454_v12  ;;  %v4921_v27 = vmul.f32 %v13430_v37, %v13557_v4  ;;  %v4722_v31 = vmul.f32 %v13412_v24, %v13561_v61  ;;  %v4124_v0 = vmul.f32 %v13510_v62, %v13376_v29  ;;  %v13604_v42 = vld [vmem:[#allocation2 + $0x81] sm:$0xff] }
 0x65f   : > { %v4990_v10 = vadd.f32 %v13462_v52, %v4952_v45  ;;  %v4853_v5 = vadd.f32 %v4821_v3, %v4753_v13  ;;  %v4355_v11 = vadd.f32 %v4323_v7, %v4255_v23  ;;  %v4224_v1 = vmul.f32 %v13517_v2, %v13379_v43 }
 0x660   : > { %v3991_v47 = vpop.permute.xlu1 %3990  ;;  %v4654_v8 = vadd.f32 %v4622_v18, %v4554_v63  ;;  %v4822_v46 = vmul.f32 %v13415_v50, %v13570_v17  ;;  %v4523_v60 = vmul.f32 %v4785_v35, %v13400_v53  ;;  %v4324_v26 = vmul.f32 %v4884_v6, %v13384_v25  ;;  %v13614_v63 = vld [vmem:[#allocation2 + $0x82] sm:$0xff] }
 0x661   : > { %4066 = vst.msk [vmem:[#allocation2 + $0x111] sm:$0xff] %vm4044_vm7, %v3991_v47  ;;  %v3989_v15 = vpop.permute.xlu0 %3988  ;;  %v13581_v22 = vmax.f32 %v4990_v10, 0.0  ;;  %v4953_v30 = vadd.f32 %v4921_v27, %v4853_v5  ;;  %v4455_v48 = vadd.f32 %v4423_v19, %v4355_v11  ;;  %v4256_v44 = vadd.f32 %v4224_v1, %v4124_v0 }
 0x662   : > { %4065 = vst.msk [vmem:[#allocation2 + $0x109] sm:$0xff] %vm4044_vm7, %v3989_v15  ;;  %v4754_v62 = vadd.f32 %v4722_v31, %v4654_v8  ;;  %v4424_v2 = vmul.f32 %v13561_v61, %v13397_v58  ;;  %v4922_v9 = vmul.f32 %v13430_v37, %v13583_v57  ;;  %v4623_v12 = vmul.f32 %v13557_v4, %v13407_v56  ;;  %v13622_v31 = vld [vmem:[#allocation2 + $0x90] sm:$0xff] }
 0x663   : > { %5681 = vrot.lane.b32.xlu0 %v13581_v22, %s11077_s28  ;;  %v4991_v51 = vadd.f32 %v13462_v52, %v4953_v30  ;;  %v4555_v45 = vadd.f32 %v4523_v60, %v4455_v48  ;;  %v4356_v38 = vadd.f32 %v4324_v26, %v4256_v44  ;;  %v4723_v3 = vmul.f32 %v13412_v24, %v13594_v39  ;;  %v13635_v60 = vld [vmem:[#allocation2 + $0x91] sm:$0xff] }
 0x664   : > { %v3995_v21 = vpop.permute.xlu1 %3994  ;;  %v4854_v54 = vadd.f32 %v4822_v46, %v4754_v62  ;;  %v4125_v18 = vmul.f32 %v13540_v55, %v13376_v29  ;;  %v4225_v7 = vmul.f32 %v4785_v35, %v13379_v43  ;;  %v4524_v19 = vmul.f32 %v13570_v17, %v13400_v53 }
 0x665   : > { %4068 = vst.msk [vmem:[#allocation2 + $0x129] sm:$0xff] %vm4044_vm7, %v3995_v21  ;;  %v3993_v6 = vpop.permute.xlu0 %3992  ;;  %v13607_v13 = vmax.f32 %v4991_v51, 0.0  ;;  %v4655_v47 = vadd.f32 %v4623_v12, %v4555_v45  ;;  %v4456_v23 = vadd.f32 %v4424_v2, %v4356_v38  ;;  %v4823_v27 = vmul.f32 %v13415_v50, %v13604_v42  ;;  %v13641_v2 = vld [vmem:[#allocation2 + $0x92] sm:$0xff] }
 0x666   : > { %4067 = vst.msk [vmem:[#allocation2 + $0x121] sm:$0xff] %vm4044_vm7, %v3993_v6  ;;  %v4954_v10 = vadd.f32 %v4922_v9, %v4854_v54  ;;  %v4257_v55 = vadd.f32 %v4225_v7, %v4125_v18  ;;  %v4325_v35 = vmul.f32 %v13557_v4, %v13384_v25  ;;  %v4425_v15 = vmul.f32 %v13594_v39, %v13397_v58  ;;  %v13656_v7 = vld [vmem:[#allocation2 + $0x98] sm:$0xff] }
 0x667   : > { %5683 = vrot.lane.b32.xlu1 %v13607_v13, %s11077_s28  ;;  %v4755_v11 = vadd.f32 %v4723_v3, %v4655_v47  ;;  %v4556_v1 = vadd.f32 %v4524_v19, %v4456_v23  ;;  %v4624_v30 = vmul.f32 %v13583_v57, %v13407_v56  ;;  %v4923_v46 = vmul.f32 %v13430_v37, %v13614_v63 }
 0x668   : > { %v3999_v5 = vpop.permute.xlu1 %3998  ;;  %v4992_v8 = vadd.f32 %v13462_v52, %v4954_v10  ;;  %v4357_v26 = vadd.f32 %v4325_v35, %v4257_v55  ;;  %v4724_v48 = vmul.f32 %v13412_v24, %v13622_v31  ;;  %v4525_v9 = vmul.f32 %v13604_v42, %v13400_v53 }
 0x669   : > { %4070 = vst.msk [vmem:[#allocation2 + $0x141] sm:$0xff] %vm4044_vm7, %v3999_v5  ;;  %v3997_v0 = vpop.permute.xlu0 %3996  ;;  %v4855_v62 = vadd.f32 %v4823_v27, %v4755_v11  ;;  %v4656_v21 = vadd.f32 %v4624_v30, %v4556_v1  ;;  %v4126_v6 = vmul.f32 %v13561_v61, %v13376_v29  ;;  %v4226_v54 = vmul.f32 %v13570_v17, %v13379_v43  ;;  %v13666_v27 = vld [vmem:[#allocation2 + $0x99] sm:$0xff] }
 0x66a   : > { %4069 = vst.msk [vmem:[#allocation2 + $0x139] sm:$0xff] %vm4044_vm7, %v3997_v0  ;;  %v13637_v4 = vmax.f32 %v4992_v8, 0.0  ;;  %v4457_v51 = vadd.f32 %v4425_v15, %v4357_v26  ;;  %v4824_v3 = vmul.f32 %v13415_v50, %v13635_v60  ;;  %v4625_v18 = vmul.f32 %v13614_v63, %v13407_v56  ;;  %v4889_v1 = vld [vmem:[#allocation2 + $0x9a] sm:$0xff] }
 0x66b   : > { %v4955_v12 = vadd.f32 %v4923_v46, %v4855_v62  ;;  %v4756_v38 = vadd.f32 %v4724_v48, %v4656_v21  ;;  %v4258_v17 = vadd.f32 %v4226_v54, %v4126_v6  ;;  %v4326_v10 = vmul.f32 %v13583_v57, %v13384_v25 }
 0x66c   : > { %16622 = vst [vmem:[#allocation54_spill] sm:$0xff] %v13637_v4  ;;  %v4003_v44 = vpop.permute.xlu1 %4002  ;;  %5685 = vrot.lane.b32.xlu0 %v13637_v4, %s11077_s28  ;;  %v4557_v61 = vadd.f32 %v4525_v9, %v4457_v51  ;;  %v4426_v47 = vmul.f32 %v13622_v31, %v13397_v58  ;;  %v4924_v5 = vmul.f32 %v13430_v37, %v13641_v2  ;;  %v4690_v51 = vld [vmem:[#allocation2 + $0xa8] sm:$0xff] }
 0x66d   : > { %4072 = vst.msk [vmem:[#allocation2 + $0x159] sm:$0xff] %vm4044_vm7, %v4003_v44  ;;  %v4001_v45 = vpop.permute.xlu0 %4000  ;;  %v4993_v23 = vadd.f32 %v13462_v52, %v4955_v12  ;;  %v4856_v19 = vadd.f32 %v4824_v3, %v4756_v38  ;;  %v4725_v15 = vmul.f32 %v13412_v24, %v13656_v7  ;;  %v4358_v0 = vadd.f32 %v4326_v10, %v4258_v17 }
 0x66e   : > { %4071 = vst.msk [vmem:[#allocation2 + $0x151] sm:$0xff] %vm4044_vm7, %v4001_v45  ;;  %v4657_v35 = vadd.f32 %v4625_v18, %v4557_v61  ;;  %v4127_v30 = vmul.f32 %v13594_v39, %v13376_v29  ;;  %v4227_v46 = vmul.f32 %v13604_v42, %v13379_v43  ;;  %v4825_v62 = vmul.f32 %v13415_v50, %v13666_v27  ;;  %v4790_v61 = vld [vmem:[#allocation2 + $0xa9] sm:$0xff] }
 0x66f   : > { %v13671_v8 = vmax.f32 %v4993_v23, 0.0  ;;  %v4956_v11 = vadd.f32 %v4924_v5, %v4856_v19  ;;  %v4458_v21 = vadd.f32 %v4426_v47, %v4358_v0  ;;  %v4526_v48 = vmul.f32 %v13635_v60, %v13400_v53  ;;  %v4890_v19 = vld [vmem:[#allocation2 + $0xaa] sm:$0xff] }
 0x670   : > { %v4007_v55 = vpop.permute.xlu1 %4006  ;;  %v4757_v26 = vadd.f32 %v4725_v15, %v4657_v35  ;;  %v4259_v39 = vadd.f32 %v4227_v46, %v4127_v30  ;;  %v4327_v42 = vmul.f32 %v13614_v63, %v13384_v25  ;;  %v4427_v9 = vmul.f32 %v13656_v7, %v13397_v58  ;;  %v4691_v30 = vld [vmem:[#allocation2 + $0xb0] sm:$0xff] }
 0x671   : > { %4074 = vst.msk [vmem:[#allocation2 + $0x171] sm:$0xff] %vm4044_vm7, %v4007_v55  ;;  %v4005_v57 = vpop.permute.xlu0 %4004  ;;  %5687 = vrot.lane.b32.xlu1 %v13671_v8, %s11077_s28  ;;  %v4994_v44 = vadd.f32 %v13462_v52, %v4956_v11  ;;  %v4925_v45 = vmul.f32 %v13430_v37, %v4889_v1  ;;  %v4558_v12 = vadd.f32 %v4526_v48, %v4458_v21 }
 0x672   : > { %4073 = vst.msk [vmem:[#allocation2 + $0x169] sm:$0xff] %vm4044_vm7, %v4005_v57  ;;  %v4857_v54 = vadd.f32 %v4825_v62, %v4757_v26  ;;  %v4626_v38 = vmul.f32 %v13641_v2, %v13407_v56  ;;  %v4359_v17 = vadd.f32 %v4327_v42, %v4259_v39  ;;  %v4726_v47 = vmul.f32 %v13412_v24, %v4690_v51 }
 0x673   : > { %v13693_v18 = vmax.f32 %v4994_v44, 0.0  ;;  %v4128_v23 = vmul.f32 %v13622_v31, %v13376_v29  ;;  %v4527_v55 = vmul.f32 %v13666_v27, %v13400_v53  ;;  %v4228_v35 = vmul.f32 %v13635_v60, %v13379_v43  ;;  %v4791_v44 = vld [vmem:[#allocation2 + $0xb1] sm:$0xff] }
 0x674   : > { %v4011_v6 = vpop.permute.xlu1 %4010  ;;  %v4957_v63 = vadd.f32 %v4925_v45, %v4857_v54  ;;  %v4658_v10 = vadd.f32 %v4626_v38, %v4558_v12  ;;  %v4459_v5 = vadd.f32 %v4427_v9, %v4359_v17  ;;  %v4826_v57 = vmul.f32 %v13415_v50, %v4790_v61 }
 0x675   : > { %4076 = vst.msk [vmem:[#allocation2 + $0x189] sm:$0xff] %vm4044_vm7, %v4011_v6  ;;  %v4009_v3 = vpop.permute.xlu0 %4008  ;;  %16623 = vst [vmem:[#allocation55_spill] sm:$0xff] %v13693_v18  ;;  %5689 = vrot.lane.b32.xlu0 %v13693_v18, %s11077_s28  ;;  %v4627_v11 = vmul.f32 %v4889_v1, %v13407_v56  ;;  %v4260_v46 = vadd.f32 %v4228_v35, %v4128_v23  ;;  %v4328_v26 = vmul.f32 %v13641_v2, %v13384_v25  ;;  %v4891_v2 = vld [vmem:[#allocation2 + $0xb2] sm:$0xff] }
 0x676   : > { %4075 = vst.msk [vmem:[#allocation2 + $0x181] sm:$0xff] %vm4044_vm7, %v4009_v3  ;;  %v4995_v15 = vadd.f32 %v13462_v52, %v4957_v63  ;;  %v4758_v0 = vadd.f32 %v4726_v47, %v4658_v10  ;;  %v4559_v31 = vadd.f32 %v4527_v55, %v4459_v5  ;;  %v4428_v62 = vmul.f32 %v4690_v51, %v13397_v58  ;;  %v4692_v10 = vld [vmem:[#allocation2 + $0xc0] sm:$0xff] }
 0x677   : > { %v4926_v60 = vmul.f32 %v13430_v37, %v4890_v19  ;;  %v4727_v42 = vmul.f32 %v13412_v24, %v4691_v30  ;;  %v4360_v9 = vadd.f32 %v4328_v26, %v4260_v46  ;;  %v4129_v6 = vmul.f32 %v13656_v7, %v13376_v29 }
 0x678   : > { %v13711_v21 = vmax.f32 %v4995_v15, 0.0  ;;  %v4858_v48 = vadd.f32 %v4826_v57, %v4758_v0  ;;  %v4659_v39 = vadd.f32 %v4627_v11, %v4559_v31  ;;  %v4229_v45 = vmul.f32 %v13666_v27, %v13379_v43  ;;  %v4792_v15 = vld [vmem:[#allocation2 + $0xc1] sm:$0xff] }
 0x679   : > { %v4827_v38 = vmul.f32 %v13415_v50, %v4791_v44  ;;  %v4460_v3 = vadd.f32 %v4428_v62, %v4360_v9  ;;  %v4528_v17 = vmul.f32 %v4790_v61, %v13400_v53  ;;  %v4329_v7 = vmul.f32 %v4889_v1, %v13384_v25 }
 0x67a   : > { %5691 = vrot.lane.b32.xlu1 %v13711_v21, %s11077_s28  ;;  %v4958_v54 = vadd.f32 %v4926_v60, %v4858_v48  ;;  %v4759_v12 = vadd.f32 %v4727_v42, %v4659_v39  ;;  %v4261_v47 = vadd.f32 %v4229_v45, %v4129_v6  ;;  %v4429_v23 = vmul.f32 %v4691_v30, %v13397_v58  ;;  %v4892_v48 = vld [vmem:[#allocation2 + $0xc2] sm:$0xff] }
 0x67b   : > { %v4927_v55 = vmul.f32 %v13430_v37, %v4891_v2  ;;  %v4560_v35 = vadd.f32 %v4528_v17, %v4460_v3  ;;  %v4628_v27 = vmul.f32 %v4890_v19, %v13407_v56  ;;  %v4130_v11 = vmul.f32 %v4690_v51, %v13376_v29  ;;  %v13739_v6 = vld [vmem:[#allocation2 + $0xc8] sm:$0xff] }
 0x67c   : > { %v4996_v63 = vadd.f32 %v13462_v52, %v4958_v54  ;;  %v4859_v5 = vadd.f32 %v4827_v38, %v4759_v12  ;;  %v4361_v57 = vadd.f32 %v4329_v7, %v4261_v47  ;;  %v4728_v26 = vmul.f32 %v13412_v24, %v4692_v10 }
 0x67d   : > { %v4660_v46 = vadd.f32 %v4628_v27, %v4560_v35  ;;  %v4230_v1 = vmul.f32 %v4790_v61, %v13379_v43  ;;  %v4828_v62 = vmul.f32 %v13415_v50, %v4792_v15  ;;  %v4529_v39 = vmul.f32 %v4791_v44, %v13400_v53 }
 0x67e   : > { %v13728_v0 = vmax.f32 %v4996_v63, 0.0  ;;  %v4959_v31 = vadd.f32 %v4927_v55, %v4859_v5  ;;  %v4461_v60 = vadd.f32 %v4429_v23, %v4361_v57  ;;  %v4330_v42 = vmul.f32 %v4890_v19, %v13384_v25  ;;  %v4793_v19 = vld [vmem:[#allocation2 + $0xc9] sm:$0xff] }
 0x67f   : > { %v4760_v51 = vadd.f32 %v4728_v26, %v4660_v46  ;;  %v4262_v54 = vadd.f32 %v4230_v1, %v4130_v11  ;;  %v4430_v45 = vmul.f32 %v4692_v10, %v13397_v58  ;;  %v13744_v61 = vsel %vm1189_vm3, %v13490_v28, 0.0  ;;  %v4893_v11 = vld [vmem:[#allocation2 + $0xca] sm:$0xff]  ;;  %v13762_v26 = vld [vmem:[#allocation2 + $0xd8] sm:$0xff] }
 0x680   : > { %16624 = vst [vmem:[#allocation56_spill] sm:$0xff] %v13728_v0  ;;  %5693 = vrot.lane.b32.xlu0 %v13728_v0, %s11077_s28  ;;  %v4997_v9 = vadd.f32 %v13462_v52, %v4959_v31  ;;  %v13748_v12 = vsel %vm1189_vm3, %v13492_v41, 0.0  ;;  %v4561_v38 = vadd.f32 %v4529_v39, %v4461_v60  ;;  %v4629_v3 = vmul.f32 %v4891_v2, %v13407_v56 }
 0x681   : > { %v4860_v63 = vadd.f32 %v4828_v62, %v4760_v51  ;;  %v4928_v47 = vmul.f32 %v13430_v37, %v4892_v48  ;;  %v4362_v7 = vadd.f32 %v4330_v42, %v4262_v54  ;;  %v4729_v5 = vmul.f32 %v13412_v24, %v13739_v6  ;;  %v4794_v51 = vld [vmem:[#allocation2 + $0xd9] sm:$0xff] }
 0x682   : > { %v13751_v17 = vmax.f32 %v4997_v9, 0.0  ;;  %v4661_v23 = vadd.f32 %v4629_v3, %v4561_v38  ;;  %v4131_v55 = vmul.f32 %v4691_v30, %v13376_v29  ;;  %v4231_v35 = vmul.f32 %v4791_v44, %v13379_v43 }
 0x683   : > { %v4960_v27 = vadd.f32 %v4928_v47, %v4860_v63  ;;  %v4829_v57 = vmul.f32 %v13415_v50, %v4793_v19  ;;  %v4462_v31 = vadd.f32 %v4430_v45, %v4362_v7  ;;  %v4530_v46 = vmul.f32 %v4792_v15, %v13400_v53 }
 0x684   : > { %5695 = vrot.lane.b32.xlu1 %v13751_v17, %s11077_s28  ;;  %v4761_v1 = vadd.f32 %v4729_v5, %v4661_v23  ;;  %v4263_v62 = vadd.f32 %v4231_v35, %v4131_v55  ;;  %v4331_v60 = vmul.f32 %v4891_v2, %v13384_v25  ;;  %v4431_v30 = vmul.f32 %v13739_v6, %v13397_v58  ;;  %v4894_v55 = vld [vmem:[#allocation2 + $0xda] sm:$0xff] }
 0x685   : > { %v5211_v44 = vsel %vm1189_vm3, %v13519_v40, 0.0  ;;  %v4998_v39 = vadd.f32 %v13462_v52, %v4960_v27  ;;  %v4562_v42 = vadd.f32 %v4530_v46, %v4462_v31  ;;  %v4630_v9 = vmul.f32 %v4892_v48, %v13407_v56  ;;  %v13782_v31 = vld [vmem:[#allocation2 + $0xe0] sm:$0xff] }
 0x686   : > { %v4861_v54 = vadd.f32 %v4829_v57, %v4761_v1  ;;  %v4929_v45 = vmul.f32 %v13430_v37, %v4893_v11  ;;  %v4730_v38 = vmul.f32 %v13412_v24, %v13762_v26  ;;  %v4363_v3 = vadd.f32 %v4331_v60, %v4263_v62 }
 0x687   : > { %v13774_v2 = vmax.f32 %v4998_v39, 0.0  ;;  %v4662_v63 = vadd.f32 %v4630_v9, %v4562_v42  ;;  %v4132_v47 = vmul.f32 %v4692_v10, %v13376_v29  ;;  %v4232_v7 = vmul.f32 %v4792_v15, %v13379_v43 }
 0x688   : > { %v4961_v23 = vadd.f32 %v4929_v45, %v4861_v54  ;;  %v4830_v5 = vmul.f32 %v13415_v50, %v4794_v51  ;;  %v4463_v35 = vadd.f32 %v4431_v30, %v4363_v3  ;;  %v4531_v27 = vmul.f32 %v4793_v19, %v13400_v53  ;;  %v4795_v54 = vld [vmem:[#allocation2 + $0xe1] sm:$0xff] }
 0x689   : > { %16625 = vst [vmem:[#allocation57_spill] sm:$0xff] %v13774_v2  ;;  %5697 = vrot.lane.b32.xlu0 %v13774_v2, %s11077_s28  ;;  %v4762_v57 = vadd.f32 %v4730_v38, %v4662_v63  ;;  %v4264_v46 = vadd.f32 %v4232_v7, %v4132_v47  ;;  %v4332_v1 = vmul.f32 %v4892_v48, %v13384_v25  ;;  %v5242_v15 = vsel %vm1189_vm3, %v13533_v49, 0.0  ;;  %v4895_v7 = vld [vmem:[#allocation2 + $0xe2] sm:$0xff] }
 0x68a   : > { %v4432_v10 = vmul.f32 %v13762_v26, %v13397_v58  ;;  %v4999_v62 = vadd.f32 %v13462_v52, %v4961_v23  ;;  %v4563_v60 = vadd.f32 %v4531_v27, %v4463_v35  ;;  %v4631_v30 = vmul.f32 %v4893_v11, %v13407_v56 }
 0x68b   : > { %v5213_v39 = vsel %vm1189_vm3, %v13581_v22, 0.0  ;;  %v4862_v42 = vadd.f32 %v4830_v5, %v4762_v57  ;;  %v4930_v9 = vmul.f32 %v13430_v37, %v4894_v55  ;;  %v4364_v45 = vadd.f32 %v4332_v1, %v4264_v46  ;;  %v13806_v1 = vld [vmem:[#allocation2 + $0xf0] sm:$0xff] }
 0x68c   : > { %v13794_v48 = vmax.f32 %v4999_v62, 0.0  ;;  %v4663_v38 = vadd.f32 %v4631_v30, %v4563_v60  ;;  %v4731_v3 = vmul.f32 %v13412_v24, %v13782_v31  ;;  %v4133_v63 = vmul.f32 %v13739_v6, %v13376_v29 }
 0x68d   : > { %v4962_v47 = vadd.f32 %v4930_v9, %v4862_v42  ;;  %v4464_v23 = vadd.f32 %v4432_v10, %v4364_v45  ;;  %v4532_v35 = vmul.f32 %v4794_v51, %v13400_v53  ;;  %v4233_v5 = vmul.f32 %v4793_v19, %v13379_v43 }
 0x68e   : > { %16626 = vst [vmem:[#allocation58_spill] sm:$0xff] %v13794_v48  ;;  %5699 = vrot.lane.b32.xlu1 %v13794_v48, %s11077_s28  ;;  %v4763_v27 = vadd.f32 %v4731_v3, %v4663_v38  ;;  %v4831_v57 = vmul.f32 %v13415_v50, %v4795_v54  ;;  %v4632_v46 = vmul.f32 %v4894_v55, %v13407_v56  ;;  %v4796_v38 = vld [vmem:[#allocation2 + $0xf1] sm:$0xff] }
 0x68f   : > { %v4333_v62 = vmul.f32 %v4893_v11, %v13384_v25  ;;  %v5000_v6 = vadd.f32 %v13462_v52, %v4962_v47  ;;  %v4564_v60 = vadd.f32 %v4532_v35, %v4464_v23  ;;  %v4265_v10 = vadd.f32 %v4233_v5, %v4133_v63  ;;  %v4896_v35 = vld [vmem:[#allocation2 + $0xf2] sm:$0xff] }
 0x690   : > { %v4433_v30 = vmul.f32 %v13782_v31, %v13397_v58  ;;  %v5212_v19 = vadd.f32 %v5211_v44, %v13748_v12  ;;  %v5243_v42 = vadd.f32 %v5242_v15, %v13744_v61  ;;  %v4863_v9 = vadd.f32 %v4831_v57, %v4763_v27  ;;  %v13828_v57 = vld [vmem:[#allocation2 + $0xf8] sm:$0xff] }
 0x691   : > { %v4931_v45 = vmul.f32 %v13430_v37, %v4895_v7  ;;  %v13815_v3 = vmax.f32 %v5000_v6, 0.0  ;;  %v4664_v41 = vadd.f32 %v4632_v46, %v4564_v60  ;;  %v4732_v11 = vmul.f32 %v13412_v24, %v13806_v1 }
 0x692   : > { %v4365_v47 = vadd.f32 %v4333_v62, %v4265_v10  ;;  %v13819_v23 = vadd.f32 %v5213_v39, %v5212_v19  ;;  %v4134_v12 = vmul.f32 %v13762_v26, %v13376_v29  ;;  %v4234_v61 = vmul.f32 %v4794_v51, %v13379_v43  ;;  %v4797_v10 = vld [vmem:[#allocation2 + $0xf9] sm:$0xff] }
 0x693   : > { %16627 = vst [vmem:[#allocation59_spill] sm:$0xff] %v13815_v3  ;;  %v4963_v63 = vadd.f32 %v4931_v45, %v4863_v9  ;;  %5701 = vrot.lane.b32.xlu0 %v13815_v3, %s11077_s28  ;;  %v4764_v44 = vadd.f32 %v4732_v11, %v4664_v41  ;;  %v4832_v15 = vmul.f32 %v13415_v50, %v4796_v38 }
 0x694   : > { %v4465_v5 = vadd.f32 %v4433_v30, %v4365_v47  ;;  %v4533_v27 = vmul.f32 %v4795_v54, %v13400_v53  ;;  %v4266_v46 = vadd.f32 %v4234_v61, %v4134_v12  ;;  %v4334_v62 = vmul.f32 %v4894_v55, %v13384_v25  ;;  %v4897_v61 = vld [vmem:[#allocation2 + $0xfa] sm:$0xff] }
 0x695   : > { %v5001_v39 = vadd.f32 %v13462_v52, %v4963_v63  ;;  %v4434_v26 = vmul.f32 %v13806_v1, %v13397_v58  ;;  %v4864_v51 = vadd.f32 %v4832_v15, %v4764_v44  ;;  %v4932_v6 = vmul.f32 %v13430_v37, %v4896_v35 }
 0x696   : > { %v4565_v60 = vadd.f32 %v4533_v27, %v4465_v5  ;;  %v4633_v41 = vmul.f32 %v4895_v7, %v13407_v56  ;;  %v5244_v30 = vsel %vm1189_vm3, %v13607_v13, 0.0  ;;  %v4733_v9 = vmul.f32 %v13412_v24, %v13828_v57 }
 0x697   : > { %v13838_v19 = vmax.f32 %v5001_v39, 0.0  ;;  %v4366_v45 = vadd.f32 %v4334_v62, %v4266_v46  ;;  %v4964_v55 = vadd.f32 %v4932_v6, %v4864_v51  ;;  %v4135_v47 = vmul.f32 %v13782_v31, %v13376_v29  ;;  %v13851_v46 = vld [vmem:[#allocation2 + $0x108] sm:$0xff] }
 0x698   : > { %v4665_v11 = vadd.f32 %v4633_v41, %v4565_v60  ;;  %v4235_v63 = vmul.f32 %v4795_v54, %v13379_v43  ;;  %v4833_v12 = vmul.f32 %v13415_v50, %v4797_v10  ;;  %v4534_v15 = vmul.f32 %v4796_v38, %v13400_v53  ;;  %v4798_v60 = vld [vmem:[#allocation2 + $0x109] sm:$0xff] }
 0x699   : > { %16628 = vst [vmem:[#allocation60_spill] sm:$0xff] %v13838_v19  ;;  %5703 = vrot.lane.b32.xlu1 %v13838_v19, %s11077_s28  ;;  %v4466_v44 = vadd.f32 %v4434_v26, %v4366_v45  ;;  %v4335_v5 = vmul.f32 %v4895_v7, %v13384_v25  ;;  %v5002_v27 = vadd.f32 %v13462_v52, %v4964_v55  ;;  %v5215_v51 = vsel %vm1189_vm3, %v13637_v4, 0.0  ;;  %v14087_v4 = vld [vmem:[#allocation2 + $0x172] sm:$0xff] }
 0x69a   : > { %v4765_v39 = vadd.f32 %v4733_v9, %v4665_v11  ;;  %v4267_v62 = vadd.f32 %v4235_v63, %v4135_v47  ;;  %v4435_v31 = vmul.f32 %v13828_v57, %v13397_v58  ;;  %v5245_v54 = vadd.f32 %v5244_v30, %v5243_v42 }
 0x69b   : > { %v4566_v6 = vadd.f32 %v4534_v15, %v4466_v44  ;;  %v4634_v26 = vmul.f32 %v4896_v35, %v13407_v56  ;;  %v13858_v41 = vmax.f32 %v5002_v27, 0.0  ;;  %v4933_v45 = vmul.f32 %v13430_v37, %v4897_v61  ;;  %v4898_v44 = vld [vmem:[#allocation2 + $0x10a] sm:$0xff] }
 0x69c   : > { %v4865_v7 = vadd.f32 %v4833_v12, %v4765_v39  ;;  %v4367_v9 = vadd.f32 %v4335_v5, %v4267_v62  ;;  %v4734_v11 = vmul.f32 %v13412_v24, %v13851_v46  ;;  %v4136_v42 = vmul.f32 %v13806_v1, %v13376_v29  ;;  %v13870_v27 = vld [vmem:[#allocation2 + $0x110] sm:$0xff] }
 0x69d   : > { %16629 = vst [vmem:[#allocation61_spill] sm:$0xff] %v13858_v41  ;;  %v4666_v55 = vadd.f32 %v4634_v26, %v4566_v6  ;;  %v4236_v30 = vmul.f32 %v4796_v38, %v13379_v43  ;;  %5705 = vrot.lane.b32.xlu0 %v13858_v41, %s11077_s28  ;;  %v4834_v63 = vmul.f32 %v13415_v50, %v4798_v60  ;;  %v5246_v38 = vsel %vm1189_vm3, %v13671_v8, 0.0 }
 0x69e   : > { %v4965_v47 = vadd.f32 %v4933_v45, %v4865_v7  ;;  %v4467_v12 = vadd.f32 %v4435_v31, %v4367_v9  ;;  %v4535_v15 = vmul.f32 %v4797_v10, %v13400_v53  ;;  %v4336_v62 = vmul.f32 %v4896_v35, %v13384_v25 }
 0x69f   : > { %v4766_v5 = vadd.f32 %v4734_v11, %v4666_v55  ;;  %v4268_v39 = vadd.f32 %v4236_v30, %v4136_v42  ;;  %v4436_v1 = vmul.f32 %v13851_v46, %v13397_v58  ;;  %v4635_v7 = vmul.f32 %v4897_v61, %v13407_v56  ;;  %v4799_v55 = vld [vmem:[#allocation2 + $0x111] sm:$0xff] }
 0x6a0   : > { %v5003_v6 = vadd.f32 %v13462_v52, %v4965_v47  ;;  %v4567_v26 = vadd.f32 %v4535_v15, %v4467_v12  ;;  %v5217_v31 = vsel %vm1189_vm3, %v13693_v18, 0.0  ;;  %v4934_v9 = vmul.f32 %v13430_v37, %v4898_v44  ;;  %v4899_v15 = vld [vmem:[#allocation2 + $0x112] sm:$0xff] }
 0x6a1   : > { %v4866_v45 = vadd.f32 %v4834_v63, %v4766_v5  ;;  %v4368_v11 = vadd.f32 %v4336_v62, %v4268_v39  ;;  %v4735_v30 = vmul.f32 %v13412_v24, %v13870_v27  ;;  %v4137_v47 = vmul.f32 %v13828_v57, %v13376_v29 }
 0x6a2   : > { %v13882_v35 = vmax.f32 %v5003_v6, 0.0  ;;  %v4667_v42 = vadd.f32 %v4635_v7, %v4567_v26  ;;  %v4536_v36 = vmul.f32 %v4798_v60, %v13400_v53  ;;  %v4237_v63 = vmul.f32 %v4797_v10, %v13379_v43  ;;  %v13894_v6 = vld [vmem:[#allocation2 + $0x120] sm:$0xff] }
 0x6a3   : > { %v4966_v12 = vadd.f32 %v4934_v9, %v4866_v45  ;;  %v4468_v59 = vadd.f32 %v4436_v1, %v4368_v11  ;;  %v4835_v39 = vmul.f32 %v13415_v50, %v4799_v55  ;;  %v4636_v62 = vmul.f32 %v4898_v44, %v13407_v56 }
 0x6a4   : > { %16630 = vst [vmem:[#allocation62_spill] sm:$0xff] %v13882_v35  ;;  %5707 = vrot.lane.b32.xlu1 %v13882_v35, %s11077_s28  ;;  %v4767_v5 = vadd.f32 %v4735_v30, %v4667_v42  ;;  %v4337_v26 = vmul.f32 %v4897_v61, %v13384_v25  ;;  %v4269_v1 = vadd.f32 %v4237_v63, %v4137_v47  ;;  %v4800_v30 = vld [vmem:[#allocation2 + $0x121] sm:$0xff] }
 0x6a5   : > { %v5004_v57 = vadd.f32 %v13462_v52, %v4966_v12  ;;  %v4568_v7 = vadd.f32 %v4536_v36, %v4468_v59  ;;  %v4437_v45 = vmul.f32 %v13870_v27, %v13397_v58  ;;  %v5216_v10 = vadd.f32 %v5215_v51, %v13819_v23  ;;  %v4900_v59 = vld [vmem:[#allocation2 + $0x122] sm:$0xff] }
 0x6a6   : > { %v5247_v9 = vadd.f32 %v5246_v38, %v5245_v54  ;;  %v4867_v11 = vadd.f32 %v4835_v39, %v4767_v5  ;;  %v4935_v42 = vmul.f32 %v13430_v37, %v4899_v15  ;;  %v4736_v61 = vmul.f32 %v13412_v24, %v13894_v6  ;;  %v13915_v63 = vld [vmem:[#allocation2 + $0x128] sm:$0xff] }
 0x6a7   : > { %v13902_v34 = vmax.f32 %v5004_v57, 0.0  ;;  %v4668_v33 = vadd.f32 %v4636_v62, %v4568_v7  ;;  %v4369_v32 = vadd.f32 %v4337_v26, %v4269_v1  ;;  %v13906_v12 = vadd.f32 %v5217_v31, %v5216_v10  ;;  %v13921_v62 = vld [vmem:[#allocation15 + $0x8] ss:$0 sm:$0xff] }
 0x6a8   : > { %v4967_v36 = vadd.f32 %v4935_v42, %v4867_v11  ;;  %v4138_v47 = vmul.f32 %v13851_v46, %v13376_v29  ;;  %v4238_v23 = vmul.f32 %v4798_v60, %v13379_v43  ;;  %v4836_v54 = vmul.f32 %v13415_v50, %v4800_v30  ;;  %v4801_v57 = vld [vmem:[#allocation2 + $0x129] sm:$0xff] }
 0x6a9   : > { %16631 = vst [vmem:[#allocation63_spill] sm:$0xff] %v13902_v34  ;;  %5709 = vrot.lane.b32.xlu0 %v13902_v34, %s11077_s28  ;;  %v4768_v37 = vadd.f32 %v4736_v61, %v4668_v33  ;;  %v4469_v51 = vadd.f32 %v4437_v45, %v4369_v32  ;;  %v4537_v38 = vmul.f32 %v4799_v55, %v13400_v53  ;;  %v5248_v7 = vsel %vm1189_vm3, %v13711_v21, 0.0 }
 0x6aa   : > { %v5005_v31 = vadd.f32 %v13462_v52, %v4967_v36  ;;  %v4270_v5 = vadd.f32 %v4238_v23, %v4138_v47  ;;  %v4338_v39 = vmul.f32 %v4898_v44, %v13384_v25  ;;  %v4438_v46 = vmul.f32 %v13894_v6, %v13397_v58  ;;  %v4901_v47 = vld [vmem:[#allocation2 + $0x12a] sm:$0xff] }
 0x6ab   : > { %v4868_v60 = vadd.f32 %v4836_v54, %v4768_v37  ;;  %v4936_v33 = vmul.f32 %v13921_v62, %v4900_v59  ;;  %v4569_v26 = vadd.f32 %v4537_v38, %v4469_v51  ;;  %v4637_v32 = vmul.f32 %v4899_v15, %v13407_v56 }
 0x6ac   : > { %v13927_v1 = vmax.f32 %v5005_v31, 0.0  ;;  %v4737_v44 = vmul.f32 %v13412_v24, %v13915_v63  ;;  %v4370_v45 = vadd.f32 %v4338_v39, %v4270_v5  ;;  %v4139_v42 = vmul.f32 %v13870_v27, %v13376_v29  ;;  %v13940_v31 = vld [vmem:[#allocation2 + $0x138] sm:$0xff] }
 0x6ad   : > { %v4968_v10 = vadd.f32 %v4936_v33, %v4868_v60  ;;  %v4669_v11 = vadd.f32 %v4637_v32, %v4569_v26  ;;  %v4239_v61 = vmul.f32 %v4799_v55, %v13379_v43  ;;  %v4837_v36 = vmul.f32 %v13415_v50, %v4801_v57  ;;  %v4802_v33 = vld [vmem:[#allocation2 + $0x139] sm:$0xff] }
 0x6ae   : > { %16632 = vst [vmem:[#allocation64_spill] sm:$0xff] %v13927_v1  ;;  %5711 = vrot.lane.b32.xlu1 %v13927_v1, %s11077_s28  ;;  %v4470_v23 = vadd.f32 %v4438_v46, %v4370_v45  ;;  %v4538_v37 = vmul.f32 %v4800_v30, %v13400_v53  ;;  %v4339_v54 = vmul.f32 %v4899_v15, %v13384_v25  ;;  %v5219_v39 = vsel %vm1189_vm3, %v13728_v0, 0.0 }
 0x6af   : > { %v5006_v51 = vadd.f32 %v13462_v52, %v4968_v10  ;;  %v4769_v38 = vadd.f32 %v4737_v44, %v4669_v11  ;;  %v4271_v5 = vadd.f32 %v4239_v61, %v4139_v42  ;;  %v4439_v27 = vmul.f32 %v13915_v63, %v13397_v58  ;;  %v4902_v42 = vld [vmem:[#allocation2 + $0x13a] sm:$0xff] }
 0x6b0   : > { %v5249_v55 = vadd.f32 %v5248_v7, %v5247_v9  ;;  %v4570_v60 = vadd.f32 %v4538_v37, %v4470_v23  ;;  %v4638_v46 = vmul.f32 %v4900_v59, %v13407_v56  ;;  %v4937_v52 = vmul.f32 %v13921_v62, %v4901_v47  ;;  %v13959_v37 = vld [vmem:[#allocation2 + $0x140] sm:$0xff] }
 0x6b1   : > { %v13947_v26 = vmax.f32 %v5006_v51, 0.0  ;;  %v4869_v15 = vadd.f32 %v4837_v36, %v4769_v38  ;;  %v4371_v32 = vadd.f32 %v4339_v54, %v4271_v5  ;;  %v4738_v45 = vmul.f32 %v13412_v24, %v13940_v31  ;;  %v13966_v38 = vld [vmem:[#allocation17] ss:$0 sm:$0xff] }
 0x6b2   : > { %v4670_v44 = vadd.f32 %v4638_v46, %v4570_v60  ;;  %v4140_v9 = vmul.f32 %v13894_v6, %v13376_v29  ;;  %v4240_v7 = vmul.f32 %v4800_v30, %v13379_v43  ;;  %v4838_v11 = vmul.f32 %v13415_v50, %v4802_v33 }
 0x6b3   : > { %16633 = vst [vmem:[#allocation65_spill] sm:$0xff] %v13947_v26  ;;  %5713 = vrot.lane.b32.xlu0 %v13947_v26, %s11077_s28  ;;  %v4969_v10 = vadd.f32 %v4937_v52, %v4869_v15  ;;  %v4471_v61 = vadd.f32 %v4439_v27, %v4371_v32  ;;  %v4539_v36 = vmul.f32 %v4801_v57, %v13400_v53  ;;  %v5250_v30 = vsel %vm1189_vm3, %v13751_v17, 0.0 }
 0x6b4   : > { %v4770_v23 = vadd.f32 %v4738_v45, %v4670_v44  ;;  %v4272_v54 = vadd.f32 %v4240_v7, %v4140_v9  ;;  %v4340_v51 = vmul.f32 %v4900_v59, %v13384_v25  ;;  %v4440_v6 = vmul.f32 %v13940_v31, %v13397_v58  ;;  %v4803_v59 = vld [vmem:[#allocation2 + $0x141] sm:$0xff] }
 0x6b5   : > { %v5007_v5 = vadd.f32 %v13966_v38, %v4969_v10  ;;  %v4571_v60 = vadd.f32 %v4539_v36, %v4471_v61  ;;  %v4639_v27 = vmul.f32 %v4901_v47, %v13407_v56  ;;  %v5221_v46 = vsel %vm1189_vm3, %v13774_v2, 0.0  ;;  %v4903_v61 = vld [vmem:[#allocation2 + $0x142] sm:$0xff] }
 0x6b6   : > { %v4870_v15 = vadd.f32 %v4838_v11, %v4770_v23  ;;  %v4938_v52 = vmul.f32 %v13921_v62, %v4902_v42  ;;  %v4372_v32 = vadd.f32 %v4340_v51, %v4272_v54  ;;  %v4739_v9 = vmul.f32 %v13412_v24, %v13959_v37 }
 0x6b7   : > { %v13973_v44 = vmax.f32 %v5007_v5, 0.0  ;;  %v4671_v45 = vadd.f32 %v4639_v27, %v4571_v60  ;;  %v4141_v7 = vmul.f32 %v13915_v63, %v13376_v29  ;;  %v4540_v20 = vmul.f32 %v4802_v33, %v13400_v53  ;;  %v13985_v5 = vld [vmem:[#allocation2 + $0x150] sm:$0xff] }
 0x6b8   : > { %v4970_v10 = vadd.f32 %v4938_v52, %v4870_v15  ;;  %v4472_v36 = vadd.f32 %v4440_v6, %v4372_v32  ;;  %v4241_v11 = vmul.f32 %v4801_v57, %v13379_v43  ;;  %v4839_v54 = vmul.f32 %v13415_v50, %v4803_v59 }
 0x6b9   : > { %16634 = vst [vmem:[#allocation66_spill] sm:$0xff] %v13973_v44  ;;  %5715 = vrot.lane.b32.xlu1 %v13973_v44, %s11077_s28  ;;  %v4771_v23 = vadd.f32 %v4739_v9, %v4671_v45  ;;  %v4640_v51 = vmul.f32 %v4902_v42, %v13407_v56  ;;  %v4341_v60 = vmul.f32 %v4901_v47, %v13384_v25  ;;  %v4804_v9 = vld [vmem:[#allocation2 + $0x151] sm:$0xff] }
 0x6ba   : > { %v5008_v63 = vadd.f32 %v13966_v38, %v4970_v10  ;;  %v4572_v27 = vadd.f32 %v4540_v20, %v4472_v36  ;;  %v4273_v6 = vadd.f32 %v4241_v11, %v4141_v7  ;;  %v4441_v15 = vmul.f32 %v13959_v37, %v13397_v58  ;;  %v14001_v36 = vld [vmem:[#allocation2 + $0x152] sm:$0xff] }
 0x6bb   : > { %v5220_v57 = vadd.f32 %v5219_v39, %v13906_v12  ;;  %v13992_v52 = vadd.f32 %v5250_v30, %v5249_v55  ;;  %v4871_v32 = vadd.f32 %v4839_v54, %v4771_v23  ;;  %v4939_v45 = vmul.f32 %v13921_v62, %v4903_v61  ;;  %v14010_v54 = vld [vmem:[#allocation2 + $0x158] sm:$0xff] }
 0x6bc   : > { %v13995_v16 = vmax.f32 %v5008_v63, 0.0  ;;  %v4672_v14 = vadd.f32 %v4640_v51, %v4572_v27  ;;  %v4740_v47 = vmul.f32 %v13412_v24, %v13985_v5  ;;  %v4373_v10 = vadd.f32 %v4341_v60, %v4273_v6 }
 0x6bd   : > { %v13999_v20 = vadd.f32 %v5221_v46, %v5220_v57  ;;  %v4971_v7 = vadd.f32 %v4939_v45, %v4871_v32  ;;  %v4142_v12 = vmul.f32 %v13940_v31, %v13376_v29  ;;  %v4242_v55 = vmul.f32 %v4802_v33, %v13379_v43  ;;  %v14012_v46 = vld [vmem:[#allocation2 + $0x159] sm:$0xff] }
 0x6be   : > { %16635 = vst [vmem:[#allocation67_spill] sm:$0xff] %v13995_v16  ;;  %5717 = vrot.lane.b32.xlu0 %v13995_v16, %s11077_s28  ;;  %v4772_v39 = vadd.f32 %v4740_v47, %v4672_v14  ;;  %v4840_v30 = vmul.f32 %v13415_v50, %v4804_v9  ;;  %v4473_v11 = vadd.f32 %v4441_v15, %v4373_v10 }
 0x6bf   : > { %v4541_v23 = vmul.f32 %v4803_v59, %v13400_v53  ;;  %v5009_v51 = vadd.f32 %v13966_v38, %v4971_v7  ;;  %v4274_v60 = vadd.f32 %v4242_v55, %v4142_v12  ;;  %v4342_v31 = vmul.f32 %v4902_v42, %v13384_v25 }
 0x6c0   : > { %v4442_v33 = vmul.f32 %v13985_v5, %v13397_v58  ;;  %v4872_v63 = vadd.f32 %v4840_v30, %v4772_v39  ;;  %v4940_v14 = vmul.f32 %v13921_v62, %v14001_v36  ;;  %v4641_v6 = vmul.f32 %v4903_v61, %v13407_v56  ;;  %v4905_v39 = vld [vmem:[#allocation2 + $0x15a] sm:$0xff] }
 0x6c1   : > { %v4573_v27 = vadd.f32 %v4541_v23, %v4473_v11  ;;  %v14021_v15 = vmax.f32 %v5009_v51, 0.0  ;;  %v4741_v57 = vmul.f32 %v13412_v24, %v14010_v54  ;;  %v4841_v32 = vmul.f32 %v13415_v50, %v14012_v46 }
 0x6c2   : > { %v4374_v45 = vadd.f32 %v4342_v31, %v4274_v60  ;;  %v4972_v42 = vadd.f32 %v4940_v14, %v4872_v63  ;;  %v4143_v10 = vmul.f32 %v13959_v37, %v13376_v29  ;;  %v4243_v7 = vmul.f32 %v4803_v59, %v13379_v43  ;;  %v14038_v37 = vld [vmem:[#allocation2 + $0x168] sm:$0xff] }
 0x6c3   : > { %16636 = vst [vmem:[#allocation68_spill] sm:$0xff] %v14021_v15  ;;  %v4673_v47 = vadd.f32 %v4641_v6, %v4573_v27  ;;  %5719 = vrot.lane.b32.xlu1 %v14021_v15, %s11077_s28  ;;  %v4542_v11 = vmul.f32 %v4804_v9, %v13400_v53  ;;  %v4343_v23 = vmul.f32 %v4903_v61, %v13384_v25  ;;  %v5252_v63 = vsel %vm1189_vm3, %v13794_v48, 0.0  ;;  %v14048_v27 = vld [vmem:[#allocation2 + $0x169] sm:$0xff] }
 0x6c4   : > { %v4474_v30 = vadd.f32 %v4442_v33, %v4374_v45  ;;  %v5010_v51 = vadd.f32 %v13966_v38, %v4972_v42  ;;  %v4275_v59 = vadd.f32 %v4243_v7, %v4143_v10  ;;  %v4443_v31 = vmul.f32 %v14010_v54, %v13397_v58 }
 0x6c5   : > { %v4773_v60 = vadd.f32 %v4741_v57, %v4673_v47  ;;  %v5223_v33 = vsel %vm1189_vm3, %v13815_v3, 0.0  ;;  %v4642_v61 = vmul.f32 %v14001_v36, %v13407_v56  ;;  %v4941_v45 = vmul.f32 %v13921_v62, %v4905_v39 }
 0x6c6   : > { %v14030_v12 = vpop.permute.xlu1 %5675  ;;  %v5674_v55 = vpop.permute.xlu0 %5673  ;;  %v4574_v14 = vadd.f32 %v4542_v11, %v4474_v30  ;;  %v14050_v6 = vmax.f32 %v5010_v51, 0.0  ;;  %v4375_v42 = vadd.f32 %v4343_v23, %v4275_v59  ;;  %v4742_v7 = vmul.f32 %v13412_v24, %v14038_v37  ;;  %v14067_v59 = vld [vmem:[#allocation2 + $0x170] sm:$0xff] }
 0x6c7   : > { %10162 = vmatprep.mubr.msk.f32.mxu1 %vm1189_vm3, %v5674_v55  ;;  %v4873_v57 = vadd.f32 %v4841_v32, %v4773_v60  ;;  %v14055_v55 = vld [vmem:[#allocation2 + $0x16a] sm:$0xff]  ;;  %v4144_v30 = vmul.f32 %v13985_v5, %v13376_v29  ;;  %v4244_v11 = vmul.f32 %v4804_v9, %v13379_v43  ;;  %v4842_v23 = vmul.f32 %v13415_v50, %v14048_v27 }
 0x6c8   : > { %16637 = vst [vmem:[#allocation69_spill] sm:$0xff] %v14050_v6  ;;  %v4674_v10 = vadd.f32 %v4642_v61, %v4574_v14  ;;  %5721 = vrot.lane.b32.xlu0 %v14050_v6, %s11077_s28  ;;  %v4475_v51 = vadd.f32 %v4443_v31, %v4375_v42  ;;  %v4543_v60 = vmul.f32 %v14012_v46, %v13400_v53  ;;  %v14069_v14 = vld [vmem:[#allocation2 + $0x171] sm:$0xff] }
 0x6c9   : > { %v4973_v32 = vadd.f32 %v4941_v45, %v4873_v57  ;;  %v4276_v61 = vadd.f32 %v4244_v11, %v4144_v30  ;;  %v4344_v9 = vmul.f32 %v14001_v36, %v13384_v25  ;;  %v5671_v57 = vld [vmem:[#allocation18 + $0x10] sm:$0xff]  ;;  %v5672_v45 = vld [vmem:[#allocation18 + $0x18] sm:$0xff]  ;;  %v4942_v31 = vmul.f32 %v13921_v62, %v14055_v55 }
 0x6ca   : > { %v5286_v47 = vpop.permute.xlu1 %5285  ;;  %v4774_v5 = vadd.f32 %v4742_v7, %v4674_v10  ;;  %v4575_v42 = vadd.f32 %v4543_v60, %v4475_v51  ;;  %v4643_v2 = vmul.f32 %v4905_v39, %v13407_v56  ;;  %v4743_v10 = vmul.f32 %v13412_v24, %v14067_v59 }
 0x6cb   : > { %10110 = vmatprep.mubr.msk.f32.mxu0 %vm1189_vm3, %v5286_v47  ;;  %v4444_v47 = vmul.f32 %v14038_v37, %v13397_v58  ;;  %v5011_v3 = vadd.f32 %v13966_v38, %v4973_v32  ;;  %v4843_v36 = vmul.f32 %v13415_v50, %v14069_v14  ;;  %v4376_v7 = vadd.f32 %v4344_v9, %v4276_v61  ;;  %v5678_v61 = vpop.permute.xlu0 %5677 }
 0x6cc   : > { %v4874_v0 = vadd.f32 %v4842_v23, %v4774_v5  ;;  %v4675_v11 = vadd.f32 %v4643_v2, %v4575_v42  ;;  %v4544_v32 = vmul.f32 %v14048_v27, %v13400_v53  ;;  %v10290_v18 = vpack.c.bf16 %v5672_v45, %v5671_v57  ;;  %v4708_v5 = vld [vmem:[#allocation2 + $0x180] sm:$0xff] }
 0x6cd   : > { %v14083_v30 = vmax.f32 %v5011_v3, 0.0  ;;  %v4476_v51 = vadd.f32 %v4444_v47, %v4376_v7  ;;  %v4145_v23 = vmul.f32 %v14010_v54, %v13376_v29  ;;  %v4245_v60 = vmul.f32 %v14012_v46, %v13379_v43  ;;  %v4808_v57 = vld [vmem:[#allocation2 + $0x181] sm:$0xff] }
 0x6ce   : > { %v4974_v48 = vadd.f32 %v4942_v31, %v4874_v0  ;;  %v4775_v3 = vadd.f32 %v4743_v10, %v4675_v11  ;;  %v4644_v2 = vmul.f32 %v14055_v55, %v13407_v56  ;;  %10291 = vmatprep.subr.bf16.mxu1 %v10290_v18  ;;  %v4345_v0 = vmul.f32 %v4905_v39, %v13384_v25 }
 0x6cf   : > { %16638 = vst [vmem:[#allocation70_spill] sm:$0xff] %v14083_v30  ;;  %5723 = vrot.lane.b32.xlu1 %v14083_v30, %s11077_s28  ;;  %v4576_v47 = vadd.f32 %v4544_v32, %v4476_v51  ;;  %10293 = vmatpush3.bf16.msra.mxu1 %v10290_v18  ;;  %v4277_v54 = vadd.f32 %v4245_v60, %v4145_v23  ;;  %v5680_v18 = vpop.permute.xlu1 %5679  ;;  %v4908_v23 = vld [vmem:[#allocation2 + $0x182] sm:$0xff] }
 0x6d0   : > { %v5012_v9 = vadd.f32 %v13966_v38, %v4974_v48  ;;  %v4445_v46 = vmul.f32 %v14067_v59, %v13397_v58  ;;  %v5253_v45 = vadd.f32 %v5252_v63, %v13992_v52  ;;  %v14103_v31 = vadd.f32 %v5223_v33, %v13999_v20 }
 0x6d1   : > { %v4875_v42 = vadd.f32 %v4843_v36, %v4775_v3  ;;  %v4943_v10 = vmul.f32 %v13921_v62, %v14087_v4  ;;  %v4676_v7 = vadd.f32 %v4644_v2, %v4576_v47  ;;  %v4744_v48 = vmul.f32 %v13412_v24, %v4708_v5  ;;  %v4709_v3 = vld [vmem:[#allocation2 + $0x188] sm:$0xff] }
 0x6d2   : > { %v14107_v39 = vmax.f32 %v5012_v9, 0.0  ;;  %v4377_v11 = vadd.f32 %v4345_v0, %v4277_v54  ;;  %v4844_v51 = vmul.f32 %v13415_v50, %v4808_v57  ;;  %v4146_v52 = vmul.f32 %v14038_v37, %v13376_v29  ;;  %10163 = vmatmul.mubr.msk.f32.vlgmr.msra.gmra.mrb[96].mxu1 %vm1189_vm3, %v14030_v12 }
 0x6d3   : > { %v4975_v32 = vadd.f32 %v4943_v10, %v4875_v42  ;;  %v4246_v20 = vmul.f32 %v14048_v27, %v13379_v43  ;;  %v5254_v63 = vsel %vm1189_vm3, %v13838_v19, 0.0  ;;  %v4776_v33 = vadd.f32 %v4744_v48, %v4676_v7  ;;  %10165 = vmatprep.mubr.msk.f32.mxu1 %vm1189_vm3, %v5678_v61  ;;  %v4809_v42 = vld [vmem:[#allocation2 + $0x189] sm:$0xff] }
 0x6d4   : > { %16639 = vst [vmem:[#allocation71_spill] sm:$0xff] %v14107_v39  ;;  %5725 = vrot.lane.b32.xlu0 %v14107_v39, %s11077_s28  ;;  %v4477_v36 = vadd.f32 %v4445_v46, %v4377_v11  ;;  %v4545_v60 = vmul.f32 %v14069_v14, %v13400_v53  ;;  %v4346_v12 = vmul.f32 %v14055_v55, %v13384_v25  ;;  %v5225_v61 = vsel %vm1189_vm3, %v13858_v41, 0.0  ;;  %v4710_v55 = vld [vmem:[#allocation2 + $0x198] sm:$0xff] }
 0x6d5   : > { %v5013_v37 = vadd.f32 %v13966_v38, %v4975_v32  ;;  %v4278_v27 = vadd.f32 %v4246_v20, %v4146_v52  ;;  %v4446_v2 = vmul.f32 %v4708_v5, %v13397_v58  ;;  %v5682_v0 = vpop.permute.xlu0 %5681  ;;  %v4876_v9 = vadd.f32 %v4844_v51, %v4776_v33  ;;  %v4909_v20 = vld [vmem:[#allocation2 + $0x18a] sm:$0xff] }
 0x6d6   : > { %v4944_v47 = vmul.f32 %v13921_v62, %v4908_v23  ;;  %v4577_v54 = vadd.f32 %v4545_v60, %v4477_v36  ;;  %v4645_v46 = vmul.f32 %v14087_v4, %v13407_v56  ;;  %v14131_v10 = vadd.f32 %v5254_v63, %v5253_v45  ;;  %10166 = vmatmul.mubr.msk.f32.gmra.mrb[98].mxu1 %vm1189_vm3, %v5680_v18 }
 0x6d7   : > { %v14135_v7 = vmax.f32 %v5013_v37, 0.0  ;;  %v4378_v48 = vadd.f32 %v4346_v12, %v4278_v27  ;;  %v4745_v32 = vmul.f32 %v13412_v24, %v4709_v3  ;;  %v4147_v51 = vmul.f32 %v14067_v59, %v13376_v29  ;;  %10168 = vmatprep.mubr.msk.f32.mxu1 %vm1189_vm3, %v5682_v0  ;;  %v4810_v37 = vld [vmem:[#allocation2 + $0x199] sm:$0xff] }
 0x6d8   : > { %v4976_v5 = vadd.f32 %v4944_v47, %v4876_v9  ;;  %v4677_v11 = vadd.f32 %v4645_v46, %v4577_v54  ;;  %v4845_v52 = vmul.f32 %v13415_v50, %v4809_v42  ;;  %v4546_v33 = vmul.f32 %v4808_v57, %v13400_v53  ;;  %v5283_v27 = vld [vmem:[#allocation18] sm:$0xff]  ;;  %v5284_v12 = vld [vmem:[#allocation18 + $0x8] sm:$0xff] }
 0x6d9   : > { %16640 = vst [vmem:[#allocation72_spill] sm:$0xff] %v14135_v7  ;;  %v5684_v45 = vpop.permute.xlu1 %5683  ;;  %5727 = vrot.lane.b32.xlu1 %v14135_v7, %s11077_s28  ;;  %v4478_v63 = vadd.f32 %v4446_v2, %v4378_v48  ;;  %v4247_v18 = vmul.f32 %v14069_v14, %v13379_v43  ;;  %v4646_v29 = vmul.f32 %v4908_v23, %v13407_v56  ;;  %v5227_v43 = vsel %vm1189_vm3, %v13902_v34, 0.0  ;;  %v4910_v54 = vld [vmem:[#allocation2 + $0x19a] sm:$0xff] }
 0x6da   : > { %v5014_v36 = vadd.f32 %v13966_v38, %v4976_v5  ;;  %v4777_v60 = vadd.f32 %v4745_v32, %v4677_v11  ;;  %v4746_v59 = vmul.f32 %v13412_v24, %v4710_v55  ;;  %v4347_v2 = vmul.f32 %v14087_v4, %v13384_v25  ;;  %10169 = vmatmul.mubr.msk.f32.gmra.mrb[100].mxu1 %vm1189_vm3, %v5684_v45  ;;  %v4711_v32 = vld [vmem:[#allocation2 + $0x1a0] sm:$0xff] }
 0x6db   : > { %v4578_v0 = vadd.f32 %v4546_v33, %v4478_v63  ;;  %v4279_v9 = vadd.f32 %v4247_v18, %v4147_v51  ;;  %v4447_v57 = vmul.f32 %v4709_v3, %v13397_v58  ;;  %v4945_v47 = vmul.f32 %v13921_v62, %v4909_v20 }
 0x6dc   : > { %v14157_v14 = vmax.f32 %v5014_v36, 0.0  ;;  %v4877_v23 = vadd.f32 %v4845_v52, %v4777_v60  ;;  %v4846_v48 = vmul.f32 %v13415_v50, %v4810_v37  ;;  %v10286_v58 = vpack.c.bf16 %v5284_v12, %v5283_v27  ;;  %v4811_v36 = vld [vmem:[#allocation2 + $0x1a1] sm:$0xff] }
 0x6dd   : > { %5287 = vrot.lane.b32.xlu1 %v13490_v28, %s11078_s22  ;;  %v4678_v46 = vadd.f32 %v4646_v29, %v4578_v0  ;;  %v4379_v25 = vadd.f32 %v4347_v2, %v4279_v9  ;;  %v5226_v3 = vadd.f32 %v5225_v61, %v14103_v31  ;;  %v5256_v55 = vsel %vm1189_vm3, %v13882_v35, 0.0  ;;  %v4911_v0 = vld [vmem:[#allocation2 + $0x1a2] sm:$0xff] }
 0x6de   : > { %16641 = vst [vmem:[#allocation73_spill] sm:$0xff] %v14157_v14  ;;  %v5686_v4 = vpop.permute.xlu0 %5685  ;;  %v5229_v5 = vsel %vm1189_vm3, %v13947_v26, 0.0  ;;  %5729 = vrot.lane.b32.xlu0 %v14157_v14, %s11077_s28  ;;  %v4977_v11 = vadd.f32 %v4945_v47, %v4877_v23  ;;  %v4946_v45 = vmul.f32 %v13921_v62, %v4910_v54  ;;  %v4547_v63 = vmul.f32 %v4809_v42, %v13400_v53 }
 0x6df   : > { %10171 = vmatprep.mubr.msk.f32.mxu1 %vm1189_vm3, %v5686_v4  ;;  %v4778_v51 = vadd.f32 %v4746_v59, %v4678_v46  ;;  %v4479_v52 = vadd.f32 %v4447_v57, %v4379_v25  ;;  %10287 = vmatprep.subr.bf16.mxu0 %v10286_v58  ;;  %v5228_v31 = vadd.f32 %v5227_v43, %v5226_v3  ;;  %v5258_v61 = vsel %vm1189_vm3, %v13927_v1, 0.0 }
 0x6e0   : > { %v5231_v33 = vsel %vm1189_vm3, %v13995_v16, 0.0  ;;  %v5015_v18 = vadd.f32 %v13966_v38, %v4977_v11  ;;  %10289 = vmatpush3.bf16.msra.mxu0 %v10286_v58  ;;  %v4647_v59 = vmul.f32 %v4909_v20, %v13407_v56  ;;  %v4747_v53 = vmul.f32 %v13412_v24, %v4711_v32 }
 0x6e1   : > { %5289 = vrot.lane.b32.xlu1 %v13519_v40, %s11078_s22  ;;  %v4878_v60 = vadd.f32 %v4846_v48, %v4778_v51  ;;  %v4579_v29 = vadd.f32 %v4547_v63, %v4479_v52  ;;  %v5257_v42 = vadd.f32 %v5256_v55, %v14131_v10  ;;  %v5230_v37 = vadd.f32 %v5229_v5, %v5228_v31 }
 0x6e2   : > { %v5260_v27 = vsel %vm1189_vm3, %v13973_v44, 0.0  ;;  %v14185_v12 = vmax.f32 %v5015_v18, 0.0  ;;  %v5233_v9 = vsel %vm1189_vm3, %v14050_v6, 0.0  ;;  %v4847_v43 = vmul.f32 %v13415_v50, %v4811_v36 }
 0x6e3   : > { %v4978_v2 = vadd.f32 %v4946_v45, %v4878_v60  ;;  %v4679_v57 = vadd.f32 %v4647_v59, %v4579_v29  ;;  %v5688_v23 = vpop.permute.xlu1 %5687  ;;  %v5259_v56 = vadd.f32 %v5258_v61, %v5257_v42  ;;  %v5232_v20 = vadd.f32 %v5231_v33, %v5230_v37 }
 0x6e4   : > { %16642 = vst [vmem:[#allocation74_spill] sm:$0xff] %v14185_v12  ;;  %v5262_v24 = vsel %vm1189_vm3, %v14021_v15, 0.0  ;;  %5731 = vrot.lane.b32.xlu0 %v14185_v12, %s11077_s28  ;;  %10172 = vmatmul.mubr.msk.f32.gmra.mrb[102].mxu1 %vm1189_vm3, %v5688_v23  ;;  %v5235_v10 = vsel %vm1189_vm3, %v14107_v39, 0.0  ;;  %v4947_v54 = vmul.f32 %v13921_v62, %v4911_v0  ;;  %v5264_v25 = vsel %vm1189_vm3, %v14083_v30, 0.0 }
 0x6e5   : > { %v5016_v47 = vadd.f32 %v13966_v38, %v4978_v2  ;;  %5291 = vrot.lane.b32.xlu1 %v13533_v49, %s11078_s22  ;;  %v4779_v50 = vadd.f32 %v4747_v53, %v4679_v57  ;;  %v5261_v46 = vadd.f32 %v5260_v27, %v5259_v56  ;;  %v5234_v48 = vadd.f32 %v5233_v9, %v5232_v20  ;;  %v16645_v9 = vld [vmem:[#allocation54_spill] sm:$0xff]  ;;  %v16647_v56 = vld [vmem:[#allocation55_spill] sm:$0xff] }
 0x6e6   : > { %v5237_v4 = vsel %vm1189_vm3, %v14157_v14, 0.0  ;;  %v5266_v32 = vsel %vm1189_vm3, %v14135_v7, 0.0  ;;  %v5268_v63 = vsel %vm1189_vm3, %v14185_v12, 0.0 }
 0x6e7   : > { %v14205_v58 = vmax.f32 %v5016_v47, 0.0  ;;  %v4879_v3 = vadd.f32 %v4847_v43, %v4779_v50  ;;  %v5690_v55 = vpop.permute.xlu0 %5689  ;;  %v5263_v5 = vadd.f32 %v5262_v24, %v5261_v46  ;;  %v5236_v11 = vadd.f32 %v5235_v10, %v5234_v48  ;;  %v16646_v43 = vld [vmem:[#allocation58_spill] sm:$0xff]  ;;  %v16648_v10 = vld [vmem:[#allocation56_spill] sm:$0xff]  ;;  %v16649_v46 = vld [vmem:[#allocation57_spill] sm:$0xff] }
 0x6e8   : > { %10174 = vmatprep.mubr.msk.f32.mxu1 %vm1189_vm3, %v5690_v55  ;;  %v16650_v48 = vld [vmem:[#allocation59_spill] sm:$0xff] }
 0x6e9   : > { %16643 = vst [vmem:[#allocation75_spill] sm:$0xff] %v14205_v58  ;;  %5733 = vrot.lane.b32.xlu0 %v14205_v58, %s11077_s28  ;;  %v5239_v62 = vsel %vm1189_vm3, %v14205_v58, 0.0  ;;  %v4979_v51 = vadd.f32 %v4947_v54, %v4879_v3  ;;  %5295 = vrot.lane.b32.xlu1 %v13607_v13, %s11078_s22  ;;  %v5265_v45 = vadd.f32 %v5264_v25, %v5263_v5 }
 0x6ea   : > { %v5238_v52 = vadd.f32 %v5237_v4, %v5236_v11 }
 0x6eb   : > { %v5017_v31 = vadd.f32 %v13966_v38, %v4979_v51  ;;  %v5267_v61 = vadd.f32 %v5266_v32, %v5265_v45 }
 0x6ec   : > { %v5240_v33 = vadd.f32 %v5239_v62, %v5238_v52  ;;  %v5692_v18 = vpop.permute.xlu1 %5691 }
 0x6ed   : > { %v14219_v36 = vmax.f32 %v5017_v31, 0.0  ;;  %5299 = vrot.lane.b32.xlu1 %v13671_v8, %s11078_s22  ;;  %10175 = vmatmul.mubr.msk.f32.gmra.mrb[104].mxu1 %vm1189_vm3, %v5692_v18  ;;  %v5269_v60 = vadd.f32 %v5268_v63, %v5267_v61 }
 0x6ee   : > { %v5272_v59 = vsel %vm1189_vm3, %v5240_v33, 0.0 }
 0x6ef   : > { %16644 = vst [vmem:[#allocation76_spill] sm:$0xff] %v14219_v36  ;;  %v5270_v29 = vsel %vm1189_vm3, %v14219_v36, 0.0  ;;  %5735 = vrot.lane.b32.xlu0 %v14219_v36, %s11077_s28 }
 0x6f0   : > { %v5271_v38 = vadd.f32 %v5270_v29, %v5269_v60 }
 0x6f1   : > { %5303 = vrot.lane.b32.xlu1 %v13711_v21, %s11078_s22 }
 0x6f2   : > { %v5273_v53 = vsel %vm1189_vm3, %v5271_v38, 0.0  ;;  %v5694_v42 = vpop.permute.xlu0 %5693 }
 0x6f3   : > { %v5274_v37 = vadd.f32 %v5273_v53, %v5272_v59  ;;  %5293 = vrot.lane.b32.xlu0 %v13581_v22, %s11078_s22  ;;  %10177 = vmatprep.mubr.msk.f32.mxu1 %vm1189_vm3, %v5694_v42 }
 0x6f5   : > { %v5275_v27 = vrot.slane %v5274_v37, 4  ;;  %5307 = vrot.lane.b32.xlu1 %v13751_v17, %s11078_s22 }
 0x6f6   : > { %v5696_v2 = vpop.permute.xlu1 %5695 }
 0x6f7   : > { %v5276_v0 = vadd.f32 %v5275_v27, %v5274_v37  ;;  %5297 = vrot.lane.b32.xlu0 %v16645_v9, %s11078_s22  ;;  %10178 = vmatmul.mubr.msk.f32.gmra.mrb[106].mxu1 %vm1189_vm3, %v5696_v2 }
 0x6f9   : > { %v5277_v57 = vrot.slane %v5276_v0, 2  ;;  %5311 = vrot.lane.b32.xlu1 %v16646_v43, %s11078_s22 }
 0x6fb   : > { %v5278_v23 = vadd.f32 %v5277_v57, %v5276_v0  ;;  %5301 = vrot.lane.b32.xlu0 %v16647_v56, %s11078_s22  ;;  %v5698_v24 = vpop.permute.xlu0 %5697 }
 0x6fc   : > { %10180 = vmatprep.mubr.msk.f32.mxu1 %vm1189_vm3, %v5698_v24 }
 0x6fd   : > { %v5279_v20 = vrot.slane %v5278_v23, 1  ;;  %5315 = vrot.lane.b32.xlu1 %v13838_v19, %s11078_s22 }
 0x6ff   : > { %5305 = vrot.lane.b32.xlu0 %v16648_v10, %s11078_s22  ;;  %v5280_v47 = vadd.f32 %v5279_v20, %v5278_v23 }
 0x700   : > { %v5700_v54 = vpop.permute.xlu1 %5699 }
 0x701   : > { %5319 = vrot.lane.b32.xlu1 %v13882_v35, %s11078_s22  ;;  %v5281_v50 = vmul.f32 0.00390625, %v5280_v47  ;;  %10181 = vmatmul.mubr.msk.f32.gmra.mrb[108].mxu1 %vm1189_vm3, %v5700_v54 }
 0x703   : > { %5309 = vrot.lane.b32.xlu0 %v16649_v46, %s11078_s22  ;;  %5282 = vst.msk [vmem:[%s13077_s29 + $0x1] sm:$0x1] %vm2622_vm5, %v5281_v50 }
 0x705   : > { %5323 = vrot.lane.b32.xlu1 %v13927_v1, %s11078_s22  ;;  %v5702_v25 = vpop.permute.xlu0 %5701 }
 0x706   : > { %10183 = vmatprep.mubr.msk.f32.mxu1 %vm1189_vm3, %v5702_v25 }
 0x707   : > { %5313 = vrot.lane.b32.xlu0 %v16650_v48, %s11078_s22 }
 0x709   : > { %5327 = vrot.lane.b32.xlu1 %v13973_v44, %s11078_s22 }
 0x70b   : > { %5317 = vrot.lane.b32.xlu0 %v13858_v41, %s11078_s22  ;;  %v5704_v4 = vpop.permute.xlu1 %5703 }
 0x70c   : > { %10184 = vmatmul.mubr.msk.f32.gmra.mrb[110].mxu1 %vm1189_vm3, %v5704_v4 }
 0x70d   : > { %5331 = vrot.lane.b32.xlu1 %v14021_v15, %s11078_s22 }
 0x70f   : > { %5321 = vrot.lane.b32.xlu0 %v13902_v34, %s11078_s22  ;;  %v5706_v3 = vpop.permute.xlu0 %5705 }
 0x710   : > { %10186 = vmatprep.mubr.msk.f32.mxu1 %vm1189_vm3, %v5706_v3 }
 0x711   : > { %5335 = vrot.lane.b32.xlu1 %v14083_v30, %s11078_s22  ;;  %v14440_v30 = vld [vmem:[#allocation21] ss:$0 sm:$0xff] }
 0x713   : > { %5325 = vrot.lane.b32.xlu0 %v13947_v26, %s11078_s22 }
 0x715   : > { %5339 = vrot.lane.b32.xlu1 %v14135_v7, %s11078_s22 }
 0x716   : > { %v5708_v55 = vpop.permute.xlu1 %5707 }
 0x717   : > { %5329 = vrot.lane.b32.xlu0 %v13995_v16, %s11078_s22  ;;  %10187 = vmatmul.mubr.msk.f32.gmra.mrb[112].mxu1 %vm1189_vm3, %v5708_v55 }
 0x719   : > { %5343 = vrot.lane.b32.xlu1 %v14185_v12, %s11078_s22 }
 0x71b   : > { %5333 = vrot.lane.b32.xlu0 %v14050_v6, %s11078_s22  ;;  %v5710_v5 = vpop.permute.xlu0 %5709 }
 0x71c   : > { %10189 = vmatprep.mubr.msk.f32.mxu1 %vm1189_vm3, %v5710_v5 }
 0x71d   : > { %5347 = vrot.lane.b32.xlu1 %v14219_v36, %s11078_s22 }
 0x71f   : > { %5337 = vrot.lane.b32.xlu0 %v14107_v39, %s11078_s22 }
 0x720   : > { %v5712_v11 = vpop.permute.xlu1 %5711 }
 0x721   : > { %10190 = vmatmul.mubr.msk.f32.gmra.mrb[114].mxu1 %vm1189_vm3, %v5712_v11 }
 0x723   : > { %5341 = vrot.lane.b32.xlu0 %v14157_v14, %s11078_s22 }
 0x725   : > { %v5714_v32 = vpop.permute.xlu0 %5713 }
 0x726   : > { %10192 = vmatprep.mubr.msk.f32.mxu1 %vm1189_vm3, %v5714_v32 }
 0x727   : > { %5345 = vrot.lane.b32.xlu0 %v14205_v58, %s11078_s22 }
 0x72b   : > { %v5716_v62 = vpop.permute.xlu1 %5715 }
 0x72c   : > { %10193 = vmatmul.mubr.msk.f32.gmra.mrb[116].mxu1 %vm1189_vm3, %v5716_v62 }
 0x730   : > { %v5718_v51 = vpop.permute.xlu0 %5717 }
 0x731   : > { %10195 = vmatprep.mubr.msk.f32.mxu1 %vm1189_vm3, %v5718_v51 }
 0x735   : > { %v5720_v45 = vpop.permute.xlu1 %5719 }
 0x736   : > { %10196 = vmatmul.mubr.msk.f32.gmra.mrb[118].mxu1 %vm1189_vm3, %v5720_v45 }
 0x73a   : > { %v5722_v52 = vpop.permute.xlu0 %5721 }
 0x73b   : > { %10198 = vmatprep.mubr.msk.f32.mxu1 %vm1189_vm3, %v5722_v52 }
 0x741   : > { %v5724_v63 = vpop.permute.xlu1 %5723 }
 0x742   : > { %10199 = vmatmul.mubr.msk.f32.gmra.mrb[120].mxu1 %vm1189_vm3, %v5724_v63 }
 0x746   : > { %v5726_v31 = vpop.permute.xlu0 %5725 }
 0x747   : > { %10201 = vmatprep.mubr.msk.f32.mxu1 %vm1189_vm3, %v5726_v31 }
 0x74b   : > { %v5728_v61 = vpop.permute.xlu1 %5727 }
 0x74c   : > { %10202 = vmatmul.mubr.msk.f32.gmra.mrb[122].mxu1 %vm1189_vm3, %v5728_v61 }
 0x74f   : > { %v5288_v33 = vpop.permute.xlu1 %5287 }
 0x750   : > { %v5730_v18 = vpop.permute.xlu0 %5729  ;;  %10111 = vmatmul.mubr.msk.f32.vlgmr.msra.gmra.mrb[64].mxu0 %vm1189_vm3, %v5288_v33 }
 0x751   : > { %10204 = vmatprep.mubr.msk.f32.mxu1 %vm1189_vm3, %v5730_v18 }
 0x753   : > { %v5290_v60 = vpop.permute.xlu1 %5289 }
 0x754   : > { %10113 = vmatprep.mubr.msk.f32.mxu0 %vm1189_vm3, %v5290_v60 }
 0x756   : > { %v5732_v29 = vpop.permute.xlu0 %5731 }
 0x757   : > { %10205 = vmatmul.mubr.msk.f32.gmra.mrb[124].mxu1 %vm1189_vm3, %v5732_v29  ;;  %v5292_v59 = vpop.permute.xlu1 %5291 }
 0x758   : > { %10114 = vmatmul.mubr.msk.f32.gmra.mrb[66].mxu0 %vm1189_vm3, %v5292_v59 }
 0x75b   : > { %v5734_v38 = vpop.permute.xlu0 %5733  ;;  %v5296_v53 = vpop.permute.xlu1 %5295 }
 0x75c   : > { %10207 = vmatprep.mubr.msk.f32.mxu1 %vm1189_vm3, %v5734_v38 }
 0x75f   : > { %v5300_v42 = vpop.permute.xlu1 %5299 }
 0x761   : > { %v5736_v37 = vpop.permute.xlu0 %5735 }
 0x762   : > { %10208 = vmatmul.mubr.msk.f32.gmra.mrb[126].mxu1 %vm1189_vm3, %v5736_v37 }
 0x763   : > { %v5304_v27 = vpop.permute.xlu1 %5303 }
 0x765   : > { %v5294_v0 = vpop.permute.xlu0 %5293 }
 0x766   : > { %10116 = vmatprep.mubr.msk.f32.mxu0 %vm1189_vm3, %v5294_v0 }
 0x767   : > { %10117 = vmatmul.mubr.msk.f32.gmra.mrb[68].mxu0 %vm1189_vm3, %v5296_v53  ;;  %v5308_v2 = vpop.permute.xlu1 %5307 }
 0x769   : > { %v5298_v57 = vpop.permute.xlu0 %5297 }
 0x76a   : > { %10119 = vmatprep.mubr.msk.f32.mxu0 %vm1189_vm3, %v5298_v57 }
 0x76b   : > { %10120 = vmatmul.mubr.msk.f32.gmra.mrb[70].mxu0 %vm1189_vm3, %v5300_v42  ;;  %v5312_v23 = vpop.permute.xlu1 %5311 }
 0x76d   : > { %v5302_v20 = vpop.permute.xlu0 %5301 }
 0x76e   : > { %10122 = vmatprep.mubr.msk.f32.mxu0 %vm1189_vm3, %v5302_v20 }
 0x76f   : > { %10123 = vmatmul.mubr.msk.f32.gmra.mrb[72].mxu0 %vm1189_vm3, %v5304_v27  ;;  %v5316_v24 = vpop.permute.xlu1 %5315 }
 0x771   : > { %v5306_v47 = vpop.permute.xlu0 %5305 }
 0x772   : > { %10125 = vmatprep.mubr.msk.f32.mxu0 %vm1189_vm3, %v5306_v47 }
 0x773   : > { %10126 = vmatmul.mubr.msk.f32.gmra.mrb[74].mxu0 %vm1189_vm3, %v5308_v2  ;;  %v5320_v50 = vpop.permute.xlu1 %5319 }
 0x775   : > { %v5310_v54 = vpop.permute.xlu0 %5309 }
 0x776   : > { %10128 = vmatprep.mubr.msk.f32.mxu0 %vm1189_vm3, %v5310_v54 }
 0x777   : > { %10129 = vmatmul.mubr.msk.f32.gmra.mrb[76].mxu0 %vm1189_vm3, %v5312_v23  ;;  %v5324_v25 = vpop.permute.xlu1 %5323 }
 0x779   : > { %v5314_v4 = vpop.permute.xlu0 %5313 }
 0x77a   : > { %10131 = vmatprep.mubr.msk.f32.mxu0 %vm1189_vm3, %v5314_v4 }
 0x77b   : > { %10132 = vmatmul.mubr.msk.f32.gmra.mrb[78].mxu0 %vm1189_vm3, %v5316_v24  ;;  %v5328_v3 = vpop.permute.xlu1 %5327 }
 0x77d   : > { %v5318_v55 = vpop.permute.xlu0 %5317 }
 0x77e   : > { %10134 = vmatprep.mubr.msk.f32.mxu0 %vm1189_vm3, %v5318_v55 }
 0x77f   : > { %10135 = vmatmul.mubr.msk.f32.gmra.mrb[80].mxu0 %vm1189_vm3, %v5320_v50  ;;  %v5332_v5 = vpop.permute.xlu1 %5331 }
 0x781   : > { %v5322_v11 = vpop.permute.xlu0 %5321 }
 0x782   : > { %10137 = vmatprep.mubr.msk.f32.mxu0 %vm1189_vm3, %v5322_v11 }
 0x783   : > { %10138 = vmatmul.mubr.msk.f32.gmra.mrb[82].mxu0 %vm1189_vm3, %v5324_v25  ;;  %v5336_v62 = vpop.permute.xlu1 %5335 }
 0x785   : > { %v5326_v32 = vpop.permute.xlu0 %5325 }
 0x786   : > { %10140 = vmatprep.mubr.msk.f32.mxu0 %vm1189_vm3, %v5326_v32 }
 0x787   : > { %10141 = vmatmul.mubr.msk.f32.gmra.mrb[84].mxu0 %vm1189_vm3, %v5328_v3  ;;  %v5340_v45 = vpop.permute.xlu1 %5339 }
 0x789   : > { %v5330_v51 = vpop.permute.xlu0 %5329 }
 0x78a   : > { %10143 = vmatprep.mubr.msk.f32.mxu0 %vm1189_vm3, %v5330_v51 }
 0x78b   : > { %10144 = vmatmul.mubr.msk.f32.gmra.mrb[86].mxu0 %vm1189_vm3, %v5332_v5  ;;  %v5344_v31 = vpop.permute.xlu1 %5343 }
 0x78d   : > { %v5334_v52 = vpop.permute.xlu0 %5333 }
 0x78e   : > { %10146 = vmatprep.mubr.msk.f32.mxu0 %vm1189_vm3, %v5334_v52 }
 0x78f   : > { %10147 = vmatmul.mubr.msk.f32.gmra.mrb[88].mxu0 %vm1189_vm3, %v5336_v62  ;;  %v5348_v33 = vpop.permute.xlu1 %5347 }
 0x791   : > { %v5338_v63 = vpop.permute.xlu0 %5337 }
 0x792   : > { %10149 = vmatprep.mubr.msk.f32.mxu0 %vm1189_vm3, %v5338_v63 }
 0x793   : > { %10150 = vmatmul.mubr.msk.f32.gmra.mrb[90].mxu0 %vm1189_vm3, %v5340_v45  ;;  %v14363_v45 = vld [vmem:[#allocation20] sm:$0xff] }
 0x795   : > { %v5342_v61 = vpop.permute.xlu0 %5341 }
 0x796   : > { %10152 = vmatprep.mubr.msk.f32.mxu0 %vm1189_vm3, %v5342_v61  ;;  %v16651_v61 = vld [vmem:[#allocation45_spill] sm:$0xff] }
 0x797   : > { %10153 = vmatmul.mubr.msk.f32.gmra.mrb[92].mxu0 %vm1189_vm3, %v5344_v31  ;;  %v6190_v31 = vld [vmem:[#allocation2 + $0x8] sm:$0xff] }
 0x799   : > { %v5346_v18 = vpop.permute.xlu0 %5345 }
 0x79a   : > { %10155 = vmatprep.mubr.msk.f32.mxu0 %vm1189_vm3, %v5346_v18  ;;  %v16652_v18 = vld [vmem:[#allocation46_spill] sm:$0xff] }
 0x79b   : > { %10156 = vmatmul.mubr.msk.f32.gmra.mrb[94].mxu0 %vm1189_vm3, %v5348_v33  ;;  %v14368_v33 = vrot.slane %v14363_v45, %v16651_v61 }
 0x7a5   : > { %v10164_v60 = vpop.f32.mrb[96].mxu1 }
 0x7a6   : > { %6060 = vrot.lane.b32.xlu1 %v10164_v60, %s11080_s1  ;;  %v5867_v29 = vpop.f32.mrb[97].mxu1  ;;  %v14372_v60 = vrot.slane %v14363_v45, %v16652_v18 }
 0x7a7   : > { %6058 = vrot.lane.b32.xlu0 %v5867_v29, %s11080_s1  ;;  %v6290_v29 = vld [vmem:[#allocation2 + $0x9] sm:$0xff] }
 0x7a9   : > { %v10167_v59 = vpop.f32.mrb[98].mxu1 }
 0x7aa   : > { %6064 = vrot.lane.b32.xlu1 %v10167_v59, %s11080_s1  ;;  %v5877_v38 = vpop.f32.mrb[99].mxu1  ;;  %v6189_v59 = vld [vmem:[#allocation2] sm:$0xff] }
 0x7ab   : > { %6062 = vrot.lane.b32.xlu0 %v5877_v38, %s11080_s1  ;;  %v6289_v38 = vld [vmem:[#allocation2 + $0x1] sm:$0xff] }
 0x7ad   : > { %v10170_v53 = vpop.f32.mrb[100].mxu1 }
 0x7ae   : > { %6068 = vrot.lane.b32.xlu1 %v10170_v53, %s11080_s1  ;;  %v5887_v42 = vpop.f32.mrb[101].mxu1 }
 0x7af   : > { %6066 = vrot.lane.b32.xlu0 %v5887_v42, %s11080_s1 }
 0x7b7   : > { %v10173_v37 = vpop.f32.mrb[102].mxu1 }
 0x7b8   : > { %6072 = vrot.lane.b32.xlu1 %v10173_v37, %s11080_s1  ;;  %v5897_v27 = vpop.f32.mrb[103].mxu1 }
 0x7b9   : > { %6070 = vrot.lane.b32.xlu0 %v5897_v27, %s11080_s1  ;;  %v16653_v27 = vld [vmem:[#allocation47_spill] sm:$0xff] }
 0x7c0   : > { %v10176_v0 = vpop.f32.mrb[104].mxu1 }
 0x7c1   : > { %6076 = vrot.lane.b32.xlu1 %v10176_v0, %s11080_s1  ;;  %v5907_v2 = vpop.f32.mrb[105].mxu1  ;;  %v14377_v0 = vrot.slane %v14363_v45, %v16653_v27 }
 0x7c2   : > { %6074 = vrot.lane.b32.xlu0 %v5907_v2, %s11080_s1 }
 0x7ca   : > { %v10179_v57 = vpop.f32.mrb[106].mxu1 }
 0x7cb   : > { %6080 = vrot.lane.b32.xlu1 %v10179_v57, %s11080_s1  ;;  %v5917_v23 = vpop.f32.mrb[107].mxu1  ;;  %v6226_v57 = vmul.f32 %v14368_v33, %v6190_v31 }
 0x7cc   : > { %6078 = vrot.lane.b32.xlu0 %v5917_v23, %s11080_s1  ;;  %v6326_v23 = vmul.f32 %v14372_v60, %v6290_v29 }
 0x7d4   : > { %v10182_v20 = vpop.f32.mrb[108].mxu1 }
 0x7d5   : > { %6084 = vrot.lane.b32.xlu1 %v10182_v20, %s11080_s1  ;;  %v5927_v24 = vpop.f32.mrb[109].mxu1  ;;  %v6225_v20 = vmul.f32 %v14368_v33, %v6189_v59  ;;  %v16655_v59 = vld [vmem:[#allocation49_spill] sm:$0xff] }
 0x7d6   : > { %6082 = vrot.lane.b32.xlu0 %v5927_v24, %s11080_s1  ;;  %v6325_v24 = vmul.f32 %v14372_v60, %v6289_v38  ;;  %v14398_v38 = vrot.slane %v14363_v45, %v16655_v59 }
 0x7df   : > { %v10185_v47 = vpop.f32.mrb[110].mxu1 }
 0x7e0   : > { %6088 = vrot.lane.b32.xlu1 %v10185_v47, %s11080_s1  ;;  %v5937_v50 = vpop.f32.mrb[111].mxu1  ;;  %v6390_v47 = vld [vmem:[#allocation2 + $0xa] sm:$0xff] }
 0x7e1   : > { %6086 = vrot.lane.b32.xlu0 %v5937_v50, %s11080_s1  ;;  %v6389_v50 = vld [vmem:[#allocation2 + $0x2] sm:$0xff] }
 0x7ea   : > { %v10188_v54 = vpop.f32.mrb[112].mxu1 }
 0x7eb   : > { %6092 = vrot.lane.b32.xlu1 %v10188_v54, %s11080_s1  ;;  %v5947_v25 = vpop.f32.mrb[113].mxu1  ;;  %v6358_v54 = vadd.f32 %v6326_v23, %v6226_v57  ;;  %v16656_v23 = vld [vmem:[#allocation50_spill] sm:$0xff] }
 0x7ec   : > { %6090 = vrot.lane.b32.xlu0 %v5947_v25, %s11080_s1  ;;  %v6426_v25 = vmul.f32 %v14377_v0, %v6390_v47 }
 0x7ee   : > { %v6458_v31 = vadd.f32 %v6426_v25, %v6358_v54 }
 0x7f4   : > { %v10191_v4 = vpop.f32.mrb[114].mxu1 }
 0x7f5   : > { %6096 = vrot.lane.b32.xlu1 %v10191_v4, %s11080_s1  ;;  %v5957_v3 = vpop.f32.mrb[115].mxu1  ;;  %v6357_v4 = vadd.f32 %v6325_v24, %v6225_v20  ;;  %v14406_v20 = vrot.slane %v14363_v45, %v16656_v23 }
 0x7f6   : > { %6094 = vrot.lane.b32.xlu0 %v5957_v3, %s11080_s1  ;;  %v6425_v3 = vmul.f32 %v14377_v0, %v6389_v50  ;;  %v16657_v50 = vld [vmem:[#allocation52_spill] sm:$0xff] }
 0x7f7   : > { %v14411_v54 = vrot.slane %v14363_v45, %v16657_v50 }
 0x7ff   : > { %v10194_v55 = vpop.f32.mrb[116].mxu1 }
 0x800   : > { %6100 = vrot.lane.b32.xlu1 %v10194_v55, %s11080_s1  ;;  %v5967_v5 = vpop.f32.mrb[117].mxu1 }
 0x801   : > { %6098 = vrot.lane.b32.xlu0 %v5967_v5, %s11080_s1 }
 0x809   : > { %v10197_v11 = vpop.f32.mrb[118].mxu1 }
 0x80a   : > { %6104 = vrot.lane.b32.xlu1 %v10197_v11, %s11080_s1  ;;  %v5977_v32 = vpop.f32.mrb[119].mxu1 }
 0x80b   : > { %6102 = vrot.lane.b32.xlu0 %v5977_v32, %s11080_s1  ;;  %v16654_v32 = vld [vmem:[#allocation48_spill] sm:$0xff] }
 0x815   : > { %v10200_v62 = vpop.f32.mrb[120].mxu1 }
 0x816   : > { %6108 = vrot.lane.b32.xlu1 %v10200_v62, %s11080_s1  ;;  %v5987_v51 = vpop.f32.mrb[121].mxu1  ;;  %v14391_v62 = vrot.slane %v14363_v45, %v16654_v32 }
 0x817   : > { %6106 = vrot.lane.b32.xlu0 %v5987_v51, %s11080_s1 }
 0x818   : > { %v6061_v53 = vpop.permute.xlu1 %6060 }
 0x819   : > { %v6059_v37 = vpop.permute.xlu0 %6058 }
 0x81c   : > { %v6065_v55 = vpop.permute.xlu1 %6064 }
 0x81d   : > { %v6063_v11 = vpop.permute.xlu0 %6062 }
 0x81f   : > { %v10203_v52 = vpop.f32.mrb[122].mxu1 }
 0x820   : > { %6112 = vrot.lane.b32.xlu1 %v10203_v52, %s11080_s1  ;;  %v5997_v63 = vpop.f32.mrb[123].mxu1 }
 0x821   : > { %6110 = vrot.lane.b32.xlu0 %v5997_v63, %s11080_s1  ;;  %v6067_v59 = vpop.permute.xlu0 %6066 }
 0x823   : > { %v10112_v42 = vpop.f32.mrb[64].mxu0 }
 0x824   : > { %5639 = vst.msk [vmem:[#allocation2 + $0x21] sm:$0xff] %vm1189_vm3, %v10112_v42  ;;  %v5479_v2 = vpop.f32.mrb[65].mxu0 }
 0x825   : > { %5638 = vst.msk [vmem:[#allocation2 + $0x19] sm:$0xff] %vm1189_vm3, %v5479_v2 }
 0x826   : > { %6155 = vst.msk [vmem:[#allocation2 + $0x21] sm:$0xff] %vm3527_vm6, %v6061_v53  ;;  %6154 = vst.msk [vmem:[#allocation2 + $0x19] sm:$0xff] %vm3527_vm6, %v6059_v37  ;;  %v6457_v53 = vadd.f32 %v6425_v3, %v6357_v4 }
 0x82a   : > { %v10206_v5 = vpop.f32.mrb[124].mxu1 }
 0x82b   : > { %6116 = vrot.lane.b32.xlu1 %v10206_v5, %s11080_s1  ;;  %v6007_v51 = vpop.f32.mrb[125].mxu1  ;;  %v10115_v52 = vpop.f32.mrb[66].mxu0 }
 0x82c   : > { %6114 = vrot.lane.b32.xlu0 %v6007_v51, %s11080_s1  ;;  %5641 = vst.msk [vmem:[#allocation2 + $0x39] sm:$0xff] %vm1189_vm3, %v10115_v52  ;;  %v5489_v63 = vpop.f32.mrb[67].mxu0 }
 0x82d   : > { %v6590_v29 = vld [vmem:[#allocation2 + $0x21] sm:$0xff]  ;;  %5640 = vst.msk [vmem:[#allocation2 + $0x31] sm:$0xff] %vm1189_vm3, %v5489_v63  ;;  %v6489_v37 = vld [vmem:[#allocation2 + $0x18] sm:$0xff] }
 0x82e   : > { %6157 = vst.msk [vmem:[#allocation2 + $0x39] sm:$0xff] %vm3527_vm6, %v6065_v55  ;;  %v6490_v42 = vld [vmem:[#allocation2 + $0x20] sm:$0xff]  ;;  %6156 = vst.msk [vmem:[#allocation2 + $0x31] sm:$0xff] %vm3527_vm6, %v6063_v11  ;;  %v6525_v24 = vmul.f32 %v14391_v62, %v6489_v37  ;;  %v6626_v3 = vmul.f32 %v14398_v38, %v6590_v29  ;;  %v6069_v11 = vpop.permute.xlu1 %6068  ;;  %v6328_v52 = vmul.f32 %v6590_v29, %v14372_v60 }
 0x82f   : > { %v6589_v2 = vld [vmem:[#allocation2 + $0x19] sm:$0xff]  ;;  %v6526_v57 = vmul.f32 %v14391_v62, %v6490_v42  ;;  %v6690_v47 = vld [vmem:[#allocation2 + $0x22] sm:$0xff]  ;;  %v6228_v51 = vmul.f32 %v6490_v42, %v14368_v33  ;;  %v6227_v63 = vmul.f32 %v6489_v37, %v14368_v33 }
 0x830   : > { %v6689_v25 = vld [vmem:[#allocation2 + $0x1a] sm:$0xff]  ;;  %v6557_v55 = vadd.f32 %v6525_v24, %v6457_v53  ;;  %v6625_v5 = vmul.f32 %v14398_v38, %v6589_v2  ;;  %v6327_v23 = vmul.f32 %v6589_v2, %v14372_v60  ;;  %v6726_v50 = vmul.f32 %v14406_v20, %v6690_v47  ;;  %v16658_v24 = vld [vmem:[#allocation51_spill] sm:$0xff] }
 0x831   : > { %v6558_v4 = vadd.f32 %v6526_v57, %v6458_v31  ;;  %v6725_v31 = vmul.f32 %v14406_v20, %v6689_v25  ;;  %v14423_v18 = vrot.slane %v14363_v45, %v16658_v24  ;;  %v6360_v14 = vadd.f32 %v6328_v52, %v6228_v51  ;;  %v6071_v51 = vpop.permute.xlu0 %6070 }
 0x832   : > { %v6657_v27 = vadd.f32 %v6625_v5, %v6557_v55  ;;  %v6359_v2 = vadd.f32 %v6327_v23, %v6227_v63  ;;  %v6428_v5 = vmul.f32 %v6690_v47, %v14377_v0  ;;  %v6427_v23 = vmul.f32 %v6689_v25, %v14377_v0 }
 0x833   : > { %v6658_v32 = vadd.f32 %v6626_v3, %v6558_v4 }
 0x834   : > { %v6757_v42 = vadd.f32 %v6725_v31, %v6657_v27  ;;  %v6460_v36 = vadd.f32 %v6428_v5, %v6360_v14  ;;  %v6459_v39 = vadd.f32 %v6427_v23, %v6359_v2 }
 0x835   : > { %v6758_v57 = vadd.f32 %v6726_v50, %v6658_v32  ;;  %v6890_v53 = vld [vmem:[#allocation2 + $0x39] sm:$0xff]  ;;  %v10209_v61 = vpop.f32.mrb[126].mxu1  ;;  %v6789_v58 = vld [vmem:[#allocation2 + $0x30] sm:$0xff]  ;;  %v6073_v32 = vpop.permute.xlu1 %6072 }
 0x836   : > { %v6790_v29 = vld [vmem:[#allocation2 + $0x38] sm:$0xff]  ;;  %6120 = vrot.lane.b32.xlu1 %v10209_v61, %s11080_s1  ;;  %v6017_v4 = vpop.f32.mrb[127].mxu1  ;;  %v6825_v55 = vmul.f32 %v14411_v54, %v6789_v58  ;;  %v6527_v61 = vmul.f32 %v6789_v58, %v14391_v62  ;;  %v6926_v63 = vmul.f32 %v14423_v18, %v6890_v53 }
 0x837   : > { %v6889_v37 = vld [vmem:[#allocation2 + $0x31] sm:$0xff]  ;;  %v6826_v3 = vmul.f32 %v14411_v54, %v6790_v29  ;;  %6118 = vrot.lane.b32.xlu0 %v6017_v4, %s11080_s1  ;;  %v14429_v50 = vld [vmem:[#allocation20 + $0x8] ss:$0 sm:$0xff]  ;;  %v6528_v31 = vmul.f32 %v6790_v29, %v14391_v62 }
 0x838   : > { %v6990_v45 = vld [vmem:[#allocation2 + $0x3a] sm:$0xff]  ;;  %v6989_v27 = vld [vmem:[#allocation2 + $0x32] sm:$0xff]  ;;  %v6857_v24 = vadd.f32 %v6825_v55, %v6757_v42  ;;  %v6925_v4 = vmul.f32 %v14423_v18, %v6889_v37  ;;  %v6230_v42 = vmul.f32 %v6790_v29, %v14368_v33  ;;  %v6330_v55 = vmul.f32 %v6890_v53, %v14372_v60 }
 0x839   : > { %v6858_v52 = vadd.f32 %v6826_v3, %v6758_v57  ;;  %v7026_v7 = vmul.f32 %v14429_v50, %v6990_v45  ;;  %v7025_v16 = vmul.f32 %v14429_v50, %v6989_v27  ;;  %v6560_v57 = vadd.f32 %v6528_v31, %v6460_v36  ;;  %v6075_v31 = vpop.permute.xlu0 %6074 }
 0x83a   : > { %v10118_v12 = vpop.f32.mrb[68].mxu0  ;;  %v6957_v47 = vadd.f32 %v6925_v4, %v6857_v24  ;;  %v6559_v3 = vadd.f32 %v6527_v61, %v6459_v39  ;;  %v6229_v24 = vmul.f32 %v6789_v58, %v14368_v33  ;;  %v6329_v5 = vmul.f32 %v6889_v37, %v14372_v60 }
 0x83b   : > { %v6958_v6 = vadd.f32 %v6926_v63, %v6858_v52  ;;  %5643 = vst.msk [vmem:[#allocation2 + $0x51] sm:$0xff] %vm1189_vm3, %v10118_v12  ;;  %v5499_v25 = vpop.f32.mrb[69].mxu0  ;;  %v6077_v12 = vpop.permute.xlu1 %6076  ;;  %v6628_v36 = vmul.f32 %v6890_v53, %v14398_v38  ;;  %v6627_v39 = vmul.f32 %v6889_v37, %v14398_v38  ;;  %v6362_v58 = vadd.f32 %v6330_v55, %v6230_v42 }
 0x83c   : > { %5642 = vst.msk [vmem:[#allocation2 + $0x49] sm:$0xff] %vm1189_vm3, %v5499_v25  ;;  %v7057_v2 = vadd.f32 %v7025_v16, %v6957_v47  ;;  %v6361_v53 = vadd.f32 %v6329_v5, %v6229_v24  ;;  %v6728_v37 = vmul.f32 %v6990_v45, %v14406_v20  ;;  %v6727_v52 = vmul.f32 %v6989_v27, %v14406_v20 }
 0x83d   : > { %6159 = vst.msk [vmem:[#allocation2 + $0x51] sm:$0xff] %vm3527_vm6, %v6069_v11  ;;  %v7058_v14 = vadd.f32 %v7026_v7, %v6958_v6  ;;  %6158 = vst.msk [vmem:[#allocation2 + $0x49] sm:$0xff] %vm3527_vm6, %v6067_v59  ;;  %v6660_v6 = vadd.f32 %v6628_v36, %v6560_v57  ;;  %v6659_v7 = vadd.f32 %v6627_v39, %v6559_v3 }
 0x83e   : > { %v10121_v29 = vpop.f32.mrb[70].mxu0  ;;  %v7095_v61 = vadd.f32 %v14440_v30, %v7057_v2  ;;  %v6430_v63 = vmul.f32 %v6990_v45, %v14377_v0  ;;  %v6079_v45 = vpop.permute.xlu0 %6078 }
 0x83f   : > { %v7096_v23 = vadd.f32 %v14440_v30, %v7058_v14  ;;  %5645 = vst.msk [vmem:[#allocation2 + $0x69] sm:$0xff] %vm1189_vm3, %v10121_v29  ;;  %v5509_v16 = vpop.f32.mrb[71].mxu0  ;;  %v6081_v25 = vpop.permute.xlu1 %6080  ;;  %v6759_v42 = vadd.f32 %v6727_v52, %v6659_v7 }
 0x840   : > { %5644 = vst.msk [vmem:[#allocation2 + $0x61] sm:$0xff] %vm1189_vm3, %v5509_v16  ;;  %v14458_v11 = vmax.f32 %v7095_v61, 0.0  ;;  %v6462_v55 = vadd.f32 %v6430_v63, %v6362_v58 }
 0x841   : > { %6161 = vst.msk [vmem:[#allocation2 + $0x69] sm:$0xff] %vm3527_vm6, %v6073_v32  ;;  %v14456_v59 = vmax.f32 %v7096_v23, 0.0  ;;  %6160 = vst.msk [vmem:[#allocation2 + $0x61] sm:$0xff] %vm3527_vm6, %v6071_v51  ;;  %v6429_v32 = vmul.f32 %v6989_v27, %v14377_v0  ;;  %v6760_v51 = vadd.f32 %v6728_v37, %v6660_v6 }
 0x842   : > { %16660 = vst [vmem:[#allocation58_spill] sm:$0xff] %v14458_v11  ;;  %v10124_v4 = vpop.f32.mrb[72].mxu0  ;;  %7394 = vrot.lane.b32.xlu0 %v14458_v11, %s11078_s22 }
 0x843   : > { %16659 = vst [vmem:[#allocation54_spill] sm:$0xff] %v14456_v59  ;;  %7396 = vrot.lane.b32.xlu1 %v14456_v59, %s11078_s22  ;;  %5647 = vst.msk [vmem:[#allocation2 + $0x81] sm:$0xff] %vm1189_vm3, %v10124_v4  ;;  %v5519_v47 = vpop.f32.mrb[73].mxu0  ;;  %v6461_v27 = vadd.f32 %v6429_v32, %v6361_v53 }
 0x844   : > { %v6892_v57 = vld [vmem:[#allocation2 + $0x51] sm:$0xff]  ;;  %5646 = vst.msk [vmem:[#allocation2 + $0x79] sm:$0xff] %vm1189_vm3, %v5519_v47  ;;  %v14472_v2 = vld [vmem:[#allocation2 + $0x48] sm:$0xff] }
 0x845   : > { %v6992_v3 = vld [vmem:[#allocation2 + $0x52] sm:$0xff]  ;;  %6163 = vst.msk [vmem:[#allocation2 + $0x81] sm:$0xff] %vm3527_vm6, %v6077_v12  ;;  %v14474_v24 = vld [vmem:[#allocation2 + $0x49] sm:$0xff]  ;;  %6162 = vst.msk [vmem:[#allocation2 + $0x79] sm:$0xff] %vm3527_vm6, %v6075_v31  ;;  %v6928_v36 = vmul.f32 %v14423_v18, %v6892_v57  ;;  %v6827_v39 = vmul.f32 %v14411_v54, %v14472_v2  ;;  %v6630_v6 = vmul.f32 %v6892_v57, %v14398_v38 }
 0x846   : > { %v6792_v14 = vld [vmem:[#allocation2 + $0x50] sm:$0xff]  ;;  %v10127_v23 = vpop.f32.mrb[74].mxu0  ;;  %v7028_v12 = vmul.f32 %v14429_v50, %v6992_v3  ;;  %v6927_v61 = vmul.f32 %v14423_v18, %v14474_v24  ;;  %v6529_v31 = vmul.f32 %v14472_v2, %v14391_v62  ;;  %v6730_v4 = vmul.f32 %v6992_v3, %v14406_v20 }
 0x847   : > { %v6828_v5 = vmul.f32 %v14411_v54, %v6792_v14  ;;  %v6530_v29 = vmul.f32 %v6792_v14, %v14391_v62  ;;  %v14485_v16 = vld [vmem:[#allocation2 + $0x4a] sm:$0xff]  ;;  %5649 = vst.msk [vmem:[#allocation2 + $0x99] sm:$0xff] %vm1189_vm3, %v10127_v23  ;;  %v5529_v7 = vpop.f32.mrb[75].mxu0  ;;  %v6859_v53 = vadd.f32 %v6827_v39, %v6759_v42  ;;  %v6232_v63 = vmul.f32 %v6792_v14, %v14368_v33  ;;  %v6085_v42 = vpop.permute.xlu1 %6084 }
 0x848   : > { %v14491_v52 = vld [vmem:[#allocation2 + $0x69] sm:$0xff]  ;;  %5648 = vst.msk [vmem:[#allocation2 + $0x91] sm:$0xff] %vm1189_vm3, %v5529_v7  ;;  %v6561_v47 = vadd.f32 %v6529_v31, %v6461_v27  ;;  %v6629_v23 = vmul.f32 %v14474_v24, %v14398_v38  ;;  %v7027_v14 = vmul.f32 %v14429_v50, %v14485_v16  ;;  %v6083_v7 = vpop.permute.xlu0 %6082 }
 0x849   : > { %v6860_v58 = vadd.f32 %v6828_v5, %v6760_v51  ;;  %v6562_v37 = vadd.f32 %v6530_v29, %v6462_v55  ;;  %6165 = vst.msk [vmem:[#allocation2 + $0x99] sm:$0xff] %vm3527_vm6, %v6081_v25  ;;  %v14497_v32 = vld [vmem:[#allocation2 + $0x68] sm:$0xff]  ;;  %v6332_v51 = vmul.f32 %v6892_v57, %v14372_v60  ;;  %6164 = vst.msk [vmem:[#allocation2 + $0x91] sm:$0xff] %vm3527_vm6, %v6079_v45  ;;  %v14505_v25 = vld [vmem:[#allocation2 + $0x60] sm:$0xff] }
 0x84a   : > { %v6959_v5 = vadd.f32 %v6927_v61, %v6859_v53  ;;  %v10130_v29 = vpop.f32.mrb[76].mxu0  ;;  %v6830_v27 = vmul.f32 %v14411_v54, %v14497_v32  ;;  %v6930_v31 = vmul.f32 %v14423_v18, %v14491_v52  ;;  %v14511_v57 = vld [vmem:[#allocation2 + $0x6a] sm:$0xff]  ;;  %v6661_v45 = vadd.f32 %v6629_v23, %v6561_v47  ;;  %v14518_v26 = vld [vmem:[#allocation2 + $0x62] sm:$0xff] }
 0x84b   : > { %v6960_v55 = vadd.f32 %v6928_v36, %v6860_v58  ;;  %v6662_v39 = vadd.f32 %v6630_v6, %v6562_v37  ;;  %v6729_v36 = vmul.f32 %v14485_v16, %v14406_v20  ;;  %5651 = vst.msk [vmem:[#allocation2 + $0xb1] sm:$0xff] %vm1189_vm3, %v10130_v29  ;;  %v5539_v61 = vpop.f32.mrb[77].mxu0  ;;  %v14516_v37 = vld [vmem:[#allocation2 + $0x61] sm:$0xff]  ;;  %v6364_v15 = vadd.f32 %v6332_v51, %v6232_v63 }
 0x84c   : > { %v7059_v58 = vadd.f32 %v7027_v14, %v6959_v5  ;;  %5650 = vst.msk [vmem:[#allocation2 + $0xa9] sm:$0xff] %vm1189_vm3, %v5539_v61  ;;  %v6829_v47 = vmul.f32 %v14411_v54, %v14505_v25  ;;  %v6432_v23 = vmul.f32 %v6992_v3, %v14377_v0  ;;  %v7030_v51 = vmul.f32 %v14429_v50, %v14511_v57 }
 0x84d   : > { %v7060_v6 = vadd.f32 %v7028_v12, %v6960_v55  ;;  %v6762_v53 = vadd.f32 %v6730_v4, %v6662_v39  ;;  %6167 = vst.msk [vmem:[#allocation2 + $0xb1] sm:$0xff] %vm3527_vm6, %v6085_v42  ;;  %v6761_v34 = vadd.f32 %v6729_v36, %v6661_v45  ;;  %v6532_v12 = vmul.f32 %v14497_v32, %v14391_v62 }
 0x84e   : > { %6166 = vst.msk [vmem:[#allocation2 + $0xa9] sm:$0xff] %vm3527_vm6, %v6083_v7  ;;  %v7097_v55 = vadd.f32 %v14440_v30, %v7059_v58  ;;  %v10133_v42 = vpop.f32.mrb[78].mxu0  ;;  %v6929_v14 = vmul.f32 %v14423_v18, %v14516_v37  ;;  %v7029_v3 = vmul.f32 %v14429_v50, %v14518_v26  ;;  %v6464_v39 = vadd.f32 %v6432_v23, %v6364_v15  ;;  %v14552_v58 = vld [vmem:[#allocation2 + $0x80] sm:$0xff] }
 0x84f   : > { %v7098_v4 = vadd.f32 %v14440_v30, %v7060_v6  ;;  %v6862_v63 = vadd.f32 %v6830_v27, %v6762_v53  ;;  %v6861_v5 = vadd.f32 %v6829_v47, %v6761_v34  ;;  %5653 = vst.msk [vmem:[#allocation2 + $0xc9] sm:$0xff] %vm1189_vm3, %v10133_v42  ;;  %v5549_v29 = vpop.f32.mrb[79].mxu0  ;;  %v6632_v36 = vmul.f32 %v14491_v52, %v14398_v38 }
 0x850   : > { %v14539_v45 = vmax.f32 %v7097_v55, 0.0  ;;  %5652 = vst.msk [vmem:[#allocation2 + $0xc1] sm:$0xff] %vm1189_vm3, %v5549_v29  ;;  %v6564_v61 = vadd.f32 %v6532_v12, %v6464_v39  ;;  %v6231_v6 = vmul.f32 %v14472_v2, %v14368_v33  ;;  %v6331_v15 = vmul.f32 %v14474_v24, %v14372_v60  ;;  %v14569_v29 = vld [vmem:[#allocation2 + $0x82] sm:$0xff] }
 0x851   : > { %v14537_v7 = vmax.f32 %v7098_v4, 0.0  ;;  %v6962_v27 = vadd.f32 %v6930_v31, %v6862_v63  ;;  %v6961_v34 = vadd.f32 %v6929_v14, %v6861_v5  ;;  %v6732_v12 = vmul.f32 %v14511_v57, %v14406_v20  ;;  %v14556_v4 = vld [vmem:[#allocation2 + $0x81] sm:$0xff] }
 0x852   : > { %16662 = vst [vmem:[#allocation56_spill] sm:$0xff] %v14539_v45  ;;  %7398 = vrot.lane.b32.xlu0 %v14539_v45, %s11078_s22  ;;  %v10136_v53 = vpop.f32.mrb[80].mxu0  ;;  %v6664_v23 = vadd.f32 %v6632_v36, %v6564_v61  ;;  %v6089_v24 = vpop.permute.xlu1 %6088  ;;  %v6363_v63 = vadd.f32 %v6331_v15, %v6231_v6  ;;  %v6531_v42 = vmul.f32 %v14505_v25, %v14391_v62 }
 0x853   : > { %16661 = vst [vmem:[#allocation55_spill] sm:$0xff] %v14537_v7  ;;  %7400 = vrot.lane.b32.xlu1 %v14537_v7, %s11078_s22  ;;  %v7062_v31 = vadd.f32 %v7030_v51, %v6962_v27  ;;  %v7061_v47 = vadd.f32 %v7029_v3, %v6961_v34  ;;  %5655 = vst.msk [vmem:[#allocation2 + $0xe1] sm:$0xff] %vm1189_vm3, %v10136_v53  ;;  %v5559_v2 = vpop.f32.mrb[81].mxu0  ;;  %v6431_v51 = vmul.f32 %v14485_v16, %v14377_v0  ;;  %v6087_v5 = vpop.permute.xlu0 %6086 }
 0x854   : > { %5654 = vst.msk [vmem:[#allocation2 + $0xd9] sm:$0xff] %vm1189_vm3, %v5559_v2  ;;  %v6764_v3 = vadd.f32 %v6732_v12, %v6664_v23  ;;  %v6832_v39 = vmul.f32 %v14411_v54, %v14552_v58  ;;  %v6932_v16 = vmul.f32 %v14423_v18, %v14556_v4  ;;  %v6234_v15 = vmul.f32 %v14497_v32, %v14368_v33 }
 0x855   : > { %v7100_v55 = vadd.f32 %v14440_v30, %v7062_v31  ;;  %6169 = vst.msk [vmem:[#allocation2 + $0xc9] sm:$0xff] %vm3527_vm6, %v6089_v24  ;;  %v7099_v14 = vadd.f32 %v14440_v30, %v7061_v47  ;;  %6168 = vst.msk [vmem:[#allocation2 + $0xc1] sm:$0xff] %vm3527_vm6, %v6087_v5  ;;  %v6463_v36 = vadd.f32 %v6431_v51, %v6363_v63 }
 0x856   : > { %v10139_v34 = vpop.f32.mrb[82].mxu0  ;;  %v6864_v6 = vadd.f32 %v6832_v39, %v6764_v3  ;;  %v6334_v31 = vmul.f32 %v14491_v52, %v14372_v60  ;;  %v7032_v47 = vmul.f32 %v14429_v50, %v14569_v29  ;;  %v6631_v12 = vmul.f32 %v14516_v37, %v14398_v38  ;;  %v14592_v52 = vld [vmem:[#allocation2 + $0x78] sm:$0xff] }
 0x857   : > { %v14572_v27 = vmax.f32 %v7100_v55, 0.0  ;;  %v14576_v61 = vmax.f32 %v7099_v14, 0.0  ;;  %5657 = vst.msk [vmem:[#allocation2 + $0xf9] sm:$0xff] %vm1189_vm3, %v10139_v34  ;;  %v5569_v53 = vpop.f32.mrb[83].mxu0  ;;  %v6563_v23 = vadd.f32 %v6531_v42, %v6463_v36  ;;  %v6434_v24 = vmul.f32 %v14511_v57, %v14377_v0  ;;  %v14600_v42 = vld [vmem:[#allocation2 + $0x79] sm:$0xff] }
 0x858   : > { %5656 = vst.msk [vmem:[#allocation2 + $0xf1] sm:$0xff] %vm1189_vm3, %v5569_v53  ;;  %v6964_v32 = vadd.f32 %v6932_v16, %v6864_v6  ;;  %v6366_v2 = vadd.f32 %v6334_v31, %v6234_v15  ;;  %v6534_v55 = vmul.f32 %v14552_v58, %v14391_v62  ;;  %v6731_v51 = vmul.f32 %v14518_v26, %v14406_v20  ;;  %v14613_v31 = vld [vmem:[#allocation2 + $0x7a] sm:$0xff] }
 0x859   : > { %16663 = vst [vmem:[#allocation77_spill] sm:$0xff] %v14572_v27  ;;  %16664 = vst [vmem:[#allocation78_spill] sm:$0xff] %v14576_v61  ;;  %7404 = vrot.lane.b32.xlu1 %v14572_v27, %s11078_s22  ;;  %7402 = vrot.lane.b32.xlu0 %v14576_v61, %s11078_s22  ;;  %v6663_v63 = vadd.f32 %v6631_v12, %v6563_v23  ;;  %v6831_v36 = vmul.f32 %v14411_v54, %v14592_v52  ;;  %v14617_v12 = vld [vmem:[#allocation2 + $0x98] sm:$0xff] }
 0x85a   : > { %v10142_v5 = vpop.f32.mrb[84].mxu0  ;;  %v7064_v14 = vadd.f32 %v7032_v47, %v6964_v32  ;;  %v6466_v3 = vadd.f32 %v6434_v24, %v6366_v2  ;;  %v6233_v57 = vmul.f32 %v14505_v25, %v14368_v33  ;;  %v6333_v34 = vmul.f32 %v14516_v37, %v14372_v60 }
 0x85b   : > { %5659 = vst.msk [vmem:[#allocation2 + $0x111] sm:$0xff] %vm1189_vm3, %v10142_v5  ;;  %v5579_v39 = vpop.f32.mrb[85].mxu0  ;;  %v6763_v16 = vadd.f32 %v6731_v51, %v6663_v63  ;;  %v6931_v15 = vmul.f32 %v14423_v18, %v14600_v42  ;;  %v6634_v47 = vmul.f32 %v14556_v4, %v14398_v38  ;;  %v6433_v37 = vmul.f32 %v14518_v26, %v14377_v0  ;;  %v14627_v5 = vld [vmem:[#allocation2 + $0x99] sm:$0xff] }
 0x85c   : > { %5658 = vst.msk [vmem:[#allocation2 + $0x109] sm:$0xff] %vm1189_vm3, %v5579_v39  ;;  %v7102_v6 = vadd.f32 %v14440_v30, %v7064_v14  ;;  %v6566_v53 = vadd.f32 %v6534_v55, %v6466_v3  ;;  %v6365_v25 = vadd.f32 %v6333_v34, %v6233_v57  ;;  %v6533_v32 = vmul.f32 %v14592_v52, %v14391_v62 }
 0x85d   : > { %v6863_v23 = vadd.f32 %v6831_v36, %v6763_v16  ;;  %v6093_v24 = vpop.permute.xlu1 %6092  ;;  %v6734_v55 = vmul.f32 %v14569_v29, %v14406_v20  ;;  %v7031_v39 = vmul.f32 %v14429_v50, %v14613_v31  ;;  %v6236_v36 = vmul.f32 %v14552_v58, %v14368_v33 }
 0x85e   : > { %v10145_v2 = vpop.f32.mrb[86].mxu0  ;;  %v14623_v63 = vmax.f32 %v7102_v6, 0.0  ;;  %v6666_v51 = vadd.f32 %v6634_v47, %v6566_v53  ;;  %6171 = vst.msk [vmem:[#allocation2 + $0xe1] sm:$0xff] %vm3527_vm6, %v6093_v24  ;;  %v6091_v3 = vpop.permute.xlu0 %6090  ;;  %v6465_v16 = vadd.f32 %v6433_v37, %v6365_v25  ;;  %v6834_v34 = vmul.f32 %v14411_v54, %v14617_v12  ;;  %v14645_v47 = vld [vmem:[#allocation2 + $0x9a] sm:$0xff] }
 0x85f   : > { %5661 = vst.msk [vmem:[#allocation2 + $0x129] sm:$0xff] %vm1189_vm3, %v10145_v2  ;;  %v5589_v14 = vpop.f32.mrb[87].mxu0  ;;  %v6963_v26 = vadd.f32 %v6931_v15, %v6863_v23  ;;  %v6336_v6 = vmul.f32 %v14556_v4, %v14372_v60  ;;  %v6934_v53 = vmul.f32 %v14423_v18, %v14627_v5  ;;  %v6633_v23 = vmul.f32 %v14600_v42, %v14398_v38  ;;  %v14649_v2 = vld [vmem:[#allocation2 + $0x90] sm:$0xff] }
 0x860   : > { %16665 = vst [vmem:[#allocation79_spill] sm:$0xff] %v14623_v63  ;;  %5660 = vst.msk [vmem:[#allocation2 + $0x121] sm:$0xff] %vm1189_vm3, %v5589_v14  ;;  %7408 = vrot.lane.b32.xlu1 %v14623_v63, %s11078_s22  ;;  %v6766_v57 = vadd.f32 %v6734_v55, %v6666_v51  ;;  %v6565_v58 = vadd.f32 %v6533_v32, %v6465_v16  ;;  %v6436_v51 = vmul.f32 %v14569_v29, %v14377_v0 }
 0x861   : > { %6170 = vst.msk [vmem:[#allocation2 + $0xd9] sm:$0xff] %vm3527_vm6, %v6091_v3  ;;  %v7063_v15 = vadd.f32 %v7031_v39, %v6963_v26  ;;  %v6368_v24 = vadd.f32 %v6336_v6, %v6236_v36  ;;  %v6536_v4 = vmul.f32 %v14617_v12, %v14391_v62  ;;  %v6733_v3 = vmul.f32 %v14613_v31, %v14406_v20  ;;  %v14659_v26 = vld [vmem:[#allocation2 + $0x91] sm:$0xff] }
 0x862   : > { %v10148_v25 = vpop.f32.mrb[88].mxu0  ;;  %v6866_v37 = vadd.f32 %v6834_v34, %v6766_v57  ;;  %v6665_v32 = vadd.f32 %v6633_v23, %v6565_v58  ;;  %v7034_v29 = vmul.f32 %v14429_v50, %v14645_v47  ;;  %v6235_v36 = vmul.f32 %v14592_v52, %v14368_v33 }
 0x863   : > { %5663 = vst.msk [vmem:[#allocation2 + $0x141] sm:$0xff] %vm1189_vm3, %v10148_v25  ;;  %v5599_v55 = vpop.f32.mrb[89].mxu0  ;;  %v7101_v14 = vadd.f32 %v14440_v30, %v7063_v15  ;;  %v6468_v16 = vadd.f32 %v6436_v51, %v6368_v24  ;;  %v6833_v6 = vmul.f32 %v14411_v54, %v14649_v2  ;;  %v6335_v15 = vmul.f32 %v14600_v42, %v14372_v60  ;;  %v14674_v25 = vld [vmem:[#allocation2 + $0x92] sm:$0xff] }
 0x864   : > { %5662 = vst.msk [vmem:[#allocation2 + $0x139] sm:$0xff] %vm1189_vm3, %v5599_v55  ;;  %v6966_v39 = vadd.f32 %v6934_v53, %v6866_v37  ;;  %v6765_v34 = vadd.f32 %v6733_v3, %v6665_v32  ;;  %v6933_v53 = vmul.f32 %v14423_v18, %v14659_v26  ;;  %v6636_v52 = vmul.f32 %v14627_v5, %v14398_v38  ;;  %v14678_v24 = vld [vmem:[#allocation2 + $0xb0] sm:$0xff] }
 0x865   : > { %v14666_v57 = vmax.f32 %v7101_v14, 0.0  ;;  %v6568_v37 = vadd.f32 %v6536_v4, %v6468_v16  ;;  %v6367_v55 = vadd.f32 %v6335_v15, %v6235_v36  ;;  %v6435_v14 = vmul.f32 %v14613_v31, %v14377_v0  ;;  %v14691_v16 = vld [vmem:[#allocation2 + $0xb1] sm:$0xff] }
 0x866   : > { %v10151_v58 = vpop.f32.mrb[90].mxu0  ;;  %v7066_v23 = vadd.f32 %v7034_v29, %v6966_v39  ;;  %v6865_v42 = vadd.f32 %v6833_v6, %v6765_v34  ;;  %v6535_v32 = vmul.f32 %v14649_v2, %v14391_v62  ;;  %v6736_v29 = vmul.f32 %v14645_v47, %v14406_v20 }
 0x867   : > { %16666 = vst [vmem:[#allocation80_spill] sm:$0xff] %v14666_v57  ;;  %5665 = vst.msk [vmem:[#allocation2 + $0x159] sm:$0xff] %vm1189_vm3, %v10151_v58  ;;  %v5609_v51 = vpop.f32.mrb[91].mxu0  ;;  %7406 = vrot.lane.b32.xlu0 %v14666_v57, %s11078_s22  ;;  %v6097_v4 = vpop.permute.xlu1 %6096  ;;  %v6668_v39 = vadd.f32 %v6636_v52, %v6568_v37  ;;  %v7033_v31 = vmul.f32 %v14429_v50, %v14674_v25  ;;  %v6836_v6 = vmul.f32 %v14411_v54, %v14678_v24 }
 0x868   : > { %5664 = vst.msk [vmem:[#allocation2 + $0x151] sm:$0xff] %vm1189_vm3, %v5609_v51  ;;  %v7104_v3 = vadd.f32 %v14440_v30, %v7066_v23  ;;  %v6095_v36 = vpop.permute.xlu0 %6094  ;;  %v6965_v34 = vadd.f32 %v6933_v53, %v6865_v42  ;;  %v6467_v15 = vadd.f32 %v6435_v14, %v6367_v55  ;;  %v6238_v52 = vmul.f32 %v14617_v12, %v14368_v33  ;;  %v14708_v55 = vld [vmem:[#allocation2 + $0xb2] sm:$0xff] }
 0x869   : > { %6173 = vst.msk [vmem:[#allocation2 + $0xf9] sm:$0xff] %vm3527_vm6, %v6097_v4  ;;  %6172 = vst.msk [vmem:[#allocation2 + $0xf1] sm:$0xff] %vm3527_vm6, %v6095_v36  ;;  %v6768_v37 = vadd.f32 %v6736_v29, %v6668_v39  ;;  %v6338_v51 = vmul.f32 %v14627_v5, %v14372_v60  ;;  %v6936_v4 = vmul.f32 %v14423_v18, %v14691_v16  ;;  %v14715_v5 = vld [vmem:[#allocation2 + $0xa8] sm:$0xff] }
 0x86a   : > { %v10154_v58 = vpop.f32.mrb[92].mxu0  ;;  %v14699_v23 = vmax.f32 %v7104_v3, 0.0  ;;  %v7065_v42 = vadd.f32 %v7033_v31, %v6965_v34  ;;  %v6567_v14 = vadd.f32 %v6535_v32, %v6467_v15  ;;  %v6635_v3 = vmul.f32 %v14659_v26, %v14398_v38 }
 0x86b   : > { %5667 = vst.msk [vmem:[#allocation2 + $0x171] sm:$0xff] %vm1189_vm3, %v10154_v58  ;;  %v5619_v53 = vpop.f32.mrb[93].mxu0  ;;  %v6868_v12 = vadd.f32 %v6836_v6, %v6768_v37  ;;  %v6370_v39 = vadd.f32 %v6338_v51, %v6238_v52  ;;  %v6438_v29 = vmul.f32 %v14645_v47, %v14377_v0  ;;  %v6538_v36 = vmul.f32 %v14678_v24, %v14391_v62  ;;  %v6899_v37 = vld [vmem:[#allocation2 + $0xa9] sm:$0xff] }
 0x86c   : > { %16667 = vst [vmem:[#allocation81_spill] sm:$0xff] %v14699_v23  ;;  %5666 = vst.msk [vmem:[#allocation2 + $0x169] sm:$0xff] %vm1189_vm3, %v5619_v53  ;;  %7412 = vrot.lane.b32.xlu1 %v14699_v23, %s11078_s22  ;;  %v7103_v32 = vadd.f32 %v14440_v30, %v7065_v42  ;;  %v6667_v34 = vadd.f32 %v6635_v3, %v6567_v14  ;;  %v6735_v31 = vmul.f32 %v14674_v25, %v14406_v20  ;;  %v6999_v3 = vld [vmem:[#allocation2 + $0xaa] sm:$0xff] }
 0x86d   : > { %v6968_v58 = vadd.f32 %v6936_v4, %v6868_v12  ;;  %v7036_v6 = vmul.f32 %v14429_v50, %v14708_v55  ;;  %v6470_v53 = vadd.f32 %v6438_v29, %v6370_v39  ;;  %v6835_v42 = vmul.f32 %v14411_v54, %v14715_v5 }
 0x86e   : > { %v10157_v15 = vpop.f32.mrb[94].mxu0  ;;  %v14727_v47 = vmax.f32 %v7103_v32, 0.0  ;;  %v6767_v51 = vadd.f32 %v6735_v31, %v6667_v34  ;;  %v6237_v14 = vmul.f32 %v14649_v2, %v14368_v33  ;;  %v6638_v39 = vmul.f32 %v14691_v16, %v14398_v38  ;;  %v14743_v31 = vld [vmem:[#allocation2 + $0xc8] sm:$0xff] }
 0x86f   : > { %5669 = vst.msk [vmem:[#allocation2 + $0x189] sm:$0xff] %vm1189_vm3, %v10157_v15  ;;  %v5629_v52 = vpop.f32.mrb[95].mxu0  ;;  %v7068_v4 = vadd.f32 %v7036_v6, %v6968_v58  ;;  %v6570_v12 = vadd.f32 %v6538_v36, %v6470_v53  ;;  %v6337_v29 = vmul.f32 %v14659_v26, %v14372_v60  ;;  %v6935_v34 = vmul.f32 %v14423_v18, %v6899_v37 }
 0x870   : > { %16668 = vst [vmem:[#allocation82_spill] sm:$0xff] %v14727_v47  ;;  %5668 = vst.msk [vmem:[#allocation2 + $0x181] sm:$0xff] %vm1189_vm3, %v5629_v52  ;;  %7410 = vrot.lane.b32.xlu0 %v14727_v47, %s11078_s22  ;;  %v6867_v32 = vadd.f32 %v6835_v42, %v6767_v51  ;;  %v6738_v2 = vmul.f32 %v14708_v55, %v14406_v20  ;;  %v6437_v36 = vmul.f32 %v14674_v25, %v14377_v0  ;;  %v14751_v42 = vld [vmem:[#allocation2 + $0xc9] sm:$0xff] }
 0x871   : > { %v7106_v15 = vadd.f32 %v14440_v30, %v7068_v4  ;;  %v6670_v58 = vadd.f32 %v6638_v39, %v6570_v12  ;;  %v6369_v6 = vadd.f32 %v6337_v29, %v6237_v14  ;;  %v6537_v26 = vmul.f32 %v14715_v5, %v14391_v62  ;;  %v14763_v39 = vld [vmem:[#allocation2 + $0xca] sm:$0xff] }
 0x872   : > { %v6101_v53 = vpop.permute.xlu1 %6100  ;;  %v6967_v52 = vadd.f32 %v6935_v34, %v6867_v32  ;;  %v7035_v51 = vmul.f32 %v14429_v50, %v6999_v3  ;;  %v6838_v25 = vmul.f32 %v14411_v54, %v14743_v31  ;;  %v14760_v14 = vsel %vm1189_vm3, %v14456_v59, 0.0  ;;  %v14815_v59 = vld [vmem:[#allocation2 + $0xe1] sm:$0xff] }
 0x873   : > { %6175 = vst.msk [vmem:[#allocation2 + $0x111] sm:$0xff] %vm3527_vm6, %v6101_v53  ;;  %v6099_v44 = vpop.permute.xlu0 %6098  ;;  %v14754_v41 = vmax.f32 %v7106_v15, 0.0  ;;  %v6770_v1 = vadd.f32 %v6738_v2, %v6670_v58  ;;  %v6469_v4 = vadd.f32 %v6437_v36, %v6369_v6  ;;  %v6240_v29 = vmul.f32 %v14678_v24, %v14368_v33 }
 0x874   : > { %6174 = vst.msk [vmem:[#allocation2 + $0x109] sm:$0xff] %vm3527_vm6, %v6099_v44  ;;  %v7067_v12 = vadd.f32 %v7035_v51, %v6967_v52  ;;  %v6340_v32 = vmul.f32 %v14691_v16, %v14372_v60  ;;  %v6938_v2 = vmul.f32 %v14423_v18, %v14751_v42  ;;  %v6637_v15 = vmul.f32 %v6899_v37, %v14398_v38  ;;  %v14774_v44 = vld [vmem:[#allocation2 + $0xc0] sm:$0xff] }
 0x875   : > { %16669 = vst [vmem:[#allocation83_spill] sm:$0xff] %v14754_v41  ;;  %7416 = vrot.lane.b32.xlu1 %v14754_v41, %s11078_s22  ;;  %v6870_v34 = vadd.f32 %v6838_v25, %v6770_v1  ;;  %v6569_v36 = vadd.f32 %v6537_v26, %v6469_v4  ;;  %v6440_v24 = vmul.f32 %v14708_v55, %v14377_v0  ;;  %v14784_v51 = vld [vmem:[#allocation2 + $0xc1] sm:$0xff]  ;;  %v14788_v25 = vsel %vm1189_vm3, %v14458_v11, 0.0 }
 0x876   : > { %v7105_v58 = vadd.f32 %v14440_v30, %v7067_v12  ;;  %v6372_v6 = vadd.f32 %v6340_v32, %v6240_v29  ;;  %v6540_v16 = vmul.f32 %v14743_v31, %v14391_v62  ;;  %v7038_v1 = vmul.f32 %v14429_v50, %v14763_v39 }
 0x877   : > { %v6970_v53 = vadd.f32 %v6938_v2, %v6870_v34  ;;  %v6669_v52 = vadd.f32 %v6637_v15, %v6569_v36  ;;  %v6737_v26 = vmul.f32 %v6999_v3, %v14406_v20  ;;  %v6837_v55 = vmul.f32 %v14411_v54, %v14774_v44  ;;  %v7001_v15 = vld [vmem:[#allocation2 + $0xc2] sm:$0xff] }
 0x878   : > { %v14790_v4 = vmax.f32 %v7105_v58, 0.0  ;;  %v6472_v12 = vadd.f32 %v6440_v24, %v6372_v6  ;;  %v6239_v34 = vmul.f32 %v14715_v5, %v14368_v33  ;;  %v6339_v2 = vmul.f32 %v6899_v37, %v14372_v60 }
 0x879   : > { %v7070_v29 = vadd.f32 %v7038_v1, %v6970_v53  ;;  %v6769_v32 = vadd.f32 %v6737_v26, %v6669_v52  ;;  %v6937_v36 = vmul.f32 %v14423_v18, %v14784_v51  ;;  %v6640_v11 = vmul.f32 %v14751_v42, %v14398_v38  ;;  %v14805_v1 = vld [vmem:[#allocation2 + $0xe0] sm:$0xff] }
 0x87a   : > { %16670 = vst [vmem:[#allocation84_spill] sm:$0xff] %v14790_v4  ;;  %7414 = vrot.lane.b32.xlu0 %v14790_v4, %s11078_s22  ;;  %v6572_v58 = vadd.f32 %v6540_v16, %v6472_v12  ;;  %v6439_v6 = vmul.f32 %v6999_v3, %v14377_v0  ;;  %v6371_v5 = vadd.f32 %v6339_v2, %v6239_v34  ;;  %v7351_v52 = vsel %vm1189_vm3, %v14537_v7, 0.0 }
 0x87b   : > { %v7108_v24 = vadd.f32 %v14440_v30, %v7070_v29  ;;  %v6869_v53 = vadd.f32 %v6837_v55, %v6769_v32  ;;  %v6539_v37 = vmul.f32 %v14774_v44, %v14391_v62  ;;  %v7320_v16 = vsel %vm1189_vm3, %v14539_v45, 0.0 }
 0x87c   : > { %v6105_v26 = vpop.permute.xlu1 %6104  ;;  %v6672_v12 = vadd.f32 %v6640_v11, %v6572_v58  ;;  %v6740_v3 = vmul.f32 %v14763_v39, %v14406_v20  ;;  %v7037_v34 = vmul.f32 %v14429_v50, %v7001_v15  ;;  %v6471_v2 = vadd.f32 %v6439_v6, %v6371_v5  ;;  %v7004_v6 = vld [vmem:[#allocation2 + $0xe2] sm:$0xff] }
 0x87d   : > { %6177 = vst.msk [vmem:[#allocation2 + $0x129] sm:$0xff] %vm3527_vm6, %v6105_v26  ;;  %v6103_v55 = vpop.permute.xlu0 %6102  ;;  %v14818_v29 = vmax.f32 %v7108_v24, 0.0  ;;  %v6969_v32 = vadd.f32 %v6937_v36, %v6869_v53  ;;  %v6840_v11 = vmul.f32 %v14411_v54, %v14805_v1  ;;  %v6242_v58 = vmul.f32 %v14743_v31, %v14368_v33 }
 0x87e   : > { %6176 = vst.msk [vmem:[#allocation2 + $0x121] sm:$0xff] %vm3527_vm6, %v6103_v55  ;;  %v6772_v7 = vadd.f32 %v6740_v3, %v6672_v12  ;;  %v6342_v45 = vmul.f32 %v14751_v42, %v14372_v60  ;;  %v6940_v36 = vmul.f32 %v14423_v18, %v14815_v59  ;;  %v6571_v53 = vadd.f32 %v6539_v37, %v6471_v2  ;;  %v14834_v12 = vld [vmem:[#allocation2 + $0xd8] sm:$0xff] }
 0x87f   : > { %16671 = vst [vmem:[#allocation85_spill] sm:$0xff] %v14818_v29  ;;  %7420 = vrot.lane.b32.xlu1 %v14818_v29, %s11078_s22  ;;  %v7069_v24 = vadd.f32 %v7037_v34, %v6969_v32  ;;  %v6639_v5 = vmul.f32 %v14784_v51, %v14398_v38  ;;  %v6442_v31 = vmul.f32 %v14763_v39, %v14377_v0  ;;  %v7353_v2 = vsel %vm1189_vm3, %v14572_v27, 0.0  ;;  %v14868_v27 = vld [vmem:[#allocation2 + $0xf9] sm:$0xff] }
 0x880   : > { %v6872_v26 = vadd.f32 %v6840_v11, %v6772_v7  ;;  %v6374_v3 = vadd.f32 %v6342_v45, %v6242_v58  ;;  %v6542_v42 = vmul.f32 %v14805_v1, %v14391_v62  ;;  %v7352_v55 = vadd.f32 %v7351_v52, %v14760_v14  ;;  %v6903_v45 = vld [vmem:[#allocation2 + $0xd9] sm:$0xff] }
 0x881   : > { %v7107_v32 = vadd.f32 %v14440_v30, %v7069_v24  ;;  %v6671_v34 = vadd.f32 %v6639_v5, %v6571_v53  ;;  %v6739_v37 = vmul.f32 %v7001_v15, %v14406_v20  ;;  %v7040_v11 = vmul.f32 %v14429_v50, %v7004_v6  ;;  %v7003_v24 = vld [vmem:[#allocation2 + $0xda] sm:$0xff] }
 0x882   : > { %v6972_v7 = vadd.f32 %v6940_v36, %v6872_v26  ;;  %v6474_v58 = vadd.f32 %v6442_v31, %v6374_v3  ;;  %v6839_v35 = vmul.f32 %v14411_v54, %v14834_v12  ;;  %v6241_v14 = vmul.f32 %v14774_v44, %v14368_v33 }
 0x883   : > { %v14846_v48 = vmax.f32 %v7107_v32, 0.0  ;;  %v6771_v39 = vadd.f32 %v6739_v37, %v6671_v34  ;;  %v6642_v5 = vmul.f32 %v14815_v59, %v14398_v38  ;;  %v6341_v36 = vmul.f32 %v14784_v51, %v14372_v60  ;;  %v14860_v32 = vld [vmem:[#allocation2 + $0xf8] sm:$0xff] }
 0x884   : > { %v7072_v52 = vadd.f32 %v7040_v11, %v6972_v7  ;;  %v6574_v53 = vadd.f32 %v6542_v42, %v6474_v58  ;;  %v6939_v3 = vmul.f32 %v14423_v18, %v6903_v45  ;;  %v6742_v31 = vmul.f32 %v7004_v6, %v14406_v20 }
 0x885   : > { %16672 = vst [vmem:[#allocation86_spill] sm:$0xff] %v14846_v48  ;;  %7418 = vrot.lane.b32.xlu0 %v14846_v48, %s11078_s22  ;;  %v6871_v26 = vadd.f32 %v6839_v35, %v6771_v39  ;;  %v6441_v44 = vmul.f32 %v7001_v15, %v14377_v0  ;;  %v6373_v37 = vadd.f32 %v6341_v36, %v6241_v14 }
 0x886   : > { %v7110_v42 = vadd.f32 %v14440_v30, %v7072_v52  ;;  %v6674_v34 = vadd.f32 %v6642_v5, %v6574_v53  ;;  %v6541_v7 = vmul.f32 %v14834_v12, %v14391_v62  ;;  %v7321_v51 = vadd.f32 %v7320_v16, %v14788_v25 }
 0x887   : > { %v7354_v11 = vadd.f32 %v7353_v2, %v7352_v55  ;;  %v6971_v35 = vadd.f32 %v6939_v3, %v6871_v26  ;;  %v7039_v39 = vmul.f32 %v14429_v50, %v7003_v24  ;;  %v6842_v14 = vmul.f32 %v14411_v54, %v14860_v32  ;;  %v14878_v55 = vld [vmem:[#allocation2 + $0xfa] sm:$0xff] }
 0x888   : > { %v6109_v58 = vpop.permute.xlu1 %6108  ;;  %v14871_v15 = vmax.f32 %v7110_v42, 0.0  ;;  %v6774_v52 = vadd.f32 %v6742_v31, %v6674_v34  ;;  %v6473_v53 = vadd.f32 %v6441_v44, %v6373_v37  ;;  %v7322_v25 = vsel %vm1189_vm3, %v14576_v61, 0.0 }
 0x889   : > { %6179 = vst.msk [vmem:[#allocation2 + $0x141] sm:$0xff] %vm3527_vm6, %v6109_v58  ;;  %v6107_v46 = vpop.permute.xlu0 %6106  ;;  %v7071_v16 = vadd.f32 %v7039_v39, %v6971_v35  ;;  %v6244_v2 = vmul.f32 %v14805_v1, %v14368_v33  ;;  %v6344_v5 = vmul.f32 %v14815_v59, %v14372_v60  ;;  %v6942_v26 = vmul.f32 %v14423_v18, %v14868_v27 }
 0x88a   : > { %16673 = vst [vmem:[#allocation87_spill] sm:$0xff] %v14871_v15  ;;  %6178 = vst.msk [vmem:[#allocation2 + $0x139] sm:$0xff] %vm3527_vm6, %v6107_v46  ;;  %7424 = vrot.lane.b32.xlu1 %v14871_v15, %s11078_s22  ;;  %v6874_v36 = vadd.f32 %v6842_v14, %v6774_v52  ;;  %v6573_v3 = vadd.f32 %v6541_v7, %v6473_v53  ;;  %v6641_v31 = vmul.f32 %v6903_v45, %v14398_v38  ;;  %v14889_v46 = vld [vmem:[#allocation2 + $0xf0] sm:$0xff] }
 0x88b   : > { %v7109_v44 = vadd.f32 %v14440_v30, %v7071_v16  ;;  %v6376_v42 = vadd.f32 %v6344_v5, %v6244_v2  ;;  %v6444_v1 = vmul.f32 %v7004_v6, %v14377_v0  ;;  %v6544_v59 = vmul.f32 %v14860_v32, %v14391_v62  ;;  %v14898_v7 = vld [vmem:[#allocation2 + $0xf1] sm:$0xff] }
 0x88c   : > { %v6974_v34 = vadd.f32 %v6942_v26, %v6874_v36  ;;  %v7042_v37 = vmul.f32 %v14429_v50, %v14878_v55  ;;  %v6673_v58 = vadd.f32 %v6641_v31, %v6573_v3  ;;  %v6741_v35 = vmul.f32 %v7003_v24, %v14406_v20  ;;  %v7005_v26 = vld [vmem:[#allocation2 + $0xf2] sm:$0xff] }
 0x88d   : > { %v7355_v39 = vsel %vm1189_vm3, %v14623_v63, 0.0  ;;  %v14902_v52 = vmax.f32 %v7109_v44, 0.0  ;;  %v6841_v6 = vmul.f32 %v14411_v54, %v14889_v46  ;;  %v6476_v14 = vadd.f32 %v6444_v1, %v6376_v42 }
 0x88e   : > { %v7074_v53 = vadd.f32 %v7042_v37, %v6974_v34  ;;  %v6773_v16 = vadd.f32 %v6741_v35, %v6673_v58  ;;  %v6243_v2 = vmul.f32 %v14834_v12, %v14368_v33  ;;  %v6343_v5 = vmul.f32 %v6903_v45, %v14372_v60  ;;  %v14917_v34 = vld [vmem:[#allocation2 + $0x110] sm:$0xff] }
 0x88f   : > { %16674 = vst [vmem:[#allocation88_spill] sm:$0xff] %v14902_v52  ;;  %7422 = vrot.lane.b32.xlu0 %v14902_v52, %s11078_s22  ;;  %v6941_v36 = vmul.f32 %v14423_v18, %v14898_v7  ;;  %v6576_v3 = vadd.f32 %v6544_v59, %v6476_v14  ;;  %v6644_v31 = vmul.f32 %v14868_v27, %v14398_v38  ;;  %v14923_v14 = vld [vmem:[#allocation2 + $0x111] sm:$0xff] }
 0x890   : > { %v6443_v44 = vmul.f32 %v7003_v24, %v14377_v0  ;;  %v7112_v42 = vadd.f32 %v14440_v30, %v7074_v53  ;;  %v6873_v1 = vadd.f32 %v6841_v6, %v6773_v16  ;;  %v6375_v12 = vadd.f32 %v6343_v5, %v6243_v2 }
 0x891   : > { %v6543_v45 = vmul.f32 %v14889_v46, %v14391_v62  ;;  %v7323_v37 = vadd.f32 %v7322_v25, %v7321_v51  ;;  %v7356_v58 = vadd.f32 %v7355_v39, %v7354_v11  ;;  %v6676_v61 = vadd.f32 %v6644_v31, %v6576_v3 }
 0x892   : > { %v6113_v35 = vpop.permute.xlu1 %6112  ;;  %v6744_v59 = vmul.f32 %v14878_v55, %v14406_v20  ;;  %v14926_v53 = vmax.f32 %v7112_v42, 0.0  ;;  %v6973_v6 = vadd.f32 %v6941_v36, %v6873_v1  ;;  %v7041_v16 = vmul.f32 %v14429_v50, %v7005_v26  ;;  %v14940_v36 = vld [vmem:[#allocation2 + $0x112] sm:$0xff] }
 0x893   : > { %6181 = vst.msk [vmem:[#allocation2 + $0x159] sm:$0xff] %vm3527_vm6, %v6113_v35  ;;  %v6111_v24 = vpop.permute.xlu0 %6110  ;;  %v6475_v2 = vadd.f32 %v6443_v44, %v6375_v12  ;;  %v6844_v11 = vmul.f32 %v14411_v54, %v14917_v34  ;;  %v6246_v25 = vmul.f32 %v14860_v32, %v14368_v33  ;;  %v6346_v39 = vmul.f32 %v14868_v27, %v14372_v60  ;;  %v14944_v44 = vld [vmem:[#allocation2 + $0x108] sm:$0xff] }
 0x894   : > { %16675 = vst [vmem:[#allocation89_spill] sm:$0xff] %v14926_v53  ;;  %6180 = vst.msk [vmem:[#allocation2 + $0x151] sm:$0xff] %vm3527_vm6, %v6111_v24  ;;  %v6776_v51 = vadd.f32 %v6744_v59, %v6676_v61  ;;  %7428 = vrot.lane.b32.xlu1 %v14926_v53, %s11078_s22  ;;  %v7073_v5 = vadd.f32 %v7041_v16, %v6973_v6  ;;  %v6944_v50 = vmul.f32 %v14423_v18, %v14923_v14  ;;  %v14956_v6 = vld [vmem:[#allocation20 + $0x8] ss:$0 sm:$0xff]  ;;  %v6907_v16 = vld [vmem:[#allocation2 + $0x109] sm:$0xff] }
 0x895   : > { %v6575_v3 = vadd.f32 %v6543_v45, %v6475_v2  ;;  %v6643_v61 = vmul.f32 %v14898_v7, %v14398_v38  ;;  %v6378_v32 = vadd.f32 %v6346_v39, %v6246_v25  ;;  %v6446_v27 = vmul.f32 %v14878_v55, %v14377_v0 }
 0x896   : > { %v6876_v31 = vadd.f32 %v6844_v11, %v6776_v51  ;;  %v6546_v42 = vmul.f32 %v14917_v34, %v14391_v62  ;;  %v7324_v1 = vsel %vm1189_vm3, %v14666_v57, 0.0  ;;  %v7111_v12 = vadd.f32 %v14440_v30, %v7073_v5  ;;  %v7007_v5 = vld [vmem:[#allocation2 + $0x10a] sm:$0xff] }
 0x897   : > { %v6675_v35 = vadd.f32 %v6643_v61, %v6575_v3  ;;  %v6743_v45 = vmul.f32 %v7005_v26, %v14406_v20  ;;  %v7357_v59 = vsel %vm1189_vm3, %v14699_v23, 0.0  ;;  %v7044_v55 = vmul.f32 %v14956_v6, %v14940_v36  ;;  %v6910_v23 = vld [vmem:[#allocation2 + $0x129] sm:$0xff] }
 0x898   : > { %v6976_v24 = vadd.f32 %v6944_v50, %v6876_v31  ;;  %v6478_v2 = vadd.f32 %v6446_v27, %v6378_v32  ;;  %v14960_v51 = vmax.f32 %v7111_v12, 0.0  ;;  %v6843_v30 = vmul.f32 %v14411_v54, %v14944_v44  ;;  %v14975_v12 = vld [vmem:[#allocation2 + $0x128] sm:$0xff] }
 0x899   : > { %v6775_v11 = vadd.f32 %v6743_v45, %v6675_v35  ;;  %v6245_v25 = vmul.f32 %v14889_v46, %v14368_v33  ;;  %v6646_v50 = vmul.f32 %v14923_v14, %v14398_v38  ;;  %v6345_v61 = vmul.f32 %v14898_v7, %v14372_v60 }
 0x89a   : > { %v7076_v39 = vadd.f32 %v7044_v55, %v6976_v24  ;;  %v6578_v3 = vadd.f32 %v6546_v42, %v6478_v2  ;;  %7426 = vrot.lane.b32.xlu0 %v14960_v51, %s11078_s22  ;;  %v6943_v32 = vmul.f32 %v14423_v18, %v6907_v16  ;;  %v6746_v27 = vmul.f32 %v14940_v36, %v14406_v20  ;;  %v14978_v42 = vld [vmem:[#allocation21] ss:$0 sm:$0xff] }
 0x89b   : > { %v6875_v31 = vadd.f32 %v6843_v30, %v6775_v11  ;;  %v6445_v46 = vmul.f32 %v7005_v26, %v14377_v0  ;;  %v6377_v24 = vadd.f32 %v6345_v61, %v6245_v25  ;;  %v6545_v7 = vmul.f32 %v14944_v44, %v14391_v62 }
 0x89c   : > { %v7114_v35 = vadd.f32 %v14978_v42, %v7076_v39  ;;  %v6678_v45 = vadd.f32 %v6646_v50, %v6578_v3  ;;  %v7325_v55 = vadd.f32 %v7324_v1, %v7323_v37  ;;  %v7358_v2 = vadd.f32 %v7357_v59, %v7356_v58  ;;  %v14992_v58 = vld [vmem:[#allocation2 + $0x12a] sm:$0xff] }
 0x89d   : > { %v6117_v11 = vpop.permute.xlu1 %6116  ;;  %v6975_v30 = vadd.f32 %v6943_v32, %v6875_v31  ;;  %v7043_v57 = vmul.f32 %v14956_v6, %v7007_v5  ;;  %v6846_v39 = vmul.f32 %v14411_v54, %v14975_v12  ;;  %v6477_v25 = vadd.f32 %v6445_v46, %v6377_v24  ;;  %v15012_v24 = vld [vmem:[#allocation2 + $0x121] sm:$0xff] }
 0x89e   : > { %6183 = vst.msk [vmem:[#allocation2 + $0x171] sm:$0xff] %vm3527_vm6, %v6117_v11  ;;  %v6115_v63 = vpop.permute.xlu0 %6114  ;;  %v14985_v26 = vmax.f32 %v7114_v35, 0.0  ;;  %v6778_v19 = vadd.f32 %v6746_v27, %v6678_v45  ;;  %v7326_v3 = vsel %vm1189_vm3, %v14727_v47, 0.0  ;;  %v6248_v1 = vmul.f32 %v14917_v34, %v14368_v33  ;;  %v15002_v27 = vld [vmem:[#allocation2 + $0x120] sm:$0xff] }
 0x89f   : > { %6182 = vst.msk [vmem:[#allocation2 + $0x169] sm:$0xff] %vm3527_vm6, %v6115_v63  ;;  %v7075_v37 = vadd.f32 %v7043_v57, %v6975_v30  ;;  %v6348_v59 = vmul.f32 %v14923_v14, %v14372_v60  ;;  %v6946_v61 = vmul.f32 %v14423_v18, %v6910_v23  ;;  %v6577_v31 = vadd.f32 %v6545_v7, %v6477_v25 }
 0x8a0   : > { %7432 = vrot.lane.b32.xlu1 %v14985_v26, %s11078_s22  ;;  %v6878_v50 = vadd.f32 %v6846_v39, %v6778_v19  ;;  %v6645_v32 = vmul.f32 %v6907_v16, %v14398_v38  ;;  %v6448_v34 = vmul.f32 %v14940_v36, %v14377_v0  ;;  %v6548_v14 = vmul.f32 %v14975_v12, %v14391_v62 }
 0x8a1   : > { %v7113_v63 = vadd.f32 %v14978_v42, %v7075_v37  ;;  %v6380_v57 = vadd.f32 %v6348_v59, %v6248_v1  ;;  %v7046_v19 = vmul.f32 %v14956_v6, %v14992_v58  ;;  %v6745_v45 = vmul.f32 %v7007_v5, %v14406_v20 }
 0x8a2   : > { %v6978_v46 = vadd.f32 %v6946_v61, %v6878_v50  ;;  %v6677_v35 = vadd.f32 %v6645_v32, %v6577_v31  ;;  %v7359_v7 = vsel %vm1189_vm3, %v14754_v41, 0.0  ;;  %v6845_v36 = vmul.f32 %v14411_v54, %v15002_v27  ;;  %v7009_v50 = vld [vmem:[#allocation2 + $0x122] sm:$0xff] }
 0x8a3   : > { %v15016_v11 = vmax.f32 %v7113_v63, 0.0  ;;  %v6480_v30 = vadd.f32 %v6448_v34, %v6380_v57  ;;  %v6247_v37 = vmul.f32 %v14944_v44, %v14368_v33  ;;  %v6347_v1 = vmul.f32 %v6907_v16, %v14372_v60  ;;  %v15030_v34 = vld [vmem:[#allocation2 + $0x140] sm:$0xff] }
 0x8a4   : > { %v7078_v39 = vadd.f32 %v7046_v19, %v6978_v46  ;;  %v6777_v25 = vadd.f32 %v6745_v45, %v6677_v35  ;;  %v6945_v59 = vmul.f32 %v14423_v18, %v15012_v24  ;;  %v6648_v31 = vmul.f32 %v6910_v23, %v14398_v38 }
 0x8a5   : > { %7430 = vrot.lane.b32.xlu0 %v15016_v11, %s11078_s22  ;;  %v6580_v61 = vadd.f32 %v6548_v14, %v6480_v30  ;;  %v6447_v32 = vmul.f32 %v7007_v5, %v14377_v0  ;;  %v6379_v44 = vadd.f32 %v6347_v1, %v6247_v37  ;;  %v6547_v16 = vmul.f32 %v15002_v27, %v14391_v62  ;;  %v15036_v14 = vld [vmem:[#allocation2 + $0x141] sm:$0xff] }
 0x8a6   : > { %v7116_v63 = vadd.f32 %v14978_v42, %v7078_v39  ;;  %v6877_v57 = vadd.f32 %v6845_v36, %v6777_v25  ;;  %v7327_v46 = vadd.f32 %v7326_v3, %v7325_v55  ;;  %v7360_v19 = vadd.f32 %v7359_v7, %v7358_v2 }
 0x8a7   : > { %v6680_v35 = vadd.f32 %v6648_v31, %v6580_v61  ;;  %v6748_v45 = vmul.f32 %v14992_v58, %v14406_v20  ;;  %v7045_v36 = vmul.f32 %v14956_v6, %v7009_v50  ;;  %v6479_v39 = vadd.f32 %v6447_v32, %v6379_v44 }
 0x8a8   : > { %v6121_v30 = vpop.permute.xlu1 %6120  ;;  %v15038_v47 = vmax.f32 %v7116_v63, 0.0  ;;  %v6977_v5 = vadd.f32 %v6945_v59, %v6877_v57  ;;  %v6848_v55 = vmul.f32 %v14411_v54, %v15030_v34  ;;  %v6250_v2 = vmul.f32 %v14975_v12, %v14368_v33  ;;  %v7012_v59 = vld [vmem:[#allocation2 + $0x142] sm:$0xff]  ;;  %v15054_v63 = vld [vmem:[#allocation2 + $0x138] sm:$0xff] }
 0x8a9   : > { %6185 = vst.msk [vmem:[#allocation2 + $0x189] sm:$0xff] %vm3527_vm6, %v6121_v30  ;;  %v6119_v25 = vpop.permute.xlu0 %6118  ;;  %v6780_v37 = vadd.f32 %v6748_v45, %v6680_v35  ;;  %v6350_v3 = vmul.f32 %v6910_v23, %v14372_v60  ;;  %v6948_v1 = vmul.f32 %v14423_v18, %v15036_v14  ;;  %v6579_v61 = vadd.f32 %v6547_v16, %v6479_v39  ;;  %v6911_v39 = vld [vmem:[#allocation2 + $0x139] sm:$0xff] }
 0x8aa   : > { %6184 = vst.msk [vmem:[#allocation2 + $0x181] sm:$0xff] %vm3527_vm6, %v6119_v25  ;;  %7436 = vrot.lane.b32.xlu1 %v15038_v47, %s11078_s22  ;;  %v7077_v7 = vadd.f32 %v7045_v36, %v6977_v5  ;;  %v6647_v31 = vmul.f32 %v15012_v24, %v14398_v38  ;;  %v6450_v23 = vmul.f32 %v14992_v58, %v14377_v0  ;;  %v7328_v44 = vsel %vm1189_vm3, %v14790_v4, 0.0 }
 0x8ab   : > { %v6880_v32 = vadd.f32 %v6848_v55, %v6780_v37  ;;  %v6382_v12 = vadd.f32 %v6350_v3, %v6250_v2  ;;  %v6550_v57 = vmul.f32 %v15030_v34, %v14391_v62  ;;  %v6747_v16 = vmul.f32 %v7009_v50, %v14406_v20 }
 0x8ac   : > { %v7115_v35 = vadd.f32 %v14978_v42, %v7077_v7  ;;  %v6679_v45 = vadd.f32 %v6647_v31, %v6579_v61  ;;  %v7361_v30 = vsel %vm1189_vm3, %v14818_v29, 0.0  ;;  %v7048_v36 = vmul.f32 %v14956_v6, %v7012_v59  ;;  %v7011_v7 = vld [vmem:[#allocation2 + $0x13a] sm:$0xff] }
 0x8ad   : > { %v6980_v5 = vadd.f32 %v6948_v1, %v6880_v32  ;;  %v6482_v25 = vadd.f32 %v6450_v23, %v6382_v12  ;;  %v6847_v55 = vmul.f32 %v14411_v54, %v15054_v63  ;;  %v6249_v2 = vmul.f32 %v15002_v27, %v14368_v33 }
 0x8ae   : > { %v15067_v58 = vmax.f32 %v7115_v35, 0.0  ;;  %v6779_v37 = vadd.f32 %v6747_v16, %v6679_v45  ;;  %v6650_v31 = vmul.f32 %v15036_v14, %v14398_v38  ;;  %v6349_v1 = vmul.f32 %v15012_v24, %v14372_v60  ;;  %v15081_v35 = vld [vmem:[#allocation2 + $0x158] sm:$0xff] }
 0x8af   : > { %v7080_v3 = vadd.f32 %v7048_v36, %v6980_v5  ;;  %v6582_v61 = vadd.f32 %v6550_v57, %v6482_v25  ;;  %v6947_v12 = vmul.f32 %v14423_v18, %v6911_v39  ;;  %v6750_v23 = vmul.f32 %v7012_v59, %v14406_v20  ;;  %v15085_v16 = vld [vmem:[#allocation2 + $0x159] sm:$0xff] }
 0x8b0   : > { %7434 = vrot.lane.b32.xlu0 %v15067_v58, %s11078_s22  ;;  %v6879_v32 = vadd.f32 %v6847_v55, %v6779_v37  ;;  %v6449_v27 = vmul.f32 %v7009_v50, %v14377_v0  ;;  %v6381_v5 = vadd.f32 %v6349_v1, %v6249_v2  ;;  %v6549_v24 = vmul.f32 %v15054_v63, %v14391_v62 }
 0x8b1   : > { %v7118_v57 = vadd.f32 %v14978_v42, %v7080_v3  ;;  %v6682_v45 = vadd.f32 %v6650_v31, %v6582_v61  ;;  %v7329_v36 = vadd.f32 %v7328_v44, %v7327_v46  ;;  %v15089_v25 = vadd.f32 %v7361_v30, %v7360_v19  ;;  %v15098_v31 = vld [vmem:[#allocation2 + $0x15a] sm:$0xff] }
 0x8b2   : > { %v6979_v37 = vadd.f32 %v6947_v12, %v6879_v32  ;;  %v7047_v55 = vmul.f32 %v14956_v6, %v7011_v7  ;;  %v6850_v50 = vmul.f32 %v14411_v54, %v15081_v35  ;;  %v6481_v3 = vadd.f32 %v6449_v27, %v6381_v5  ;;  %v15107_v12 = vld [vmem:[#allocation2 + $0x150] sm:$0xff] }
 0x8b3   : > { %v15092_v4 = vmax.f32 %v7118_v57, 0.0  ;;  %v6782_v29 = vadd.f32 %v6750_v23, %v6682_v45  ;;  %v6950_v2 = vmul.f32 %v14423_v18, %v15085_v16  ;;  %v6252_v46 = vmul.f32 %v15030_v34, %v14368_v33 }
 0x8b4   : > { %v7079_v61 = vadd.f32 %v7047_v55, %v6979_v37  ;;  %v6352_v19 = vmul.f32 %v15036_v14, %v14372_v60  ;;  %v7395_v44 = vpop.permute.xlu0 %7394  ;;  %v6581_v1 = vadd.f32 %v6549_v24, %v6481_v3  ;;  %v6649_v32 = vmul.f32 %v6911_v39, %v14398_v38  ;;  %v15117_v24 = vld [vmem:[#allocation2 + $0x151] sm:$0xff] }
 0x8b5   : > { %7440 = vrot.lane.b32.xlu1 %v15092_v4, %s11078_s22  ;;  %v6882_v30 = vadd.f32 %v6850_v50, %v6782_v29  ;;  %10214 = vmatprep.mubr.msk.f32.mxu0 %vm1189_vm3, %v7395_v44  ;;  %v6452_v34 = vmul.f32 %v7012_v59, %v14377_v0  ;;  %v6552_v14 = vmul.f32 %v15081_v35, %v14391_v62  ;;  %v7330_v37 = vsel %vm1189_vm3, %v14846_v48, 0.0  ;;  %v15132_v44 = vld [vmem:[#allocation2 + $0x152] sm:$0xff]  ;;  %v15164_v48 = vld [vmem:[#allocation2 + $0x168] sm:$0xff] }
 0x8b6   : > { %v7117_v23 = vadd.f32 %v14978_v42, %v7079_v61  ;;  %v6384_v27 = vadd.f32 %v6352_v19, %v6252_v46  ;;  %v7050_v45 = vmul.f32 %v14956_v6, %v15098_v31  ;;  %v6681_v29 = vadd.f32 %v6649_v32, %v6581_v1 }
 0x8b7   : > { %v6982_v57 = vadd.f32 %v6950_v2, %v6882_v30  ;;  %v6749_v5 = vmul.f32 %v7011_v7, %v14406_v20  ;;  %v6849_v59 = vmul.f32 %v14411_v54, %v15107_v12  ;;  %v6251_v2 = vmul.f32 %v15054_v63, %v14368_v33  ;;  %v15138_v63 = vld [vmem:[#allocation2 + $0x170] sm:$0xff] }
 0x8b8   : > { %v15121_v55 = vmax.f32 %v7117_v23, 0.0  ;;  %v6484_v50 = vadd.f32 %v6452_v34, %v6384_v27  ;;  %v6351_v46 = vmul.f32 %v6911_v39, %v14372_v60  ;;  %v6949_v19 = vmul.f32 %v14423_v18, %v15117_v24 }
 0x8b9   : > { %v7082_v3 = vadd.f32 %v7050_v45, %v6982_v57  ;;  %v6781_v61 = vadd.f32 %v6749_v5, %v6681_v29  ;;  %v6652_v1 = vmul.f32 %v15085_v16, %v14398_v38  ;;  %v6451_v32 = vmul.f32 %v7011_v7, %v14377_v0  ;;  %v7392_v57 = vld [vmem:[#allocation23] sm:$0xff]  ;;  %v7393_v45 = vld [vmem:[#allocation23 + $0x8] sm:$0xff] }
 0x8ba   : > { %7438 = vrot.lane.b32.xlu0 %v15121_v55, %s11078_s22  ;;  %v6584_v30 = vadd.f32 %v6552_v14, %v6484_v50  ;;  %v6383_v39 = vadd.f32 %v6351_v46, %v6251_v2  ;;  %v6551_v34 = vmul.f32 %v15107_v12, %v14391_v62  ;;  %v15142_v29 = vadd.f32 %v7330_v37, %v7329_v36 }
 0x8bb   : > { %v7120_v23 = vadd.f32 %v14978_v42, %v7082_v3  ;;  %v6881_v27 = vadd.f32 %v6849_v59, %v6781_v61  ;;  %v7363_v14 = vsel %vm1189_vm3, %v14871_v15, 0.0  ;;  %v6752_v7 = vmul.f32 %v15098_v31, %v14406_v20  ;;  %v15152_v61 = vld [vmem:[#allocation2 + $0x171] sm:$0xff] }
 0x8bc   : > { %v6684_v5 = vadd.f32 %v6652_v1, %v6584_v30  ;;  %v7049_v3 = vmul.f32 %v14956_v6, %v15132_v44  ;;  %v6483_v2 = vadd.f32 %v6451_v32, %v6383_v39  ;;  %v6852_v36 = vmul.f32 %v14411_v54, %v15138_v63  ;;  %v7397_v39 = vpop.permute.xlu1 %7396 }
 0x8bd   : > { %v15148_v50 = vmax.f32 %v7120_v23, 0.0  ;;  %v6981_v59 = vadd.f32 %v6949_v19, %v6881_v27  ;;  %v10294_v37 = vpack.c.bf16 %v7393_v45, %v7392_v57  ;;  %v6254_v30 = vmul.f32 %v15081_v35, %v14368_v33  ;;  %v15160_v23 = vld [vmem:[#allocation2 + $0x172] sm:$0xff] }
 0x8be   : > { %v6784_v46 = vadd.f32 %v6752_v7, %v6684_v5  ;;  %v6583_v19 = vadd.f32 %v6551_v34, %v6483_v2  ;;  %v6651_v27 = vmul.f32 %v15117_v24, %v14398_v38  ;;  %v6354_v32 = vmul.f32 %v15085_v16, %v14372_v60  ;;  %v15172_v5 = vld [vmem:[#allocation2 + $0x169] sm:$0xff] }
 0x8bf   : > { %7444 = vrot.lane.b32.xlu1 %v15148_v50, %s11078_s22  ;;  %v7081_v1 = vadd.f32 %v7049_v3, %v6981_v59  ;;  %v6952_v35 = vmul.f32 %v14423_v18, %v15152_v61  ;;  %v6751_v45 = vmul.f32 %v15132_v44, %v14406_v20  ;;  %10295 = vmatprep.subr.bf16.mxu0 %v10294_v37  ;;  %v15177_v3 = vld [vmem:[#allocation2 + $0x16a] sm:$0xff] }
 0x8c0   : > { %v6884_v57 = vadd.f32 %v6852_v36, %v6784_v46  ;;  %v6454_v34 = vmul.f32 %v15098_v31, %v14377_v0  ;;  %v6683_v59 = vadd.f32 %v6651_v27, %v6583_v19  ;;  %10297 = vmatpush3.bf16.msra.mxu0 %v10294_v37  ;;  %v6386_v16 = vadd.f32 %v6354_v32, %v6254_v30 }
 0x8c1   : > { %v7119_v7 = vadd.f32 %v14978_v42, %v7081_v1  ;;  %v6554_v2 = vmul.f32 %v15138_v63, %v14391_v62  ;;  %v7364_v46 = vadd.f32 %v7363_v14, %v15089_v25  ;;  %v7052_v15 = vmul.f32 %v14956_v6, %v15160_v23  ;;  %v6818_v14 = vld [vmem:[#allocation2 + $0x188] sm:$0xff] }
 0x8c2   : > { %v6984_v36 = vadd.f32 %v6952_v35, %v6884_v57  ;;  %v6851_v41 = vmul.f32 %v14411_v54, %v15164_v48  ;;  %v6783_v1 = vadd.f32 %v6751_v45, %v6683_v59  ;;  %v6951_v19 = vmul.f32 %v14423_v18, %v15172_v5 }
 0x8c3   : > { %v15186_v31 = vmax.f32 %v7119_v7, 0.0  ;;  %v6486_v37 = vadd.f32 %v6454_v34, %v6386_v16  ;;  %v7051_v25 = vmul.f32 %v14956_v6, %v15177_v3  ;;  %v6253_v57 = vmul.f32 %v15107_v12, %v14368_v33  ;;  %10215 = vmatmul.mubr.msk.f32.vlgmr.msra.gmra.mrb[96].mxu0 %vm1189_vm3, %v7397_v39 }
 0x8c4   : > { %v7399_v27 = vpop.permute.xlu0 %7398  ;;  %v7084_v32 = vadd.f32 %v7052_v15, %v6984_v36  ;;  %v6353_v35 = vmul.f32 %v15117_v24, %v14372_v60  ;;  %v7332_v45 = vsel %vm1189_vm3, %v14902_v52, 0.0  ;;  %v6883_v34 = vadd.f32 %v6851_v41, %v6783_v1  ;;  %v6918_v1 = vld [vmem:[#allocation2 + $0x189] sm:$0xff]  ;;  %v6917_v52 = vld [vmem:[#allocation2 + $0x181] sm:$0xff] }
 0x8c5   : > { %v7401_v30 = vpop.permute.xlu1 %7400  ;;  %7442 = vrot.lane.b32.xlu0 %v15186_v31, %s11078_s22  ;;  %v6586_v15 = vadd.f32 %v6554_v2, %v6486_v37  ;;  %v6654_v7 = vmul.f32 %v15152_v61, %v14398_v38  ;;  %10217 = vmatprep.mubr.msk.f32.mxu0 %vm1189_vm3, %v7399_v27  ;;  %v6453_v24 = vmul.f32 %v15132_v44, %v14377_v0  ;;  %v7365_v27 = vsel %vm1189_vm3, %v14926_v53, 0.0 }
 0x8c6   : > { %v7122_v12 = vadd.f32 %v14978_v42, %v7084_v32  ;;  %v6385_v59 = vadd.f32 %v6353_v35, %v6253_v57  ;;  %v6553_v39 = vmul.f32 %v15164_v48, %v14391_v62  ;;  %v6983_v16 = vadd.f32 %v6951_v19, %v6883_v34  ;;  %v6817_v35 = vld [vmem:[#allocation2 + $0x180] sm:$0xff] }
 0x8c7   : > { %v6686_v36 = vadd.f32 %v6654_v7, %v6586_v15  ;;  %v6754_v41 = vmul.f32 %v15160_v23, %v14406_v20  ;;  %v6854_v2 = vmul.f32 %v14411_v54, %v6818_v14  ;;  %v15213_v37 = vadd.f32 %v7332_v45, %v15142_v29  ;;  %10218 = vmatmul.mubr.msk.f32.gmra.mrb[98].mxu0 %vm1189_vm3, %v7401_v30  ;;  %v7018_v45 = vld [vmem:[#allocation2 + $0x18a] sm:$0xff] }
 0x8c8   : > { %v15217_v32 = vmax.f32 %v7122_v12, 0.0  ;;  %v6485_v44 = vadd.f32 %v6453_v24, %v6385_v59  ;;  %v7083_v57 = vadd.f32 %v7051_v25, %v6983_v16  ;;  %v6256_v34 = vmul.f32 %v15138_v63, %v14368_v33 }
 0x8c9   : > { %v6786_v19 = vadd.f32 %v6754_v41, %v6686_v36  ;;  %v6356_v15 = vmul.f32 %v15152_v61, %v14372_v60  ;;  %v6954_v29 = vmul.f32 %v14423_v18, %v6918_v1  ;;  %v6653_v30 = vmul.f32 %v15172_v5, %v14398_v38 }
 0x8ca   : > { %7448 = vrot.lane.b32.xlu1 %v15217_v32, %s11078_s22  ;;  %v6585_v12 = vadd.f32 %v6553_v39, %v6485_v44  ;;  %v6456_v25 = vmul.f32 %v15160_v23, %v14377_v0  ;;  %v7121_v63 = vadd.f32 %v14978_v42, %v7083_v57  ;;  %v6556_v61 = vmul.f32 %v6818_v14, %v14391_v62 }
 0x8cb   : > { %v7405_v7 = vpop.permute.xlu1 %7404  ;;  %v7403_v59 = vpop.permute.xlu0 %7402  ;;  %v6886_v24 = vadd.f32 %v6854_v2, %v6786_v19  ;;  %v6388_v16 = vadd.f32 %v6356_v15, %v6256_v34  ;;  %v7366_v36 = vadd.f32 %v7365_v27, %v7364_v46  ;;  %v6753_v39 = vmul.f32 %v15177_v3, %v14406_v20  ;;  %v6820_v46 = vld [vmem:[#allocation2 + $0x1a0] sm:$0xff] }
 0x8cc   : > { %10220 = vmatprep.mubr.msk.f32.mxu0 %vm1189_vm3, %v7403_v59  ;;  %v6685_v41 = vadd.f32 %v6653_v30, %v6585_v12  ;;  %v6853_v44 = vmul.f32 %v14411_v54, %v6817_v35  ;;  %v15238_v23 = vmax.f32 %v7121_v63, 0.0  ;;  %v7054_v2 = vmul.f32 %v14956_v6, %v7018_v45  ;;  %v6920_v59 = vld [vmem:[#allocation2 + $0x1a1] sm:$0xff] }
 0x8cd   : > { %10221 = vmatmul.mubr.msk.f32.gmra.mrb[100].mxu0 %vm1189_vm3, %v7405_v7  ;;  %v6986_v53 = vadd.f32 %v6954_v29, %v6886_v24  ;;  %v6488_v57 = vadd.f32 %v6456_v25, %v6388_v16  ;;  %v7367_v14 = vsel %vm1189_vm3, %v14985_v26, 0.0  ;;  %v6255_v27 = vmul.f32 %v15164_v48, %v14368_v33  ;;  %v7017_v29 = vld [vmem:[#allocation2 + $0x182] sm:$0xff] }
 0x8ce   : > { %v6785_v19 = vadd.f32 %v6753_v39, %v6685_v41  ;;  %v6355_v34 = vmul.f32 %v15172_v5, %v14372_v60  ;;  %7446 = vrot.lane.b32.xlu0 %v15238_v23, %s11078_s22  ;;  %v6953_v7 = vmul.f32 %v14423_v18, %v6917_v52  ;;  %v6656_v30 = vmul.f32 %v6918_v1, %v14398_v38  ;;  %v7020_v41 = vld [vmem:[#allocation2 + $0x1a2] sm:$0xff] }
 0x8cf   : > { %v7086_v15 = vadd.f32 %v7054_v2, %v6986_v53  ;;  %v6588_v12 = vadd.f32 %v6556_v61, %v6488_v57  ;;  %v6455_v24 = vmul.f32 %v15177_v3, %v14377_v0  ;;  %v6555_v48 = vmul.f32 %v6817_v35, %v14391_v62  ;;  %v6819_v3 = vld [vmem:[#allocation2 + $0x198] sm:$0xff] }
 0x8d0   : > { %v6885_v25 = vadd.f32 %v6853_v44, %v6785_v19  ;;  %v6387_v63 = vadd.f32 %v6355_v34, %v6255_v27  ;;  %v6756_v5 = vmul.f32 %v7018_v45, %v14406_v20  ;;  %v6856_v53 = vmul.f32 %v14411_v54, %v6820_v46  ;;  %v6919_v34 = vld [vmem:[#allocation2 + $0x199] sm:$0xff] }
 0x8d1   : > { %v7124_v33 = vadd.f32 %v14978_v42, %v7086_v15  ;;  %v6688_v60 = vadd.f32 %v6656_v30, %v6588_v12  ;;  %v7334_v16 = vsel %vm1189_vm3, %v14960_v51, 0.0  ;;  %v7053_v1 = vmul.f32 %v14956_v6, %v7017_v29 }
 0x8d2   : > { %v6985_v61 = vadd.f32 %v6953_v7, %v6885_v25  ;;  %v6487_v39 = vadd.f32 %v6455_v24, %v6387_v63  ;;  %v7368_v44 = vadd.f32 %v7367_v14, %v7366_v36  ;;  %v6956_v62 = vmul.f32 %v14423_v18, %v6920_v59  ;;  %v7019_v63 = vld [vmem:[#allocation2 + $0x19a] sm:$0xff] }
 0x8d3   : > { %v15260_v2 = vmax.f32 %v7124_v33, 0.0  ;;  %v6788_v0 = vadd.f32 %v6756_v5, %v6688_v60  ;;  %v7369_v35 = vsel %vm1189_vm3, %v15038_v47, 0.0  ;;  %v6655_v19 = vmul.f32 %v6917_v52, %v14398_v38  ;;  %v7409_v5 = vpop.permute.xlu1 %7408 }
 0x8d4   : > { %v7085_v45 = vadd.f32 %v7053_v1, %v6985_v61  ;;  %v6587_v57 = vadd.f32 %v6555_v48, %v6487_v39  ;;  %v7336_v46 = vsel %vm1189_vm3, %v15016_v11, 0.0  ;;  %v7371_v27 = vsel %vm1189_vm3, %v15092_v4, 0.0 }
 0x8d5   : > { %7452 = vrot.lane.b32.xlu1 %v15260_v2, %s11078_s22  ;;  %v6888_v36 = vadd.f32 %v6856_v53, %v6788_v0  ;;  %v7056_v14 = vmul.f32 %v14956_v6, %v7020_v41  ;;  %v6755_v12 = vmul.f32 %v7017_v29, %v14406_v20  ;;  %v6855_v38 = vmul.f32 %v14411_v54, %v6819_v3 }
 0x8d6   : > { %v7123_v15 = vadd.f32 %v14978_v42, %v7085_v45  ;;  %v6687_v7 = vadd.f32 %v6655_v19, %v6587_v57  ;;  %v7335_v52 = vadd.f32 %v7334_v16, %v15213_v37  ;;  %v7370_v30 = vadd.f32 %v7369_v35, %v7368_v44 }
 0x8d7   : > { %v7338_v25 = vsel %vm1189_vm3, %v15067_v58, 0.0  ;;  %v6988_v59 = vadd.f32 %v6956_v62, %v6888_v36  ;;  %v7373_v24 = vsel %vm1189_vm3, %v15148_v50, 0.0  ;;  %v6955_v60 = vmul.f32 %v14423_v18, %v6919_v34 }
 0x8d8   : > { %v15281_v48 = vmax.f32 %v7123_v15, 0.0  ;;  %v6787_v33 = vadd.f32 %v6755_v12, %v6687_v7  ;;  %v7337_v20 = vadd.f32 %v7336_v46, %v7335_v52  ;;  %v7372_v29 = vadd.f32 %v7371_v27, %v7370_v30 }
 0x8d9   : > { %v7088_v54 = vadd.f32 %v7056_v14, %v6988_v59  ;;  %v7407_v53 = vpop.permute.xlu0 %7406  ;;  %v7340_v37 = vsel %vm1189_vm3, %v15121_v55, 0.0  ;;  %v7375_v16 = vsel %vm1189_vm3, %v15217_v32, 0.0  ;;  %v7055_v1 = vmul.f32 %v14956_v6, %v7019_v63  ;;  %v16676_v63 = vld [vmem:[#allocation53_spill] sm:$0xff] }
 0x8da   : > { %7450 = vrot.lane.b32.xlu0 %v15281_v48, %s11078_s22  ;;  %v6887_v61 = vadd.f32 %v6855_v38, %v6787_v33  ;;  %10223 = vmatprep.mubr.msk.f32.mxu0 %vm1189_vm3, %v7407_v53  ;;  %v7339_v18 = vadd.f32 %v7338_v25, %v7337_v20  ;;  %v7374_v41 = vadd.f32 %v7373_v24, %v7372_v29  ;;  %v7342_v44 = vsel %vm1189_vm3, %v15186_v31, 0.0  ;;  %v16680_v53 = vld [vmem:[#allocation59_spill] sm:$0xff] }
 0x8db   : > { %v7126_v39 = vadd.f32 %v14978_v42, %v7088_v54  ;;  %10224 = vmatmul.mubr.msk.f32.gmra.mrb[102].mxu0 %vm1189_vm3, %v7409_v5  ;;  %v7377_v0 = vsel %vm1189_vm3, %v15260_v2, 0.0  ;;  %v7344_v6 = vsel %vm1189_vm3, %v15238_v23, 0.0  ;;  %v7346_v36 = vsel %vm1189_vm3, %v15281_v48, 0.0 }
 0x8dc   : > { %v6987_v62 = vadd.f32 %v6955_v60, %v6887_v61  ;;  %v7341_v3 = vadd.f32 %v7340_v37, %v7339_v18  ;;  %v7376_v35 = vadd.f32 %v7375_v16, %v7374_v41  ;;  %v16683_v37 = vld [vmem:[#allocation66_spill] sm:$0xff]  ;;  %v16684_v16 = vld [vmem:[#allocation63_spill] sm:$0xff]  ;;  %v16685_v18 = vld [vmem:[#allocation68_spill] sm:$0xff] }
 0x8dd   : > { %v15298_v45 = vmax.f32 %v7126_v39, 0.0  ;;  %v16686_v41 = vld [vmem:[#allocation65_spill] sm:$0xff]  ;;  %v16687_v39 = vld [vmem:[#allocation70_spill] sm:$0xff] }
 0x8de   : > { %v7087_v57 = vadd.f32 %v7055_v1, %v6987_v62  ;;  %v7343_v19 = vadd.f32 %v7342_v44, %v7341_v3  ;;  %v7378_v46 = vadd.f32 %v7377_v0, %v7376_v35  ;;  %v7413_v12 = vpop.permute.xlu1 %7412  ;;  %v16688_v44 = vld [vmem:[#allocation67_spill] sm:$0xff]  ;;  %v16689_v62 = vld [vmem:[#allocation72_spill] sm:$0xff]  ;;  %v16690_v35 = vld [vmem:[#allocation69_spill] sm:$0xff] }
 0x8df   : > { %7456 = vrot.lane.b32.xlu1 %v15298_v45, %s11078_s22  ;;  %v7379_v27 = vsel %vm1189_vm3, %v15298_v45, 0.0 }
 0x8e0   : > { %v7125_v14 = vadd.f32 %v14978_v42, %v7087_v57  ;;  %v7345_v34 = vadd.f32 %v7344_v6, %v7343_v19  ;;  %v7380_v15 = vadd.f32 %v7379_v27, %v7378_v46  ;;  %v16691_v6 = vld [vmem:[#allocation74_spill] sm:$0xff]  ;;  %v16692_v57 = vld [vmem:[#allocation71_spill] sm:$0xff]  ;;  %v16693_v19 = vld [vmem:[#allocation76_spill] sm:$0xff] }
 0x8e1   : > { %v16694_v46 = vld [vmem:[#allocation73_spill] sm:$0xff] }
 0x8e2   : > { %v15309_v7 = vmax.f32 %v7125_v14, 0.0  ;;  %v7347_v38 = vadd.f32 %v7346_v36, %v7345_v34  ;;  %v7411_v52 = vpop.permute.xlu0 %7410  ;;  %v7382_v42 = vsel %vm1189_vm3, %v7380_v15, 0.0  ;;  %v16695_v14 = vld [vmem:[#allocation54_spill] sm:$0xff]  ;;  %v16696_v34 = vld [vmem:[#allocation75_spill] sm:$0xff] }
 0x8e3   : > { %5084 = vrot.lane.b32.xlu1 %v13490_v28, %s11080_s1  ;;  %10226 = vmatprep.mubr.msk.f32.mxu0 %vm1189_vm3, %v7411_v52  ;;  %v16697_v15 = vld [vmem:[#allocation55_spill] sm:$0xff] }
 0x8e4   : > { %7454 = vrot.lane.b32.xlu0 %v15309_v7, %s11078_s22  ;;  %v7348_v30 = vsel %vm1189_vm3, %v15309_v7, 0.0  ;;  %10227 = vmatmul.mubr.msk.f32.gmra.mrb[104].mxu0 %vm1189_vm3, %v7413_v12  ;;  %v16698_v12 = vld [vmem:[#allocation58_spill] sm:$0xff] }
 0x8e5   : > { %v7349_v25 = vadd.f32 %v7348_v30, %v7347_v38  ;;  %v16699_v38 = vld [vmem:[#allocation77_spill] sm:$0xff]  ;;  %v16700_v30 = vld [vmem:[#allocation56_spill] sm:$0xff] }
 0x8e7   : > { %v7381_v59 = vsel %vm1189_vm3, %v7349_v25, 0.0  ;;  %5088 = vrot.lane.b32.xlu1 %v13533_v49, %s11080_s1  ;;  %v7417_v60 = vpop.permute.xlu1 %7416  ;;  %v16701_v25 = vld [vmem:[#allocation79_spill] sm:$0xff] }
 0x8e8   : > { %v7383_v28 = vadd.f32 %v7382_v42, %v7381_v59  ;;  %5082 = vrot.lane.b32.xlu0 %v16676_v63, %s11080_s1  ;;  %v16702_v59 = vld [vmem:[#allocation78_spill] sm:$0xff]  ;;  %v16704_v63 = vld [vmem:[#allocation80_spill] sm:$0xff] }
 0x8ea   : > { %v7384_v24 = vrot.slane %v7383_v28, 4 }
 0x8eb   : > { %5092 = vrot.lane.b32.xlu1 %v13607_v13, %s11080_s1 }
 0x8ec   : > { %v7385_v33 = vadd.f32 %v7384_v24, %v7383_v28  ;;  %5086 = vrot.lane.b32.xlu0 %v13519_v40, %s11080_s1  ;;  %v7415_v5 = vpop.permute.xlu0 %7414  ;;  %v16703_v28 = vld [vmem:[#allocation81_spill] sm:$0xff] }
 0x8ed   : > { %10229 = vmatprep.mubr.msk.f32.mxu0 %vm1189_vm3, %v7415_v5  ;;  %v16706_v5 = vld [vmem:[#allocation82_spill] sm:$0xff] }
 0x8ee   : > { %v7386_v20 = vrot.slane %v7385_v33, 2  ;;  %10230 = vmatmul.mubr.msk.f32.gmra.mrb[106].mxu0 %vm1189_vm3, %v7417_v60 }
 0x8ef   : > { %5096 = vrot.lane.b32.xlu1 %v13671_v8, %s11080_s1 }
 0x8f0   : > { %v7387_v49 = vadd.f32 %v7386_v20, %v7385_v33  ;;  %5090 = vrot.lane.b32.xlu0 %v13581_v22, %s11080_s1  ;;  %v16677_v22 = vld [vmem:[#allocation60_spill] sm:$0xff]  ;;  %v16705_v33 = vld [vmem:[#allocation83_spill] sm:$0xff]  ;;  %v16707_v20 = vld [vmem:[#allocation85_spill] sm:$0xff] }
 0x8f1   : > { %v7421_v54 = vpop.permute.xlu1 %7420 }
 0x8f2   : > { %v7388_v13 = vrot.slane %v7387_v49, 1 }
 0x8f3   : > { %5100 = vrot.lane.b32.xlu1 %v13711_v21, %s11080_s1  ;;  %v16678_v21 = vld [vmem:[#allocation57_spill] sm:$0xff] }
 0x8f4   : > { %v7389_v40 = vadd.f32 %v7388_v13, %v7387_v49  ;;  %5094 = vrot.lane.b32.xlu0 %v16645_v9, %s11080_s1  ;;  %v16708_v49 = vld [vmem:[#allocation84_spill] sm:$0xff]  ;;  %v16709_v13 = vld [vmem:[#allocation87_spill] sm:$0xff] }
 0x8f6   : > { %v7390_v29 = vmul.f32 0.00390625, %v7389_v40  ;;  %v16710_v40 = vld [vmem:[#allocation86_spill] sm:$0xff] }
 0x8f7   : > { %5104 = vrot.lane.b32.xlu1 %v13751_v17, %s11080_s1  ;;  %v7419_v8 = vpop.permute.xlu0 %7418 }
 0x8f8   : > { %5098 = vrot.lane.b32.xlu0 %v16647_v56, %s11080_s1  ;;  %7391 = vst.msk [vmem:[%s13077_s29 + $0x2] sm:$0x1] %vm2622_vm5, %v7390_v29  ;;  %10232 = vmatprep.mubr.msk.f32.mxu0 %vm1189_vm3, %v7419_v8  ;;  %v16679_v56 = vld [vmem:[#allocation62_spill] sm:$0xff]  ;;  %v16711_v8 = vld [vmem:[#allocation89_spill] sm:$0xff] }
 0x8f9   : > { %10233 = vmatmul.mubr.msk.f32.gmra.mrb[108].mxu0 %vm1189_vm3, %v7421_v54 }
 0x8fb   : > { %5108 = vrot.lane.b32.xlu1 %v16646_v43, %s11080_s1  ;;  %v16681_v43 = vld [vmem:[#allocation64_spill] sm:$0xff] }
 0x8fc   : > { %5102 = vrot.lane.b32.xlu0 %v16648_v10, %s11080_s1  ;;  %v7425_v17 = vpop.permute.xlu1 %7424  ;;  %v16682_v10 = vld [vmem:[#allocation61_spill] sm:$0xff] }
 0x8ff   : > { %5112 = vrot.lane.b32.xlu1 %v16677_v22, %s11080_s1  ;;  %v16712_v22 = vld [vmem:[#allocation88_spill] sm:$0xff] }
 0x900   : > { %5106 = vrot.lane.b32.xlu0 %v16678_v21, %s11080_s1 }
 0x901   : > { %v7423_v9 = vpop.permute.xlu0 %7422 }
 0x902   : > { %10235 = vmatprep.mubr.msk.f32.mxu0 %vm1189_vm3, %v7423_v9 }
 0x903   : > { %5116 = vrot.lane.b32.xlu1 %v16679_v56, %s11080_s1  ;;  %10236 = vmatmul.mubr.msk.f32.gmra.mrb[110].mxu0 %vm1189_vm3, %v7425_v17 }
 0x904   : > { %5110 = vrot.lane.b32.xlu0 %v16680_v53, %s11080_s1 }
 0x906   : > { %v7429_v61 = vpop.permute.xlu1 %7428 }
 0x907   : > { %5120 = vrot.lane.b32.xlu1 %v16681_v43, %s11080_s1 }
 0x908   : > { %5114 = vrot.lane.b32.xlu0 %v16682_v10, %s11080_s1 }
 0x90b   : > { %5124 = vrot.lane.b32.xlu1 %v16683_v37, %s11080_s1 }
 0x90c   : > { %5118 = vrot.lane.b32.xlu0 %v16684_v16, %s11080_s1  ;;  %v7427_v1 = vpop.permute.xlu0 %7426 }
 0x90d   : > { %10238 = vmatprep.mubr.msk.f32.mxu0 %vm1189_vm3, %v7427_v1 }
 0x90e   : > { %10239 = vmatmul.mubr.msk.f32.gmra.mrb[112].mxu0 %vm1189_vm3, %v7429_v61 }
 0x90f   : > { %5128 = vrot.lane.b32.xlu1 %v16685_v18, %s11080_s1 }
 0x910   : > { %5122 = vrot.lane.b32.xlu0 %v16686_v41, %s11080_s1 }
 0x912   : > { %v7433_v0 = vpop.permute.xlu1 %7432 }
 0x913   : > { %5132 = vrot.lane.b32.xlu1 %v16687_v39, %s11080_s1 }
 0x914   : > { %5126 = vrot.lane.b32.xlu0 %v16688_v44, %s11080_s1 }
 0x917   : > { %5136 = vrot.lane.b32.xlu1 %v16689_v62, %s11080_s1  ;;  %v7431_v3 = vpop.permute.xlu0 %7430 }
 0x918   : > { %5130 = vrot.lane.b32.xlu0 %v16690_v35, %s11080_s1  ;;  %10241 = vmatprep.mubr.msk.f32.mxu0 %vm1189_vm3, %v7431_v3  ;;  %v7779_v35 = vld [vmem:[#allocation24] sm:$0xff] }
 0x919   : > { %10242 = vmatmul.mubr.msk.f32.gmra.mrb[114].mxu0 %vm1189_vm3, %v7433_v0 }
 0x91b   : > { %5140 = vrot.lane.b32.xlu1 %v16691_v6, %s11080_s1 }
 0x91c   : > { %5134 = vrot.lane.b32.xlu0 %v16692_v57, %s11080_s1  ;;  %v7437_v27 = vpop.permute.xlu1 %7436 }
 0x91f   : > { %5144 = vrot.lane.b32.xlu1 %v16693_v19, %s11080_s1  ;;  %v7783_v19 = vld [vmem:[#allocation2 + $0x8] sm:$0xff] }
 0x920   : > { %5138 = vrot.lane.b32.xlu0 %v16694_v46, %s11080_s1  ;;  %v16713_v46 = vld [vmem:[#allocation45_spill] sm:$0xff] }
 0x922   : > { %v7435_v36 = vpop.permute.xlu0 %7434 }
 0x923   : > { %7193 = vrot.lane.b32.xlu1 %v16695_v14, %s11081_s16  ;;  %10244 = vmatprep.mubr.msk.f32.mxu0 %vm1189_vm3, %v7435_v36  ;;  %v16714_v36 = vld [vmem:[#allocation46_spill] sm:$0xff] }
 0x924   : > { %5142 = vrot.lane.b32.xlu0 %v16696_v34, %s11080_s1  ;;  %10245 = vmatmul.mubr.msk.f32.gmra.mrb[116].mxu0 %vm1189_vm3, %v7437_v27  ;;  %v15534_v27 = vrot.slane %v7779_v35, %v16713_v46  ;;  %v15537_v14 = vrot.slane %v7779_v35, %v16714_v36  ;;  %v7883_v34 = vld [vmem:[#allocation2 + $0x9] sm:$0xff]  ;;  %s16346_s1 = scalar_lea.hbm %s16724_s23, %s9563_s21 }
 0x927   : > { %7197 = vrot.lane.b32.xlu1 %v16697_v15, %s11081_s16  ;;  %v7441_v52 = vpop.permute.xlu1 %7440  ;;  %v7782_v15 = vld [vmem:[#allocation2] sm:$0xff] }
 0x928   : > { %7191 = vrot.lane.b32.xlu0 %v16698_v12, %s11081_s16  ;;  %v7882_v12 = vld [vmem:[#allocation2 + $0x1] sm:$0xff] }
 0x92b   : > { %7201 = vrot.lane.b32.xlu1 %v16699_v38, %s11081_s16 }
 0x92c   : > { %7195 = vrot.lane.b32.xlu0 %v16700_v30, %s11081_s16  ;;  %v7439_v42 = vpop.permute.xlu0 %7438  ;;  %v16715_v30 = vld [vmem:[#allocation47_spill] sm:$0xff] }
 0x92d   : > { %10247 = vmatprep.mubr.msk.f32.mxu0 %vm1189_vm3, %v7439_v42  ;;  %v15542_v42 = vrot.slane %v7779_v35, %v16715_v30 }
 0x92e   : > { %10248 = vmatmul.mubr.msk.f32.gmra.mrb[118].mxu0 %vm1189_vm3, %v7441_v52 }
 0x92f   : > { %7205 = vrot.lane.b32.xlu1 %v16701_v25, %s11081_s16 }
 0x930   : > { %7199 = vrot.lane.b32.xlu0 %v16702_v59, %s11081_s16  ;;  %v7819_v59 = vmul.f32 %v15534_v27, %v7783_v19 }
 0x931   : > { %v7445_v24 = vpop.permute.xlu1 %7444 }
 0x933   : > { %7209 = vrot.lane.b32.xlu1 %v16703_v28, %s11081_s16  ;;  %v7919_v28 = vmul.f32 %v15537_v14, %v7883_v34 }
 0x934   : > { %7203 = vrot.lane.b32.xlu0 %v16704_v63, %s11081_s16  ;;  %v7818_v63 = vmul.f32 %v15534_v27, %v7782_v15 }
 0x937   : > { %7213 = vrot.lane.b32.xlu1 %v16705_v33, %s11081_s16  ;;  %v7443_v60 = vpop.permute.xlu0 %7442 }
 0x938   : > { %7207 = vrot.lane.b32.xlu0 %v16706_v5, %s11081_s16  ;;  %10250 = vmatprep.mubr.msk.f32.mxu0 %vm1189_vm3, %v7443_v60  ;;  %v7983_v60 = vld [vmem:[#allocation2 + $0xa] sm:$0xff]  ;;  %v7982_v5 = vld [vmem:[#allocation2 + $0x2] sm:$0xff] }
 0x939   : > { %10251 = vmatmul.mubr.msk.f32.gmra.mrb[120].mxu0 %vm1189_vm3, %v7445_v24  ;;  %v7918_v24 = vmul.f32 %v15537_v14, %v7882_v12 }
 0x93b   : > { %7217 = vrot.lane.b32.xlu1 %v16707_v20, %s11081_s16 }
 0x93c   : > { %7211 = vrot.lane.b32.xlu0 %v16708_v49, %s11081_s16  ;;  %v7449_v29 = vpop.permute.xlu1 %7448 }
 0x93f   : > { %7221 = vrot.lane.b32.xlu1 %v16709_v13, %s11081_s16 }
 0x940   : > { %7215 = vrot.lane.b32.xlu0 %v16710_v40, %s11081_s16  ;;  %v7447_v54 = vpop.permute.xlu0 %7446  ;;  %v7951_v40 = vadd.f32 %v7919_v28, %v7819_v59 }
 0x941   : > { %10253 = vmatprep.mubr.msk.f32.mxu0 %vm1189_vm3, %v7447_v54  ;;  %v7950_v54 = vadd.f32 %v7918_v24, %v7818_v63 }
 0x942   : > { %10254 = vmatmul.mubr.msk.f32.gmra.mrb[122].mxu0 %vm1189_vm3, %v7449_v29  ;;  %v8019_v29 = vmul.f32 %v15542_v42, %v7983_v60 }
 0x943   : > { %7225 = vrot.lane.b32.xlu1 %v16711_v8, %s11081_s16  ;;  %v8018_v8 = vmul.f32 %v15542_v42, %v7982_v5 }
 0x944   : > { %7219 = vrot.lane.b32.xlu0 %v16712_v22, %s11081_s16 }
 0x947   : > { %7229 = vrot.lane.b32.xlu1 %v14985_v26, %s11081_s16  ;;  %v7453_v21 = vpop.permute.xlu1 %7452 }
 0x948   : > { %7223 = vrot.lane.b32.xlu0 %v14960_v51, %s11081_s16 }
 0x94b   : > { %7233 = vrot.lane.b32.xlu1 %v15038_v47, %s11081_s16 }
 0x94c   : > { %7227 = vrot.lane.b32.xlu0 %v15016_v11, %s11081_s16  ;;  %v7451_v17 = vpop.permute.xlu0 %7450 }
 0x94d   : > { %10256 = vmatprep.mubr.msk.f32.mxu0 %vm1189_vm3, %v7451_v17  ;;  %v16716_v17 = vld [vmem:[#allocation48_spill] sm:$0xff] }
 0x94e   : > { %10257 = vmatmul.mubr.msk.f32.gmra.mrb[124].mxu0 %vm1189_vm3, %v7453_v21 }
 0x94f   : > { %7237 = vrot.lane.b32.xlu1 %v15092_v4, %s11081_s16 }
 0x950   : > { %7231 = vrot.lane.b32.xlu0 %v15067_v58, %s11081_s16 }
 0x951   : > { %v7457_v51 = vpop.permute.xlu1 %7456 }
 0x953   : > { %7241 = vrot.lane.b32.xlu1 %v15148_v50, %s11081_s16 }
 0x954   : > { %7235 = vrot.lane.b32.xlu0 %v15121_v55, %s11081_s16 }
 0x955   : > { %v5085_v47 = vpop.permute.xlu1 %5084 }
 0x956   : > { %v7455_v26 = vpop.permute.xlu0 %7454  ;;  %5179 = vst.msk [vmem:[%s12289_s27 + $0x8] sm:$0xff] %vm3527_vm6, %v5085_v47  ;;  %v16717_v47 = vld [vmem:[#allocation49_spill] sm:$0xff] }
 0x957   : > { %10259 = vmatprep.mubr.msk.f32.mxu0 %vm1189_vm3, %v7455_v26  ;;  %7245 = vrot.lane.b32.xlu1 %v15217_v32, %s11081_s16  ;;  %v15564_v26 = vrot.slane %v7779_v35, %v16717_v47 }
 0x958   : > { %7239 = vrot.lane.b32.xlu0 %v15186_v31, %s11081_s16  ;;  %10260 = vmatmul.mubr.msk.f32.gmra.mrb[126].mxu0 %vm1189_vm3, %v7457_v51  ;;  %v15561_v51 = vrot.slane %v7779_v35, %v16716_v17 }
 0x959   : > { %v5089_v4 = vpop.permute.xlu1 %5088 }
 0x95a   : > { %v5083_v11 = vpop.permute.xlu0 %5082  ;;  %5181 = vst.msk [vmem:[%s12289_s27 + $0x18] sm:$0xff] %vm3527_vm6, %v5089_v4 }
 0x95b   : > { %5178 = vst.msk [vmem:[%s12289_s27] sm:$0xff] %vm3527_vm6, %v5083_v11  ;;  %7249 = vrot.lane.b32.xlu1 %v15260_v2, %s11081_s16  ;;  %v16718_v11 = vld [vmem:[#allocation50_spill] sm:$0xff] }
 0x95c   : > { %7243 = vrot.lane.b32.xlu0 %v15238_v23, %s11081_s16 }
 0x95d   : > { %v5093_v58 = vpop.permute.xlu1 %5092 }
 0x95e   : > { %v5087_v55 = vpop.permute.xlu0 %5086  ;;  %5183 = vst.msk [vmem:[%s12289_s27 + $0x28] sm:$0xff] %vm3527_vm6, %v5093_v58  ;;  %v15569_v58 = vrot.slane %v7779_v35, %v16718_v11 }
 0x95f   : > { %5180 = vst.msk [vmem:[%s12289_s27 + $0x10] sm:$0xff] %vm3527_vm6, %v5087_v55  ;;  %7253 = vrot.lane.b32.xlu1 %v15298_v45, %s11081_s16 }
 0x960   : > { %7247 = vrot.lane.b32.xlu0 %v15281_v48, %s11081_s16 }
 0x961   : > { %v5097_v50 = vpop.permute.xlu1 %5096 }
 0x962   : > { %v5091_v31 = vpop.permute.xlu0 %5090  ;;  %5185 = vst.msk [vmem:[%s12289_s27 + $0x38] sm:$0xff] %vm3527_vm6, %v5097_v50  ;;  %v8051_v50 = vadd.f32 %v8019_v29, %v7951_v40 }
 0x963   : > { %5182 = vst.msk [vmem:[%s12289_s27 + $0x20] sm:$0xff] %vm3527_vm6, %v5091_v31 }
 0x964   : > { %7251 = vrot.lane.b32.xlu0 %v15309_v7, %s11081_s16  ;;  %s8992_s16 = scalar_lea.sflag [#allocation29], %s11602_s26 }
 0x965   : > { %v5101_v32 = vpop.permute.xlu1 %5100 }
 0x966   : > { %v5095_v23 = vpop.permute.xlu0 %5094  ;;  %5187 = vst.msk [vmem:[%s12289_s27 + $0x48] sm:$0xff] %vm3527_vm6, %v5101_v32 }
 0x967   : > { %5184 = vst.msk [vmem:[%s12289_s27 + $0x30] sm:$0xff] %vm3527_vm6, %v5095_v23  ;;  %v8050_v23 = vadd.f32 %v8018_v8, %v7950_v54 }
 0x969   : > { %v5105_v2 = vpop.permute.xlu1 %5104 }
 0x96a   : > { %v5099_v48 = vpop.permute.xlu0 %5098  ;;  %5189 = vst.msk [vmem:[%s12289_s27 + $0x58] sm:$0xff] %vm3527_vm6, %v5105_v2 }
 0x96b   : > { %5186 = vst.msk [vmem:[%s12289_s27 + $0x40] sm:$0xff] %vm3527_vm6, %v5099_v48 }
 0x96d   : > { %v5109_v45 = vpop.permute.xlu1 %5108 }
 0x96e   : > { %v5103_v9 = vpop.permute.xlu0 %5102  ;;  %5191 = vst.msk [vmem:[%s12289_s27 + $0x68] sm:$0xff] %vm3527_vm6, %v5109_v45  ;;  %v16719_v45 = vld [vmem:[#allocation52_spill] sm:$0xff] }
 0x96f   : > { %5188 = vst.msk [vmem:[%s12289_s27 + $0x50] sm:$0xff] %vm3527_vm6, %v5103_v9  ;;  %v15575_v9 = vrot.slane %v7779_v35, %v16719_v45 }
 0x971   : > { %v5113_v7 = vpop.permute.xlu1 %5112 }
 0x972   : > { %v5107_v56 = vpop.permute.xlu0 %5106  ;;  %5193 = vst.msk [vmem:[%s12289_s27 + $0x78] sm:$0xff] %vm3527_vm6, %v5113_v7  ;;  %v16720_v7 = vld [vmem:[#allocation51_spill] sm:$0xff] }
 0x973   : > { %5190 = vst.msk [vmem:[%s12289_s27 + $0x60] sm:$0xff] %vm3527_vm6, %v5107_v56  ;;  %v15578_v56 = vrot.slane %v7779_v35, %v16720_v7 }
 0x975   : > { %v5117_v53 = vpop.permute.xlu1 %5116 }
 0x976   : > { %v5111_v43 = vpop.permute.xlu0 %5110  ;;  %5195 = vst.msk [vmem:[%s12289_s27 + $0x88] sm:$0xff] %vm3527_vm6, %v5117_v53 }
 0x977   : > { %5192 = vst.msk [vmem:[%s12289_s27 + $0x70] sm:$0xff] %vm3527_vm6, %v5111_v43 }
 0x979   : > { %v5121_v10 = vpop.permute.xlu1 %5120 }
 0x97a   : > { %v5115_v37 = vpop.permute.xlu0 %5114  ;;  %5197 = vst.msk [vmem:[%s12289_s27 + $0x98] sm:$0xff] %vm3527_vm6, %v5121_v10 }
 0x97b   : > { %5194 = vst.msk [vmem:[%s12289_s27 + $0x80] sm:$0xff] %vm3527_vm6, %v5115_v37 }
 0x97d   : > { %v5125_v16 = vpop.permute.xlu1 %5124 }
 0x97e   : > { %v5119_v61 = vpop.permute.xlu0 %5118  ;;  %5199 = vst.msk [vmem:[%s12289_s27 + $0xa8] sm:$0xff] %vm3527_vm6, %v5125_v16  ;;  %v15582_v16 = vld [vmem:[#allocation24 + $0x8] ss:$0 sm:$0xff] }
 0x97f   : > { %5196 = vst.msk [vmem:[%s12289_s27 + $0x90] sm:$0xff] %vm3527_vm6, %v5119_v61 }
 0x981   : > { %v5129_v1 = vpop.permute.xlu1 %5128 }
 0x982   : > { %v5123_v18 = vpop.permute.xlu0 %5122  ;;  %5201 = vst.msk [vmem:[%s12289_s27 + $0xb8] sm:$0xff] %vm3527_vm6, %v5129_v1 }
 0x983   : > { %5198 = vst.msk [vmem:[%s12289_s27 + $0xa0] sm:$0xff] %vm3527_vm6, %v5123_v18 }
 0x985   : > { %v5133_v41 = vpop.permute.xlu1 %5132 }
 0x986   : > { %v5127_v39 = vpop.permute.xlu0 %5126  ;;  %5203 = vst.msk [vmem:[%s12289_s27 + $0xc8] sm:$0xff] %vm3527_vm6, %v5133_v41 }
 0x987   : > { %5200 = vst.msk [vmem:[%s12289_s27 + $0xb0] sm:$0xff] %vm3527_vm6, %v5127_v39 }
 0x989   : > { %v5137_v44 = vpop.permute.xlu1 %5136 }
 0x98a   : > { %v5131_v0 = vpop.permute.xlu0 %5130  ;;  %5205 = vst.msk [vmem:[%s12289_s27 + $0xd8] sm:$0xff] %vm3527_vm6, %v5137_v44 }
 0x98b   : > { %5202 = vst.msk [vmem:[%s12289_s27 + $0xc0] sm:$0xff] %vm3527_vm6, %v5131_v0 }
 0x98d   : > { %v5141_v62 = vpop.permute.xlu1 %5140 }
 0x98e   : > { %v5135_v3 = vpop.permute.xlu0 %5134  ;;  %5207 = vst.msk [vmem:[%s12289_s27 + $0xe8] sm:$0xff] %vm3527_vm6, %v5141_v62 }
 0x98f   : > { %5204 = vst.msk [vmem:[%s12289_s27 + $0xd0] sm:$0xff] %vm3527_vm6, %v5135_v3 }
 0x991   : > { %v5145_v6 = vpop.permute.xlu1 %5144 }
 0x992   : > { %v5139_v57 = vpop.permute.xlu0 %5138  ;;  %5209 = vst.msk [vmem:[%s12289_s27 + $0xf8] sm:$0xff] %vm3527_vm6, %v5145_v6 }
 0x993   : > { %5206 = vst.msk [vmem:[%s12289_s27 + $0xe0] sm:$0xff] %vm3527_vm6, %v5139_v57 }
 0x995   : > { %v7194_v38 = vpop.permute.xlu1 %7193 }
 0x996   : > { %v5143_v52 = vpop.permute.xlu0 %5142  ;;  %7288 = vst.msk [vmem:[%s12289_s27 + $0x8] sm:$0xff] %vm4044_vm7, %v7194_v38  ;;  %v10216_v25 = vpop.f32.mrb[96].mxu0 }
 0x997   : > { %5208 = vst.msk [vmem:[%s12289_s27 + $0xf0] sm:$0xff] %vm3527_vm6, %v5143_v52  ;;  %v7588_v33 = vpop.f32.mrb[97].mxu0 }
 0x998   : > { %7748 = vst.msk [vmem:[#allocation2 + $0x21] sm:$0xff] %vm1189_vm3, %v10216_v25  ;;  %7747 = vst.msk [vmem:[#allocation2 + $0x19] sm:$0xff] %vm1189_vm3, %v7588_v33 }
 0x999   : > { %v7198_v20 = vpop.permute.xlu1 %7197 }
 0x99a   : > { %v7192_v49 = vpop.permute.xlu0 %7191  ;;  %7290 = vst.msk [vmem:[%s12289_s27 + $0x18] sm:$0xff] %vm4044_vm7, %v7198_v20  ;;  %v10219_v13 = vpop.f32.mrb[98].mxu0 }
 0x99b   : > { %7287 = vst.msk [vmem:[%s12289_s27] sm:$0xff] %vm4044_vm7, %v7192_v49  ;;  %v7598_v22 = vpop.f32.mrb[99].mxu0 }
 0x99c   : > { %7750 = vst.msk [vmem:[#allocation2 + $0x39] sm:$0xff] %vm1189_vm3, %v10219_v13  ;;  %7749 = vst.msk [vmem:[#allocation2 + $0x31] sm:$0xff] %vm1189_vm3, %v7598_v22 }
 0x99d   : > { %v7202_v21 = vpop.permute.xlu1 %7201 }
 0x99e   : > { %v7196_v4 = vpop.permute.xlu0 %7195  ;;  %7292 = vst.msk [vmem:[%s12289_s27 + $0x28] sm:$0xff] %vm4044_vm7, %v7202_v21 }
 0x99f   : > { %7289 = vst.msk [vmem:[%s12289_s27 + $0x10] sm:$0xff] %vm4044_vm7, %v7196_v4  ;;  %v8183_v31 = vld [vmem:[#allocation2 + $0x21] sm:$0xff]  ;;  %v8082_v53 = vld [vmem:[#allocation2 + $0x18] sm:$0xff] }
 0x9a0   : > { %v10222_v55 = vpop.f32.mrb[100].mxu0  ;;  %v8283_v32 = vld [vmem:[#allocation2 + $0x22] sm:$0xff]  ;;  %v8182_v43 = vld [vmem:[#allocation2 + $0x19] sm:$0xff]  ;;  %v7921_v10 = vmul.f32 %v8183_v31, %v15537_v14  ;;  %v8219_v1 = vmul.f32 %v15564_v26, %v8183_v31  ;;  %v8118_v18 = vmul.f32 %v15561_v51, %v8082_v53  ;;  %v7820_v35 = vmul.f32 %v8082_v53, %v15534_v27 }
 0x9a1   : > { %7752 = vst.msk [vmem:[#allocation2 + $0x51] sm:$0xff] %vm1189_vm3, %v10222_v55  ;;  %v7608_v2 = vpop.f32.mrb[101].mxu0  ;;  %v8083_v48 = vld [vmem:[#allocation2 + $0x20] sm:$0xff]  ;;  %v7206_v37 = vpop.permute.xlu1 %7205  ;;  %v8319_v0 = vmul.f32 %v15569_v58, %v8283_v32  ;;  %v8218_v62 = vmul.f32 %v15564_v26, %v8182_v43  ;;  %v8021_v3 = vmul.f32 %v8283_v32, %v15542_v42  ;;  %v7920_v34 = vmul.f32 %v8182_v43, %v15537_v14 }
 0x9a2   : > { %7751 = vst.msk [vmem:[#allocation2 + $0x49] sm:$0xff] %vm1189_vm3, %v7608_v2  ;;  %v8119_v61 = vmul.f32 %v15561_v51, %v8083_v48  ;;  %v8282_v41 = vld [vmem:[#allocation2 + $0x1a] sm:$0xff]  ;;  %v7821_v39 = vmul.f32 %v8083_v48, %v15534_v27  ;;  %v7200_v44 = vpop.permute.xlu0 %7199  ;;  %v8150_v46 = vadd.f32 %v8118_v18, %v8050_v23 }
 0x9a3   : > { %7294 = vst.msk [vmem:[%s12289_s27 + $0x38] sm:$0xff] %vm4044_vm7, %v7206_v37  ;;  %7291 = vst.msk [vmem:[%s12289_s27 + $0x20] sm:$0xff] %vm4044_vm7, %v7200_v44  ;;  %v8483_v57 = vld [vmem:[#allocation2 + $0x39] sm:$0xff]  ;;  %v8318_v52 = vmul.f32 %v15569_v58, %v8282_v41  ;;  %v15603_v30 = vld [vmem:[#allocation2 + $0x30] sm:$0xff]  ;;  %v8020_v25 = vmul.f32 %v8282_v41, %v15542_v42  ;;  %v7952_v17 = vadd.f32 %v7920_v34, %v7820_v35 }
 0x9a4   : > { %v8151_v6 = vadd.f32 %v8119_v61, %v8051_v50  ;;  %v15596_v19 = vld [vmem:[#allocation2 + $0x3a] sm:$0xff]  ;;  %v7953_v36 = vadd.f32 %v7921_v10, %v7821_v39  ;;  %v8519_v12 = vmul.f32 %v15578_v56, %v8483_v57  ;;  %v8250_v24 = vadd.f32 %v8218_v62, %v8150_v46  ;;  %v15609_v60 = vld [vmem:[#allocation2 + $0x31] sm:$0xff]  ;;  %v15655_v62 = vld [vmem:[#allocation26] ss:$0 sm:$0xff] }
 0x9a5   : > { %v8383_v15 = vld [vmem:[#allocation2 + $0x38] sm:$0xff]  ;;  %v8619_v38 = vmul.f32 %v15582_v16, %v15596_v19  ;;  %v7210_v59 = vpop.permute.xlu1 %7209  ;;  %v8418_v33 = vmul.f32 %v15575_v9, %v15603_v30  ;;  %v8221_v40 = vmul.f32 %v8483_v57, %v15564_v26  ;;  %v8321_v29 = vmul.f32 %v15596_v19, %v15569_v58 }
 0x9a6   : > { %v8251_v28 = vadd.f32 %v8219_v1, %v8151_v6  ;;  %v8419_v63 = vmul.f32 %v15575_v9, %v8383_v15  ;;  %v15611_v5 = vld [vmem:[#allocation2 + $0x32] sm:$0xff]  ;;  %v7204_v20 = vpop.permute.xlu0 %7203  ;;  %7296 = vst.msk [vmem:[%s12289_s27 + $0x48] sm:$0xff] %vm4044_vm7, %v7210_v59  ;;  %v8053_v49 = vadd.f32 %v8021_v3, %v7953_v36  ;;  %v8121_v13 = vmul.f32 %v8383_v15, %v15561_v51 }
 0x9a7   : > { %7293 = vst.msk [vmem:[%s12289_s27 + $0x30] sm:$0xff] %vm4044_vm7, %v7204_v20  ;;  %v8350_v8 = vadd.f32 %v8318_v52, %v8250_v24  ;;  %v8120_v47 = vmul.f32 %v15603_v30, %v15561_v51  ;;  %v8518_v4 = vmul.f32 %v15578_v56, %v15609_v60  ;;  %v8618_v11 = vmul.f32 %v15582_v16, %v15611_v5 }
 0x9a8   : > { %v8351_v54 = vadd.f32 %v8319_v0, %v8251_v28  ;;  %v15621_v22 = vld [vmem:[#allocation2 + $0x51] sm:$0xff]  ;;  %v8153_v55 = vadd.f32 %v8121_v13, %v8053_v49  ;;  %v8052_v7 = vadd.f32 %v8020_v25, %v7952_v17  ;;  %v8220_v61 = vmul.f32 %v15609_v60, %v15564_v26 }
 0x9a9   : > { %v15623_v21 = vld [vmem:[#allocation2 + $0x52] sm:$0xff]  ;;  %v8521_v31 = vmul.f32 %v15578_v56, %v15621_v22  ;;  %v15635_v32 = vld [vmem:[#allocation2 + $0x48] sm:$0xff]  ;;  %v7214_v23 = vpop.permute.xlu1 %7213  ;;  %v8450_v48 = vadd.f32 %v8418_v33, %v8350_v8  ;;  %v8320_v1 = vmul.f32 %v15611_v5, %v15569_v58  ;;  %v7823_v6 = vmul.f32 %v8383_v15, %v15534_v27 }
 0x9aa   : > { %v15631_v50 = vld [vmem:[#allocation2 + $0x50] sm:$0xff]  ;;  %v8451_v2 = vadd.f32 %v8419_v63, %v8351_v54  ;;  %v8621_v45 = vmul.f32 %v15582_v16, %v15623_v21  ;;  %v7208_v43 = vpop.permute.xlu0 %7207  ;;  %7298 = vst.msk [vmem:[%s12289_s27 + $0x58] sm:$0xff] %vm4044_vm7, %v7214_v23  ;;  %v8253_v10 = vadd.f32 %v8221_v40, %v8153_v55  ;;  %v8152_v44 = vadd.f32 %v8120_v47, %v8052_v7 }
 0x9ab   : > { %v15639_v53 = vld [vmem:[#allocation2 + $0x49] sm:$0xff]  ;;  %v8421_v37 = vmul.f32 %v15575_v9, %v15631_v50  ;;  %7295 = vst.msk [vmem:[%s12289_s27 + $0x40] sm:$0xff] %vm4044_vm7, %v7208_v43  ;;  %v8550_v39 = vadd.f32 %v8518_v4, %v8450_v48  ;;  %v8420_v0 = vmul.f32 %v15575_v9, %v15635_v32  ;;  %v7923_v46 = vmul.f32 %v8483_v57, %v15537_v14 }
 0x9ac   : > { %v15649_v18 = vld [vmem:[#allocation2 + $0x4a] sm:$0xff]  ;;  %v8551_v41 = vadd.f32 %v8519_v12, %v8451_v2  ;;  %v8353_v3 = vadd.f32 %v8321_v29, %v8253_v10  ;;  %v8520_v35 = vmul.f32 %v15578_v56, %v15639_v53  ;;  %v8252_v12 = vadd.f32 %v8220_v61, %v8152_v44 }
 0x9ad   : > { %v7218_v36 = vpop.permute.xlu1 %7217  ;;  %v8650_v52 = vadd.f32 %v8618_v11, %v8550_v39  ;;  %v8620_v25 = vmul.f32 %v15582_v16, %v15649_v18  ;;  %v7955_v24 = vadd.f32 %v7923_v46, %v7823_v6  ;;  %v8023_v33 = vmul.f32 %v15596_v19, %v15542_v42 }
 0x9ae   : > { %v8651_v34 = vadd.f32 %v8619_v38, %v8551_v41  ;;  %v7212_v59 = vpop.permute.xlu0 %7211  ;;  %7300 = vst.msk [vmem:[%s12289_s27 + $0x68] sm:$0xff] %vm4044_vm7, %v7218_v36  ;;  %v10225_v28 = vpop.f32.mrb[102].mxu0  ;;  %v8453_v63 = vadd.f32 %v8421_v37, %v8353_v3  ;;  %v8123_v15 = vmul.f32 %v15631_v50, %v15561_v51  ;;  %v8352_v49 = vadd.f32 %v8320_v1, %v8252_v12 }
 0x9af   : > { %7297 = vst.msk [vmem:[%s12289_s27 + $0x50] sm:$0xff] %vm4044_vm7, %v7212_v59  ;;  %v7618_v57 = vpop.f32.mrb[103].mxu0  ;;  %v8688_v20 = vadd.f32 %v15655_v62, %v8650_v52  ;;  %v7822_v13 = vmul.f32 %v15603_v30, %v15534_v27  ;;  %v8055_v40 = vadd.f32 %v8023_v33, %v7955_v24  ;;  %v8223_v29 = vmul.f32 %v15621_v22, %v15564_v26 }
 0x9b0   : > { %7754 = vst.msk [vmem:[#allocation2 + $0x69] sm:$0xff] %vm1189_vm3, %v10225_v28  ;;  %v8689_v38 = vadd.f32 %v15655_v62, %v8651_v34  ;;  %7753 = vst.msk [vmem:[#allocation2 + $0x61] sm:$0xff] %vm1189_vm3, %v7618_v57  ;;  %v8553_v19 = vadd.f32 %v8521_v31, %v8453_v63  ;;  %v7922_v54 = vmul.f32 %v15609_v60, %v15537_v14 }
 0x9b1   : > { %v7222_v8 = vpop.permute.xlu1 %7221  ;;  %v8720_v47 = vmax.f32 %v8688_v20, 0.0  ;;  %v8452_v4 = vadd.f32 %v8420_v0, %v8352_v49  ;;  %v8022_v11 = vmul.f32 %v15611_v5, %v15542_v42  ;;  %v8155_v23 = vadd.f32 %v8123_v15, %v8055_v40 }
 0x9b2   : > { %v8721_v17 = vmax.f32 %v8689_v38, 0.0  ;;  %v7216_v55 = vpop.permute.xlu0 %7215  ;;  %7302 = vst.msk [vmem:[%s12289_s27 + $0x78] sm:$0xff] %vm4044_vm7, %v7222_v8  ;;  %v8653_v30 = vadd.f32 %v8621_v45, %v8553_v19  ;;  %v7954_v31 = vadd.f32 %v7922_v54, %v7822_v13  ;;  %v8122_v2 = vmul.f32 %v15635_v32, %v15561_v51 }
 0x9b3   : > { %7299 = vst.msk [vmem:[%s12289_s27 + $0x60] sm:$0xff] %vm4044_vm7, %v7216_v55  ;;  %8784 = vrot.lane.b32.xlu0 %v8720_v47, %s11082_s18  ;;  %v8552_v5 = vadd.f32 %v8520_v35, %v8452_v4  ;;  %v8323_v48 = vmul.f32 %v15623_v21, %v15569_v58  ;;  %v8222_v45 = vmul.f32 %v15639_v53, %v15564_v26  ;;  %v8913_v1 = vsel %vm1189_vm3, %v8720_v47, 0.0 }
 0x9b4   : > { %8786 = vrot.lane.b32.xlu1 %v8721_v17, %s11082_s18  ;;  %v8944_v60 = vsel %vm1189_vm3, %v8721_v17, 0.0  ;;  %v8691_v7 = vadd.f32 %v15655_v62, %v8653_v30  ;;  %v8255_v43 = vadd.f32 %v8223_v29, %v8155_v23  ;;  %v8054_v10 = vadd.f32 %v8022_v11, %v7954_v31 }
 0x9b5   : > { %v7825_v37 = vmul.f32 %v15631_v50, %v15534_v27  ;;  %v7226_v61 = vpop.permute.xlu1 %7225  ;;  %v8652_v41 = vadd.f32 %v8620_v25, %v8552_v5  ;;  %v8322_v39 = vmul.f32 %v15649_v18, %v15569_v58  ;;  %v7925_v44 = vmul.f32 %v15621_v22, %v15537_v14 }
 0x9b6   : > { %v7220_v0 = vpop.permute.xlu0 %7219  ;;  %7304 = vst.msk [vmem:[%s12289_s27 + $0x88] sm:$0xff] %vm4044_vm7, %v7226_v61  ;;  %v8723_v3 = vmax.f32 %v8691_v7, 0.0  ;;  %v8355_v35 = vadd.f32 %v8323_v48, %v8255_v43  ;;  %v8154_v36 = vadd.f32 %v8122_v2, %v8054_v10  ;;  %v8025_v50 = vmul.f32 %v15623_v21, %v15542_v42 }
 0x9b7   : > { %v8487_v6 = vld [vmem:[#allocation2 + $0x69] sm:$0xff]  ;;  %7301 = vst.msk [vmem:[%s12289_s27 + $0x70] sm:$0xff] %vm4044_vm7, %v7220_v0  ;;  %v8690_v34 = vadd.f32 %v15655_v62, %v8652_v41  ;;  %v15713_v12 = vld [vmem:[#allocation2 + $0x60] sm:$0xff]  ;;  %v7957_v22 = vadd.f32 %v7925_v44, %v7825_v37  ;;  %v7824_v25 = vmul.f32 %v15635_v32, %v15534_v27  ;;  %v7924_v59 = vmul.f32 %v15639_v53, %v15537_v14  ;;  %v10228_v28 = vpop.f32.mrb[104].mxu0 }
 0x9b8   : > { %v15706_v46 = vld [vmem:[#allocation2 + $0x6a] sm:$0xff]  ;;  %8790 = vrot.lane.b32.xlu1 %v8723_v3, %s11082_s18  ;;  %v8945_v21 = vsel %vm1189_vm3, %v8723_v3, 0.0  ;;  %v8523_v24 = vmul.f32 %v15578_v56, %v8487_v6  ;;  %v8254_v33 = vadd.f32 %v8222_v45, %v8154_v36  ;;  %v8486_v15 = vld [vmem:[#allocation2 + $0x61] sm:$0xff]  ;;  %7756 = vst.msk [vmem:[#allocation2 + $0x81] sm:$0xff] %vm1189_vm3, %v10228_v28  ;;  %v7628_v32 = vpop.f32.mrb[105].mxu0  ;;  %v8422_v49 = vmul.f32 %v15575_v9, %v15713_v12 }
 0x9b9   : > { %v8387_v52 = vld [vmem:[#allocation2 + $0x68] sm:$0xff]  ;;  %v7230_v57 = vpop.permute.xlu1 %7229  ;;  %v15724_v38 = vadd.f32 %v8945_v21, %v8944_v60  ;;  %v8722_v53 = vmax.f32 %v8690_v34, 0.0  ;;  %v8623_v20 = vmul.f32 %v15582_v16, %v15706_v46  ;;  %7755 = vst.msk [vmem:[#allocation2 + $0x79] sm:$0xff] %vm1189_vm3, %v7628_v32  ;;  %v8057_v54 = vadd.f32 %v8025_v50, %v7957_v22 }
 0x9ba   : > { %v8423_v63 = vmul.f32 %v15575_v9, %v8387_v52  ;;  %v7224_v13 = vpop.permute.xlu0 %7223  ;;  %7306 = vst.msk [vmem:[%s12289_s27 + $0x98] sm:$0xff] %vm4044_vm7, %v7230_v57  ;;  %v8354_v40 = vadd.f32 %v8322_v39, %v8254_v33  ;;  %v15733_v29 = vld [vmem:[#allocation2 + $0x62] sm:$0xff]  ;;  %v8125_v8 = vmul.f32 %v8387_v52, %v15561_v51  ;;  %v8522_v47 = vmul.f32 %v15578_v56, %v8486_v15 }
 0x9bb   : > { %7303 = vst.msk [vmem:[%s12289_s27 + $0x80] sm:$0xff] %vm4044_vm7, %v7224_v13  ;;  %8788 = vrot.lane.b32.xlu0 %v8722_v53, %s11082_s18  ;;  %v8914_v17 = vsel %vm1189_vm3, %v8722_v53, 0.0  ;;  %v8225_v4 = vmul.f32 %v8487_v6, %v15564_v26  ;;  %v7956_v11 = vadd.f32 %v7924_v59, %v7824_v25  ;;  %v8622_v60 = vmul.f32 %v15582_v16, %v15733_v29 }
 0x9bc   : > { %v8455_v19 = vadd.f32 %v8423_v63, %v8355_v35  ;;  %v15742_v55 = vadd.f32 %v8914_v17, %v8913_v1  ;;  %v8454_v23 = vadd.f32 %v8422_v49, %v8354_v40  ;;  %v8157_v31 = vadd.f32 %v8125_v8, %v8057_v54 }
 0x9bd   : > { %v7234_v2 = vpop.permute.xlu1 %7233  ;;  %v8325_v5 = vmul.f32 %v15706_v46, %v15569_v58  ;;  %v8024_v48 = vmul.f32 %v15649_v18, %v15542_v42  ;;  %v8124_v45 = vmul.f32 %v15713_v12, %v15561_v51  ;;  %v7827_v61 = vmul.f32 %v8387_v52, %v15534_v27 }
 0x9be   : > { %v8555_v30 = vadd.f32 %v8523_v24, %v8455_v19  ;;  %v7228_v7 = vpop.permute.xlu0 %7227  ;;  %7308 = vst.msk [vmem:[%s12289_s27 + $0xa8] sm:$0xff] %vm4044_vm7, %v7234_v2  ;;  %v8554_v10 = vadd.f32 %v8522_v47, %v8454_v23  ;;  %v8257_v37 = vadd.f32 %v8225_v4, %v8157_v31  ;;  %v8224_v41 = vmul.f32 %v8486_v15, %v15564_v26 }
 0x9bf   : > { %7305 = vst.msk [vmem:[%s12289_s27 + $0x90] sm:$0xff] %vm4044_vm7, %v7228_v7  ;;  %v8056_v1 = vadd.f32 %v8024_v48, %v7956_v11  ;;  %v8324_v39 = vmul.f32 %v15733_v29, %v15569_v58  ;;  %v7927_v18 = vmul.f32 %v8487_v6, %v15537_v14  ;;  %v8489_v35 = vld [vmem:[#allocation2 + $0x81] sm:$0xff]  ;;  %v8027_v50 = vmul.f32 %v15706_v46, %v15542_v42 }
 0x9c0   : > { %v8655_v43 = vadd.f32 %v8623_v20, %v8555_v30  ;;  %v8654_v0 = vadd.f32 %v8622_v60, %v8554_v10  ;;  %v8357_v3 = vadd.f32 %v8325_v5, %v8257_v37  ;;  %v15762_v36 = vld [vmem:[#allocation2 + $0x82] sm:$0xff]  ;;  %v15766_v25 = vld [vmem:[#allocation2 + $0x78] sm:$0xff]  ;;  %v7826_v6 = vmul.f32 %v15713_v12, %v15534_v27 }
 0x9c1   : > { %v7238_v34 = vpop.permute.xlu1 %7237  ;;  %v8389_v52 = vld [vmem:[#allocation2 + $0x80] sm:$0xff]  ;;  %v8156_v22 = vadd.f32 %v8124_v45, %v8056_v1  ;;  %v7959_v59 = vadd.f32 %v7927_v18, %v7827_v61  ;;  %v7926_v28 = vmul.f32 %v8486_v15, %v15537_v14  ;;  %v10231_v63 = vpop.f32.mrb[106].mxu0  ;;  %v8525_v57 = vmul.f32 %v15578_v56, %v8489_v35 }
 0x9c2   : > { %v8693_v44 = vadd.f32 %v15655_v62, %v8655_v43  ;;  %v7232_v21 = vpop.permute.xlu0 %7231  ;;  %7310 = vst.msk [vmem:[%s12289_s27 + $0xb8] sm:$0xff] %vm4044_vm7, %v7238_v34  ;;  %v8692_v33 = vadd.f32 %v15655_v62, %v8654_v0  ;;  %v8425_v46 = vmul.f32 %v15575_v9, %v8389_v52  ;;  %v15776_v32 = vld [vmem:[#allocation2 + $0x79] sm:$0xff]  ;;  %v7638_v12 = vpop.f32.mrb[107].mxu0  ;;  %v8625_v15 = vmul.f32 %v15582_v16, %v15762_v36 }
 0x9c3   : > { %7307 = vst.msk [vmem:[%s12289_s27 + $0xa0] sm:$0xff] %vm4044_vm7, %v7232_v21  ;;  %v8256_v53 = vadd.f32 %v8224_v41, %v8156_v22  ;;  %v8424_v20 = vmul.f32 %v15575_v9, %v15766_v25  ;;  %v8059_v49 = vadd.f32 %v8027_v50, %v7959_v59  ;;  %v8127_v54 = vmul.f32 %v8389_v52, %v15561_v51  ;;  %v15794_v11 = vld [vmem:[#allocation2 + $0x7a] sm:$0xff] }
 0x9c4   : > { %v8725_v24 = vmax.f32 %v8693_v44, 0.0  ;;  %7758 = vst.msk [vmem:[#allocation2 + $0x99] sm:$0xff] %vm1189_vm3, %v10231_v63  ;;  %7757 = vst.msk [vmem:[#allocation2 + $0x91] sm:$0xff] %vm1189_vm3, %v7638_v12  ;;  %v8724_v19 = vmax.f32 %v8692_v33, 0.0  ;;  %v8457_v40 = vadd.f32 %v8425_v46, %v8357_v3  ;;  %v8524_v4 = vmul.f32 %v15578_v56, %v15776_v32 }
 0x9c5   : > { %v7242_v8 = vpop.permute.xlu1 %7241  ;;  %v8356_v47 = vadd.f32 %v8324_v39, %v8256_v53  ;;  %v8227_v30 = vmul.f32 %v8489_v35, %v15564_v26  ;;  %v8159_v60 = vadd.f32 %v8127_v54, %v8059_v49  ;;  %v7958_v5 = vadd.f32 %v7926_v28, %v7826_v6 }
 0x9c6   : > { %8794 = vrot.lane.b32.xlu1 %v8725_v24, %s11082_s18  ;;  %v8947_v13 = vsel %vm1189_vm3, %v8725_v24, 0.0  ;;  %v7236_v23 = vpop.permute.xlu0 %7235  ;;  %7312 = vst.msk [vmem:[%s12289_s27 + $0xc8] sm:$0xff] %vm4044_vm7, %v7242_v8  ;;  %8792 = vrot.lane.b32.xlu0 %v8724_v19, %s11082_s18  ;;  %v8916_v31 = vsel %vm1189_vm3, %v8724_v19, 0.0  ;;  %v8557_v2 = vadd.f32 %v8525_v57, %v8457_v40  ;;  %v8026_v45 = vmul.f32 %v15733_v29, %v15542_v42 }
 0x9c7   : > { %v15790_v17 = vadd.f32 %v8947_v13, %v15724_v38  ;;  %7309 = vst.msk [vmem:[%s12289_s27 + $0xb0] sm:$0xff] %vm4044_vm7, %v7236_v23  ;;  %v15804_v38 = vadd.f32 %v8916_v31, %v15742_v55  ;;  %v8456_v48 = vadd.f32 %v8424_v20, %v8356_v47  ;;  %v8126_v7 = vmul.f32 %v15766_v25, %v15561_v51 }
 0x9c8   : > { %v8657_v43 = vadd.f32 %v8625_v15, %v8557_v2  ;;  %v8624_v10 = vmul.f32 %v15582_v16, %v15794_v11  ;;  %v8259_v37 = vadd.f32 %v8227_v30, %v8159_v60  ;;  %v8327_v61 = vmul.f32 %v15762_v36, %v15569_v58 }
 0x9c9   : > { %v7246_v1 = vpop.permute.xlu1 %7245  ;;  %v8556_v41 = vadd.f32 %v8524_v4, %v8456_v48  ;;  %v8058_v55 = vadd.f32 %v8026_v45, %v7958_v5  ;;  %v7829_v39 = vmul.f32 %v8389_v52, %v15534_v27  ;;  %v7929_v18 = vmul.f32 %v8489_v35, %v15537_v14 }
 0x9ca   : > { %v7240_v29 = vpop.permute.xlu0 %7239  ;;  %7314 = vst.msk [vmem:[%s12289_s27 + $0xd8] sm:$0xff] %vm4044_vm7, %v7246_v1  ;;  %v8695_v44 = vadd.f32 %v15655_v62, %v8657_v43  ;;  %v8359_v0 = vadd.f32 %v8327_v61, %v8259_v37  ;;  %v8226_v34 = vmul.f32 %v15776_v32, %v15564_v26  ;;  %v8326_v22 = vmul.f32 %v15794_v11, %v15569_v58 }
 0x9cb   : > { %v8491_v3 = vld [vmem:[#allocation2 + $0x99] sm:$0xff]  ;;  %7311 = vst.msk [vmem:[%s12289_s27 + $0xc0] sm:$0xff] %vm4044_vm7, %v7240_v29  ;;  %v8656_v52 = vadd.f32 %v8624_v10, %v8556_v41  ;;  %v8158_v35 = vadd.f32 %v8126_v7, %v8058_v55  ;;  %v15827_v6 = vld [vmem:[#allocation2 + $0x90] sm:$0xff]  ;;  %v8029_v21 = vmul.f32 %v15762_v36, %v15542_v42  ;;  %v7828_v63 = vmul.f32 %v15766_v25, %v15534_v27 }
 0x9cc   : > { %v15819_v50 = vld [vmem:[#allocation2 + $0x9a] sm:$0xff]  ;;  %v15829_v28 = vld [vmem:[#allocation2 + $0x91] sm:$0xff]  ;;  %v8727_v24 = vmax.f32 %v8695_v44, 0.0  ;;  %v8527_v46 = vmul.f32 %v15578_v56, %v8491_v3  ;;  %v10234_v15 = vpop.f32.mrb[108].mxu0  ;;  %v8426_v36 = vmul.f32 %v15575_v9, %v15827_v6  ;;  %v7961_v25 = vadd.f32 %v7929_v18, %v7829_v39 }
 0x9cd   : > { %v8391_v59 = vld [vmem:[#allocation2 + $0x98] sm:$0xff]  ;;  %v8627_v57 = vmul.f32 %v15582_v16, %v15819_v50  ;;  %v7250_v12 = vpop.permute.xlu1 %7249  ;;  %v8694_v53 = vadd.f32 %v15655_v62, %v8656_v52  ;;  %v8258_v20 = vadd.f32 %v8226_v34, %v8158_v35  ;;  %7760 = vst.msk [vmem:[#allocation2 + $0xb1] sm:$0xff] %vm1189_vm3, %v10234_v15  ;;  %v7648_v19 = vpop.f32.mrb[109].mxu0  ;;  %v8526_v8 = vmul.f32 %v15578_v56, %v15829_v28 }
 0x9ce   : > { %v8427_v33 = vmul.f32 %v15575_v9, %v8391_v59  ;;  %v15842_v49 = vld [vmem:[#allocation2 + $0x92] sm:$0xff]  ;;  %v7244_v13 = vpop.permute.xlu0 %7243  ;;  %7316 = vst.msk [vmem:[%s12289_s27 + $0xe8] sm:$0xff] %vm4044_vm7, %v7250_v12  ;;  %8798 = vrot.lane.b32.xlu1 %v8727_v24, %s11082_s18  ;;  %v8949_v40 = vsel %vm1189_vm3, %v8727_v24, 0.0  ;;  %v8129_v47 = vmul.f32 %v8391_v59, %v15561_v51  ;;  %v8061_v31 = vadd.f32 %v8029_v21, %v7961_v25 }
 0x9cf   : > { %7313 = vst.msk [vmem:[%s12289_s27 + $0xd0] sm:$0xff] %vm4044_vm7, %v7244_v13  ;;  %v8950_v4 = vadd.f32 %v8949_v40, %v15790_v17  ;;  %v8726_v30 = vmax.f32 %v8694_v53, 0.0  ;;  %v8358_v23 = vadd.f32 %v8326_v22, %v8258_v20  ;;  %v8626_v60 = vmul.f32 %v15582_v16, %v15842_v49 }
 0x9d0   : > { %v8459_v54 = vadd.f32 %v8427_v33, %v8359_v0  ;;  %7759 = vst.msk [vmem:[#allocation2 + $0xa9] sm:$0xff] %vm1189_vm3, %v7648_v19  ;;  %v8229_v5 = vmul.f32 %v8491_v3, %v15564_v26  ;;  %v7928_v48 = vmul.f32 %v15776_v32, %v15537_v14  ;;  %v8161_v17 = vadd.f32 %v8129_v47, %v8061_v31 }
 0x9d1   : > { %v7254_v45 = vpop.permute.xlu1 %7253  ;;  %8796 = vrot.lane.b32.xlu0 %v8726_v30, %s11082_s18  ;;  %v8918_v7 = vsel %vm1189_vm3, %v8726_v30, 0.0  ;;  %v8458_v43 = vadd.f32 %v8426_v36, %v8358_v23  ;;  %v8028_v10 = vmul.f32 %v15794_v11, %v15542_v42  ;;  %v8128_v32 = vmul.f32 %v15827_v6, %v15561_v51 }
 0x9d2   : > { %v8559_v2 = vadd.f32 %v8527_v46, %v8459_v54  ;;  %v7248_v37 = vpop.permute.xlu0 %7247  ;;  %7318 = vst.msk [vmem:[%s12289_s27 + $0xf8] sm:$0xff] %vm4044_vm7, %v7254_v45  ;;  %v8919_v61 = vadd.f32 %v8918_v7, %v15804_v38  ;;  %v7960_v41 = vadd.f32 %v7928_v48, %v7828_v63  ;;  %v8261_v39 = vadd.f32 %v8229_v5, %v8161_v17 }
 0x9d3   : > { %7315 = vst.msk [vmem:[%s12289_s27 + $0xe0] sm:$0xff] %vm4044_vm7, %v7248_v37  ;;  %v8558_v55 = vadd.f32 %v8526_v8, %v8458_v43  ;;  %v8329_v18 = vmul.f32 %v15819_v50, %v15569_v58  ;;  %v8228_v11 = vmul.f32 %v15829_v28, %v15564_v26  ;;  %v7831_v38 = vmul.f32 %v8391_v59, %v15534_v27 }
 0x9d4   : > { %v8659_v1 = vadd.f32 %v8627_v57, %v8559_v2  ;;  %v8060_v44 = vadd.f32 %v8028_v10, %v7960_v41  ;;  %v7931_v0 = vmul.f32 %v8491_v3, %v15537_v14  ;;  %v8493_v52 = vld [vmem:[#allocation2 + $0xb1] sm:$0xff]  ;;  %v8328_v21 = vmul.f32 %v15842_v49, %v15569_v58 }
 0x9d5   : > { %v8658_v34 = vadd.f32 %v8626_v60, %v8558_v55  ;;  %v8361_v22 = vadd.f32 %v8329_v18, %v8261_v39  ;;  %v8593_v35 = vld [vmem:[#allocation2 + $0xb2] sm:$0xff]  ;;  %v8031_v63 = vmul.f32 %v15819_v50, %v15542_v42  ;;  %v7830_v59 = vmul.f32 %v15827_v6, %v15534_v27 }
 0x9d6   : > { %v8697_v29 = vadd.f32 %v15655_v62, %v8659_v1  ;;  %v7252_v24 = vpop.permute.xlu0 %7251  ;;  %v8160_v57 = vadd.f32 %v8128_v32, %v8060_v44  ;;  %v7930_v3 = vmul.f32 %v15829_v28, %v15537_v14  ;;  %v10237_v15 = vpop.f32.mrb[110].mxu0  ;;  %v8529_v50 = vmul.f32 %v15578_v56, %v8493_v52 }
 0x9d7   : > { %v8393_v46 = vld [vmem:[#allocation2 + $0xb0] sm:$0xff]  ;;  %v8392_v12 = vld [vmem:[#allocation2 + $0xa8] sm:$0xff]  ;;  %7317 = vst.msk [vmem:[%s12289_s27 + $0xf0] sm:$0xff] %vm4044_vm7, %v7252_v24  ;;  %v8696_v53 = vadd.f32 %v15655_v62, %v8658_v34  ;;  %v8629_v36 = vmul.f32 %v15582_v16, %v8593_v35  ;;  %v7658_v13 = vpop.f32.mrb[111].mxu0  ;;  %v7963_v40 = vadd.f32 %v7931_v0, %v7831_v38  ;;  %v8231_v5 = vmul.f32 %v8493_v52, %v15564_v26 }
 0x9d8   : > { %v8729_v33 = vmax.f32 %v8697_v29, 0.0  ;;  %v8429_v20 = vmul.f32 %v15575_v9, %v8393_v46  ;;  %v15893_v25 = vld [vmem:[#allocation2 + $0xa9] sm:$0xff]  ;;  %7762 = vst.msk [vmem:[#allocation2 + $0xc9] sm:$0xff] %vm1189_vm3, %v10237_v15  ;;  %v8260_v28 = vadd.f32 %v8228_v11, %v8160_v57  ;;  %v8428_v19 = vmul.f32 %v15575_v9, %v8392_v12  ;;  %7761 = vst.msk [vmem:[#allocation2 + $0xc1] sm:$0xff] %vm1189_vm3, %v7658_v13 }
 0x9d9   : > { %v8728_v8 = vmax.f32 %v8696_v53, 0.0  ;;  %v8131_v30 = vmul.f32 %v8393_v46, %v15561_v51  ;;  %v8528_v31 = vmul.f32 %v15578_v56, %v15893_v25  ;;  %v15903_v2 = vld [vmem:[#allocation2 + $0xaa] sm:$0xff]  ;;  %v8063_v60 = vadd.f32 %v8031_v63, %v7963_v40 }
 0x9da   : > { %8802 = vrot.lane.b32.xlu1 %v8729_v33, %s11082_s18  ;;  %v8951_v6 = vsel %vm1189_vm3, %v8729_v33, 0.0  ;;  %v8461_v47 = vadd.f32 %v8429_v20, %v8361_v22  ;;  %v8360_v23 = vadd.f32 %v8328_v21, %v8260_v28  ;;  %v7962_v7 = vadd.f32 %v7930_v3, %v7830_v59 }
 0x9db   : > { %v8952_v54 = vadd.f32 %v8951_v6, %v8950_v4  ;;  %8800 = vrot.lane.b32.xlu0 %v8728_v8, %s11082_s18  ;;  %v8920_v48 = vsel %vm1189_vm3, %v8728_v8, 0.0  ;;  %v8030_v4 = vmul.f32 %v15842_v49, %v15542_v42  ;;  %v8163_v10 = vadd.f32 %v8131_v30, %v8063_v60 }
 0x9dc   : > { %v8561_v45 = vadd.f32 %v8529_v50, %v8461_v47  ;;  %v8921_v43 = vadd.f32 %v8920_v48, %v8919_v61  ;;  %v8460_v17 = vadd.f32 %v8428_v19, %v8360_v23  ;;  %v8130_v37 = vmul.f32 %v8392_v12, %v15561_v51 }
 0x9dd   : > { %v8628_v41 = vmul.f32 %v15582_v16, %v15903_v2  ;;  %v8331_v32 = vmul.f32 %v8593_v35, %v15569_v58  ;;  %v8062_v55 = vadd.f32 %v8030_v4, %v7962_v7  ;;  %v8263_v18 = vadd.f32 %v8231_v5, %v8163_v10 }
 0x9de   : > { %v8661_v1 = vadd.f32 %v8629_v36, %v8561_v45  ;;  %v8560_v39 = vadd.f32 %v8528_v31, %v8460_v17  ;;  %v7833_v11 = vmul.f32 %v8393_v46, %v15534_v27  ;;  %v7933_v29 = vmul.f32 %v8493_v52, %v15537_v14 }
 0x9df   : > { %v8495_v61 = vld [vmem:[#allocation2 + $0xc9] sm:$0xff]  ;;  %v8162_v38 = vadd.f32 %v8130_v37, %v8062_v55  ;;  %v8230_v0 = vmul.f32 %v15893_v25, %v15564_v26  ;;  %v8330_v34 = vmul.f32 %v15903_v2, %v15569_v58  ;;  %v8363_v21 = vadd.f32 %v8331_v32, %v8263_v18  ;;  %v8394_v24 = vld [vmem:[#allocation2 + $0xc0] sm:$0xff] }
 0x9e0   : > { %v8699_v49 = vadd.f32 %v15655_v62, %v8661_v1  ;;  %v8595_v44 = vld [vmem:[#allocation2 + $0xca] sm:$0xff]  ;;  %v8660_v22 = vadd.f32 %v8628_v41, %v8560_v39  ;;  %v8033_v33 = vmul.f32 %v8593_v35, %v15542_v42  ;;  %v7832_v46 = vmul.f32 %v8392_v12, %v15534_v27  ;;  %v8494_v15 = vld [vmem:[#allocation2 + $0xc1] sm:$0xff] }
 0x9e1   : > { %v8395_v63 = vld [vmem:[#allocation2 + $0xc8] sm:$0xff]  ;;  %v8531_v59 = vmul.f32 %v15578_v56, %v8495_v61  ;;  %v8262_v3 = vadd.f32 %v8230_v0, %v8162_v38  ;;  %v10240_v53 = vpop.f32.mrb[112].mxu0  ;;  %v8631_v50 = vmul.f32 %v15582_v16, %v8595_v44  ;;  %v8430_v36 = vmul.f32 %v15575_v9, %v8394_v24 }
 0x9e2   : > { %v8731_v52 = vmax.f32 %v8699_v49, 0.0  ;;  %v8431_v57 = vmul.f32 %v15575_v9, %v8395_v63  ;;  %v8698_v20 = vadd.f32 %v15655_v62, %v8660_v22  ;;  %v15928_v13 = vld [vmem:[#allocation2 + $0xc2] sm:$0xff]  ;;  %v7965_v6 = vadd.f32 %v7933_v29, %v7833_v11  ;;  %7764 = vst.msk [vmem:[#allocation2 + $0xe1] sm:$0xff] %vm1189_vm3, %v10240_v53  ;;  %v7668_v35 = vpop.f32.mrb[113].mxu0 }
 0x9e3   : > { %v8362_v19 = vadd.f32 %v8330_v34, %v8262_v3  ;;  %v8133_v40 = vmul.f32 %v8395_v63, %v15561_v51  ;;  %7763 = vst.msk [vmem:[#allocation2 + $0xd9] sm:$0xff] %vm1189_vm3, %v7668_v35  ;;  %v8530_v30 = vmul.f32 %v15578_v56, %v8494_v15  ;;  %v8630_v5 = vmul.f32 %v15582_v16, %v15928_v13 }
 0x9e4   : > { %8806 = vrot.lane.b32.xlu1 %v8731_v52, %s11082_s18  ;;  %v8953_v12 = vsel %vm1189_vm3, %v8731_v52, 0.0  ;;  %v8463_v28 = vadd.f32 %v8431_v57, %v8363_v21  ;;  %v8730_v47 = vmax.f32 %v8698_v20, 0.0  ;;  %v8065_v23 = vadd.f32 %v8033_v33, %v7965_v6 }
 0x9e5   : > { %v8954_v8 = vadd.f32 %v8953_v12, %v8952_v54  ;;  %v8462_v60 = vadd.f32 %v8430_v36, %v8362_v19  ;;  %v7932_v48 = vmul.f32 %v15893_v25, %v15537_v14  ;;  %v8233_v4 = vmul.f32 %v8495_v61, %v15564_v26 }
 0x9e6   : > { %v8563_v31 = vadd.f32 %v8531_v59, %v8463_v28  ;;  %8804 = vrot.lane.b32.xlu0 %v8730_v47, %s11082_s18  ;;  %v8922_v45 = vsel %vm1189_vm3, %v8730_v47, 0.0  ;;  %v8165_v7 = vadd.f32 %v8133_v40, %v8065_v23  ;;  %v8032_v54 = vmul.f32 %v15903_v2, %v15542_v42 }
 0x9e7   : > { %v8923_v17 = vadd.f32 %v8922_v45, %v8921_v43  ;;  %v8562_v37 = vadd.f32 %v8530_v30, %v8462_v60  ;;  %v7964_v1 = vadd.f32 %v7932_v48, %v7832_v46  ;;  %v8333_v32 = vmul.f32 %v8595_v44, %v15569_v58 }
 0x9e8   : > { %v8663_v10 = vadd.f32 %v8631_v50, %v8563_v31  ;;  %v8265_v41 = vadd.f32 %v8233_v4, %v8165_v7  ;;  %v8132_v55 = vmul.f32 %v8394_v24, %v15561_v51  ;;  %v7835_v25 = vmul.f32 %v8395_v63, %v15534_v27 }
 0x9e9   : > { %v8662_v18 = vadd.f32 %v8630_v5, %v8562_v37  ;;  %v8064_v11 = vadd.f32 %v8032_v54, %v7964_v1  ;;  %v7935_v29 = vmul.f32 %v8495_v61, %v15537_v14  ;;  %v8497_v38 = vld [vmem:[#allocation2 + $0xe1] sm:$0xff]  ;;  %v8232_v43 = vmul.f32 %v8494_v15, %v15564_v26 }
 0x9ea   : > { %v8701_v39 = vadd.f32 %v15655_v62, %v8663_v10  ;;  %v8365_v49 = vadd.f32 %v8333_v32, %v8265_v41  ;;  %v8597_v2 = vld [vmem:[#allocation2 + $0xe2] sm:$0xff]  ;;  %v8332_v0 = vmul.f32 %v15928_v13, %v15569_v58  ;;  %v8035_v34 = vmul.f32 %v8595_v44, %v15542_v42  ;;  %v8396_v33 = vld [vmem:[#allocation2 + $0xd8] sm:$0xff] }
 0x9eb   : > { %v8700_v21 = vadd.f32 %v15655_v62, %v8662_v18  ;;  %v8397_v63 = vld [vmem:[#allocation2 + $0xe0] sm:$0xff]  ;;  %v7834_v46 = vmul.f32 %v8394_v24, %v15534_v27  ;;  %v7934_v52 = vmul.f32 %v8494_v15, %v15537_v14  ;;  %v8533_v59 = vmul.f32 %v15578_v56, %v8497_v38 }
 0x9ec   : > { %v8733_v22 = vmax.f32 %v8701_v39, 0.0  ;;  %v10243_v61 = vpop.f32.mrb[114].mxu0  ;;  %v8433_v57 = vmul.f32 %v15575_v9, %v8397_v63  ;;  %v8633_v3 = vmul.f32 %v15582_v16, %v8597_v2  ;;  %v8164_v53 = vadd.f32 %v8132_v55, %v8064_v11  ;;  %v8496_v20 = vld [vmem:[#allocation2 + $0xd9] sm:$0xff] }
 0x9ed   : > { %v15960_v50 = vld [vmem:[#allocation2 + $0xda] sm:$0xff]  ;;  %7766 = vst.msk [vmem:[#allocation2 + $0xf9] sm:$0xff] %vm1189_vm3, %v10243_v61  ;;  %v7678_v44 = vpop.f32.mrb[115].mxu0  ;;  %v8732_v36 = vmax.f32 %v8700_v21, 0.0  ;;  %v8432_v15 = vmul.f32 %v15575_v9, %v8396_v33  ;;  %v7967_v6 = vadd.f32 %v7935_v29, %v7835_v25  ;;  %v8135_v19 = vmul.f32 %v8397_v63, %v15561_v51 }
 0x9ee   : > { %8810 = vrot.lane.b32.xlu1 %v8733_v22, %s11082_s18  ;;  %v8955_v24 = vsel %vm1189_vm3, %v8733_v22, 0.0  ;;  %7765 = vst.msk [vmem:[#allocation2 + $0xf1] sm:$0xff] %vm1189_vm3, %v7678_v44  ;;  %v8465_v12 = vadd.f32 %v8433_v57, %v8365_v49  ;;  %v8264_v28 = vadd.f32 %v8232_v43, %v8164_v53  ;;  %v8532_v47 = vmul.f32 %v15578_v56, %v8496_v20 }
 0x9ef   : > { %v8956_v35 = vadd.f32 %v8955_v24, %v8954_v8  ;;  %8808 = vrot.lane.b32.xlu0 %v8732_v36, %s11082_s18  ;;  %v8924_v40 = vsel %vm1189_vm3, %v8732_v36, 0.0  ;;  %v8632_v30 = vmul.f32 %v15582_v16, %v15960_v50  ;;  %v8067_v23 = vadd.f32 %v8035_v34, %v7967_v6 }
 0x9f0   : > { %v15973_v31 = vadd.f32 %v8924_v40, %v8923_v17  ;;  %v8565_v60 = vadd.f32 %v8533_v59, %v8465_v12  ;;  %v8364_v5 = vadd.f32 %v8332_v0, %v8264_v28  ;;  %v7966_v48 = vadd.f32 %v7934_v52, %v7834_v46 }
 0x9f1   : > { %v8167_v8 = vadd.f32 %v8135_v19, %v8067_v23  ;;  %v8235_v45 = vmul.f32 %v8497_v38, %v15564_v26  ;;  %v8034_v7 = vmul.f32 %v15928_v13, %v15542_v42  ;;  %v8134_v4 = vmul.f32 %v8396_v33, %v15561_v51 }
 0x9f2   : > { %v8665_v54 = vadd.f32 %v8633_v3, %v8565_v60  ;;  %v8464_v10 = vadd.f32 %v8432_v15, %v8364_v5  ;;  %v8335_v37 = vmul.f32 %v8597_v2, %v15569_v58  ;;  %v8234_v1 = vmul.f32 %v8496_v20, %v15564_v26 }
 0x9f3   : > { %v8267_v41 = vadd.f32 %v8235_v45, %v8167_v8  ;;  %v8066_v17 = vadd.f32 %v8034_v7, %v7966_v48  ;;  %v7837_v32 = vmul.f32 %v8397_v63, %v15534_v27  ;;  %v7937_v55 = vmul.f32 %v8497_v38, %v15537_v14  ;;  %v16018_v45 = vld [vmem:[#allocation24 + $0x8] ss:$0 sm:$0xff] }
 0x9f4   : > { %v8703_v25 = vadd.f32 %v15655_v62, %v8665_v54  ;;  %v8564_v39 = vadd.f32 %v8532_v47, %v8464_v10  ;;  %v8499_v18 = vld [vmem:[#allocation2 + $0xf9] sm:$0xff]  ;;  %v8334_v13 = vmul.f32 %v15960_v50, %v15569_v58  ;;  %v8037_v29 = vmul.f32 %v8597_v2, %v15542_v42 }
 0x9f5   : > { %v15984_v11 = vld [vmem:[#allocation2 + $0xfa] sm:$0xff]  ;;  %v8367_v49 = vadd.f32 %v8335_v37, %v8267_v41  ;;  %v8166_v0 = vadd.f32 %v8134_v4, %v8066_v17  ;;  %v15989_v34 = vld [vmem:[#allocation2 + $0xf0] sm:$0xff]  ;;  %v7836_v22 = vmul.f32 %v8396_v33, %v15534_v27  ;;  %v7936_v38 = vmul.f32 %v8496_v20, %v15537_v14 }
 0x9f6   : > { %v8399_v43 = vld [vmem:[#allocation2 + $0xf8] sm:$0xff]  ;;  %v8735_v21 = vmax.f32 %v8703_v25, 0.0  ;;  %v8664_v63 = vadd.f32 %v8632_v30, %v8564_v39  ;;  %v8535_v52 = vmul.f32 %v15578_v56, %v8499_v18  ;;  %v8635_v2 = vmul.f32 %v15582_v16, %v15984_v11 }
 0x9f7   : > { %v8435_v46 = vmul.f32 %v15575_v9, %v8399_v43  ;;  %v15995_v61 = vld [vmem:[#allocation2 + $0xf1] sm:$0xff]  ;;  %v10246_v57 = vpop.f32.mrb[116].mxu0  ;;  %v8266_v59 = vadd.f32 %v8234_v1, %v8166_v0  ;;  %v8434_v3 = vmul.f32 %v15575_v9, %v15989_v34  ;;  %v7969_v53 = vadd.f32 %v7937_v55, %v7837_v32 }
 0x9f8   : > { %7768 = vst.msk [vmem:[#allocation2 + $0x111] sm:$0xff] %vm1189_vm3, %v10246_v57  ;;  %v7688_v33 = vpop.f32.mrb[117].mxu0  ;;  %8814 = vrot.lane.b32.xlu1 %v8735_v21, %s11082_s18  ;;  %v8957_v20 = vsel %vm1189_vm3, %v8735_v21, 0.0  ;;  %v8702_v44 = vadd.f32 %v15655_v62, %v8664_v63  ;;  %v8137_v36 = vmul.f32 %v8399_v43, %v15561_v51  ;;  %v8534_v6 = vmul.f32 %v15578_v56, %v15995_v61  ;;  %v16009_v12 = vld [vmem:[#allocation2 + $0xf2] sm:$0xff] }
 0x9f9   : > { %v8467_v24 = vadd.f32 %v8435_v46, %v8367_v49  ;;  %7767 = vst.msk [vmem:[#allocation2 + $0x109] sm:$0xff] %vm1189_vm3, %v7688_v33  ;;  %v8958_v16 = vadd.f32 %v8957_v20, %v8956_v35  ;;  %v8366_v15 = vadd.f32 %v8334_v13, %v8266_v59  ;;  %v8069_v28 = vadd.f32 %v8037_v29, %v7969_v53 }
 0x9fa   : > { %v8734_v19 = vmax.f32 %v8702_v44, 0.0  ;;  %v8237_v47 = vmul.f32 %v8499_v18, %v15564_v26  ;;  %v7968_v30 = vadd.f32 %v7936_v38, %v7836_v22  ;;  %v8036_v5 = vmul.f32 %v15960_v50, %v15542_v42 }
 0x9fb   : > { %v8567_v40 = vadd.f32 %v8535_v52, %v8467_v24  ;;  %v8466_v23 = vadd.f32 %v8434_v3, %v8366_v15  ;;  %v8169_v60 = vadd.f32 %v8137_v36, %v8069_v28  ;;  %v8136_v35 = vmul.f32 %v15989_v34, %v15561_v51 }
 0x9fc   : > { %8812 = vrot.lane.b32.xlu0 %v8734_v19, %s11082_s18  ;;  %v8926_v48 = vsel %vm1189_vm3, %v8734_v19, 0.0  ;;  %v8634_v7 = vmul.f32 %v16018_v45, %v16009_v12  ;;  %v8337_v4 = vmul.f32 %v15984_v11, %v15569_v58  ;;  %v8068_v37 = vadd.f32 %v8036_v5, %v7968_v30 }
 0x9fd   : > { %v8667_v8 = vadd.f32 %v8635_v2, %v8567_v40  ;;  %v16025_v54 = vadd.f32 %v8926_v48, %v15973_v31  ;;  %v8566_v50 = vadd.f32 %v8534_v6, %v8466_v23  ;;  %v8269_v10 = vadd.f32 %v8237_v47, %v8169_v60 }
 0x9fe   : > { %v7839_v41 = vmul.f32 %v8399_v43, %v15534_v27  ;;  %v7939_v17 = vmul.f32 %v8499_v18, %v15537_v14  ;;  %v8168_v39 = vadd.f32 %v8136_v35, %v8068_v37  ;;  %v8236_v13 = vmul.f32 %v15995_v61, %v15564_v26 }
 0x9ff   : > { %v8705_v1 = vadd.f32 %v15655_v62, %v8667_v8  ;;  %v8666_v32 = vadd.f32 %v8634_v7, %v8566_v50  ;;  %v8369_v55 = vadd.f32 %v8337_v4, %v8269_v10  ;;  %v8501_v25 = vld [vmem:[#allocation2 + $0x111] sm:$0xff]  ;;  %v8336_v31 = vmul.f32 %v16009_v12, %v15569_v58  ;;  %v16070_v50 = vld [vmem:[#allocation26] ss:$0 sm:$0xff] }
 0xa00   : > { %v8401_v49 = vld [vmem:[#allocation2 + $0x110] sm:$0xff]  ;;  %v8400_v0 = vld [vmem:[#allocation2 + $0x108] sm:$0xff]  ;;  %v7971_v22 = vadd.f32 %v7939_v17, %v7839_v41  ;;  %v8039_v38 = vmul.f32 %v15984_v11, %v15542_v42  ;;  %v8268_v46 = vadd.f32 %v8236_v13, %v8168_v39  ;;  %v7838_v52 = vmul.f32 %v15989_v34, %v15534_v27 }
 0xa01   : > { %v8737_v29 = vmax.f32 %v8705_v1, 0.0  ;;  %v10249_v43 = vpop.f32.mrb[118].mxu0  ;;  %v16037_v18 = vadd.f32 %v15655_v62, %v8666_v32  ;;  %v8437_v21 = vmul.f32 %v15575_v9, %v8401_v49  ;;  %v8601_v63 = vld [vmem:[#allocation2 + $0x112] sm:$0xff]  ;;  %v8537_v11 = vmul.f32 %v15578_v56, %v8501_v25  ;;  %v16047_v62 = vld [vmem:[#allocation2 + $0x109] sm:$0xff] }
 0xa02   : > { %7770 = vst.msk [vmem:[#allocation2 + $0x129] sm:$0xff] %vm1189_vm3, %v10249_v43  ;;  %v7698_v57 = vpop.f32.mrb[119].mxu0  ;;  %v8436_v59 = vmul.f32 %v15575_v9, %v8400_v0  ;;  %v8071_v3 = vadd.f32 %v8039_v38, %v7971_v22  ;;  %v8368_v20 = vadd.f32 %v8336_v31, %v8268_v46  ;;  %v8637_v44 = vmul.f32 %v16018_v45, %v8601_v63  ;;  %v8600_v24 = vld [vmem:[#allocation2 + $0x10a] sm:$0xff] }
 0xa03   : > { %8818 = vrot.lane.b32.xlu1 %v8737_v29, %s11082_s18  ;;  %v8959_v2 = vsel %vm1189_vm3, %v8737_v29, 0.0  ;;  %7769 = vst.msk [vmem:[#allocation2 + $0x121] sm:$0xff] %vm1189_vm3, %v7698_v57  ;;  %v8736_v34 = vmax.f32 %v16037_v18, 0.0  ;;  %v8469_v33 = vadd.f32 %v8437_v21, %v8369_v55  ;;  %v8139_v36 = vmul.f32 %v8401_v49, %v15561_v51 }
 0xa04   : > { %v16050_v53 = vadd.f32 %v8959_v2, %v8958_v16  ;;  %v7938_v15 = vmul.f32 %v15995_v61, %v15537_v14  ;;  %v8468_v28 = vadd.f32 %v8436_v59, %v8368_v20  ;;  %v8536_v16 = vmul.f32 %v15578_v56, %v16047_v62 }
 0xa05   : > { %8816 = vrot.lane.b32.xlu0 %v8736_v34, %s11082_s18  ;;  %v8569_v6 = vadd.f32 %v8537_v11, %v8469_v33  ;;  %v8239_v19 = vmul.f32 %v8501_v25, %v15564_v26  ;;  %v8171_v40 = vadd.f32 %v8139_v36, %v8071_v3  ;;  %v8038_v30 = vmul.f32 %v16009_v12, %v15542_v42 }
 0xa06   : > { %v7970_v47 = vadd.f32 %v7938_v15, %v7838_v52  ;;  %v8138_v23 = vmul.f32 %v8400_v0, %v15561_v51  ;;  %v8568_v61 = vadd.f32 %v8536_v16, %v8468_v28  ;;  %v8636_v5 = vmul.f32 %v16018_v45, %v8600_v24 }
 0xa07   : > { %v8669_v60 = vadd.f32 %v8637_v44, %v8569_v6  ;;  %v8339_v35 = vmul.f32 %v8601_v63, %v15569_v58  ;;  %v8271_v48 = vadd.f32 %v8239_v19, %v8171_v40  ;;  %v7841_v7 = vmul.f32 %v8401_v49, %v15534_v27 }
 0xa08   : > { %v8070_v8 = vadd.f32 %v8038_v30, %v7970_v47  ;;  %v7941_v4 = vmul.f32 %v8501_v25, %v15537_v14  ;;  %v8668_v12 = vadd.f32 %v8636_v5, %v8568_v61  ;;  %v8238_v32 = vmul.f32 %v16047_v62, %v15564_v26 }
 0xa09   : > { %v16073_v10 = vadd.f32 %v16070_v50, %v8669_v60  ;;  %v8371_v37 = vadd.f32 %v8339_v35, %v8271_v48  ;;  %v8503_v41 = vld [vmem:[#allocation2 + $0x129] sm:$0xff]  ;;  %v8338_v13 = vmul.f32 %v8600_v24, %v15569_v58  ;;  %v8041_v43 = vmul.f32 %v8601_v63, %v15542_v42 }
 0xa0a   : > { %v8403_v1 = vld [vmem:[#allocation2 + $0x128] sm:$0xff]  ;;  %v8170_v17 = vadd.f32 %v8138_v23, %v8070_v8  ;;  %v16079_v39 = vadd.f32 %v16070_v50, %v8668_v12  ;;  %v8402_v29 = vld [vmem:[#allocation2 + $0x120] sm:$0xff]  ;;  %v7973_v38 = vadd.f32 %v7941_v4, %v7841_v7  ;;  %v7840_v21 = vmul.f32 %v8400_v0, %v15534_v27 }
 0xa0b   : > { %v8739_v55 = vmax.f32 %v16073_v10, 0.0  ;;  %v8439_v25 = vmul.f32 %v15575_v9, %v8403_v1  ;;  %v8603_v31 = vld [vmem:[#allocation2 + $0x12a] sm:$0xff]  ;;  %v8539_v2 = vmul.f32 %v15578_v56, %v8503_v41  ;;  %v8502_v11 = vld [vmem:[#allocation2 + $0x121] sm:$0xff]  ;;  %v8141_v59 = vmul.f32 %v8403_v1, %v15561_v51 }
 0xa0c   : > { %v10252_v49 = vpop.f32.mrb[120].mxu0  ;;  %v8270_v22 = vadd.f32 %v8238_v32, %v8170_v17  ;;  %v8738_v52 = vmax.f32 %v16079_v39, 0.0  ;;  %v8438_v0 = vmul.f32 %v15575_v9, %v8402_v29  ;;  %v8073_v3 = vadd.f32 %v8041_v43, %v7973_v38  ;;  %v8602_v44 = vld [vmem:[#allocation2 + $0x122] sm:$0xff] }
 0xa0d   : > { %7772 = vst.msk [vmem:[#allocation2 + $0x141] sm:$0xff] %vm1189_vm3, %v10252_v49  ;;  %v7708_v46 = vpop.f32.mrb[121].mxu0  ;;  %8822 = vrot.lane.b32.xlu1 %v8739_v55, %s11082_s18  ;;  %v8471_v57 = vadd.f32 %v8439_v25, %v8371_v37  ;;  %v8639_v20 = vmul.f32 %v16018_v45, %v8603_v31  ;;  %v7940_v36 = vmul.f32 %v16047_v62, %v15537_v14 }
 0xa0e   : > { %7771 = vst.msk [vmem:[#allocation2 + $0x139] sm:$0xff] %vm1189_vm3, %v7708_v46  ;;  %v8370_v63 = vadd.f32 %v8338_v13, %v8270_v22  ;;  %8820 = vrot.lane.b32.xlu0 %v8738_v52, %s11082_s18  ;;  %v8538_v6 = vmul.f32 %v15578_v56, %v8502_v11  ;;  %v8173_v28 = vadd.f32 %v8141_v59, %v8073_v3 }
 0xa0f   : > { %v8571_v33 = vadd.f32 %v8539_v2, %v8471_v57  ;;  %v8241_v16 = vmul.f32 %v8503_v41, %v15564_v26  ;;  %v7972_v40 = vadd.f32 %v7940_v36, %v7840_v21  ;;  %v8040_v47 = vmul.f32 %v8600_v24, %v15542_v42 }
 0xa10   : > { %v8470_v15 = vadd.f32 %v8438_v0, %v8370_v63  ;;  %v8140_v30 = vmul.f32 %v8402_v29, %v15561_v51  ;;  %v8638_v60 = vmul.f32 %v16018_v45, %v8602_v44  ;;  %v8341_v5 = vmul.f32 %v8603_v31, %v15569_v58 }
 0xa11   : > { %v8671_v19 = vadd.f32 %v8639_v20, %v8571_v33  ;;  %v8273_v61 = vadd.f32 %v8241_v16, %v8173_v28  ;;  %v8072_v35 = vadd.f32 %v8040_v47, %v7972_v40  ;;  %v7843_v48 = vmul.f32 %v8403_v1, %v15534_v27 }
 0xa12   : > { %v8570_v23 = vadd.f32 %v8538_v6, %v8470_v15  ;;  %v7943_v8 = vmul.f32 %v8503_v41, %v15537_v14  ;;  %v8240_v32 = vmul.f32 %v8502_v11, %v15564_v26  ;;  %v7842_v1 = vmul.f32 %v8402_v29, %v15534_v27 }
 0xa13   : > { %v16107_v62 = vadd.f32 %v16070_v50, %v8671_v19  ;;  %v8373_v4 = vadd.f32 %v8341_v5, %v8273_v61  ;;  %v8172_v17 = vadd.f32 %v8140_v30, %v8072_v35  ;;  %v7942_v41 = vmul.f32 %v8502_v11, %v15537_v14 }
 0xa14   : > { %v8670_v7 = vadd.f32 %v8638_v60, %v8570_v23  ;;  %v8505_v37 = vld [vmem:[#allocation2 + $0x141] sm:$0xff]  ;;  %v8340_v46 = vmul.f32 %v8602_v44, %v15569_v58  ;;  %v7975_v2 = vadd.f32 %v7943_v8, %v7843_v48  ;;  %v8043_v59 = vmul.f32 %v8603_v31, %v15542_v42 }
 0xa15   : > { %v8741_v24 = vmax.f32 %v16107_v62, 0.0  ;;  %v8405_v12 = vld [vmem:[#allocation2 + $0x140] sm:$0xff]  ;;  %v10255_v25 = vpop.f32.mrb[122].mxu0  ;;  %v8404_v38 = vld [vmem:[#allocation2 + $0x138] sm:$0xff]  ;;  %v8272_v21 = vadd.f32 %v8240_v32, %v8172_v17  ;;  %v8541_v63 = vmul.f32 %v15578_v56, %v8505_v37  ;;  %v7974_v28 = vadd.f32 %v7942_v41, %v7842_v1 }
 0xa16   : > { %v16114_v13 = vadd.f32 %v16070_v50, %v8670_v7  ;;  %v8441_v49 = vmul.f32 %v15575_v9, %v8405_v12  ;;  %v8605_v22 = vld [vmem:[#allocation2 + $0x142] sm:$0xff]  ;;  %7774 = vst.msk [vmem:[#allocation2 + $0x159] sm:$0xff] %vm1189_vm3, %v10255_v25  ;;  %v7718_v43 = vpop.f32.mrb[123].mxu0  ;;  %v16124_v57 = vld [vmem:[#allocation2 + $0x139] sm:$0xff]  ;;  %v8143_v0 = vmul.f32 %v8405_v12, %v15561_v51  ;;  %v8440_v20 = vmul.f32 %v15575_v9, %v8404_v38 }
 0xa17   : > { %8826 = vrot.lane.b32.xlu1 %v8741_v24, %s11082_s18  ;;  %7773 = vst.msk [vmem:[#allocation2 + $0x151] sm:$0xff] %vm1189_vm3, %v7718_v43  ;;  %v8641_v3 = vmul.f32 %v16018_v45, %v8605_v22  ;;  %v8372_v33 = vadd.f32 %v8340_v46, %v8272_v21  ;;  %v8604_v36 = vld [vmem:[#allocation2 + $0x13a] sm:$0xff]  ;;  %v8075_v15 = vadd.f32 %v8043_v59, %v7975_v2 }
 0xa18   : > { %v8740_v29 = vmax.f32 %v16114_v13, 0.0  ;;  %v8473_v11 = vadd.f32 %v8441_v49, %v8373_v4  ;;  %v8540_v6 = vmul.f32 %v15578_v56, %v16124_v57  ;;  %v8042_v16 = vmul.f32 %v8602_v44, %v15542_v42 }
 0xa19   : > { %v8472_v19 = vadd.f32 %v8440_v20, %v8372_v33  ;;  %v8175_v40 = vadd.f32 %v8143_v0, %v8075_v15  ;;  %v8243_v47 = vmul.f32 %v8505_v37, %v15564_v26  ;;  %v8142_v30 = vmul.f32 %v8404_v38, %v15561_v51 }
 0xa1a   : > { %8824 = vrot.lane.b32.xlu0 %v8740_v29, %s11082_s18  ;;  %v8573_v31 = vadd.f32 %v8541_v63, %v8473_v11  ;;  %v8640_v60 = vmul.f32 %v16018_v45, %v8604_v36  ;;  %v8343_v61 = vmul.f32 %v8605_v22, %v15569_v58  ;;  %v8074_v5 = vadd.f32 %v8042_v16, %v7974_v28 }
 0xa1b   : > { %v8572_v35 = vadd.f32 %v8540_v6, %v8472_v19  ;;  %v8275_v48 = vadd.f32 %v8243_v47, %v8175_v40  ;;  %v7845_v8 = vmul.f32 %v8405_v12, %v15534_v27  ;;  %v7945_v7 = vmul.f32 %v8505_v37, %v15537_v14 }
 0xa1c   : > { %v8673_v23 = vadd.f32 %v8641_v3, %v8573_v31  ;;  %v8174_v17 = vadd.f32 %v8142_v30, %v8074_v5  ;;  %v8242_v32 = vmul.f32 %v16124_v57, %v15564_v26  ;;  %v8342_v41 = vmul.f32 %v8604_v36, %v15569_v58 }
 0xa1d   : > { %v8507_v4 = vld [vmem:[#allocation2 + $0x159] sm:$0xff]  ;;  %v8672_v25 = vadd.f32 %v8640_v60, %v8572_v35  ;;  %v8375_v49 = vadd.f32 %v8343_v61, %v8275_v48  ;;  %v8045_v2 = vmul.f32 %v8605_v22, %v15542_v42  ;;  %v7977_v3 = vadd.f32 %v7945_v7, %v7845_v8 }
 0xa1e   : > { %v16146_v44 = vadd.f32 %v16070_v50, %v8673_v23  ;;  %v8407_v1 = vld [vmem:[#allocation2 + $0x158] sm:$0xff]  ;;  %v8406_v43 = vld [vmem:[#allocation2 + $0x150] sm:$0xff]  ;;  %v8274_v37 = vadd.f32 %v8242_v32, %v8174_v17  ;;  %v8543_v63 = vmul.f32 %v15578_v56, %v8507_v4  ;;  %v7844_v33 = vmul.f32 %v8404_v38, %v15534_v27 }
 0xa1f   : > { %v8443_v12 = vmul.f32 %v15575_v9, %v8407_v1  ;;  %v8607_v46 = vld [vmem:[#allocation2 + $0x15a] sm:$0xff]  ;;  %v16155_v11 = vadd.f32 %v16070_v50, %v8672_v25  ;;  %v8506_v0 = vld [vmem:[#allocation2 + $0x151] sm:$0xff]  ;;  %v8442_v22 = vmul.f32 %v15575_v9, %v8406_v43  ;;  %v8145_v28 = vmul.f32 %v8407_v1, %v15561_v51 }
 0xa20   : > { %v8743_v21 = vmax.f32 %v16146_v44, 0.0  ;;  %v8374_v31 = vadd.f32 %v8342_v41, %v8274_v37  ;;  %v8606_v6 = vld [vmem:[#allocation2 + $0x152] sm:$0xff]  ;;  %v8643_v38 = vmul.f32 %v16018_v45, %v8607_v46  ;;  %v8077_v19 = vadd.f32 %v8045_v2, %v7977_v3 }
 0xa21   : > { %v10258_v59 = vpop.f32.mrb[124].mxu0  ;;  %v8475_v15 = vadd.f32 %v8443_v12, %v8375_v49  ;;  %v16558_v16 = vmax.f32 %v16155_v11, 0.0  ;;  %v8542_v30 = vmul.f32 %v15578_v56, %v8506_v0  ;;  %v7944_v23 = vmul.f32 %v16124_v57, %v15537_v14 }
 0xa22   : > { %7776 = vst.msk [vmem:[#allocation2 + $0x171] sm:$0xff] %vm1189_vm3, %v10258_v59  ;;  %v7728_v20 = vpop.f32.mrb[125].mxu0  ;;  %8830 = vrot.lane.b32.xlu1 %v8743_v21, %s11082_s18  ;;  %v8474_v47 = vadd.f32 %v8442_v22, %v8374_v31  ;;  %v8642_v60 = vmul.f32 %v16018_v45, %v8606_v6  ;;  %v8177_v61 = vadd.f32 %v8145_v28, %v8077_v19  ;;  %v8932_v44 = vsel %vm1189_vm3, %v8740_v29, 0.0 }
 0xa23   : > { %7775 = vst.msk [vmem:[#allocation2 + $0x169] sm:$0xff] %vm1189_vm3, %v7728_v20  ;;  %v8575_v40 = vadd.f32 %v8543_v63, %v8475_v15  ;;  %8828 = vrot.lane.b32.xlu0 %v16558_v16, %s11082_s18  ;;  %v8245_v5 = vmul.f32 %v8507_v4, %v15564_v26  ;;  %v7976_v8 = vadd.f32 %v7944_v23, %v7844_v33  ;;  %v16721_v13 = vmax.f32 %v16155_v11, 0.0 }
 0xa24   : > { %v8574_v48 = vadd.f32 %v8542_v30, %v8474_v47  ;;  %v8044_v7 = vmul.f32 %v8604_v36, %v15542_v42  ;;  %v8345_v32 = vmul.f32 %v8607_v46, %v15569_v58  ;;  %v8144_v25 = vmul.f32 %v8406_v43, %v15561_v51 }
 0xa25   : > { %v8675_v35 = vadd.f32 %v8643_v38, %v8575_v40  ;;  %v8277_v17 = vadd.f32 %v8245_v5, %v8177_v61  ;;  %v7847_v57 = vmul.f32 %v8407_v1, %v15534_v27  ;;  %v7947_v37 = vmul.f32 %v8507_v4, %v15537_v14 }
 0xa26   : > { %v8674_v41 = vadd.f32 %v8642_v60, %v8574_v48  ;;  %v8076_v12 = vadd.f32 %v8044_v7, %v7976_v8  ;;  %v8244_v33 = vmul.f32 %v8506_v0, %v15564_v26  ;;  %v8344_v20 = vmul.f32 %v8606_v6, %v15569_v58 }
 0xa27   : > { %v16181_v49 = vadd.f32 %v16070_v50, %v8675_v35  ;;  %v8377_v2 = vadd.f32 %v8345_v32, %v8277_v17  ;;  %v7846_v4 = vmul.f32 %v8406_v43, %v15534_v27  ;;  %v7946_v28 = vmul.f32 %v8506_v0, %v15537_v14 }
 0xa28   : > { %v16186_v36 = vadd.f32 %v16070_v50, %v8674_v41  ;;  %v8176_v22 = vadd.f32 %v8144_v25, %v8076_v12  ;;  %v7979_v30 = vadd.f32 %v7947_v37, %v7847_v57  ;;  %v8047_v23 = vmul.f32 %v8607_v46, %v15542_v42  ;;  %v16214_v12 = vpop.permute.xlu1 %8786 }
 0xa29   : > { %v8509_v59 = vld [vmem:[#allocation2 + $0x171] sm:$0xff]  ;;  %v8745_v63 = vmax.f32 %v16181_v49, 0.0  ;;  %v7978_v46 = vadd.f32 %v7946_v28, %v7846_v4  ;;  %v8046_v57 = vmul.f32 %v8606_v6, %v15542_v42  ;;  %8882 = vst.msk [vmem:[%s12289_s27 + $0x8] sm:$0xff] %vm8880_vm8, %v16214_v12  ;;  %v8965_v12 = vsel %vm1189_vm3, %v8743_v21, 0.0  ;;  %v8612_v21 = vld [vmem:[#allocation2 + $0x19a] sm:$0xff] }
 0xa2a   : > { %v8409_v3 = vld [vmem:[#allocation2 + $0x170] sm:$0xff]  ;;  %v16190_v1 = vld [vmem:[#allocation2 + $0x168] sm:$0xff]  ;;  %v16556_v19 = vmax.f32 %v16186_v36, 0.0  ;;  %v8545_v40 = vmul.f32 %v15578_v56, %v8509_v59  ;;  %v8276_v60 = vadd.f32 %v8244_v33, %v8176_v22  ;;  %v8079_v35 = vadd.f32 %v8047_v23, %v7979_v30 }
 0xa2b   : > { %v10261_v15 = vpop.f32.mrb[126].mxu0  ;;  %v8445_v31 = vmul.f32 %v15575_v9, %v8409_v3  ;;  %8834 = vrot.lane.b32.xlu1 %v8745_v63, %s11082_s18  ;;  %v8609_v47 = vld [vmem:[#allocation2 + $0x172] sm:$0xff]  ;;  %v8444_v0 = vmul.f32 %v15575_v9, %v16190_v1  ;;  %v8147_v61 = vmul.f32 %v8409_v3, %v15561_v51  ;;  %v8508_v5 = vld [vmem:[#allocation2 + $0x169] sm:$0xff]  ;;  %v8247_v25 = vmul.f32 %v8509_v59, %v15564_v26 }
 0xa2c   : > { %7778 = vst.msk [vmem:[#allocation2 + $0x189] sm:$0xff] %vm1189_vm3, %v10261_v15  ;;  %v7738_v38 = vpop.f32.mrb[127].mxu0  ;;  %8832 = vrot.lane.b32.xlu0 %v16556_v19, %s11082_s18  ;;  %v8645_v8 = vmul.f32 %v16018_v45, %v8609_v47  ;;  %v8376_v7 = vadd.f32 %v8344_v20, %v8276_v60  ;;  %v8608_v17 = vld [vmem:[#allocation2 + $0x16a] sm:$0xff]  ;;  %v8146_v41 = vmul.f32 %v16190_v1, %v15561_v51  ;;  %v8934_v29 = vsel %vm1189_vm3, %v16721_v13, 0.0 }
 0xa2d   : > { %7777 = vst.msk [vmem:[#allocation2 + $0x181] sm:$0xff] %vm1189_vm3, %v7738_v38  ;;  %v8477_v43 = vadd.f32 %v8445_v31, %v8377_v2  ;;  %v8179_v32 = vadd.f32 %v8147_v61, %v8079_v35  ;;  %v8544_v33 = vmul.f32 %v15578_v56, %v8508_v5  ;;  %v8347_v15 = vmul.f32 %v8609_v47, %v15569_v58  ;;  %v8791_v35 = vpop.permute.xlu1 %8790 }
 0xa2e   : > { %v8476_v2 = vadd.f32 %v8444_v0, %v8376_v7  ;;  %v8078_v20 = vadd.f32 %v8046_v57, %v7978_v46  ;;  %v7849_v22 = vmul.f32 %v8409_v3, %v15534_v27  ;;  %v7949_v4 = vmul.f32 %v8509_v59, %v15537_v14  ;;  %v8413_v46 = vld [vmem:[#allocation2 + $0x1a0] sm:$0xff]  ;;  %8884 = vst.msk [vmem:[%s12289_s27 + $0x18] sm:$0xff] %vm8880_vm8, %v8791_v35 }
 0xa2f   : > { %v8577_v48 = vadd.f32 %v8545_v40, %v8477_v43  ;;  %v8279_v31 = vadd.f32 %v8247_v25, %v8179_v32  ;;  %v8644_v38 = vmul.f32 %v16018_v45, %v8608_v17  ;;  %v16224_v40 = vpop.permute.xlu0 %8784  ;;  %v8246_v0 = vmul.f32 %v8508_v5, %v15564_v26  ;;  %v8512_v35 = vld [vmem:[#allocation2 + $0x199] sm:$0xff] }
 0xa30   : > { %v8576_v6 = vadd.f32 %v8544_v33, %v8476_v2  ;;  %v8178_v60 = vadd.f32 %v8146_v41, %v8078_v20  ;;  %v8346_v7 = vmul.f32 %v8608_v17, %v15569_v58  ;;  %v8049_v41 = vmul.f32 %v8609_v47, %v15542_v42  ;;  %8881 = vst.msk [vmem:[%s12289_s27] sm:$0xff] %vm8880_vm8, %v16224_v40 }
 0xa31   : > { %v8677_v37 = vadd.f32 %v8645_v8, %v8577_v48  ;;  %v8379_v30 = vadd.f32 %v8347_v15, %v8279_v31  ;;  %v8449_v47 = vmul.f32 %v15575_v9, %v8413_v46 }
 0xa32   : > { %v8676_v48 = vadd.f32 %v8644_v38, %v8576_v6  ;;  %v8278_v32 = vadd.f32 %v8246_v0, %v8178_v60 }
 0xa33   : > { %v16221_v28 = vadd.f32 %v16070_v50, %v8677_v37  ;;  %v8511_v43 = vld [vmem:[#allocation2 + $0x189] sm:$0xff]  ;;  %v7981_v37 = vadd.f32 %v7949_v4, %v7849_v22  ;;  %v8789_v20 = vpop.permute.xlu0 %8788 }
 0xa34   : > { %v8411_v23 = vld [vmem:[#allocation2 + $0x188] sm:$0xff]  ;;  %v8410_v61 = vld [vmem:[#allocation2 + $0x180] sm:$0xff]  ;;  %v16236_v2 = vadd.f32 %v16070_v50, %v8676_v48  ;;  %v8547_v15 = vmul.f32 %v15578_v56, %v8511_v43  ;;  %v8378_v38 = vadd.f32 %v8346_v7, %v8278_v32  ;;  %v8249_v48 = vmul.f32 %v8511_v43, %v15564_v26  ;;  %8883 = vst.msk [vmem:[%s12289_s27 + $0x10] sm:$0xff] %vm8880_vm8, %v8789_v20 }
 0xa35   : > { %v16557_v3 = vmax.f32 %v16221_v28, 0.0  ;;  %v8447_v59 = vmul.f32 %v15575_v9, %v8411_v23  ;;  %v8611_v8 = vld [vmem:[#allocation2 + $0x18a] sm:$0xff]  ;;  %v8446_v25 = vmul.f32 %v15575_v9, %v8410_v61  ;;  %v8510_v57 = vld [vmem:[#allocation2 + $0x181] sm:$0xff]  ;;  %v8149_v31 = vmul.f32 %v8411_v23, %v15561_v51 }
 0xa36   : > { %v8647_v6 = vmul.f32 %v16018_v45, %v8611_v8  ;;  %v8610_v60 = vld [vmem:[#allocation2 + $0x182] sm:$0xff]  ;;  %v8081_v22 = vadd.f32 %v8049_v41, %v7981_v37  ;;  %v8746_v4 = vmax.f32 %v16236_v2, 0.0  ;;  %v8546_v19 = vmul.f32 %v15578_v56, %v8510_v57 }
 0xa37   : > { %8838 = vrot.lane.b32.xlu1 %v16557_v3, %s11082_s18  ;;  %v8479_v33 = vadd.f32 %v8447_v59, %v8379_v30  ;;  %v8478_v30 = vadd.f32 %v8446_v25, %v8378_v38  ;;  %v7848_v23 = vmul.f32 %v16190_v1, %v15534_v27  ;;  %v7948_v3 = vmul.f32 %v8508_v5, %v15537_v14  ;;  %v8513_v37 = vld [vmem:[#allocation2 + $0x1a1] sm:$0xff] }
 0xa38   : > { %v8181_v59 = vadd.f32 %v8149_v31, %v8081_v22  ;;  %v8795_v16 = vpop.permute.xlu1 %8794  ;;  %8836 = vrot.lane.b32.xlu0 %v8746_v4, %s11082_s18  ;;  %v8646_v46 = vmul.f32 %v16018_v45, %v8610_v60  ;;  %v8349_v32 = vmul.f32 %v8611_v8, %v15569_v58  ;;  %v8048_v43 = vmul.f32 %v8608_v17, %v15542_v42  ;;  %v8793_v8 = vpop.permute.xlu0 %8792  ;;  %v8412_v17 = vld [vmem:[#allocation2 + $0x198] sm:$0xff] }
 0xa39   : > { %v8579_v0 = vadd.f32 %v8547_v15, %v8479_v33  ;;  %v8578_v25 = vadd.f32 %v8546_v19, %v8478_v30  ;;  %v8613_v33 = vld [vmem:[#allocation2 + $0x1a2] sm:$0xff]  ;;  %v7980_v15 = vadd.f32 %v7948_v3, %v7848_v23  ;;  %v8148_v27 = vmul.f32 %v8410_v61, %v15561_v51  ;;  %8886 = vst.msk [vmem:[%s12289_s27 + $0x28] sm:$0xff] %vm8880_vm8, %v8795_v16 }
 0xa3a   : > { %v8281_v41 = vadd.f32 %v8249_v48, %v8181_v59  ;;  %v8928_v14 = vsel %vm1189_vm3, %v8736_v34, 0.0  ;;  %v8961_v1 = vsel %vm1189_vm3, %v8739_v55, 0.0  ;;  %v8549_v51 = vmul.f32 %v15578_v56, %v8513_v37  ;;  %8885 = vst.msk [vmem:[%s12289_s27 + $0x20] sm:$0xff] %vm8880_vm8, %v8793_v8 }
 0xa3b   : > { %v8679_v7 = vadd.f32 %v8647_v6, %v8579_v0  ;;  %v8678_v42 = vadd.f32 %v8646_v46, %v8578_v25  ;;  %v8080_v18 = vadd.f32 %v8048_v43, %v7980_v15  ;;  %v8963_v34 = vsel %vm1189_vm3, %v8741_v24, 0.0 }
 0xa3c   : > { %v8381_v19 = vadd.f32 %v8349_v32, %v8281_v41  ;;  %v8649_v55 = vmul.f32 %v16018_v45, %v8613_v33  ;;  %v8248_v6 = vmul.f32 %v8510_v57, %v15564_v26  ;;  %v8962_v24 = vadd.f32 %v8961_v1, %v16050_v53 }
 0xa3d   : > { %v8717_v5 = vadd.f32 %v16070_v50, %v8679_v7  ;;  %v8716_v61 = vadd.f32 %v16070_v50, %v8678_v42  ;;  %v8180_v31 = vadd.f32 %v8148_v27, %v8080_v18  ;;  %v8930_v26 = vsel %vm1189_vm3, %v8738_v52, 0.0 }
 0xa3e   : > { %v8481_v3 = vadd.f32 %v8449_v47, %v8381_v19  ;;  %v8348_v40 = vmul.f32 %v8610_v60, %v15569_v58  ;;  %v8448_v53 = vmul.f32 %v15575_v9, %v8412_v17  ;;  %v8929_v39 = vadd.f32 %v8928_v14, %v16025_v54 }
 0xa3f   : > { %v8749_v10 = vmax.f32 %v8717_v5, 0.0  ;;  %v8748_v16 = vmax.f32 %v8716_v61, 0.0  ;;  %v8280_v20 = vadd.f32 %v8248_v6, %v8180_v31  ;;  %v8964_v52 = vadd.f32 %v8963_v34, %v8962_v24 }
 0xa40   : > { %v8799_v62 = vpop.permute.xlu1 %8798  ;;  %v8581_v57 = vadd.f32 %v8549_v51, %v8481_v3  ;;  %v8967_v58 = vsel %vm1189_vm3, %v8745_v63, 0.0  ;;  %v8548_v47 = vmul.f32 %v15578_v56, %v8512_v35  ;;  %v8931_v9 = vadd.f32 %v8930_v26, %v8929_v39 }
 0xa41   : > { %8842 = vrot.lane.b32.xlu1 %v8749_v10, %s11082_s18  ;;  %8888 = vst.msk [vmem:[%s12289_s27 + $0x38] sm:$0xff] %vm8880_vm8, %v8799_v62  ;;  %8840 = vrot.lane.b32.xlu0 %v8748_v16, %s11082_s18  ;;  %v8380_v22 = vadd.f32 %v8348_v40, %v8280_v20  ;;  %v8966_v54 = vadd.f32 %v8965_v12, %v8964_v52  ;;  %v16722_v0 = vmax.f32 %v16221_v28, 0.0  ;;  %v16723_v23 = vmax.f32 %v16186_v36, 0.0 }
 0xa42   : > { %v8681_v60 = vadd.f32 %v8649_v55, %v8581_v57  ;;  %v8648_v30 = vmul.f32 %v16018_v45, %v8612_v21  ;;  %v8933_v59 = vadd.f32 %v8932_v44, %v8931_v9  ;;  %v8971_v11 = vsel %vm1189_vm3, %v8749_v10, 0.0 }
 0xa43   : > { %v8797_v38 = vpop.permute.xlu0 %8796  ;;  %v8969_v49 = vsel %vm1189_vm3, %v16722_v0, 0.0  ;;  %v8480_v48 = vadd.f32 %v8448_v53, %v8380_v22  ;;  %v8968_v56 = vadd.f32 %v8967_v58, %v8966_v54  ;;  %v8936_v7 = vsel %vm1189_vm3, %v16723_v23, 0.0 }
 0xa44   : > { %8887 = vst.msk [vmem:[%s12289_s27 + $0x30] sm:$0xff] %vm8880_vm8, %v8797_v38  ;;  %v8719_v63 = vadd.f32 %v16070_v50, %v8681_v60  ;;  %v8935_v37 = vadd.f32 %v8934_v29, %v8933_v59  ;;  %v8938_v43 = vsel %vm1189_vm3, %v8746_v4, 0.0  ;;  %v8940_v15 = vsel %vm1189_vm3, %v8748_v16, 0.0 }
 0xa45   : > { %v8580_v32 = vadd.f32 %v8548_v47, %v8480_v48  ;;  %v8970_v28 = vadd.f32 %v8969_v49, %v8968_v56 }
 0xa46   : > { %v8751_v46 = vmax.f32 %v8719_v63, 0.0  ;;  %v8937_v36 = vadd.f32 %v8936_v7, %v8935_v37 }
 0xa47   : > { %v8680_v25 = vadd.f32 %v8648_v30, %v8580_v32  ;;  %v8972_v33 = vadd.f32 %v8971_v11, %v8970_v28 }
 0xa48   : > { %8846 = vrot.lane.b32.xlu1 %v8751_v46, %s11082_s18  ;;  %v8973_v45 = vsel %vm1189_vm3, %v8751_v46, 0.0  ;;  %v8939_v14 = vadd.f32 %v8938_v43, %v8937_v36 }
 0xa49   : > { %v8718_v27 = vadd.f32 %v16070_v50, %v8680_v25  ;;  %v8974_v1 = vadd.f32 %v8973_v45, %v8972_v33 }
 0xa4a   : > { %v8941_v5 = vadd.f32 %v8940_v15, %v8939_v14 }
 0xa4b   : > { %v8750_v4 = vmax.f32 %v8718_v27, 0.0  ;;  %v8976_v42 = vsel %vm1189_vm3, %v8974_v1, 0.0 }
 0xa4c   : > { %v8803_v41 = vpop.permute.xlu1 %8802 }
 0xa4d   : > { %8890 = vst.msk [vmem:[%s12289_s27 + $0x48] sm:$0xff] %vm8880_vm8, %v8803_v41  ;;  %v8801_v2 = vpop.permute.xlu0 %8800  ;;  %8844 = vrot.lane.b32.xlu0 %v8750_v4, %s11082_s18  ;;  %v8942_v8 = vsel %vm1189_vm3, %v8750_v4, 0.0  ;;  %s10931_s18 = scalar_lea.vmem %s16348_s20, 64 }
 0xa4e   : > { %8889 = vst.msk [vmem:[%s12289_s27 + $0x40] sm:$0xff] %vm8880_vm8, %v8801_v2  ;;  %v8943_v19 = vadd.f32 %v8942_v8, %v8941_v5  ;;  %p10932_p4 = scmp.ne.s32.totalorder %s16348_s20, %s10931_s18  ;;  %p10939_p7 = scmp.lt.s32.totalorder %s10937_s5, %s10931_s18 }
 0xa50   : > { %v8975_v50 = vsel %vm1189_vm3, %v8943_v19, 0.0  ;;  %p10933_p11 = pnand %p10932_p4, %p16726_p10  ;;  %p10940_p6 = por %p10939_p7, %p10938_p5 }
 0xa51   : > { %v8977_v51 = vadd.f32 %v8976_v42, %v8975_v50 }
 0xa52   : > { %p10934_p3 = pneg %p10933_p11 }
 0xa53   : > { %v8978_v34 = vrot.slane %v8977_v51, 4 }
 0xa54   : > { %p10941_p9 = pnand %p10940_p6, %p10934_p3 }
 0xa55   : > { %v8979_v10 = vadd.f32 %v8978_v34, %v8977_v51 }
 0xa56   : > { %v8807_v18 = vpop.permute.xlu1 %8806 }
 0xa57   : > { %8892 = vst.msk [vmem:[%s12289_s27 + $0x58] sm:$0xff] %vm8880_vm8, %v8807_v18  ;;  %v8980_v17 = vrot.slane %v8979_v10, 2 }
 0xa58   : > { %v8805_v55 = vpop.permute.xlu0 %8804 }
 0xa59   : > { %8891 = vst.msk [vmem:[%s12289_s27 + $0x50] sm:$0xff] %vm8880_vm8, %v8805_v55  ;;  %v8981_v61 = vadd.f32 %v8980_v17, %v8979_v10 }
 0xa5b   : > { %v8982_v3 = vrot.slane %v8981_v61, 1 }
 0xa5d   : > { %v8983_v6 = vadd.f32 %v8982_v3, %v8981_v61 }
 0xa5f   : > { %v8984_v24 = vmul.f32 0.00390625, %v8983_v6 }
 0xa60   : > { %v8811_v31 = vpop.permute.xlu1 %8810 }
 0xa61   : > { %8894 = vst.msk [vmem:[%s12289_s27 + $0x68] sm:$0xff] %vm8880_vm8, %v8811_v31  ;;  %v8809_v62 = vpop.permute.xlu0 %8808 }
 0xa62   : > { %8893 = vst.msk [vmem:[%s12289_s27 + $0x60] sm:$0xff] %vm8880_vm8, %v8809_v62 }
 0xa63   : > { %8985 = vst.msk [vmem:[%s13077_s29 + $0x3] sm:$0x1] %vm2622_vm5, %v8984_v24 }
 0xa64   : > { %10944 = shalt.err (!%p10941_p9)
}
 0xa65   : > { %s10945_s29 = scalar_lea.hbm %s16346_s1, 64  ;;  %s10949_s3 = scalar_lea.hbm %s16725_s19, 128 }
 0xa66   : > { %p10946_p12 = scmp.ne.s32.totalorder %s16346_s1, %s10945_s29  ;;  %p10950_p0 = scmp.lt.u32.totalorder %s16346_s1, %s16725_s19 }
 0xa67   : > { %p10951_p2 = scmp.lt.u32.totalorder %s10949_s3, %s10945_s29  ;;  %p10953_p4 = scmp.lt.u32.totalorder %s10945_s29, %s16346_s1 }
 0xa68   : > { %p10947_p1 = pnand %p10946_p12, %p16726_p10 }
 0xa69   : > { %p10952_p8 = por %p10951_p2, %p10950_p0 }
 0xa6a   : > { %p10948_p13 = pneg %p10947_p1 }
 0xa6b   : > { %p10954_p11 = por %p10953_p4, %p10952_p8 }
 0xa6d   : > { %p10955_p3 = pnand %p10954_p11, %p10948_p13 }
 0xa6f   : > { %10958 = shalt.err (!%p10955_p3)
}
 0xa70   : > { %10357 = dma.vmem_to_hbm [thread:$0]  (%p16726_p10), %s16348_s20, 64, %s16346_s1, %s8992_s16   ;;  %v8815_v26 = vpop.permute.xlu1 %8814  ;;  %v8813_v12 = vpop.permute.xlu0 %8812 }
 0xa71   : > { %8896 = vst.msk [vmem:[%s12289_s27 + $0x78] sm:$0xff] %vm8880_vm8, %v8815_v26  ;;  %8895 = vst.msk [vmem:[%s12289_s27 + $0x70] sm:$0xff] %vm8880_vm8, %v8813_v12  ;;  %s9567_s5 = sshll.u32 %s16596_s2, 12  ;;  %s9005_s20 = sshll.u32 %s12289_s27, 4  ;;  %s16415_s20 = int_to_ptr.vmem [resolvable:$true] %s9005_s20 }
 0xa72   : > { %s16727_s16 = sld [smem:[#allocation96_spill]]  ;;  %s8987_s29 = scalar_lea.sflag [#allocation5], %s11602_s26 }
 0xa73   : > { %s10959_s21 = scalar_lea.vmem %s16415_s20, 4096  ;;  %s11084_s2 = smov [#allocation27]  }
 0xa74   : > { %p10960_p5 = scmp.ne.s32.totalorder %s16415_s20, %s10959_s21  ;;  %s10963_s28 = sshll.u32 %s11084_s2, 4  ;;  %s10964_s28 = int_to_ptr.vmem [resolvable:$false] %s10963_s28 }
 0xa75   : > { %v8819_v40 = vpop.permute.xlu1 %8818  ;;  %s10965_s3 = scalar_lea.vmem %s10964_s28, 8192  ;;  %p10966_p9 = scmp.lt.s32.totalorder %s16415_s20, %s10964_s28 }
 0xa76   : > { %8898 = vst.msk [vmem:[%s12289_s27 + $0x88] sm:$0xff] %vm8880_vm8, %v8819_v40  ;;  %p10961_p7 = pnand %p10960_p5, %p16726_p10  ;;  %p10967_p12 = scmp.lt.s32.totalorder %s10965_s3, %s10959_s21 }
 0xa77   : > { %v8817_v35 = vpop.permute.xlu0 %8816 }
 0xa78   : > { %8897 = vst.msk [vmem:[%s12289_s27 + $0x80] sm:$0xff] %vm8880_vm8, %v8817_v35  ;;  %s16413_s18 = scalar_lea.hbm %s16727_s16, %s9567_s5  ;;  %p10962_p6 = pneg %p10961_p7 }
 0xa79   : > { %p10968_p1 = por %p10967_p12, %p10966_p9 }
 0xa7b   : > { %p10969_p13 = pnand %p10968_p1, %p10962_p6 }
 0xa7f   : > { %v8823_v16 = vpop.permute.xlu1 %8822 }
 0xa80   : > { %8900 = vst.msk [vmem:[%s12289_s27 + $0x98] sm:$0xff] %vm8880_vm8, %v8823_v16  ;;  %v8821_v57 = vpop.permute.xlu0 %8820 }
 0xa81   : > { %8899 = vst.msk [vmem:[%s12289_s27 + $0x90] sm:$0xff] %vm8880_vm8, %v8821_v57 }
 0xa89   : > { %v8827_v20 = vpop.permute.xlu1 %8826 }
 0xa8a   : > { %8902 = vst.msk [vmem:[%s12289_s27 + $0xa8] sm:$0xff] %vm8880_vm8, %v8827_v20 }
 0xa8c   : > { %v8825_v53 = vpop.permute.xlu0 %8824 }
 0xa8d   : > { %8901 = vst.msk [vmem:[%s12289_s27 + $0xa0] sm:$0xff] %vm8880_vm8, %v8825_v53 }
 0xa94   : > { %v8831_v39 = vpop.permute.xlu1 %8830 }
 0xa95   : > { %8904 = vst.msk [vmem:[%s12289_s27 + $0xb8] sm:$0xff] %vm8880_vm8, %v8831_v39  ;;  %v8829_v52 = vpop.permute.xlu0 %8828 }
 0xa96   : > { %8903 = vst.msk [vmem:[%s12289_s27 + $0xb0] sm:$0xff] %vm8880_vm8, %v8829_v52 }
 0xa9d   : > { %v8835_v44 = vpop.permute.xlu1 %8834 }
 0xa9e   : > { %8906 = vst.msk [vmem:[%s12289_s27 + $0xc8] sm:$0xff] %vm8880_vm8, %v8835_v44  ;;  %v8833_v21 = vpop.permute.xlu0 %8832 }
 0xa9f   : > { %8905 = vst.msk [vmem:[%s12289_s27 + $0xc0] sm:$0xff] %vm8880_vm8, %v8833_v21 }
 0xaa9   : > { %v8839_v38 = vpop.permute.xlu1 %8838 }
 0xaaa   : > { %8908 = vst.msk [vmem:[%s12289_s27 + $0xd8] sm:$0xff] %vm8880_vm8, %v8839_v38  ;;  %v8837_v58 = vpop.permute.xlu0 %8836 }
 0xaab   : > { %8907 = vst.msk [vmem:[%s12289_s27 + $0xd0] sm:$0xff] %vm8880_vm8, %v8837_v58 }
 0xab3   : > { %v8843_v60 = vpop.permute.xlu1 %8842  ;;  %v8841_v22 = vpop.permute.xlu0 %8840 }
 0xab4   : > { %8910 = vst.msk [vmem:[%s12289_s27 + $0xe8] sm:$0xff] %vm8880_vm8, %v8843_v60  ;;  %8909 = vst.msk [vmem:[%s12289_s27 + $0xe0] sm:$0xff] %vm8880_vm8, %v8841_v22 }
 0xaba   : > { %v8847_v47 = vpop.permute.xlu1 %8846 }
 0xabb   : > { %8912 = vst.msk [vmem:[%s12289_s27 + $0xf8] sm:$0xff] %vm8880_vm8, %v8847_v47 }
 0xabf   : > { %v8845_v9 = vpop.permute.xlu0 %8844 }
 0xac0   : > { %8911 = vst.msk [vmem:[%s12289_s27 + $0xf0] sm:$0xff] %vm8880_vm8, %v8845_v9 }
 0xac1   : > { %10972 = shalt.err (!%p10969_p13)
}
 0xac2   : > { %s10973_s27 = scalar_lea.hbm %s16413_s18, 4096  ;;  %s10977_s5 = scalar_lea.hbm %s16727_s16, 8192 }
 0xac3   : > { %p10974_p0 = scmp.ne.s32.totalorder %s16413_s18, %s10973_s27  ;;  %p10978_p4 = scmp.lt.u32.totalorder %s16413_s18, %s16727_s16 }
 0xac4   : > { %p10979_p11 = scmp.lt.u32.totalorder %s10977_s5, %s10973_s27  ;;  %p10981_p5 = scmp.lt.u32.totalorder %s10973_s27, %s16413_s18 }
 0xac5   : > { %p10975_p2 = pnand %p10974_p0, %p16726_p10 }
 0xac6   : > { %p10980_p3 = por %p10979_p11, %p10978_p4 }
 0xac7   : > { %p10976_p8 = pneg %p10975_p2 }
 0xac8   : > { %p10982_p7 = por %p10981_p5, %p10980_p3 }
 0xaca   : > { %p10983_p6 = pnand %p10982_p7, %p10976_p8 }
 0xacc   : > { %10986 = shalt.err (!%p10983_p6)
}
 0xacd   : > { %s11085_s21 = smov 128   ;;  %s11086_s2 = smov 8  }
 0xace   : > { %10356 = dma.vmem_to_hbm [thread:$0]  (%p16726_p10), %s16415_s20, 4096, %s16413_s18, %s8987_s29, %s11085_s21, %s11085_s21, %s11086_s2  }
 0xacf PF: > { %s16728_s28 = sld [smem:[#allocation40_spill]]  ;;  %p16729_p9 = scmp.ne.s32.totalorder %s16589_s30, 0 }
 0xad0   : > { %p16730_p12 = scmp.ge.s32.totalorder %s11057_s24, 2 }
 0xad2   : > { %p10408_p1 = pnand %p16730_p12, %p16729_p9 }
 0xad5   : > { %s9033_s3 = sand.u32 1, %s16728_s28  }
 0xad6   : > { %s9034_s27 = scalar_lea.sflag [#allocation5], %s9033_s3 }
 0xad7   : > { %11036 = dma.done.wait (!%p10408_p1), %s9034_s27, 4096  }
 0xad8   : > { %11038 = vsyncadd (!%p10408_p1), %s9034_s27, 4294963200  ;;  %s9043_s22 = scalar_lea.sflag [#allocation29], %s9033_s3 }
 0xad9   : > { %11040 = dma.done.wait (!%p10408_p1), %s9043_s22, 64  }
 0xada   : > { %11042 = vsyncadd (!%p10408_p1), %s9043_s22, 4294967232  ;;  %s16731_s21 = sld [smem:[#allocation41_spill]]  ;;  %s16732_s22 = sld [smem:[#allocation42_spill]] }
 0xadb   : > { %p40_p10 = scmp.ge.s32.totalorder %s11520_s0, 4   ;;  %s16733_s23 = smov %s11531_s25 }
 0xadc   : > { %s16734_s24 = smov %s11520_s0 }
 0xadd   :  { %42 = sbr.rel (!%p40_p10) target bundleno = 23 (0x17), region = 204 }
 0xae4   :  { %9048 = vsyncpa [#allocation4], 1 }
 0xae5   :  { %9050 = vsyncpa [#allocation4 + $0x1], 1 }
 0xae6   :  { %9051 = vsyncpa [#allocation7], 1 }
 0xae7   :  { %9052 = vsyncpa [#allocation10], 1 }
 0xae8   :  { %9053 = vsyncpa [#allocation13], 1 }
 0xae9   :  { %9054 = vsyncpa [#allocation16], 1 }
 0xaea   :  { %9055 = vsyncpa [#allocation19], 1 }
 0xaeb   :  { %9056 = vsyncpa [#allocation22], 1 }
 0xaec   :  { %9057 = vsyncpa [#allocation25], 1 }
 0xaed   :  { %9058 = vsyncpa [#allocation5], 1 }
 0xaee   :  { %9060 = vsyncpa [#allocation5 + $0x1], 1 }
 0xaef   :  { %9061 = vsyncpa [#allocation29], 1 }
 0xaf0   :  { %9063 = vsyncpa [#allocation29 + $0x1], 1 }

</bundles_post_ra>
